<compile_context>
chip_gen: v6e
topology: v6e:2x2x1
jax: 0.10.0
libtpu: 0.0.40
codegen_flags: <defaults>
</compile_context>

<pallas_src>
import functools
import math

import jax
import jax.numpy as jnp
from jax import lax
from jax.experimental import pallas as pl
from jax.experimental.pallas import tpu as pltpu

_FAR = 1.0e5        # sentinel 1-D coordinate for "no feature in this row"
_D2_CLAMP = 1.0e8   # squared distances >= this mean "no feature pixel found"
_MASKED_D2 = 3.0e10  # out-of-bounds candidate sentinel (> _FAR ** 2)


def _pow2_offsets(n):
    offs, k = [], 1
    while k < n:
        offs.append(k)
        k *= 2
    return offs


def _cmm_stats_kernel(pred_ref, gt_ref, stats_ref, *, H, W, P, threshold):
    """Per-grid-step statistics for P lane-packed images.

    Output tile (8, 128):
      row 0, lane 0: sum of binary-cross-entropy terms (all P images)
      row 0, lane 1: Hausdorff-DT sum  sum((pb - gt)^2 * (dt_pred^2 + dt_gt^2))
      row 1, lane p: dice intersection of image p
      row 2, lane p: dice total (sum(pb) + sum(gt)) of image p
      row 3, lane p: connected-region term of image p (1 - 1/C, or 1 if C == 0)
    """
    PW = P * W
    pred = pred_ref[0]                       # (H, PW) probabilities
    gt = gt_ref[0].astype(jnp.float32)       # (H, PW) in {0, 1}

    # ---- iota-derived index arrays (the only hoisted tiles) -----------------
    row_i = lax.broadcasted_iota(jnp.int32, (H, PW), 0)
    col_i = lax.broadcasted_iota(jnp.int32, (H, PW), 1)       # global lane index
    row_f = row_i.astype(jnp.float32)
    col_gf = col_i.astype(jnp.float32)
    img_f = jnp.floor(col_gf / float(W))                      # image id per lane
    col_f = col_gf - img_f * float(W)                         # per-image column

    # ---- binary cross entropy (torch clamps each log term at -100) ----------
    log_p = jnp.maximum(jnp.log(pred), -100.0)
    log_1mp = jnp.maximum(jnp.log(1.0 - pred), -100.0)
    bce_sum = jnp.sum(-(gt * log_p + (1.0 - gt) * log_1mp))

    # ---- thresholded prediction & per-image dice sums ------------------------
    pb = (pred > threshold).astype(jnp.float32)
    fg = pb > 0.5

    def per_image_sum(x):
        return [jnp.sum(jnp.where(img_f == float(p), x, 0.0)) for p in range(P)]

    pb_sums = per_image_sum(pb)
    gt_sums = per_image_sum(gt)
    inter_sums = per_image_sum(pb * gt)

    def scalar_map(vals):
        m = jnp.zeros((H, PW), jnp.float32)
        for p, v in enumerate(vals):
            m = jnp.where(img_f == float(p), v, m)
        return m

    pb_cnt_map = scalar_map(pb_sums)     # each pixel holds its image's fg count
    gt_cnt_map = scalar_map(gt_sums)
    n_pix = float(H * W)
    # per-pixel "this image has >= 1 feature pixel of mask i" maps
    present = (
        pb_cnt_map < n_pix,   # feature set 0: pb == 0  (pred background)
        pb_cnt_map > 0.0,     # feature set 1: pb == 1  (pred foreground)
        gt_cnt_map < n_pix,   # feature set 2: gt == 0
        gt_cnt_map > 0.0,     # feature set 3: gt == 1
    )

    # ---- exact squared Euclidean distance transform ---------------------------
    # d2(p) = min_{q in S} (rp-rq)^2 + (cp-cq)^2
    #       = min_{rq} [ (rp-rq)^2 + (1-D nearest-feature distance in row rq)^2 ]
    col_offsets = _pow2_offsets(W)

    def dt_col_pass(feat):
        """Per-row squared distance to the nearest feature pixel of `feat`."""
        last = jnp.where(feat, col_f, -_FAR)   # last feature column <= c
        nxt = jnp.where(feat, col_f, _FAR)     # next feature column >= c
        for o in col_offsets:
            last = jnp.maximum(
                last, jnp.where(col_f >= float(o),
                                pltpu.roll(last, shift=o, axis=1), -_FAR))
            nxt = jnp.minimum(
                nxt, jnp.where(col_f < float(W - o),
                               pltpu.roll(nxt, shift=PW - o, axis=1), _FAR))
        horiz = jnp.minimum(col_f - last, nxt - col_f)   # >= 0; ~1e5 if row empty
        return horiz * horiz

    g_list = (
        dt_col_pass(jnp.logical_not(fg)),   # seeds of edt(pred fg mask)^2
        dt_col_pass(fg),                    # seeds of edt(pred bg mask)^2
        dt_col_pass(gt <= 0.5),             # seeds of edt(gt fg mask)^2
        dt_col_pass(gt > 0.5),              # seeds of edt(gt bg mask)^2
    )

    def dist_bound(d2s):
        # max unresolved squared distance over images that actually have a
        # feature pixel for the given mask (empty masks would otherwise pin
        # the bound at the 1e10 sentinel and defeat the early exit).
        b = jnp.float32(0.0)
        for d2, pres in zip(d2s, present):
            b = jnp.maximum(b, jnp.max(jnp.where(pres, d2, 0.0)))
        return b

    K_DT = max(1, min(8, H - 1))      # unrolled row-pass steps per exit check

    def dt_cond(state):
        s, bound = state[0], state[1]
        sf = s.astype(jnp.float32)
        # candidates at step s are >= s^2, so once s^2 > bound nothing improves
        return jnp.logical_and(s < H, sf * sf <= bound)

    def dt_body(state):
        s0, _, d2s, gups, gdns = state
        d2s, gups, gdns = list(d2s), list(gups), list(gdns)
        for k in range(K_DT):
            sf = (s0 + k).astype(jnp.float32)
            s2 = sf * sf
            ok_up = row_f >= sf                # source row r - s is in bounds
            ok_dn = row_f < (float(H) - sf)    # source row r + s is in bounds
            for i in range(4):
                gups[i] = pltpu.roll(gups[i], shift=1, axis=0)      # g[r - s]
                gdns[i] = pltpu.roll(gdns[i], shift=H - 1, axis=0)  # g[r + s]
                cand = jnp.minimum(jnp.where(ok_up, gups[i], _MASKED_D2),
                                   jnp.where(ok_dn, gdns[i], _MASKED_D2))
                d2s[i] = jnp.minimum(d2s[i], cand + s2)
        return (s0 + K_DT, dist_bound(d2s), tuple(d2s), tuple(gups), tuple(gdns))

    dt_init = (jnp.int32(1), dist_bound(g_list), g_list, g_list, g_list)
    _, _, d2s, _, _ = lax.while_loop(dt_cond, dt_body, dt_init)

    def clamp_d2(d2):
        # "no feature pixel found" sentinel -> 0 (see module-level TODO)
        return jnp.where(d2 >= _D2_CLAMP, 0.0, d2)

    # field = edt(fg) + edt(bg); exactly one term is nonzero per pixel, so
    # field**2 == edt(fg)**2 + edt(bg)**2 exactly.  The field is zeroed for
    # images with no foreground, matching the reference's `if fg_mask.any()`.
    pred_field2 = jnp.where(present[1], clamp_d2(d2s[0]) + clamp_d2(d2s[1]), 0.0)
    gt_field2 = jnp.where(present[3], clamp_d2(d2s[2]) + clamp_d2(d2s[3]), 0.0)
    perr = (pb - gt) * (pb - gt)
    hd_sum = jnp.sum(perr * (pred_field2 + gt_field2))

    # ---- connected-region term (8-connected components) -----------------------
    BIGL = H * PW + 10
    idx = row_i * PW + col_i                      # unique int32 pixel index
    labels0 = jnp.where(fg, idx, BIGL)
    fg_f = pb                                     # float {0,1} run flags
    row_offsets = _pow2_offsets(H)

    def local_sweep(lab):
        # separable 3x3 min == min over the 8-neighbourhood plus self
        up = jnp.where(row_f >= 1.0, pltpu.roll(lab, shift=1, axis=0), BIGL)
        dn = jnp.where(row_f < float(H - 1),
                       pltpu.roll(lab, shift=H - 1, axis=0), BIGL)
        m = jnp.minimum(lab, jnp.minimum(up, dn))
        lt = jnp.where(col_f >= 1.0, pltpu.roll(m, shift=1, axis=1), BIGL)
        rt = jnp.where(col_f < float(W - 1),
                       pltpu.roll(m, shift=PW - 1, axis=1), BIGL)
        m = jnp.minimum(m, jnp.minimum(lt, rt))
        return jnp.where(fg, m, BIGL)

    def run_scan_rows(lab):
        # segmented doubling min-scan within contiguous fg runs along each row;
        # the col_f masks also prevent cross-image contamination on lane rolls.
        mL, fL = lab, fg_f
        mR, fR = lab, fg_f
        for o in col_offsets:
            okL = col_f >= float(o)
            okR = col_f < float(W - o)
            mL = jnp.minimum(mL, jnp.where((fL > 0.0) & okL,
                                           pltpu.roll(mL, shift=o, axis=1), BIGL))
            fL = fL * jnp.where(okL, pltpu.roll(fL, shift=o, axis=1), 0.0)
            mR = jnp.minimum(mR, jnp.where((fR > 0.0) & okR,
                                           pltpu.roll(mR, shift=PW - o, axis=1), BIGL))
            fR = fR * jnp.where(okR, pltpu.roll(fR, shift=PW - o, axis=1), 0.0)
        return jnp.where(fg, jnp.minimum(mL, mR), BIGL)

    def run_scan_cols(lab):
        mU, fU = lab, fg_f
        mD, fD = lab, fg_f
        for o in row_offsets:
            okU = row_f >= float(o)
            okD = row_f < float(H - o)
            mU = jnp.minimum(mU, jnp.where((fU > 0.0) & okU,
                                           pltpu.roll(mU, shift=o, axis=0), BIGL))
            fU = fU * jnp.where(okU, pltpu.roll(fU, shift=o, axis=0), 0.0)
            mD = jnp.minimum(mD, jnp.where((fD > 0.0) & okD,
                                           pltpu.roll(mD, shift=H - o, axis=0), BIGL))
            fD = fD * jnp.where(okD, pltpu.roll(fD, shift=H - o, axis=0), 0.0)
        return jnp.where(fg, jnp.minimum(mU, mD), BIGL)

    MAX_CC_ITERS = H * W     # safety bound; converges in O(#bends) in practice

    def cc_cond(state):
        it, _, changed = state
        return jnp.logical_and(it < MAX_CC_ITERS, changed > 0)

    def cc_body(state):
        it, lab, _ = state
        new = run_scan_cols(run_scan_rows(local_sweep(lab)))
        changed = jnp.max(lab - new)          # labels only ever decrease
        return it + 1, new, changed

    _, labels, _ = lax.while_loop(
        cc_cond, cc_body, (jnp.int32(0), labels0, jnp.int32(1)))

    # one pixel per component retains its own (minimal) seed label
    seeds = fg & (labels == idx)
    count_sums = per_image_sum(jnp.where(seeds, 1.0, 0.0))

    # ---- pack results into the lane-dense (8, 128) output tile ----------------
    r8 = lax.broadcasted_iota(jnp.int32, (8, 128), 0)
    c128 = lax.broadcasted_iota(jnp.int32, (8, 128), 1)
    tile = jnp.zeros((8, 128), jnp.float32)
    tile = jnp.where((r8 == 0) & (c128 == 0), bce_sum, tile)
    tile = jnp.where((r8 == 0) & (c128 == 1), hd_sum, tile)
    for p in range(P):
        total_p = pb_sums[p] + gt_sums[p]
        cr_p = jnp.where(count_sums[p] > 0.0, 1.0 - 1.0 / count_sums[p], 1.0)
        tile = jnp.where((r8 == 1) & (c128 == p), inter_sums[p], tile)
        tile = jnp.where((r8 == 2) & (c128 == p), total_p, tile)
        tile = jnp.where((r8 == 3) & (c128 == p), cr_p, tile)
    stats_ref[0] = tile


def cmm_loss(pred, gt, *, threshold=0.5, weight_ce=1.0, weight_dice=1.0,
             weight_hd=1.0, weight_cr=1.0):
    """JAX/Pallas equivalent of CMMLoss.forward (NCHW inputs, C == 1)."""
    assert pred.ndim == 4 and pred.shape[1] == 1, "expects NCHW with C == 1"
    B, _, H, W = pred.shape
    # the 1e8 "no feature" sentinel must stay above any legitimate distance^2
    assert (H - 1) ** 2 + (W - 1) ** 2 < _D2_CLAMP, "image too large for sentinel"

    p = pred[:, 0].astype(jnp.float32)   # (B, H, W)
    g = gt[:, 0].astype(jnp.float32)

    # lane packing: P images share one (H, P*W) tile per grid step
    P = max(1, 128 // W) if W <= 128 else 1
    nblk = -(-B // P)
    Bp = nblk * P
    if Bp != B:
        # pad with pred=0 / gt=0 images: they contribute exactly 0 to the
        # global bce/hd sums and their per-image stats are sliced away below.
        padn = Bp - B
        p = jnp.concatenate([p, jnp.zeros((padn, H, W), jnp.float32)], axis=0)
        g = jnp.concatenate([g, jnp.zeros((padn, H, W), jnp.float32)], axis=0)
    PW = P * W
    p2 = p.reshape(nblk, P, H, W).transpose(0, 2, 1, 3).reshape(nblk, H, PW)
    g2 = g.reshape(nblk, P, H, W).transpose(0, 2, 1, 3).reshape(nblk, H, PW)

    kernel = functools.partial(_cmm_stats_kernel, H=H, W=W, P=P,
                               threshold=threshold)

    # ~48 live (H, PW) f32 intermediates worst case (fused DT carries + maps)
    # plus the double-buffered inputs; clamp to [32 MiB, 64 MiB] so v7x (64 MiB
    # physical VMEM) never over-requests.
    vmem_limit = int(min(64 * 1024 * 1024,
                         max(32 * 1024 * 1024, 48 * H * PW * 4)))

    cost = pl.CostEstimate(
        flops=int(nblk * H * PW * (60 * H + 40 * math.log2(max(W, 2)) + 400)),
        transcendentals=int(nblk * H * PW * 2),
        bytes_accessed=int(2 * Bp * H * W * 4 + nblk * 8 * 128 * 4),
    )

    stats = pl.pallas_call(
        kernel,
        out_shape=jax.ShapeDtypeStruct((nblk, 8, 128), jnp.float32),
        grid_spec=pltpu.PrefetchScalarGridSpec(
            num_scalar_prefetch=0,
            grid=(nblk,),
            in_specs=[
                pl.BlockSpec((1, H, PW), lambda b: (b, 0, 0)),
                pl.BlockSpec((1, H, PW), lambda b: (b, 0, 0)),
            ],
            out_specs=pl.BlockSpec((1, 8, 128), lambda b: (b, 0, 0)),
        ),
        compiler_params=pltpu.CompilerParams(
            # blocks of P images are independent -> shard across v7x's two
            # TensorCores; harmless on single-TC v5e/v6e.
            dimension_semantics=("parallel",),
            vmem_limit_bytes=vmem_limit,
        ),
        cost_estimate=cost,
    )(p2, g2)

    bce_sum = jnp.sum(stats[:, 0, 0])
    hd_sum = jnp.sum(stats[:, 0, 1])
    inter = stats[:, 1, :P].reshape(-1)[:B]
    total = stats[:, 2, :P].reshape(-1)[:B]
    cr_term = stats[:, 3, :P].reshape(-1)[:B]

    n_el = B * H * W                      # total element count (C == 1)
    ce_loss = bce_sum / n_el
    dice_loss = jnp.mean(1.0 - (2.0 * inter + 1.0) / (total + 1.0))
    hd_loss = hd_sum / n_el
    cr_loss = jnp.mean(cr_term)

    return (weight_ce * ce_loss + weight_dice * dice_loss
            + weight_hd * hd_loss + weight_cr * cr_loss)


if __name__ == "__main__":
    key = jax.random.PRNGKey(0)
    k1, k2 = jax.random.split(key)
    B, C, H, W = 2, 1, 16, 16
    pred = jax.nn.sigmoid(jax.random.normal(k1, (B, C, H, W), jnp.float32))
    gt = (jax.random.uniform(k2, (B, C, H, W)) > 0.5).astype(jnp.float32)

    loss = cmm_loss(pred, gt)
    jax.block_until_ready(loss)
    print("KERNEL_OK")
</pallas_src>

<mosaic_0001>
module attributes {stable_mosaic.version = 11 : i64} {
  func.func @_cmm_stats_kernel(%arg0: i32, %arg1: memref<1x16x128xf32, #tpu.memory_space<vmem>>, %arg2: memref<1x16x128xf32, #tpu.memory_space<vmem>>, %arg3: memref<1x8x128xf32, #tpu.memory_space<vmem>>) attributes {dimension_semantics = [#tpu.dimension_semantics<parallel>], iteration_bounds = array<i64: 1>, scalar_prefetch = 0 : i64, scratch_operands = 0 : i64, tpu.core_type = #tpu.core_type<tc>, window_params = [{transform_indices = @transform_0, window_bounds = array<i64: 1, 16, 128>}, {transform_indices = @transform_1, window_bounds = array<i64: 1, 16, 128>}, {transform_indices = @transform_2, window_bounds = array<i64: 1, 8, 128>}]} {
    %c0 = arith.constant 0 : index
    %c0_0 = arith.constant 0 : index
    %c0_1 = arith.constant 0 : index
    %0 = vector.load %arg1[%c0, %c0_0, %c0_1] : memref<1x16x128xf32, #tpu.memory_space<vmem>>, vector<1x16x128xf32>
    %1 = vector.shape_cast %0 : vector<1x16x128xf32> to vector<16x128xf32>
    %c0_2 = arith.constant 0 : index
    %c0_3 = arith.constant 0 : index
    %c0_4 = arith.constant 0 : index
    %2 = vector.load %arg2[%c0_2, %c0_3, %c0_4] : memref<1x16x128xf32, #tpu.memory_space<vmem>>, vector<1x16x128xf32>
    %3 = vector.shape_cast %2 : vector<1x16x128xf32> to vector<16x128xf32>
    %4 = tpu.iota {dimensions = array<i32: 0>} : vector<16x128xi32>
    %5 = tpu.iota {dimensions = array<i32: 1>} : vector<16x128xi32>
    %6 = arith.sitofp %4 : vector<16x128xi32> to vector<16x128xf32>
    %7 = arith.sitofp %5 : vector<16x128xi32> to vector<16x128xf32>
    %cst = arith.constant 1.600000e+01 : f32
    %8 = vector.broadcast %cst : f32 to vector<16x128xf32>
    %9 = arith.divf %7, %8 : vector<16x128xf32>
    %10 = math.floor %9 : vector<16x128xf32>
    %cst_5 = arith.constant 1.600000e+01 : f32
    %11 = vector.broadcast %cst_5 : f32 to vector<16x128xf32>
    %12 = arith.mulf %10, %11 : vector<16x128xf32>
    %13 = arith.subf %7, %12 : vector<16x128xf32>
    %14 = math.log %1 : vector<16x128xf32>
    %cst_6 = arith.constant -1.000000e+02 : f32
    %15 = vector.broadcast %cst_6 : f32 to vector<16x128xf32>
    %16 = arith.maximumf %14, %15 : vector<16x128xf32>
    %cst_7 = arith.constant 1.000000e+00 : f32
    %17 = vector.broadcast %cst_7 : f32 to vector<16x128xf32>
    %18 = arith.subf %17, %1 : vector<16x128xf32>
    %19 = math.log %18 : vector<16x128xf32>
    %cst_8 = arith.constant -1.000000e+02 : f32
    %20 = vector.broadcast %cst_8 : f32 to vector<16x128xf32>
    %21 = arith.maximumf %19, %20 : vector<16x128xf32>
    %22 = arith.mulf %3, %16 : vector<16x128xf32>
    %cst_9 = arith.constant 1.000000e+00 : f32
    %23 = vector.broadcast %cst_9 : f32 to vector<16x128xf32>
    %24 = arith.subf %23, %3 : vector<16x128xf32>
    %25 = arith.mulf %24, %21 : vector<16x128xf32>
    %26 = arith.addf %22, %25 : vector<16x128xf32>
    %cst_10 = arith.constant 0.000000e+00 : f32
    %27 = vector.broadcast %cst_10 : f32 to vector<16x128xf32>
    %28 = arith.subf %27, %26 : vector<16x128xf32>
    %29 = vector.shape_cast %28 : vector<16x128xf32> to vector<1x16x128xf32>
    %cst_11 = arith.constant dense<0.000000e+00> : vector<1xf32>
    %30 = vector.multi_reduction <add>, %29, %cst_11 [1, 2] : vector<1x16x128xf32> to vector<1xf32>
    %31 = vector.shape_cast %30 : vector<1xf32> to vector<1x1x1xf32>
    %32 = vector.extract %31[0, 0, 0] : f32 from vector<1x1x1xf32>
    %cst_12 = arith.constant 5.000000e-01 : f32
    %33 = vector.broadcast %cst_12 : f32 to vector<16x128xf32>
    %34 = arith.cmpf ogt, %1, %33 : vector<16x128xf32>
    %35 = arith.extui %34 : vector<16x128xi1> to vector<16x128xi32>
    %36 = arith.sitofp %35 : vector<16x128xi32> to vector<16x128xf32>
    %cst_13 = arith.constant 5.000000e-01 : f32
    %37 = vector.broadcast %cst_13 : f32 to vector<16x128xf32>
    %38 = arith.cmpf ogt, %36, %37 : vector<16x128xf32>
    %cst_14 = arith.constant 0.000000e+00 : f32
    %39 = vector.broadcast %cst_14 : f32 to vector<16x128xf32>
    %40 = arith.cmpf oeq, %10, %39 : vector<16x128xf32>
    %cst_15 = arith.constant 0.000000e+00 : f32
    %41 = vector.broadcast %cst_15 : f32 to vector<16x128xf32>
    %42 = arith.select %40, %36, %41 : vector<16x128xi1>, vector<16x128xf32>
    %43 = vector.shape_cast %42 : vector<16x128xf32> to vector<1x16x128xf32>
    %cst_16 = arith.constant dense<0.000000e+00> : vector<1xf32>
    %44 = vector.multi_reduction <add>, %43, %cst_16 [1, 2] : vector<1x16x128xf32> to vector<1xf32>
    %45 = vector.shape_cast %44 : vector<1xf32> to vector<1x1x1xf32>
    %46 = vector.extract %45[0, 0, 0] : f32 from vector<1x1x1xf32>
    %cst_17 = arith.constant 1.000000e+00 : f32
    %47 = vector.broadcast %cst_17 : f32 to vector<16x128xf32>
    %48 = arith.cmpf oeq, %10, %47 : vector<16x128xf32>
    %cst_18 = arith.constant 0.000000e+00 : f32
    %49 = vector.broadcast %cst_18 : f32 to vector<16x128xf32>
    %50 = arith.select %48, %36, %49 : vector<16x128xi1>, vector<16x128xf32>
    %51 = vector.shape_cast %50 : vector<16x128xf32> to vector<1x16x128xf32>
    %cst_19 = arith.constant dense<0.000000e+00> : vector<1xf32>
    %52 = vector.multi_reduction <add>, %51, %cst_19 [1, 2] : vector<1x16x128xf32> to vector<1xf32>
    %53 = vector.shape_cast %52 : vector<1xf32> to vector<1x1x1xf32>
    %54 = vector.extract %53[0, 0, 0] : f32 from vector<1x1x1xf32>
    %cst_20 = arith.constant 2.000000e+00 : f32
    %55 = vector.broadcast %cst_20 : f32 to vector<16x128xf32>
    %56 = arith.cmpf oeq, %10, %55 : vector<16x128xf32>
    %cst_21 = arith.constant 0.000000e+00 : f32
    %57 = vector.broadcast %cst_21 : f32 to vector<16x128xf32>
    %58 = arith.select %56, %36, %57 : vector<16x128xi1>, vector<16x128xf32>
    %59 = vector.shape_cast %58 : vector<16x128xf32> to vector<1x16x128xf32>
    %cst_22 = arith.constant dense<0.000000e+00> : vector<1xf32>
    %60 = vector.multi_reduction <add>, %59, %cst_22 [1, 2] : vector<1x16x128xf32> to vector<1xf32>
    %61 = vector.shape_cast %60 : vector<1xf32> to vector<1x1x1xf32>
    %62 = vector.extract %61[0, 0, 0] : f32 from vector<1x1x1xf32>
    %cst_23 = arith.constant 3.000000e+00 : f32
    %63 = vector.broadcast %cst_23 : f32 to vector<16x128xf32>
    %64 = arith.cmpf oeq, %10, %63 : vector<16x128xf32>
    %cst_24 = arith.constant 0.000000e+00 : f32
    %65 = vector.broadcast %cst_24 : f32 to vector<16x128xf32>
    %66 = arith.select %64, %36, %65 : vector<16x128xi1>, vector<16x128xf32>
    %67 = vector.shape_cast %66 : vector<16x128xf32> to vector<1x16x128xf32>
    %cst_25 = arith.constant dense<0.000000e+00> : vector<1xf32>
    %68 = vector.multi_reduction <add>, %67, %cst_25 [1, 2] : vector<1x16x128xf32> to vector<1xf32>
    %69 = vector.shape_cast %68 : vector<1xf32> to vector<1x1x1xf32>
    %70 = vector.extract %69[0, 0, 0] : f32 from vector<1x1x1xf32>
    %cst_26 = arith.constant 4.000000e+00 : f32
    %71 = vector.broadcast %cst_26 : f32 to vector<16x128xf32>
    %72 = arith.cmpf oeq, %10, %71 : vector<16x128xf32>
    %cst_27 = arith.constant 0.000000e+00 : f32
    %73 = vector.broadcast %cst_27 : f32 to vector<16x128xf32>
    %74 = arith.select %72, %36, %73 : vector<16x128xi1>, vector<16x128xf32>
    %75 = vector.shape_cast %74 : vector<16x128xf32> to vector<1x16x128xf32>
    %cst_28 = arith.constant dense<0.000000e+00> : vector<1xf32>
    %76 = vector.multi_reduction <add>, %75, %cst_28 [1, 2] : vector<1x16x128xf32> to vector<1xf32>
    %77 = vector.shape_cast %76 : vector<1xf32> to vector<1x1x1xf32>
    %78 = vector.extract %77[0, 0, 0] : f32 from vector<1x1x1xf32>
    %cst_29 = arith.constant 5.000000e+00 : f32
    %79 = vector.broadcast %cst_29 : f32 to vector<16x128xf32>
    %80 = arith.cmpf oeq, %10, %79 : vector<16x128xf32>
    %cst_30 = arith.constant 0.000000e+00 : f32
    %81 = vector.broadcast %cst_30 : f32 to vector<16x128xf32>
    %82 = arith.select %80, %36, %81 : vector<16x128xi1>, vector<16x128xf32>
    %83 = vector.shape_cast %82 : vector<16x128xf32> to vector<1x16x128xf32>
    %cst_31 = arith.constant dense<0.000000e+00> : vector<1xf32>
    %84 = vector.multi_reduction <add>, %83, %cst_31 [1, 2] : vector<1x16x128xf32> to vector<1xf32>
    %85 = vector.shape_cast %84 : vector<1xf32> to vector<1x1x1xf32>
    %86 = vector.extract %85[0, 0, 0] : f32 from vector<1x1x1xf32>
    %cst_32 = arith.constant 6.000000e+00 : f32
    %87 = vector.broadcast %cst_32 : f32 to vector<16x128xf32>
    %88 = arith.cmpf oeq, %10, %87 : vector<16x128xf32>
    %cst_33 = arith.constant 0.000000e+00 : f32
    %89 = vector.broadcast %cst_33 : f32 to vector<16x128xf32>
    %90 = arith.select %88, %36, %89 : vector<16x128xi1>, vector<16x128xf32>
    %91 = vector.shape_cast %90 : vector<16x128xf32> to vector<1x16x128xf32>
    %cst_34 = arith.constant dense<0.000000e+00> : vector<1xf32>
    %92 = vector.multi_reduction <add>, %91, %cst_34 [1, 2] : vector<1x16x128xf32> to vector<1xf32>
    %93 = vector.shape_cast %92 : vector<1xf32> to vector<1x1x1xf32>
    %94 = vector.extract %93[0, 0, 0] : f32 from vector<1x1x1xf32>
    %cst_35 = arith.constant 7.000000e+00 : f32
    %95 = vector.broadcast %cst_35 : f32 to vector<16x128xf32>
    %96 = arith.cmpf oeq, %10, %95 : vector<16x128xf32>
    %cst_36 = arith.constant 0.000000e+00 : f32
    %97 = vector.broadcast %cst_36 : f32 to vector<16x128xf32>
    %98 = arith.select %96, %36, %97 : vector<16x128xi1>, vector<16x128xf32>
    %99 = vector.shape_cast %98 : vector<16x128xf32> to vector<1x16x128xf32>
    %cst_37 = arith.constant dense<0.000000e+00> : vector<1xf32>
    %100 = vector.multi_reduction <add>, %99, %cst_37 [1, 2] : vector<1x16x128xf32> to vector<1xf32>
    %101 = vector.shape_cast %100 : vector<1xf32> to vector<1x1x1xf32>
    %102 = vector.extract %101[0, 0, 0] : f32 from vector<1x1x1xf32>
    %cst_38 = arith.constant 0.000000e+00 : f32
    %103 = vector.broadcast %cst_38 : f32 to vector<16x128xf32>
    %104 = arith.cmpf oeq, %10, %103 : vector<16x128xf32>
    %cst_39 = arith.constant 0.000000e+00 : f32
    %105 = vector.broadcast %cst_39 : f32 to vector<16x128xf32>
    %106 = arith.select %104, %3, %105 : vector<16x128xi1>, vector<16x128xf32>
    %107 = vector.shape_cast %106 : vector<16x128xf32> to vector<1x16x128xf32>
    %cst_40 = arith.constant dense<0.000000e+00> : vector<1xf32>
    %108 = vector.multi_reduction <add>, %107, %cst_40 [1, 2] : vector<1x16x128xf32> to vector<1xf32>
    %109 = vector.shape_cast %108 : vector<1xf32> to vector<1x1x1xf32>
    %110 = vector.extract %109[0, 0, 0] : f32 from vector<1x1x1xf32>
    %cst_41 = arith.constant 1.000000e+00 : f32
    %111 = vector.broadcast %cst_41 : f32 to vector<16x128xf32>
    %112 = arith.cmpf oeq, %10, %111 : vector<16x128xf32>
    %cst_42 = arith.constant 0.000000e+00 : f32
    %113 = vector.broadcast %cst_42 : f32 to vector<16x128xf32>
    %114 = arith.select %112, %3, %113 : vector<16x128xi1>, vector<16x128xf32>
    %115 = vector.shape_cast %114 : vector<16x128xf32> to vector<1x16x128xf32>
    %cst_43 = arith.constant dense<0.000000e+00> : vector<1xf32>
    %116 = vector.multi_reduction <add>, %115, %cst_43 [1, 2] : vector<1x16x128xf32> to vector<1xf32>
    %117 = vector.shape_cast %116 : vector<1xf32> to vector<1x1x1xf32>
    %118 = vector.extract %117[0, 0, 0] : f32 from vector<1x1x1xf32>
    %cst_44 = arith.constant 2.000000e+00 : f32
    %119 = vector.broadcast %cst_44 : f32 to vector<16x128xf32>
    %120 = arith.cmpf oeq, %10, %119 : vector<16x128xf32>
    %cst_45 = arith.constant 0.000000e+00 : f32
    %121 = vector.broadcast %cst_45 : f32 to vector<16x128xf32>
    %122 = arith.select %120, %3, %121 : vector<16x128xi1>, vector<16x128xf32>
    %123 = vector.shape_cast %122 : vector<16x128xf32> to vector<1x16x128xf32>
    %cst_46 = arith.constant dense<0.000000e+00> : vector<1xf32>
    %124 = vector.multi_reduction <add>, %123, %cst_46 [1, 2] : vector<1x16x128xf32> to vector<1xf32>
    %125 = vector.shape_cast %124 : vector<1xf32> to vector<1x1x1xf32>
    %126 = vector.extract %125[0, 0, 0] : f32 from vector<1x1x1xf32>
    %cst_47 = arith.constant 3.000000e+00 : f32
    %127 = vector.broadcast %cst_47 : f32 to vector<16x128xf32>
    %128 = arith.cmpf oeq, %10, %127 : vector<16x128xf32>
    %cst_48 = arith.constant 0.000000e+00 : f32
    %129 = vector.broadcast %cst_48 : f32 to vector<16x128xf32>
    %130 = arith.select %128, %3, %129 : vector<16x128xi1>, vector<16x128xf32>
    %131 = vector.shape_cast %130 : vector<16x128xf32> to vector<1x16x128xf32>
    %cst_49 = arith.constant dense<0.000000e+00> : vector<1xf32>
    %132 = vector.multi_reduction <add>, %131, %cst_49 [1, 2] : vector<1x16x128xf32> to vector<1xf32>
    %133 = vector.shape_cast %132 : vector<1xf32> to vector<1x1x1xf32>
    %134 = vector.extract %133[0, 0, 0] : f32 from vector<1x1x1xf32>
    %cst_50 = arith.constant 4.000000e+00 : f32
    %135 = vector.broadcast %cst_50 : f32 to vector<16x128xf32>
    %136 = arith.cmpf oeq, %10, %135 : vector<16x128xf32>
    %cst_51 = arith.constant 0.000000e+00 : f32
    %137 = vector.broadcast %cst_51 : f32 to vector<16x128xf32>
    %138 = arith.select %136, %3, %137 : vector<16x128xi1>, vector<16x128xf32>
    %139 = vector.shape_cast %138 : vector<16x128xf32> to vector<1x16x128xf32>
    %cst_52 = arith.constant dense<0.000000e+00> : vector<1xf32>
    %140 = vector.multi_reduction <add>, %139, %cst_52 [1, 2] : vector<1x16x128xf32> to vector<1xf32>
    %141 = vector.shape_cast %140 : vector<1xf32> to vector<1x1x1xf32>
    %142 = vector.extract %141[0, 0, 0] : f32 from vector<1x1x1xf32>
    %cst_53 = arith.constant 5.000000e+00 : f32
    %143 = vector.broadcast %cst_53 : f32 to vector<16x128xf32>
    %144 = arith.cmpf oeq, %10, %143 : vector<16x128xf32>
    %cst_54 = arith.constant 0.000000e+00 : f32
    %145 = vector.broadcast %cst_54 : f32 to vector<16x128xf32>
    %146 = arith.select %144, %3, %145 : vector<16x128xi1>, vector<16x128xf32>
    %147 = vector.shape_cast %146 : vector<16x128xf32> to vector<1x16x128xf32>
    %cst_55 = arith.constant dense<0.000000e+00> : vector<1xf32>
    %148 = vector.multi_reduction <add>, %147, %cst_55 [1, 2] : vector<1x16x128xf32> to vector<1xf32>
    %149 = vector.shape_cast %148 : vector<1xf32> to vector<1x1x1xf32>
    %150 = vector.extract %149[0, 0, 0] : f32 from vector<1x1x1xf32>
    %cst_56 = arith.constant 6.000000e+00 : f32
    %151 = vector.broadcast %cst_56 : f32 to vector<16x128xf32>
    %152 = arith.cmpf oeq, %10, %151 : vector<16x128xf32>
    %cst_57 = arith.constant 0.000000e+00 : f32
    %153 = vector.broadcast %cst_57 : f32 to vector<16x128xf32>
    %154 = arith.select %152, %3, %153 : vector<16x128xi1>, vector<16x128xf32>
    %155 = vector.shape_cast %154 : vector<16x128xf32> to vector<1x16x128xf32>
    %cst_58 = arith.constant dense<0.000000e+00> : vector<1xf32>
    %156 = vector.multi_reduction <add>, %155, %cst_58 [1, 2] : vector<1x16x128xf32> to vector<1xf32>
    %157 = vector.shape_cast %156 : vector<1xf32> to vector<1x1x1xf32>
    %158 = vector.extract %157[0, 0, 0] : f32 from vector<1x1x1xf32>
    %cst_59 = arith.constant 7.000000e+00 : f32
    %159 = vector.broadcast %cst_59 : f32 to vector<16x128xf32>
    %160 = arith.cmpf oeq, %10, %159 : vector<16x128xf32>
    %cst_60 = arith.constant 0.000000e+00 : f32
    %161 = vector.broadcast %cst_60 : f32 to vector<16x128xf32>
    %162 = arith.select %160, %3, %161 : vector<16x128xi1>, vector<16x128xf32>
    %163 = vector.shape_cast %162 : vector<16x128xf32> to vector<1x16x128xf32>
    %cst_61 = arith.constant dense<0.000000e+00> : vector<1xf32>
    %164 = vector.multi_reduction <add>, %163, %cst_61 [1, 2] : vector<1x16x128xf32> to vector<1xf32>
    %165 = vector.shape_cast %164 : vector<1xf32> to vector<1x1x1xf32>
    %166 = vector.extract %165[0, 0, 0] : f32 from vector<1x1x1xf32>
    %167 = arith.mulf %36, %3 : vector<16x128xf32>
    %cst_62 = arith.constant 0.000000e+00 : f32
    %168 = vector.broadcast %cst_62 : f32 to vector<16x128xf32>
    %169 = arith.cmpf oeq, %10, %168 : vector<16x128xf32>
    %cst_63 = arith.constant 0.000000e+00 : f32
    %170 = vector.broadcast %cst_63 : f32 to vector<16x128xf32>
    %171 = arith.select %169, %167, %170 : vector<16x128xi1>, vector<16x128xf32>
    %172 = vector.shape_cast %171 : vector<16x128xf32> to vector<1x16x128xf32>
    %cst_64 = arith.constant dense<0.000000e+00> : vector<1xf32>
    %173 = vector.multi_reduction <add>, %172, %cst_64 [1, 2] : vector<1x16x128xf32> to vector<1xf32>
    %174 = vector.shape_cast %173 : vector<1xf32> to vector<1x1x1xf32>
    %175 = vector.extract %174[0, 0, 0] : f32 from vector<1x1x1xf32>
    %cst_65 = arith.constant 1.000000e+00 : f32
    %176 = vector.broadcast %cst_65 : f32 to vector<16x128xf32>
    %177 = arith.cmpf oeq, %10, %176 : vector<16x128xf32>
    %cst_66 = arith.constant 0.000000e+00 : f32
    %178 = vector.broadcast %cst_66 : f32 to vector<16x128xf32>
    %179 = arith.select %177, %167, %178 : vector<16x128xi1>, vector<16x128xf32>
    %180 = vector.shape_cast %179 : vector<16x128xf32> to vector<1x16x128xf32>
    %cst_67 = arith.constant dense<0.000000e+00> : vector<1xf32>
    %181 = vector.multi_reduction <add>, %180, %cst_67 [1, 2] : vector<1x16x128xf32> to vector<1xf32>
    %182 = vector.shape_cast %181 : vector<1xf32> to vector<1x1x1xf32>
    %183 = vector.extract %182[0, 0, 0] : f32 from vector<1x1x1xf32>
    %cst_68 = arith.constant 2.000000e+00 : f32
    %184 = vector.broadcast %cst_68 : f32 to vector<16x128xf32>
    %185 = arith.cmpf oeq, %10, %184 : vector<16x128xf32>
    %cst_69 = arith.constant 0.000000e+00 : f32
    %186 = vector.broadcast %cst_69 : f32 to vector<16x128xf32>
    %187 = arith.select %185, %167, %186 : vector<16x128xi1>, vector<16x128xf32>
    %188 = vector.shape_cast %187 : vector<16x128xf32> to vector<1x16x128xf32>
    %cst_70 = arith.constant dense<0.000000e+00> : vector<1xf32>
    %189 = vector.multi_reduction <add>, %188, %cst_70 [1, 2] : vector<1x16x128xf32> to vector<1xf32>
    %190 = vector.shape_cast %189 : vector<1xf32> to vector<1x1x1xf32>
    %191 = vector.extract %190[0, 0, 0] : f32 from vector<1x1x1xf32>
    %cst_71 = arith.constant 3.000000e+00 : f32
    %192 = vector.broadcast %cst_71 : f32 to vector<16x128xf32>
    %193 = arith.cmpf oeq, %10, %192 : vector<16x128xf32>
    %cst_72 = arith.constant 0.000000e+00 : f32
    %194 = vector.broadcast %cst_72 : f32 to vector<16x128xf32>
    %195 = arith.select %193, %167, %194 : vector<16x128xi1>, vector<16x128xf32>
    %196 = vector.shape_cast %195 : vector<16x128xf32> to vector<1x16x128xf32>
    %cst_73 = arith.constant dense<0.000000e+00> : vector<1xf32>
    %197 = vector.multi_reduction <add>, %196, %cst_73 [1, 2] : vector<1x16x128xf32> to vector<1xf32>
    %198 = vector.shape_cast %197 : vector<1xf32> to vector<1x1x1xf32>
    %199 = vector.extract %198[0, 0, 0] : f32 from vector<1x1x1xf32>
    %cst_74 = arith.constant 4.000000e+00 : f32
    %200 = vector.broadcast %cst_74 : f32 to vector<16x128xf32>
    %201 = arith.cmpf oeq, %10, %200 : vector<16x128xf32>
    %cst_75 = arith.constant 0.000000e+00 : f32
    %202 = vector.broadcast %cst_75 : f32 to vector<16x128xf32>
    %203 = arith.select %201, %167, %202 : vector<16x128xi1>, vector<16x128xf32>
    %204 = vector.shape_cast %203 : vector<16x128xf32> to vector<1x16x128xf32>
    %cst_76 = arith.constant dense<0.000000e+00> : vector<1xf32>
    %205 = vector.multi_reduction <add>, %204, %cst_76 [1, 2] : vector<1x16x128xf32> to vector<1xf32>
    %206 = vector.shape_cast %205 : vector<1xf32> to vector<1x1x1xf32>
    %207 = vector.extract %206[0, 0, 0] : f32 from vector<1x1x1xf32>
    %cst_77 = arith.constant 5.000000e+00 : f32
    %208 = vector.broadcast %cst_77 : f32 to vector<16x128xf32>
    %209 = arith.cmpf oeq, %10, %208 : vector<16x128xf32>
    %cst_78 = arith.constant 0.000000e+00 : f32
    %210 = vector.broadcast %cst_78 : f32 to vector<16x128xf32>
    %211 = arith.select %209, %167, %210 : vector<16x128xi1>, vector<16x128xf32>
    %212 = vector.shape_cast %211 : vector<16x128xf32> to vector<1x16x128xf32>
    %cst_79 = arith.constant dense<0.000000e+00> : vector<1xf32>
    %213 = vector.multi_reduction <add>, %212, %cst_79 [1, 2] : vector<1x16x128xf32> to vector<1xf32>
    %214 = vector.shape_cast %213 : vector<1xf32> to vector<1x1x1xf32>
    %215 = vector.extract %214[0, 0, 0] : f32 from vector<1x1x1xf32>
    %cst_80 = arith.constant 6.000000e+00 : f32
    %216 = vector.broadcast %cst_80 : f32 to vector<16x128xf32>
    %217 = arith.cmpf oeq, %10, %216 : vector<16x128xf32>
    %cst_81 = arith.constant 0.000000e+00 : f32
    %218 = vector.broadcast %cst_81 : f32 to vector<16x128xf32>
    %219 = arith.select %217, %167, %218 : vector<16x128xi1>, vector<16x128xf32>
    %220 = vector.shape_cast %219 : vector<16x128xf32> to vector<1x16x128xf32>
    %cst_82 = arith.constant dense<0.000000e+00> : vector<1xf32>
    %221 = vector.multi_reduction <add>, %220, %cst_82 [1, 2] : vector<1x16x128xf32> to vector<1xf32>
    %222 = vector.shape_cast %221 : vector<1xf32> to vector<1x1x1xf32>
    %223 = vector.extract %222[0, 0, 0] : f32 from vector<1x1x1xf32>
    %cst_83 = arith.constant 7.000000e+00 : f32
    %224 = vector.broadcast %cst_83 : f32 to vector<16x128xf32>
    %225 = arith.cmpf oeq, %10, %224 : vector<16x128xf32>
    %cst_84 = arith.constant 0.000000e+00 : f32
    %226 = vector.broadcast %cst_84 : f32 to vector<16x128xf32>
    %227 = arith.select %225, %167, %226 : vector<16x128xi1>, vector<16x128xf32>
    %228 = vector.shape_cast %227 : vector<16x128xf32> to vector<1x16x128xf32>
    %cst_85 = arith.constant dense<0.000000e+00> : vector<1xf32>
    %229 = vector.multi_reduction <add>, %228, %cst_85 [1, 2] : vector<1x16x128xf32> to vector<1xf32>
    %230 = vector.shape_cast %229 : vector<1xf32> to vector<1x1x1xf32>
    %231 = vector.extract %230[0, 0, 0] : f32 from vector<1x1x1xf32>
    %cst_86 = arith.constant 0.000000e+00 : f32
    %232 = vector.broadcast %cst_86 : f32 to vector<16x128xf32>
    %cst_87 = arith.constant 0.000000e+00 : f32
    %233 = vector.broadcast %cst_87 : f32 to vector<16x128xf32>
    %234 = arith.cmpf oeq, %10, %233 : vector<16x128xf32>
    %235 = vector.broadcast %46 : f32 to vector<16x128xf32>
    %236 = arith.select %234, %235, %232 : vector<16x128xi1>, vector<16x128xf32>
    %cst_88 = arith.constant 1.000000e+00 : f32
    %237 = vector.broadcast %cst_88 : f32 to vector<16x128xf32>
    %238 = arith.cmpf oeq, %10, %237 : vector<16x128xf32>
    %239 = vector.broadcast %54 : f32 to vector<16x128xf32>
    %240 = arith.select %238, %239, %236 : vector<16x128xi1>, vector<16x128xf32>
    %cst_89 = arith.constant 2.000000e+00 : f32
    %241 = vector.broadcast %cst_89 : f32 to vector<16x128xf32>
    %242 = arith.cmpf oeq, %10, %241 : vector<16x128xf32>
    %243 = vector.broadcast %62 : f32 to vector<16x128xf32>
    %244 = arith.select %242, %243, %240 : vector<16x128xi1>, vector<16x128xf32>
    %cst_90 = arith.constant 3.000000e+00 : f32
    %245 = vector.broadcast %cst_90 : f32 to vector<16x128xf32>
    %246 = arith.cmpf oeq, %10, %245 : vector<16x128xf32>
    %247 = vector.broadcast %70 : f32 to vector<16x128xf32>
    %248 = arith.select %246, %247, %244 : vector<16x128xi1>, vector<16x128xf32>
    %cst_91 = arith.constant 4.000000e+00 : f32
    %249 = vector.broadcast %cst_91 : f32 to vector<16x128xf32>
    %250 = arith.cmpf oeq, %10, %249 : vector<16x128xf32>
    %251 = vector.broadcast %78 : f32 to vector<16x128xf32>
    %252 = arith.select %250, %251, %248 : vector<16x128xi1>, vector<16x128xf32>
    %cst_92 = arith.constant 5.000000e+00 : f32
    %253 = vector.broadcast %cst_92 : f32 to vector<16x128xf32>
    %254 = arith.cmpf oeq, %10, %253 : vector<16x128xf32>
    %255 = vector.broadcast %86 : f32 to vector<16x128xf32>
    %256 = arith.select %254, %255, %252 : vector<16x128xi1>, vector<16x128xf32>
    %cst_93 = arith.constant 6.000000e+00 : f32
    %257 = vector.broadcast %cst_93 : f32 to vector<16x128xf32>
    %258 = arith.cmpf oeq, %10, %257 : vector<16x128xf32>
    %259 = vector.broadcast %94 : f32 to vector<16x128xf32>
    %260 = arith.select %258, %259, %256 : vector<16x128xi1>, vector<16x128xf32>
    %cst_94 = arith.constant 7.000000e+00 : f32
    %261 = vector.broadcast %cst_94 : f32 to vector<16x128xf32>
    %262 = arith.cmpf oeq, %10, %261 : vector<16x128xf32>
    %263 = vector.broadcast %102 : f32 to vector<16x128xf32>
    %264 = arith.select %262, %263, %260 : vector<16x128xi1>, vector<16x128xf32>
    %cst_95 = arith.constant 0.000000e+00 : f32
    %265 = vector.broadcast %cst_95 : f32 to vector<16x128xf32>
    %cst_96 = arith.constant 0.000000e+00 : f32
    %266 = vector.broadcast %cst_96 : f32 to vector<16x128xf32>
    %267 = arith.cmpf oeq, %10, %266 : vector<16x128xf32>
    %268 = vector.broadcast %110 : f32 to vector<16x128xf32>
    %269 = arith.select %267, %268, %265 : vector<16x128xi1>, vector<16x128xf32>
    %cst_97 = arith.constant 1.000000e+00 : f32
    %270 = vector.broadcast %cst_97 : f32 to vector<16x128xf32>
    %271 = arith.cmpf oeq, %10, %270 : vector<16x128xf32>
    %272 = vector.broadcast %118 : f32 to vector<16x128xf32>
    %273 = arith.select %271, %272, %269 : vector<16x128xi1>, vector<16x128xf32>
    %cst_98 = arith.constant 2.000000e+00 : f32
    %274 = vector.broadcast %cst_98 : f32 to vector<16x128xf32>
    %275 = arith.cmpf oeq, %10, %274 : vector<16x128xf32>
    %276 = vector.broadcast %126 : f32 to vector<16x128xf32>
    %277 = arith.select %275, %276, %273 : vector<16x128xi1>, vector<16x128xf32>
    %cst_99 = arith.constant 3.000000e+00 : f32
    %278 = vector.broadcast %cst_99 : f32 to vector<16x128xf32>
    %279 = arith.cmpf oeq, %10, %278 : vector<16x128xf32>
    %280 = vector.broadcast %134 : f32 to vector<16x128xf32>
    %281 = arith.select %279, %280, %277 : vector<16x128xi1>, vector<16x128xf32>
    %cst_100 = arith.constant 4.000000e+00 : f32
    %282 = vector.broadcast %cst_100 : f32 to vector<16x128xf32>
    %283 = arith.cmpf oeq, %10, %282 : vector<16x128xf32>
    %284 = vector.broadcast %142 : f32 to vector<16x128xf32>
    %285 = arith.select %283, %284, %281 : vector<16x128xi1>, vector<16x128xf32>
    %cst_101 = arith.constant 5.000000e+00 : f32
    %286 = vector.broadcast %cst_101 : f32 to vector<16x128xf32>
    %287 = arith.cmpf oeq, %10, %286 : vector<16x128xf32>
    %288 = vector.broadcast %150 : f32 to vector<16x128xf32>
    %289 = arith.select %287, %288, %285 : vector<16x128xi1>, vector<16x128xf32>
    %cst_102 = arith.constant 6.000000e+00 : f32
    %290 = vector.broadcast %cst_102 : f32 to vector<16x128xf32>
    %291 = arith.cmpf oeq, %10, %290 : vector<16x128xf32>
    %292 = vector.broadcast %158 : f32 to vector<16x128xf32>
    %293 = arith.select %291, %292, %289 : vector<16x128xi1>, vector<16x128xf32>
    %cst_103 = arith.constant 7.000000e+00 : f32
    %294 = vector.broadcast %cst_103 : f32 to vector<16x128xf32>
    %295 = arith.cmpf oeq, %10, %294 : vector<16x128xf32>
    %296 = vector.broadcast %166 : f32 to vector<16x128xf32>
    %297 = arith.select %295, %296, %293 : vector<16x128xi1>, vector<16x128xf32>
    %cst_104 = arith.constant 2.560000e+02 : f32
    %298 = vector.broadcast %cst_104 : f32 to vector<16x128xf32>
    %299 = arith.cmpf olt, %264, %298 : vector<16x128xf32>
    %cst_105 = arith.constant 0.000000e+00 : f32
    %300 = vector.broadcast %cst_105 : f32 to vector<16x128xf32>
    %301 = arith.cmpf ogt, %264, %300 : vector<16x128xf32>
    %cst_106 = arith.constant 2.560000e+02 : f32
    %302 = vector.broadcast %cst_106 : f32 to vector<16x128xf32>
    %303 = arith.cmpf olt, %297, %302 : vector<16x128xf32>
    %cst_107 = arith.constant 0.000000e+00 : f32
    %304 = vector.broadcast %cst_107 : f32 to vector<16x128xf32>
    %305 = arith.cmpf ogt, %297, %304 : vector<16x128xf32>
    %cst_108 = arith.constant dense<true> : vector<16x128xi1>
    %306 = arith.xori %38, %cst_108 : vector<16x128xi1>
    %cst_109 = arith.constant -1.000000e+05 : f32
    %307 = vector.broadcast %cst_109 : f32 to vector<16x128xf32>
    %308 = arith.select %306, %13, %307 : vector<16x128xi1>, vector<16x128xf32>
    %cst_110 = arith.constant 1.000000e+05 : f32
    %309 = vector.broadcast %cst_110 : f32 to vector<16x128xf32>
    %310 = arith.select %306, %13, %309 : vector<16x128xi1>, vector<16x128xf32>
    %cst_111 = arith.constant 1.000000e+00 : f32
    %311 = vector.broadcast %cst_111 : f32 to vector<16x128xf32>
    %312 = arith.cmpf oge, %13, %311 : vector<16x128xf32>
    %c1_i32 = arith.constant 1 : i32
    %313 = tpu.dynamic_rotate %308 by %c1_i32 dim 1 : vector<16x128xf32>, i32 -> vector<16x128xf32>
    %cst_112 = arith.constant -1.000000e+05 : f32
    %314 = vector.broadcast %cst_112 : f32 to vector<16x128xf32>
    %315 = arith.select %312, %313, %314 : vector<16x128xi1>, vector<16x128xf32>
    %316 = arith.maximumf %308, %315 : vector<16x128xf32>
    %cst_113 = arith.constant 1.500000e+01 : f32
    %317 = vector.broadcast %cst_113 : f32 to vector<16x128xf32>
    %318 = arith.cmpf olt, %13, %317 : vector<16x128xf32>
    %c127_i32 = arith.constant 127 : i32
    %319 = tpu.dynamic_rotate %310 by %c127_i32 dim 1 : vector<16x128xf32>, i32 -> vector<16x128xf32>
    %cst_114 = arith.constant 1.000000e+05 : f32
    %320 = vector.broadcast %cst_114 : f32 to vector<16x128xf32>
    %321 = arith.select %318, %319, %320 : vector<16x128xi1>, vector<16x128xf32>
    %322 = arith.minimumf %310, %321 : vector<16x128xf32>
    %cst_115 = arith.constant 2.000000e+00 : f32
    %323 = vector.broadcast %cst_115 : f32 to vector<16x128xf32>
    %324 = arith.cmpf oge, %13, %323 : vector<16x128xf32>
    %c2_i32 = arith.constant 2 : i32
    %325 = tpu.dynamic_rotate %316 by %c2_i32 dim 1 : vector<16x128xf32>, i32 -> vector<16x128xf32>
    %cst_116 = arith.constant -1.000000e+05 : f32
    %326 = vector.broadcast %cst_116 : f32 to vector<16x128xf32>
    %327 = arith.select %324, %325, %326 : vector<16x128xi1>, vector<16x128xf32>
    %328 = arith.maximumf %316, %327 : vector<16x128xf32>
    %cst_117 = arith.constant 1.400000e+01 : f32
    %329 = vector.broadcast %cst_117 : f32 to vector<16x128xf32>
    %330 = arith.cmpf olt, %13, %329 : vector<16x128xf32>
    %c126_i32 = arith.constant 126 : i32
    %331 = tpu.dynamic_rotate %322 by %c126_i32 dim 1 : vector<16x128xf32>, i32 -> vector<16x128xf32>
    %cst_118 = arith.constant 1.000000e+05 : f32
    %332 = vector.broadcast %cst_118 : f32 to vector<16x128xf32>
    %333 = arith.select %330, %331, %332 : vector<16x128xi1>, vector<16x128xf32>
    %334 = arith.minimumf %322, %333 : vector<16x128xf32>
    %cst_119 = arith.constant 4.000000e+00 : f32
    %335 = vector.broadcast %cst_119 : f32 to vector<16x128xf32>
    %336 = arith.cmpf oge, %13, %335 : vector<16x128xf32>
    %c4_i32 = arith.constant 4 : i32
    %337 = tpu.dynamic_rotate %328 by %c4_i32 dim 1 : vector<16x128xf32>, i32 -> vector<16x128xf32>
    %cst_120 = arith.constant -1.000000e+05 : f32
    %338 = vector.broadcast %cst_120 : f32 to vector<16x128xf32>
    %339 = arith.select %336, %337, %338 : vector<16x128xi1>, vector<16x128xf32>
    %340 = arith.maximumf %328, %339 : vector<16x128xf32>
    %cst_121 = arith.constant 1.200000e+01 : f32
    %341 = vector.broadcast %cst_121 : f32 to vector<16x128xf32>
    %342 = arith.cmpf olt, %13, %341 : vector<16x128xf32>
    %c124_i32 = arith.constant 124 : i32
    %343 = tpu.dynamic_rotate %334 by %c124_i32 dim 1 : vector<16x128xf32>, i32 -> vector<16x128xf32>
    %cst_122 = arith.constant 1.000000e+05 : f32
    %344 = vector.broadcast %cst_122 : f32 to vector<16x128xf32>
    %345 = arith.select %342, %343, %344 : vector<16x128xi1>, vector<16x128xf32>
    %346 = arith.minimumf %334, %345 : vector<16x128xf32>
    %cst_123 = arith.constant 8.000000e+00 : f32
    %347 = vector.broadcast %cst_123 : f32 to vector<16x128xf32>
    %348 = arith.cmpf oge, %13, %347 : vector<16x128xf32>
    %c8_i32 = arith.constant 8 : i32
    %349 = tpu.dynamic_rotate %340 by %c8_i32 dim 1 : vector<16x128xf32>, i32 -> vector<16x128xf32>
    %cst_124 = arith.constant -1.000000e+05 : f32
    %350 = vector.broadcast %cst_124 : f32 to vector<16x128xf32>
    %351 = arith.select %348, %349, %350 : vector<16x128xi1>, vector<16x128xf32>
    %352 = arith.maximumf %340, %351 : vector<16x128xf32>
    %cst_125 = arith.constant 8.000000e+00 : f32
    %353 = vector.broadcast %cst_125 : f32 to vector<16x128xf32>
    %354 = arith.cmpf olt, %13, %353 : vector<16x128xf32>
    %c120_i32 = arith.constant 120 : i32
    %355 = tpu.dynamic_rotate %346 by %c120_i32 dim 1 : vector<16x128xf32>, i32 -> vector<16x128xf32>
    %cst_126 = arith.constant 1.000000e+05 : f32
    %356 = vector.broadcast %cst_126 : f32 to vector<16x128xf32>
    %357 = arith.select %354, %355, %356 : vector<16x128xi1>, vector<16x128xf32>
    %358 = arith.minimumf %346, %357 : vector<16x128xf32>
    %359 = arith.subf %13, %352 : vector<16x128xf32>
    %360 = arith.subf %358, %13 : vector<16x128xf32>
    %361 = arith.minimumf %359, %360 : vector<16x128xf32>
    %362 = arith.mulf %361, %361 : vector<16x128xf32>
    %cst_127 = arith.constant -1.000000e+05 : f32
    %363 = vector.broadcast %cst_127 : f32 to vector<16x128xf32>
    %364 = arith.select %38, %13, %363 : vector<16x128xi1>, vector<16x128xf32>
    %cst_128 = arith.constant 1.000000e+05 : f32
    %365 = vector.broadcast %cst_128 : f32 to vector<16x128xf32>
    %366 = arith.select %38, %13, %365 : vector<16x128xi1>, vector<16x128xf32>
    %cst_129 = arith.constant 1.000000e+00 : f32
    %367 = vector.broadcast %cst_129 : f32 to vector<16x128xf32>
    %368 = arith.cmpf oge, %13, %367 : vector<16x128xf32>
    %c1_i32_130 = arith.constant 1 : i32
    %369 = tpu.dynamic_rotate %364 by %c1_i32_130 dim 1 : vector<16x128xf32>, i32 -> vector<16x128xf32>
    %cst_131 = arith.constant -1.000000e+05 : f32
    %370 = vector.broadcast %cst_131 : f32 to vector<16x128xf32>
    %371 = arith.select %368, %369, %370 : vector<16x128xi1>, vector<16x128xf32>
    %372 = arith.maximumf %364, %371 : vector<16x128xf32>
    %cst_132 = arith.constant 1.500000e+01 : f32
    %373 = vector.broadcast %cst_132 : f32 to vector<16x128xf32>
    %374 = arith.cmpf olt, %13, %373 : vector<16x128xf32>
    %c127_i32_133 = arith.constant 127 : i32
    %375 = tpu.dynamic_rotate %366 by %c127_i32_133 dim 1 : vector<16x128xf32>, i32 -> vector<16x128xf32>
    %cst_134 = arith.constant 1.000000e+05 : f32
    %376 = vector.broadcast %cst_134 : f32 to vector<16x128xf32>
    %377 = arith.select %374, %375, %376 : vector<16x128xi1>, vector<16x128xf32>
    %378 = arith.minimumf %366, %377 : vector<16x128xf32>
    %cst_135 = arith.constant 2.000000e+00 : f32
    %379 = vector.broadcast %cst_135 : f32 to vector<16x128xf32>
    %380 = arith.cmpf oge, %13, %379 : vector<16x128xf32>
    %c2_i32_136 = arith.constant 2 : i32
    %381 = tpu.dynamic_rotate %372 by %c2_i32_136 dim 1 : vector<16x128xf32>, i32 -> vector<16x128xf32>
    %cst_137 = arith.constant -1.000000e+05 : f32
    %382 = vector.broadcast %cst_137 : f32 to vector<16x128xf32>
    %383 = arith.select %380, %381, %382 : vector<16x128xi1>, vector<16x128xf32>
    %384 = arith.maximumf %372, %383 : vector<16x128xf32>
    %cst_138 = arith.constant 1.400000e+01 : f32
    %385 = vector.broadcast %cst_138 : f32 to vector<16x128xf32>
    %386 = arith.cmpf olt, %13, %385 : vector<16x128xf32>
    %c126_i32_139 = arith.constant 126 : i32
    %387 = tpu.dynamic_rotate %378 by %c126_i32_139 dim 1 : vector<16x128xf32>, i32 -> vector<16x128xf32>
    %cst_140 = arith.constant 1.000000e+05 : f32
    %388 = vector.broadcast %cst_140 : f32 to vector<16x128xf32>
    %389 = arith.select %386, %387, %388 : vector<16x128xi1>, vector<16x128xf32>
    %390 = arith.minimumf %378, %389 : vector<16x128xf32>
    %cst_141 = arith.constant 4.000000e+00 : f32
    %391 = vector.broadcast %cst_141 : f32 to vector<16x128xf32>
    %392 = arith.cmpf oge, %13, %391 : vector<16x128xf32>
    %c4_i32_142 = arith.constant 4 : i32
    %393 = tpu.dynamic_rotate %384 by %c4_i32_142 dim 1 : vector<16x128xf32>, i32 -> vector<16x128xf32>
    %cst_143 = arith.constant -1.000000e+05 : f32
    %394 = vector.broadcast %cst_143 : f32 to vector<16x128xf32>
    %395 = arith.select %392, %393, %394 : vector<16x128xi1>, vector<16x128xf32>
    %396 = arith.maximumf %384, %395 : vector<16x128xf32>
    %cst_144 = arith.constant 1.200000e+01 : f32
    %397 = vector.broadcast %cst_144 : f32 to vector<16x128xf32>
    %398 = arith.cmpf olt, %13, %397 : vector<16x128xf32>
    %c124_i32_145 = arith.constant 124 : i32
    %399 = tpu.dynamic_rotate %390 by %c124_i32_145 dim 1 : vector<16x128xf32>, i32 -> vector<16x128xf32>
    %cst_146 = arith.constant 1.000000e+05 : f32
    %400 = vector.broadcast %cst_146 : f32 to vector<16x128xf32>
    %401 = arith.select %398, %399, %400 : vector<16x128xi1>, vector<16x128xf32>
    %402 = arith.minimumf %390, %401 : vector<16x128xf32>
    %cst_147 = arith.constant 8.000000e+00 : f32
    %403 = vector.broadcast %cst_147 : f32 to vector<16x128xf32>
    %404 = arith.cmpf oge, %13, %403 : vector<16x128xf32>
    %c8_i32_148 = arith.constant 8 : i32
    %405 = tpu.dynamic_rotate %396 by %c8_i32_148 dim 1 : vector<16x128xf32>, i32 -> vector<16x128xf32>
    %cst_149 = arith.constant -1.000000e+05 : f32
    %406 = vector.broadcast %cst_149 : f32 to vector<16x128xf32>
    %407 = arith.select %404, %405, %406 : vector<16x128xi1>, vector<16x128xf32>
    %408 = arith.maximumf %396, %407 : vector<16x128xf32>
    %cst_150 = arith.constant 8.000000e+00 : f32
    %409 = vector.broadcast %cst_150 : f32 to vector<16x128xf32>
    %410 = arith.cmpf olt, %13, %409 : vector<16x128xf32>
    %c120_i32_151 = arith.constant 120 : i32
    %411 = tpu.dynamic_rotate %402 by %c120_i32_151 dim 1 : vector<16x128xf32>, i32 -> vector<16x128xf32>
    %cst_152 = arith.constant 1.000000e+05 : f32
    %412 = vector.broadcast %cst_152 : f32 to vector<16x128xf32>
    %413 = arith.select %410, %411, %412 : vector<16x128xi1>, vector<16x128xf32>
    %414 = arith.minimumf %402, %413 : vector<16x128xf32>
    %415 = arith.subf %13, %408 : vector<16x128xf32>
    %416 = arith.subf %414, %13 : vector<16x128xf32>
    %417 = arith.minimumf %415, %416 : vector<16x128xf32>
    %418 = arith.mulf %417, %417 : vector<16x128xf32>
    %cst_153 = arith.constant 5.000000e-01 : f32
    %419 = vector.broadcast %cst_153 : f32 to vector<16x128xf32>
    %420 = arith.cmpf ole, %3, %419 : vector<16x128xf32>
    %cst_154 = arith.constant -1.000000e+05 : f32
    %421 = vector.broadcast %cst_154 : f32 to vector<16x128xf32>
    %422 = arith.select %420, %13, %421 : vector<16x128xi1>, vector<16x128xf32>
    %cst_155 = arith.constant 1.000000e+05 : f32
    %423 = vector.broadcast %cst_155 : f32 to vector<16x128xf32>
    %424 = arith.select %420, %13, %423 : vector<16x128xi1>, vector<16x128xf32>
    %cst_156 = arith.constant 1.000000e+00 : f32
    %425 = vector.broadcast %cst_156 : f32 to vector<16x128xf32>
    %426 = arith.cmpf oge, %13, %425 : vector<16x128xf32>
    %c1_i32_157 = arith.constant 1 : i32
    %427 = tpu.dynamic_rotate %422 by %c1_i32_157 dim 1 : vector<16x128xf32>, i32 -> vector<16x128xf32>
    %cst_158 = arith.constant -1.000000e+05 : f32
    %428 = vector.broadcast %cst_158 : f32 to vector<16x128xf32>
    %429 = arith.select %426, %427, %428 : vector<16x128xi1>, vector<16x128xf32>
    %430 = arith.maximumf %422, %429 : vector<16x128xf32>
    %cst_159 = arith.constant 1.500000e+01 : f32
    %431 = vector.broadcast %cst_159 : f32 to vector<16x128xf32>
    %432 = arith.cmpf olt, %13, %431 : vector<16x128xf32>
    %c127_i32_160 = arith.constant 127 : i32
    %433 = tpu.dynamic_rotate %424 by %c127_i32_160 dim 1 : vector<16x128xf32>, i32 -> vector<16x128xf32>
    %cst_161 = arith.constant 1.000000e+05 : f32
    %434 = vector.broadcast %cst_161 : f32 to vector<16x128xf32>
    %435 = arith.select %432, %433, %434 : vector<16x128xi1>, vector<16x128xf32>
    %436 = arith.minimumf %424, %435 : vector<16x128xf32>
    %cst_162 = arith.constant 2.000000e+00 : f32
    %437 = vector.broadcast %cst_162 : f32 to vector<16x128xf32>
    %438 = arith.cmpf oge, %13, %437 : vector<16x128xf32>
    %c2_i32_163 = arith.constant 2 : i32
    %439 = tpu.dynamic_rotate %430 by %c2_i32_163 dim 1 : vector<16x128xf32>, i32 -> vector<16x128xf32>
    %cst_164 = arith.constant -1.000000e+05 : f32
    %440 = vector.broadcast %cst_164 : f32 to vector<16x128xf32>
    %441 = arith.select %438, %439, %440 : vector<16x128xi1>, vector<16x128xf32>
    %442 = arith.maximumf %430, %441 : vector<16x128xf32>
    %cst_165 = arith.constant 1.400000e+01 : f32
    %443 = vector.broadcast %cst_165 : f32 to vector<16x128xf32>
    %444 = arith.cmpf olt, %13, %443 : vector<16x128xf32>
    %c126_i32_166 = arith.constant 126 : i32
    %445 = tpu.dynamic_rotate %436 by %c126_i32_166 dim 1 : vector<16x128xf32>, i32 -> vector<16x128xf32>
    %cst_167 = arith.constant 1.000000e+05 : f32
    %446 = vector.broadcast %cst_167 : f32 to vector<16x128xf32>
    %447 = arith.select %444, %445, %446 : vector<16x128xi1>, vector<16x128xf32>
    %448 = arith.minimumf %436, %447 : vector<16x128xf32>
    %cst_168 = arith.constant 4.000000e+00 : f32
    %449 = vector.broadcast %cst_168 : f32 to vector<16x128xf32>
    %450 = arith.cmpf oge, %13, %449 : vector<16x128xf32>
    %c4_i32_169 = arith.constant 4 : i32
    %451 = tpu.dynamic_rotate %442 by %c4_i32_169 dim 1 : vector<16x128xf32>, i32 -> vector<16x128xf32>
    %cst_170 = arith.constant -1.000000e+05 : f32
    %452 = vector.broadcast %cst_170 : f32 to vector<16x128xf32>
    %453 = arith.select %450, %451, %452 : vector<16x128xi1>, vector<16x128xf32>
    %454 = arith.maximumf %442, %453 : vector<16x128xf32>
    %cst_171 = arith.constant 1.200000e+01 : f32
    %455 = vector.broadcast %cst_171 : f32 to vector<16x128xf32>
    %456 = arith.cmpf olt, %13, %455 : vector<16x128xf32>
    %c124_i32_172 = arith.constant 124 : i32
    %457 = tpu.dynamic_rotate %448 by %c124_i32_172 dim 1 : vector<16x128xf32>, i32 -> vector<16x128xf32>
    %cst_173 = arith.constant 1.000000e+05 : f32
    %458 = vector.broadcast %cst_173 : f32 to vector<16x128xf32>
    %459 = arith.select %456, %457, %458 : vector<16x128xi1>, vector<16x128xf32>
    %460 = arith.minimumf %448, %459 : vector<16x128xf32>
    %cst_174 = arith.constant 8.000000e+00 : f32
    %461 = vector.broadcast %cst_174 : f32 to vector<16x128xf32>
    %462 = arith.cmpf oge, %13, %461 : vector<16x128xf32>
    %c8_i32_175 = arith.constant 8 : i32
    %463 = tpu.dynamic_rotate %454 by %c8_i32_175 dim 1 : vector<16x128xf32>, i32 -> vector<16x128xf32>
    %cst_176 = arith.constant -1.000000e+05 : f32
    %464 = vector.broadcast %cst_176 : f32 to vector<16x128xf32>
    %465 = arith.select %462, %463, %464 : vector<16x128xi1>, vector<16x128xf32>
    %466 = arith.maximumf %454, %465 : vector<16x128xf32>
    %cst_177 = arith.constant 8.000000e+00 : f32
    %467 = vector.broadcast %cst_177 : f32 to vector<16x128xf32>
    %468 = arith.cmpf olt, %13, %467 : vector<16x128xf32>
    %c120_i32_178 = arith.constant 120 : i32
    %469 = tpu.dynamic_rotate %460 by %c120_i32_178 dim 1 : vector<16x128xf32>, i32 -> vector<16x128xf32>
    %cst_179 = arith.constant 1.000000e+05 : f32
    %470 = vector.broadcast %cst_179 : f32 to vector<16x128xf32>
    %471 = arith.select %468, %469, %470 : vector<16x128xi1>, vector<16x128xf32>
    %472 = arith.minimumf %460, %471 : vector<16x128xf32>
    %473 = arith.subf %13, %466 : vector<16x128xf32>
    %474 = arith.subf %472, %13 : vector<16x128xf32>
    %475 = arith.minimumf %473, %474 : vector<16x128xf32>
    %476 = arith.mulf %475, %475 : vector<16x128xf32>
    %cst_180 = arith.constant 5.000000e-01 : f32
    %477 = vector.broadcast %cst_180 : f32 to vector<16x128xf32>
    %478 = arith.cmpf ogt, %3, %477 : vector<16x128xf32>
    %cst_181 = arith.constant -1.000000e+05 : f32
    %479 = vector.broadcast %cst_181 : f32 to vector<16x128xf32>
    %480 = arith.select %478, %13, %479 : vector<16x128xi1>, vector<16x128xf32>
    %cst_182 = arith.constant 1.000000e+05 : f32
    %481 = vector.broadcast %cst_182 : f32 to vector<16x128xf32>
    %482 = arith.select %478, %13, %481 : vector<16x128xi1>, vector<16x128xf32>
    %cst_183 = arith.constant 1.000000e+00 : f32
    %483 = vector.broadcast %cst_183 : f32 to vector<16x128xf32>
    %484 = arith.cmpf oge, %13, %483 : vector<16x128xf32>
    %c1_i32_184 = arith.constant 1 : i32
    %485 = tpu.dynamic_rotate %480 by %c1_i32_184 dim 1 : vector<16x128xf32>, i32 -> vector<16x128xf32>
    %cst_185 = arith.constant -1.000000e+05 : f32
    %486 = vector.broadcast %cst_185 : f32 to vector<16x128xf32>
    %487 = arith.select %484, %485, %486 : vector<16x128xi1>, vector<16x128xf32>
    %488 = arith.maximumf %480, %487 : vector<16x128xf32>
    %cst_186 = arith.constant 1.500000e+01 : f32
    %489 = vector.broadcast %cst_186 : f32 to vector<16x128xf32>
    %490 = arith.cmpf olt, %13, %489 : vector<16x128xf32>
    %c127_i32_187 = arith.constant 127 : i32
    %491 = tpu.dynamic_rotate %482 by %c127_i32_187 dim 1 : vector<16x128xf32>, i32 -> vector<16x128xf32>
    %cst_188 = arith.constant 1.000000e+05 : f32
    %492 = vector.broadcast %cst_188 : f32 to vector<16x128xf32>
    %493 = arith.select %490, %491, %492 : vector<16x128xi1>, vector<16x128xf32>
    %494 = arith.minimumf %482, %493 : vector<16x128xf32>
    %cst_189 = arith.constant 2.000000e+00 : f32
    %495 = vector.broadcast %cst_189 : f32 to vector<16x128xf32>
    %496 = arith.cmpf oge, %13, %495 : vector<16x128xf32>
    %c2_i32_190 = arith.constant 2 : i32
    %497 = tpu.dynamic_rotate %488 by %c2_i32_190 dim 1 : vector<16x128xf32>, i32 -> vector<16x128xf32>
    %cst_191 = arith.constant -1.000000e+05 : f32
    %498 = vector.broadcast %cst_191 : f32 to vector<16x128xf32>
    %499 = arith.select %496, %497, %498 : vector<16x128xi1>, vector<16x128xf32>
    %500 = arith.maximumf %488, %499 : vector<16x128xf32>
    %cst_192 = arith.constant 1.400000e+01 : f32
    %501 = vector.broadcast %cst_192 : f32 to vector<16x128xf32>
    %502 = arith.cmpf olt, %13, %501 : vector<16x128xf32>
    %c126_i32_193 = arith.constant 126 : i32
    %503 = tpu.dynamic_rotate %494 by %c126_i32_193 dim 1 : vector<16x128xf32>, i32 -> vector<16x128xf32>
    %cst_194 = arith.constant 1.000000e+05 : f32
    %504 = vector.broadcast %cst_194 : f32 to vector<16x128xf32>
    %505 = arith.select %502, %503, %504 : vector<16x128xi1>, vector<16x128xf32>
    %506 = arith.minimumf %494, %505 : vector<16x128xf32>
    %cst_195 = arith.constant 4.000000e+00 : f32
    %507 = vector.broadcast %cst_195 : f32 to vector<16x128xf32>
    %508 = arith.cmpf oge, %13, %507 : vector<16x128xf32>
    %c4_i32_196 = arith.constant 4 : i32
    %509 = tpu.dynamic_rotate %500 by %c4_i32_196 dim 1 : vector<16x128xf32>, i32 -> vector<16x128xf32>
    %cst_197 = arith.constant -1.000000e+05 : f32
    %510 = vector.broadcast %cst_197 : f32 to vector<16x128xf32>
    %511 = arith.select %508, %509, %510 : vector<16x128xi1>, vector<16x128xf32>
    %512 = arith.maximumf %500, %511 : vector<16x128xf32>
    %cst_198 = arith.constant 1.200000e+01 : f32
    %513 = vector.broadcast %cst_198 : f32 to vector<16x128xf32>
    %514 = arith.cmpf olt, %13, %513 : vector<16x128xf32>
    %c124_i32_199 = arith.constant 124 : i32
    %515 = tpu.dynamic_rotate %506 by %c124_i32_199 dim 1 : vector<16x128xf32>, i32 -> vector<16x128xf32>
    %cst_200 = arith.constant 1.000000e+05 : f32
    %516 = vector.broadcast %cst_200 : f32 to vector<16x128xf32>
    %517 = arith.select %514, %515, %516 : vector<16x128xi1>, vector<16x128xf32>
    %518 = arith.minimumf %506, %517 : vector<16x128xf32>
    %cst_201 = arith.constant 8.000000e+00 : f32
    %519 = vector.broadcast %cst_201 : f32 to vector<16x128xf32>
    %520 = arith.cmpf oge, %13, %519 : vector<16x128xf32>
    %c8_i32_202 = arith.constant 8 : i32
    %521 = tpu.dynamic_rotate %512 by %c8_i32_202 dim 1 : vector<16x128xf32>, i32 -> vector<16x128xf32>
    %cst_203 = arith.constant -1.000000e+05 : f32
    %522 = vector.broadcast %cst_203 : f32 to vector<16x128xf32>
    %523 = arith.select %520, %521, %522 : vector<16x128xi1>, vector<16x128xf32>
    %524 = arith.maximumf %512, %523 : vector<16x128xf32>
    %cst_204 = arith.constant 8.000000e+00 : f32
    %525 = vector.broadcast %cst_204 : f32 to vector<16x128xf32>
    %526 = arith.cmpf olt, %13, %525 : vector<16x128xf32>
    %c120_i32_205 = arith.constant 120 : i32
    %527 = tpu.dynamic_rotate %518 by %c120_i32_205 dim 1 : vector<16x128xf32>, i32 -> vector<16x128xf32>
    %cst_206 = arith.constant 1.000000e+05 : f32
    %528 = vector.broadcast %cst_206 : f32 to vector<16x128xf32>
    %529 = arith.select %526, %527, %528 : vector<16x128xi1>, vector<16x128xf32>
    %530 = arith.minimumf %518, %529 : vector<16x128xf32>
    %531 = arith.subf %13, %524 : vector<16x128xf32>
    %532 = arith.subf %530, %13 : vector<16x128xf32>
    %533 = arith.minimumf %531, %532 : vector<16x128xf32>
    %534 = arith.mulf %533, %533 : vector<16x128xf32>
    %cst_207 = arith.constant 0.000000e+00 : f32
    %535 = vector.broadcast %cst_207 : f32 to vector<16x128xf32>
    %536 = arith.select %299, %362, %535 : vector<16x128xi1>, vector<16x128xf32>
    %537 = vector.shape_cast %536 : vector<16x128xf32> to vector<1x16x128xf32>
    %cst_208 = arith.constant dense<0xFF800000> : vector<1xf32>
    %538 = vector.multi_reduction <maximumf>, %537, %cst_208 [1, 2] : vector<1x16x128xf32> to vector<1xf32>
    %539 = vector.shape_cast %538 : vector<1xf32> to vector<1x1x1xf32>
    %540 = vector.extract %539[0, 0, 0] : f32 from vector<1x1x1xf32>
    %cst_209 = arith.constant 0.000000e+00 : f32
    %541 = arith.maximumf %cst_209, %540 : f32
    %cst_210 = arith.constant 0.000000e+00 : f32
    %542 = vector.broadcast %cst_210 : f32 to vector<16x128xf32>
    %543 = arith.select %301, %418, %542 : vector<16x128xi1>, vector<16x128xf32>
    %544 = vector.shape_cast %543 : vector<16x128xf32> to vector<1x16x128xf32>
    %cst_211 = arith.constant dense<0xFF800000> : vector<1xf32>
    %545 = vector.multi_reduction <maximumf>, %544, %cst_211 [1, 2] : vector<1x16x128xf32> to vector<1xf32>
    %546 = vector.shape_cast %545 : vector<1xf32> to vector<1x1x1xf32>
    %547 = vector.extract %546[0, 0, 0] : f32 from vector<1x1x1xf32>
    %548 = arith.maximumf %541, %547 : f32
    %cst_212 = arith.constant 0.000000e+00 : f32
    %549 = vector.broadcast %cst_212 : f32 to vector<16x128xf32>
    %550 = arith.select %303, %476, %549 : vector<16x128xi1>, vector<16x128xf32>
    %551 = vector.shape_cast %550 : vector<16x128xf32> to vector<1x16x128xf32>
    %cst_213 = arith.constant dense<0xFF800000> : vector<1xf32>
    %552 = vector.multi_reduction <maximumf>, %551, %cst_213 [1, 2] : vector<1x16x128xf32> to vector<1xf32>
    %553 = vector.shape_cast %552 : vector<1xf32> to vector<1x1x1xf32>
    %554 = vector.extract %553[0, 0, 0] : f32 from vector<1x1x1xf32>
    %555 = arith.maximumf %548, %554 : f32
    %cst_214 = arith.constant 0.000000e+00 : f32
    %556 = vector.broadcast %cst_214 : f32 to vector<16x128xf32>
    %557 = arith.select %305, %534, %556 : vector<16x128xi1>, vector<16x128xf32>
    %558 = vector.shape_cast %557 : vector<16x128xf32> to vector<1x16x128xf32>
    %cst_215 = arith.constant dense<0xFF800000> : vector<1xf32>
    %559 = vector.multi_reduction <maximumf>, %558, %cst_215 [1, 2] : vector<1x16x128xf32> to vector<1xf32>
    %560 = vector.shape_cast %559 : vector<1xf32> to vector<1x1x1xf32>
    %561 = vector.extract %560[0, 0, 0] : f32 from vector<1x1x1xf32>
    %562 = arith.maximumf %555, %561 : f32
    %c1_i32_216 = arith.constant 1 : i32
    %563:14 = scf.while (%arg4 = %c1_i32_216, %arg5 = %562, %arg6 = %362, %arg7 = %418, %arg8 = %476, %arg9 = %534, %arg10 = %362, %arg11 = %418, %arg12 = %476, %arg13 = %534, %arg14 = %362, %arg15 = %418, %arg16 = %476, %arg17 = %534) : (i32, f32, vector<16x128xf32>, vector<16x128xf32>, vector<16x128xf32>, vector<16x128xf32>, vector<16x128xf32>, vector<16x128xf32>, vector<16x128xf32>, vector<16x128xf32>, vector<16x128xf32>, vector<16x128xf32>, vector<16x128xf32>, vector<16x128xf32>) -> (i32, f32, vector<16x128xf32>, vector<16x128xf32>, vector<16x128xf32>, vector<16x128xf32>, vector<16x128xf32>, vector<16x128xf32>, vector<16x128xf32>, vector<16x128xf32>, vector<16x128xf32>, vector<16x128xf32>, vector<16x128xf32>, vector<16x128xf32>) {
      %898 = arith.sitofp %arg4 : i32 to f32
      %c16_i32 = arith.constant 16 : i32
      %899 = arith.cmpi slt, %arg4, %c16_i32 : i32
      %900 = arith.mulf %898, %898 : f32
      %901 = arith.cmpf ole, %900, %arg5 : f32
      %902 = arith.andi %899, %901 : i1
      scf.condition(%902) %arg4, %arg5, %arg6, %arg7, %arg8, %arg9, %arg10, %arg11, %arg12, %arg13, %arg14, %arg15, %arg16, %arg17 : i32, f32, vector<16x128xf32>, vector<16x128xf32>, vector<16x128xf32>, vector<16x128xf32>, vector<16x128xf32>, vector<16x128xf32>, vector<16x128xf32>, vector<16x128xf32>, vector<16x128xf32>, vector<16x128xf32>, vector<16x128xf32>, vector<16x128xf32>
    } do {
    ^bb0(%arg4: i32, %arg5: f32, %arg6: vector<16x128xf32>, %arg7: vector<16x128xf32>, %arg8: vector<16x128xf32>, %arg9: vector<16x128xf32>, %arg10: vector<16x128xf32>, %arg11: vector<16x128xf32>, %arg12: vector<16x128xf32>, %arg13: vector<16x128xf32>, %arg14: vector<16x128xf32>, %arg15: vector<16x128xf32>, %arg16: vector<16x128xf32>, %arg17: vector<16x128xf32>):
      %c0_i32_339 = arith.constant 0 : i32
      %898 = arith.addi %arg4, %c0_i32_339 : i32
      %899 = arith.sitofp %898 : i32 to f32
      %900 = arith.mulf %899, %899 : f32
      %901 = vector.broadcast %899 : f32 to vector<16x128xf32>
      %902 = arith.cmpf oge, %6, %901 : vector<16x128xf32>
      %cst_340 = arith.constant 1.600000e+01 : f32
      %903 = arith.subf %cst_340, %899 : f32
      %904 = vector.broadcast %903 : f32 to vector<16x128xf32>
      %905 = arith.cmpf olt, %6, %904 : vector<16x128xf32>
      %c1_i32_341 = arith.constant 1 : i32
      %906 = tpu.dynamic_rotate %arg10 by %c1_i32_341 dim 0 : vector<16x128xf32>, i32 -> vector<16x128xf32>
      %c15_i32 = arith.constant 15 : i32
      %907 = tpu.dynamic_rotate %arg14 by %c15_i32 dim 0 : vector<16x128xf32>, i32 -> vector<16x128xf32>
      %cst_342 = arith.constant 3.000000e+10 : f32
      %908 = vector.broadcast %cst_342 : f32 to vector<16x128xf32>
      %909 = arith.select %902, %906, %908 : vector<16x128xi1>, vector<16x128xf32>
      %cst_343 = arith.constant 3.000000e+10 : f32
      %910 = vector.broadcast %cst_343 : f32 to vector<16x128xf32>
      %911 = arith.select %905, %907, %910 : vector<16x128xi1>, vector<16x128xf32>
      %912 = arith.minimumf %909, %911 : vector<16x128xf32>
      %913 = vector.broadcast %900 : f32 to vector<16x128xf32>
      %914 = arith.addf %912, %913 : vector<16x128xf32>
      %915 = arith.minimumf %arg6, %914 : vector<16x128xf32>
      %c1_i32_344 = arith.constant 1 : i32
      %916 = tpu.dynamic_rotate %arg11 by %c1_i32_344 dim 0 : vector<16x128xf32>, i32 -> vector<16x128xf32>
      %c15_i32_345 = arith.constant 15 : i32
      %917 = tpu.dynamic_rotate %arg15 by %c15_i32_345 dim 0 : vector<16x128xf32>, i32 -> vector<16x128xf32>
      %cst_346 = arith.constant 3.000000e+10 : f32
      %918 = vector.broadcast %cst_346 : f32 to vector<16x128xf32>
      %919 = arith.select %902, %916, %918 : vector<16x128xi1>, vector<16x128xf32>
      %cst_347 = arith.constant 3.000000e+10 : f32
      %920 = vector.broadcast %cst_347 : f32 to vector<16x128xf32>
      %921 = arith.select %905, %917, %920 : vector<16x128xi1>, vector<16x128xf32>
      %922 = arith.minimumf %919, %921 : vector<16x128xf32>
      %923 = vector.broadcast %900 : f32 to vector<16x128xf32>
      %924 = arith.addf %922, %923 : vector<16x128xf32>
      %925 = arith.minimumf %arg7, %924 : vector<16x128xf32>
      %c1_i32_348 = arith.constant 1 : i32
      %926 = tpu.dynamic_rotate %arg12 by %c1_i32_348 dim 0 : vector<16x128xf32>, i32 -> vector<16x128xf32>
      %c15_i32_349 = arith.constant 15 : i32
      %927 = tpu.dynamic_rotate %arg16 by %c15_i32_349 dim 0 : vector<16x128xf32>, i32 -> vector<16x128xf32>
      %cst_350 = arith.constant 3.000000e+10 : f32
      %928 = vector.broadcast %cst_350 : f32 to vector<16x128xf32>
      %929 = arith.select %902, %926, %928 : vector<16x128xi1>, vector<16x128xf32>
      %cst_351 = arith.constant 3.000000e+10 : f32
      %930 = vector.broadcast %cst_351 : f32 to vector<16x128xf32>
      %931 = arith.select %905, %927, %930 : vector<16x128xi1>, vector<16x128xf32>
      %932 = arith.minimumf %929, %931 : vector<16x128xf32>
      %933 = vector.broadcast %900 : f32 to vector<16x128xf32>
      %934 = arith.addf %932, %933 : vector<16x128xf32>
      %935 = arith.minimumf %arg8, %934 : vector<16x128xf32>
      %c1_i32_352 = arith.constant 1 : i32
      %936 = tpu.dynamic_rotate %arg13 by %c1_i32_352 dim 0 : vector<16x128xf32>, i32 -> vector<16x128xf32>
      %c15_i32_353 = arith.constant 15 : i32
      %937 = tpu.dynamic_rotate %arg17 by %c15_i32_353 dim 0 : vector<16x128xf32>, i32 -> vector<16x128xf32>
      %cst_354 = arith.constant 3.000000e+10 : f32
      %938 = vector.broadcast %cst_354 : f32 to vector<16x128xf32>
      %939 = arith.select %902, %936, %938 : vector<16x128xi1>, vector<16x128xf32>
      %cst_355 = arith.constant 3.000000e+10 : f32
      %940 = vector.broadcast %cst_355 : f32 to vector<16x128xf32>
      %941 = arith.select %905, %937, %940 : vector<16x128xi1>, vector<16x128xf32>
      %942 = arith.minimumf %939, %941 : vector<16x128xf32>
      %943 = vector.broadcast %900 : f32 to vector<16x128xf32>
      %944 = arith.addf %942, %943 : vector<16x128xf32>
      %945 = arith.minimumf %arg9, %944 : vector<16x128xf32>
      %c1_i32_356 = arith.constant 1 : i32
      %946 = arith.addi %arg4, %c1_i32_356 : i32
      %947 = arith.sitofp %946 : i32 to f32
      %948 = arith.mulf %947, %947 : f32
      %949 = vector.broadcast %947 : f32 to vector<16x128xf32>
      %950 = arith.cmpf oge, %6, %949 : vector<16x128xf32>
      %cst_357 = arith.constant 1.600000e+01 : f32
      %951 = arith.subf %cst_357, %947 : f32
      %952 = vector.broadcast %951 : f32 to vector<16x128xf32>
      %953 = arith.cmpf olt, %6, %952 : vector<16x128xf32>
      %c1_i32_358 = arith.constant 1 : i32
      %954 = tpu.dynamic_rotate %906 by %c1_i32_358 dim 0 : vector<16x128xf32>, i32 -> vector<16x128xf32>
      %c15_i32_359 = arith.constant 15 : i32
      %955 = tpu.dynamic_rotate %907 by %c15_i32_359 dim 0 : vector<16x128xf32>, i32 -> vector<16x128xf32>
      %cst_360 = arith.constant 3.000000e+10 : f32
      %956 = vector.broadcast %cst_360 : f32 to vector<16x128xf32>
      %957 = arith.select %950, %954, %956 : vector<16x128xi1>, vector<16x128xf32>
      %cst_361 = arith.constant 3.000000e+10 : f32
      %958 = vector.broadcast %cst_361 : f32 to vector<16x128xf32>
      %959 = arith.select %953, %955, %958 : vector<16x128xi1>, vector<16x128xf32>
      %960 = arith.minimumf %957, %959 : vector<16x128xf32>
      %961 = vector.broadcast %948 : f32 to vector<16x128xf32>
      %962 = arith.addf %960, %961 : vector<16x128xf32>
      %963 = arith.minimumf %915, %962 : vector<16x128xf32>
      %c1_i32_362 = arith.constant 1 : i32
      %964 = tpu.dynamic_rotate %916 by %c1_i32_362 dim 0 : vector<16x128xf32>, i32 -> vector<16x128xf32>
      %c15_i32_363 = arith.constant 15 : i32
      %965 = tpu.dynamic_rotate %917 by %c15_i32_363 dim 0 : vector<16x128xf32>, i32 -> vector<16x128xf32>
      %cst_364 = arith.constant 3.000000e+10 : f32
      %966 = vector.broadcast %cst_364 : f32 to vector<16x128xf32>
      %967 = arith.select %950, %964, %966 : vector<16x128xi1>, vector<16x128xf32>
      %cst_365 = arith.constant 3.000000e+10 : f32
      %968 = vector.broadcast %cst_365 : f32 to vector<16x128xf32>
      %969 = arith.select %953, %965, %968 : vector<16x128xi1>, vector<16x128xf32>
      %970 = arith.minimumf %967, %969 : vector<16x128xf32>
      %971 = vector.broadcast %948 : f32 to vector<16x128xf32>
      %972 = arith.addf %970, %971 : vector<16x128xf32>
      %973 = arith.minimumf %925, %972 : vector<16x128xf32>
      %c1_i32_366 = arith.constant 1 : i32
      %974 = tpu.dynamic_rotate %926 by %c1_i32_366 dim 0 : vector<16x128xf32>, i32 -> vector<16x128xf32>
      %c15_i32_367 = arith.constant 15 : i32
      %975 = tpu.dynamic_rotate %927 by %c15_i32_367 dim 0 : vector<16x128xf32>, i32 -> vector<16x128xf32>
      %cst_368 = arith.constant 3.000000e+10 : f32
      %976 = vector.broadcast %cst_368 : f32 to vector<16x128xf32>
      %977 = arith.select %950, %974, %976 : vector<16x128xi1>, vector<16x128xf32>
      %cst_369 = arith.constant 3.000000e+10 : f32
      %978 = vector.broadcast %cst_369 : f32 to vector<16x128xf32>
      %979 = arith.select %953, %975, %978 : vector<16x128xi1>, vector<16x128xf32>
      %980 = arith.minimumf %977, %979 : vector<16x128xf32>
      %981 = vector.broadcast %948 : f32 to vector<16x128xf32>
      %982 = arith.addf %980, %981 : vector<16x128xf32>
      %983 = arith.minimumf %935, %982 : vector<16x128xf32>
      %c1_i32_370 = arith.constant 1 : i32
      %984 = tpu.dynamic_rotate %936 by %c1_i32_370 dim 0 : vector<16x128xf32>, i32 -> vector<16x128xf32>
      %c15_i32_371 = arith.constant 15 : i32
      %985 = tpu.dynamic_rotate %937 by %c15_i32_371 dim 0 : vector<16x128xf32>, i32 -> vector<16x128xf32>
      %cst_372 = arith.constant 3.000000e+10 : f32
      %986 = vector.broadcast %cst_372 : f32 to vector<16x128xf32>
      %987 = arith.select %950, %984, %986 : vector<16x128xi1>, vector<16x128xf32>
      %cst_373 = arith.constant 3.000000e+10 : f32
      %988 = vector.broadcast %cst_373 : f32 to vector<16x128xf32>
      %989 = arith.select %953, %985, %988 : vector<16x128xi1>, vector<16x128xf32>
      %990 = arith.minimumf %987, %989 : vector<16x128xf32>
      %991 = vector.broadcast %948 : f32 to vector<16x128xf32>
      %992 = arith.addf %990, %991 : vector<16x128xf32>
      %993 = arith.minimumf %945, %992 : vector<16x128xf32>
      %c2_i32_374 = arith.constant 2 : i32
      %994 = arith.addi %arg4, %c2_i32_374 : i32
      %995 = arith.sitofp %994 : i32 to f32
      %996 = arith.mulf %995, %995 : f32
      %997 = vector.broadcast %995 : f32 to vector<16x128xf32>
      %998 = arith.cmpf oge, %6, %997 : vector<16x128xf32>
      %cst_375 = arith.constant 1.600000e+01 : f32
      %999 = arith.subf %cst_375, %995 : f32
      %1000 = vector.broadcast %999 : f32 to vector<16x128xf32>
      %1001 = arith.cmpf olt, %6, %1000 : vector<16x128xf32>
      %c1_i32_376 = arith.constant 1 : i32
      %1002 = tpu.dynamic_rotate %954 by %c1_i32_376 dim 0 : vector<16x128xf32>, i32 -> vector<16x128xf32>
      %c15_i32_377 = arith.constant 15 : i32
      %1003 = tpu.dynamic_rotate %955 by %c15_i32_377 dim 0 : vector<16x128xf32>, i32 -> vector<16x128xf32>
      %cst_378 = arith.constant 3.000000e+10 : f32
      %1004 = vector.broadcast %cst_378 : f32 to vector<16x128xf32>
      %1005 = arith.select %998, %1002, %1004 : vector<16x128xi1>, vector<16x128xf32>
      %cst_379 = arith.constant 3.000000e+10 : f32
      %1006 = vector.broadcast %cst_379 : f32 to vector<16x128xf32>
      %1007 = arith.select %1001, %1003, %1006 : vector<16x128xi1>, vector<16x128xf32>
      %1008 = arith.minimumf %1005, %1007 : vector<16x128xf32>
      %1009 = vector.broadcast %996 : f32 to vector<16x128xf32>
      %1010 = arith.addf %1008, %1009 : vector<16x128xf32>
      %1011 = arith.minimumf %963, %1010 : vector<16x128xf32>
      %c1_i32_380 = arith.constant 1 : i32
      %1012 = tpu.dynamic_rotate %964 by %c1_i32_380 dim 0 : vector<16x128xf32>, i32 -> vector<16x128xf32>
      %c15_i32_381 = arith.constant 15 : i32
      %1013 = tpu.dynamic_rotate %965 by %c15_i32_381 dim 0 : vector<16x128xf32>, i32 -> vector<16x128xf32>
      %cst_382 = arith.constant 3.000000e+10 : f32
      %1014 = vector.broadcast %cst_382 : f32 to vector<16x128xf32>
      %1015 = arith.select %998, %1012, %1014 : vector<16x128xi1>, vector<16x128xf32>
      %cst_383 = arith.constant 3.000000e+10 : f32
      %1016 = vector.broadcast %cst_383 : f32 to vector<16x128xf32>
      %1017 = arith.select %1001, %1013, %1016 : vector<16x128xi1>, vector<16x128xf32>
      %1018 = arith.minimumf %1015, %1017 : vector<16x128xf32>
      %1019 = vector.broadcast %996 : f32 to vector<16x128xf32>
      %1020 = arith.addf %1018, %1019 : vector<16x128xf32>
      %1021 = arith.minimumf %973, %1020 : vector<16x128xf32>
      %c1_i32_384 = arith.constant 1 : i32
      %1022 = tpu.dynamic_rotate %974 by %c1_i32_384 dim 0 : vector<16x128xf32>, i32 -> vector<16x128xf32>
      %c15_i32_385 = arith.constant 15 : i32
      %1023 = tpu.dynamic_rotate %975 by %c15_i32_385 dim 0 : vector<16x128xf32>, i32 -> vector<16x128xf32>
      %cst_386 = arith.constant 3.000000e+10 : f32
      %1024 = vector.broadcast %cst_386 : f32 to vector<16x128xf32>
      %1025 = arith.select %998, %1022, %1024 : vector<16x128xi1>, vector<16x128xf32>
      %cst_387 = arith.constant 3.000000e+10 : f32
      %1026 = vector.broadcast %cst_387 : f32 to vector<16x128xf32>
      %1027 = arith.select %1001, %1023, %1026 : vector<16x128xi1>, vector<16x128xf32>
      %1028 = arith.minimumf %1025, %1027 : vector<16x128xf32>
      %1029 = vector.broadcast %996 : f32 to vector<16x128xf32>
      %1030 = arith.addf %1028, %1029 : vector<16x128xf32>
      %1031 = arith.minimumf %983, %1030 : vector<16x128xf32>
      %c1_i32_388 = arith.constant 1 : i32
      %1032 = tpu.dynamic_rotate %984 by %c1_i32_388 dim 0 : vector<16x128xf32>, i32 -> vector<16x128xf32>
      %c15_i32_389 = arith.constant 15 : i32
      %1033 = tpu.dynamic_rotate %985 by %c15_i32_389 dim 0 : vector<16x128xf32>, i32 -> vector<16x128xf32>
      %cst_390 = arith.constant 3.000000e+10 : f32
      %1034 = vector.broadcast %cst_390 : f32 to vector<16x128xf32>
      %1035 = arith.select %998, %1032, %1034 : vector<16x128xi1>, vector<16x128xf32>
      %cst_391 = arith.constant 3.000000e+10 : f32
      %1036 = vector.broadcast %cst_391 : f32 to vector<16x128xf32>
      %1037 = arith.select %1001, %1033, %1036 : vector<16x128xi1>, vector<16x128xf32>
      %1038 = arith.minimumf %1035, %1037 : vector<16x128xf32>
      %1039 = vector.broadcast %996 : f32 to vector<16x128xf32>
      %1040 = arith.addf %1038, %1039 : vector<16x128xf32>
      %1041 = arith.minimumf %993, %1040 : vector<16x128xf32>
      %c3_i32_392 = arith.constant 3 : i32
      %1042 = arith.addi %arg4, %c3_i32_392 : i32
      %1043 = arith.sitofp %1042 : i32 to f32
      %1044 = arith.mulf %1043, %1043 : f32
      %1045 = vector.broadcast %1043 : f32 to vector<16x128xf32>
      %1046 = arith.cmpf oge, %6, %1045 : vector<16x128xf32>
      %cst_393 = arith.constant 1.600000e+01 : f32
      %1047 = arith.subf %cst_393, %1043 : f32
      %1048 = vector.broadcast %1047 : f32 to vector<16x128xf32>
      %1049 = arith.cmpf olt, %6, %1048 : vector<16x128xf32>
      %c1_i32_394 = arith.constant 1 : i32
      %1050 = tpu.dynamic_rotate %1002 by %c1_i32_394 dim 0 : vector<16x128xf32>, i32 -> vector<16x128xf32>
      %c15_i32_395 = arith.constant 15 : i32
      %1051 = tpu.dynamic_rotate %1003 by %c15_i32_395 dim 0 : vector<16x128xf32>, i32 -> vector<16x128xf32>
      %cst_396 = arith.constant 3.000000e+10 : f32
      %1052 = vector.broadcast %cst_396 : f32 to vector<16x128xf32>
      %1053 = arith.select %1046, %1050, %1052 : vector<16x128xi1>, vector<16x128xf32>
      %cst_397 = arith.constant 3.000000e+10 : f32
      %1054 = vector.broadcast %cst_397 : f32 to vector<16x128xf32>
      %1055 = arith.select %1049, %1051, %1054 : vector<16x128xi1>, vector<16x128xf32>
      %1056 = arith.minimumf %1053, %1055 : vector<16x128xf32>
      %1057 = vector.broadcast %1044 : f32 to vector<16x128xf32>
      %1058 = arith.addf %1056, %1057 : vector<16x128xf32>
      %1059 = arith.minimumf %1011, %1058 : vector<16x128xf32>
      %c1_i32_398 = arith.constant 1 : i32
      %1060 = tpu.dynamic_rotate %1012 by %c1_i32_398 dim 0 : vector<16x128xf32>, i32 -> vector<16x128xf32>
      %c15_i32_399 = arith.constant 15 : i32
      %1061 = tpu.dynamic_rotate %1013 by %c15_i32_399 dim 0 : vector<16x128xf32>, i32 -> vector<16x128xf32>
      %cst_400 = arith.constant 3.000000e+10 : f32
      %1062 = vector.broadcast %cst_400 : f32 to vector<16x128xf32>
      %1063 = arith.select %1046, %1060, %1062 : vector<16x128xi1>, vector<16x128xf32>
      %cst_401 = arith.constant 3.000000e+10 : f32
      %1064 = vector.broadcast %cst_401 : f32 to vector<16x128xf32>
      %1065 = arith.select %1049, %1061, %1064 : vector<16x128xi1>, vector<16x128xf32>
      %1066 = arith.minimumf %1063, %1065 : vector<16x128xf32>
      %1067 = vector.broadcast %1044 : f32 to vector<16x128xf32>
      %1068 = arith.addf %1066, %1067 : vector<16x128xf32>
      %1069 = arith.minimumf %1021, %1068 : vector<16x128xf32>
      %c1_i32_402 = arith.constant 1 : i32
      %1070 = tpu.dynamic_rotate %1022 by %c1_i32_402 dim 0 : vector<16x128xf32>, i32 -> vector<16x128xf32>
      %c15_i32_403 = arith.constant 15 : i32
      %1071 = tpu.dynamic_rotate %1023 by %c15_i32_403 dim 0 : vector<16x128xf32>, i32 -> vector<16x128xf32>
      %cst_404 = arith.constant 3.000000e+10 : f32
      %1072 = vector.broadcast %cst_404 : f32 to vector<16x128xf32>
      %1073 = arith.select %1046, %1070, %1072 : vector<16x128xi1>, vector<16x128xf32>
      %cst_405 = arith.constant 3.000000e+10 : f32
      %1074 = vector.broadcast %cst_405 : f32 to vector<16x128xf32>
      %1075 = arith.select %1049, %1071, %1074 : vector<16x128xi1>, vector<16x128xf32>
      %1076 = arith.minimumf %1073, %1075 : vector<16x128xf32>
      %1077 = vector.broadcast %1044 : f32 to vector<16x128xf32>
      %1078 = arith.addf %1076, %1077 : vector<16x128xf32>
      %1079 = arith.minimumf %1031, %1078 : vector<16x128xf32>
      %c1_i32_406 = arith.constant 1 : i32
      %1080 = tpu.dynamic_rotate %1032 by %c1_i32_406 dim 0 : vector<16x128xf32>, i32 -> vector<16x128xf32>
      %c15_i32_407 = arith.constant 15 : i32
      %1081 = tpu.dynamic_rotate %1033 by %c15_i32_407 dim 0 : vector<16x128xf32>, i32 -> vector<16x128xf32>
      %cst_408 = arith.constant 3.000000e+10 : f32
      %1082 = vector.broadcast %cst_408 : f32 to vector<16x128xf32>
      %1083 = arith.select %1046, %1080, %1082 : vector<16x128xi1>, vector<16x128xf32>
      %cst_409 = arith.constant 3.000000e+10 : f32
      %1084 = vector.broadcast %cst_409 : f32 to vector<16x128xf32>
      %1085 = arith.select %1049, %1081, %1084 : vector<16x128xi1>, vector<16x128xf32>
      %1086 = arith.minimumf %1083, %1085 : vector<16x128xf32>
      %1087 = vector.broadcast %1044 : f32 to vector<16x128xf32>
      %1088 = arith.addf %1086, %1087 : vector<16x128xf32>
      %1089 = arith.minimumf %1041, %1088 : vector<16x128xf32>
      %c4_i32_410 = arith.constant 4 : i32
      %1090 = arith.addi %arg4, %c4_i32_410 : i32
      %1091 = arith.sitofp %1090 : i32 to f32
      %1092 = arith.mulf %1091, %1091 : f32
      %1093 = vector.broadcast %1091 : f32 to vector<16x128xf32>
      %1094 = arith.cmpf oge, %6, %1093 : vector<16x128xf32>
      %cst_411 = arith.constant 1.600000e+01 : f32
      %1095 = arith.subf %cst_411, %1091 : f32
      %1096 = vector.broadcast %1095 : f32 to vector<16x128xf32>
      %1097 = arith.cmpf olt, %6, %1096 : vector<16x128xf32>
      %c1_i32_412 = arith.constant 1 : i32
      %1098 = tpu.dynamic_rotate %1050 by %c1_i32_412 dim 0 : vector<16x128xf32>, i32 -> vector<16x128xf32>
      %c15_i32_413 = arith.constant 15 : i32
      %1099 = tpu.dynamic_rotate %1051 by %c15_i32_413 dim 0 : vector<16x128xf32>, i32 -> vector<16x128xf32>
      %cst_414 = arith.constant 3.000000e+10 : f32
      %1100 = vector.broadcast %cst_414 : f32 to vector<16x128xf32>
      %1101 = arith.select %1094, %1098, %1100 : vector<16x128xi1>, vector<16x128xf32>
      %cst_415 = arith.constant 3.000000e+10 : f32
      %1102 = vector.broadcast %cst_415 : f32 to vector<16x128xf32>
      %1103 = arith.select %1097, %1099, %1102 : vector<16x128xi1>, vector<16x128xf32>
      %1104 = arith.minimumf %1101, %1103 : vector<16x128xf32>
      %1105 = vector.broadcast %1092 : f32 to vector<16x128xf32>
      %1106 = arith.addf %1104, %1105 : vector<16x128xf32>
      %1107 = arith.minimumf %1059, %1106 : vector<16x128xf32>
      %c1_i32_416 = arith.constant 1 : i32
      %1108 = tpu.dynamic_rotate %1060 by %c1_i32_416 dim 0 : vector<16x128xf32>, i32 -> vector<16x128xf32>
      %c15_i32_417 = arith.constant 15 : i32
      %1109 = tpu.dynamic_rotate %1061 by %c15_i32_417 dim 0 : vector<16x128xf32>, i32 -> vector<16x128xf32>
      %cst_418 = arith.constant 3.000000e+10 : f32
      %1110 = vector.broadcast %cst_418 : f32 to vector<16x128xf32>
      %1111 = arith.select %1094, %1108, %1110 : vector<16x128xi1>, vector<16x128xf32>
      %cst_419 = arith.constant 3.000000e+10 : f32
      %1112 = vector.broadcast %cst_419 : f32 to vector<16x128xf32>
      %1113 = arith.select %1097, %1109, %1112 : vector<16x128xi1>, vector<16x128xf32>
      %1114 = arith.minimumf %1111, %1113 : vector<16x128xf32>
      %1115 = vector.broadcast %1092 : f32 to vector<16x128xf32>
      %1116 = arith.addf %1114, %1115 : vector<16x128xf32>
      %1117 = arith.minimumf %1069, %1116 : vector<16x128xf32>
      %c1_i32_420 = arith.constant 1 : i32
      %1118 = tpu.dynamic_rotate %1070 by %c1_i32_420 dim 0 : vector<16x128xf32>, i32 -> vector<16x128xf32>
      %c15_i32_421 = arith.constant 15 : i32
      %1119 = tpu.dynamic_rotate %1071 by %c15_i32_421 dim 0 : vector<16x128xf32>, i32 -> vector<16x128xf32>
      %cst_422 = arith.constant 3.000000e+10 : f32
      %1120 = vector.broadcast %cst_422 : f32 to vector<16x128xf32>
      %1121 = arith.select %1094, %1118, %1120 : vector<16x128xi1>, vector<16x128xf32>
      %cst_423 = arith.constant 3.000000e+10 : f32
      %1122 = vector.broadcast %cst_423 : f32 to vector<16x128xf32>
      %1123 = arith.select %1097, %1119, %1122 : vector<16x128xi1>, vector<16x128xf32>
      %1124 = arith.minimumf %1121, %1123 : vector<16x128xf32>
      %1125 = vector.broadcast %1092 : f32 to vector<16x128xf32>
      %1126 = arith.addf %1124, %1125 : vector<16x128xf32>
      %1127 = arith.minimumf %1079, %1126 : vector<16x128xf32>
      %c1_i32_424 = arith.constant 1 : i32
      %1128 = tpu.dynamic_rotate %1080 by %c1_i32_424 dim 0 : vector<16x128xf32>, i32 -> vector<16x128xf32>
      %c15_i32_425 = arith.constant 15 : i32
      %1129 = tpu.dynamic_rotate %1081 by %c15_i32_425 dim 0 : vector<16x128xf32>, i32 -> vector<16x128xf32>
      %cst_426 = arith.constant 3.000000e+10 : f32
      %1130 = vector.broadcast %cst_426 : f32 to vector<16x128xf32>
      %1131 = arith.select %1094, %1128, %1130 : vector<16x128xi1>, vector<16x128xf32>
      %cst_427 = arith.constant 3.000000e+10 : f32
      %1132 = vector.broadcast %cst_427 : f32 to vector<16x128xf32>
      %1133 = arith.select %1097, %1129, %1132 : vector<16x128xi1>, vector<16x128xf32>
      %1134 = arith.minimumf %1131, %1133 : vector<16x128xf32>
      %1135 = vector.broadcast %1092 : f32 to vector<16x128xf32>
      %1136 = arith.addf %1134, %1135 : vector<16x128xf32>
      %1137 = arith.minimumf %1089, %1136 : vector<16x128xf32>
      %c5_i32_428 = arith.constant 5 : i32
      %1138 = arith.addi %arg4, %c5_i32_428 : i32
      %1139 = arith.sitofp %1138 : i32 to f32
      %1140 = arith.mulf %1139, %1139 : f32
      %1141 = vector.broadcast %1139 : f32 to vector<16x128xf32>
      %1142 = arith.cmpf oge, %6, %1141 : vector<16x128xf32>
      %cst_429 = arith.constant 1.600000e+01 : f32
      %1143 = arith.subf %cst_429, %1139 : f32
      %1144 = vector.broadcast %1143 : f32 to vector<16x128xf32>
      %1145 = arith.cmpf olt, %6, %1144 : vector<16x128xf32>
      %c1_i32_430 = arith.constant 1 : i32
      %1146 = tpu.dynamic_rotate %1098 by %c1_i32_430 dim 0 : vector<16x128xf32>, i32 -> vector<16x128xf32>
      %c15_i32_431 = arith.constant 15 : i32
      %1147 = tpu.dynamic_rotate %1099 by %c15_i32_431 dim 0 : vector<16x128xf32>, i32 -> vector<16x128xf32>
      %cst_432 = arith.constant 3.000000e+10 : f32
      %1148 = vector.broadcast %cst_432 : f32 to vector<16x128xf32>
      %1149 = arith.select %1142, %1146, %1148 : vector<16x128xi1>, vector<16x128xf32>
      %cst_433 = arith.constant 3.000000e+10 : f32
      %1150 = vector.broadcast %cst_433 : f32 to vector<16x128xf32>
      %1151 = arith.select %1145, %1147, %1150 : vector<16x128xi1>, vector<16x128xf32>
      %1152 = arith.minimumf %1149, %1151 : vector<16x128xf32>
      %1153 = vector.broadcast %1140 : f32 to vector<16x128xf32>
      %1154 = arith.addf %1152, %1153 : vector<16x128xf32>
      %1155 = arith.minimumf %1107, %1154 : vector<16x128xf32>
      %c1_i32_434 = arith.constant 1 : i32
      %1156 = tpu.dynamic_rotate %1108 by %c1_i32_434 dim 0 : vector<16x128xf32>, i32 -> vector<16x128xf32>
      %c15_i32_435 = arith.constant 15 : i32
      %1157 = tpu.dynamic_rotate %1109 by %c15_i32_435 dim 0 : vector<16x128xf32>, i32 -> vector<16x128xf32>
      %cst_436 = arith.constant 3.000000e+10 : f32
      %1158 = vector.broadcast %cst_436 : f32 to vector<16x128xf32>
      %1159 = arith.select %1142, %1156, %1158 : vector<16x128xi1>, vector<16x128xf32>
      %cst_437 = arith.constant 3.000000e+10 : f32
      %1160 = vector.broadcast %cst_437 : f32 to vector<16x128xf32>
      %1161 = arith.select %1145, %1157, %1160 : vector<16x128xi1>, vector<16x128xf32>
      %1162 = arith.minimumf %1159, %1161 : vector<16x128xf32>
      %1163 = vector.broadcast %1140 : f32 to vector<16x128xf32>
      %1164 = arith.addf %1162, %1163 : vector<16x128xf32>
      %1165 = arith.minimumf %1117, %1164 : vector<16x128xf32>
      %c1_i32_438 = arith.constant 1 : i32
      %1166 = tpu.dynamic_rotate %1118 by %c1_i32_438 dim 0 : vector<16x128xf32>, i32 -> vector<16x128xf32>
      %c15_i32_439 = arith.constant 15 : i32
      %1167 = tpu.dynamic_rotate %1119 by %c15_i32_439 dim 0 : vector<16x128xf32>, i32 -> vector<16x128xf32>
      %cst_440 = arith.constant 3.000000e+10 : f32
      %1168 = vector.broadcast %cst_440 : f32 to vector<16x128xf32>
      %1169 = arith.select %1142, %1166, %1168 : vector<16x128xi1>, vector<16x128xf32>
      %cst_441 = arith.constant 3.000000e+10 : f32
      %1170 = vector.broadcast %cst_441 : f32 to vector<16x128xf32>
      %1171 = arith.select %1145, %1167, %1170 : vector<16x128xi1>, vector<16x128xf32>
      %1172 = arith.minimumf %1169, %1171 : vector<16x128xf32>
      %1173 = vector.broadcast %1140 : f32 to vector<16x128xf32>
      %1174 = arith.addf %1172, %1173 : vector<16x128xf32>
      %1175 = arith.minimumf %1127, %1174 : vector<16x128xf32>
      %c1_i32_442 = arith.constant 1 : i32
      %1176 = tpu.dynamic_rotate %1128 by %c1_i32_442 dim 0 : vector<16x128xf32>, i32 -> vector<16x128xf32>
      %c15_i32_443 = arith.constant 15 : i32
      %1177 = tpu.dynamic_rotate %1129 by %c15_i32_443 dim 0 : vector<16x128xf32>, i32 -> vector<16x128xf32>
      %cst_444 = arith.constant 3.000000e+10 : f32
      %1178 = vector.broadcast %cst_444 : f32 to vector<16x128xf32>
      %1179 = arith.select %1142, %1176, %1178 : vector<16x128xi1>, vector<16x128xf32>
      %cst_445 = arith.constant 3.000000e+10 : f32
      %1180 = vector.broadcast %cst_445 : f32 to vector<16x128xf32>
      %1181 = arith.select %1145, %1177, %1180 : vector<16x128xi1>, vector<16x128xf32>
      %1182 = arith.minimumf %1179, %1181 : vector<16x128xf32>
      %1183 = vector.broadcast %1140 : f32 to vector<16x128xf32>
      %1184 = arith.addf %1182, %1183 : vector<16x128xf32>
      %1185 = arith.minimumf %1137, %1184 : vector<16x128xf32>
      %c6_i32_446 = arith.constant 6 : i32
      %1186 = arith.addi %arg4, %c6_i32_446 : i32
      %1187 = arith.sitofp %1186 : i32 to f32
      %1188 = arith.mulf %1187, %1187 : f32
      %1189 = vector.broadcast %1187 : f32 to vector<16x128xf32>
      %1190 = arith.cmpf oge, %6, %1189 : vector<16x128xf32>
      %cst_447 = arith.constant 1.600000e+01 : f32
      %1191 = arith.subf %cst_447, %1187 : f32
      %1192 = vector.broadcast %1191 : f32 to vector<16x128xf32>
      %1193 = arith.cmpf olt, %6, %1192 : vector<16x128xf32>
      %c1_i32_448 = arith.constant 1 : i32
      %1194 = tpu.dynamic_rotate %1146 by %c1_i32_448 dim 0 : vector<16x128xf32>, i32 -> vector<16x128xf32>
      %c15_i32_449 = arith.constant 15 : i32
      %1195 = tpu.dynamic_rotate %1147 by %c15_i32_449 dim 0 : vector<16x128xf32>, i32 -> vector<16x128xf32>
      %cst_450 = arith.constant 3.000000e+10 : f32
      %1196 = vector.broadcast %cst_450 : f32 to vector<16x128xf32>
      %1197 = arith.select %1190, %1194, %1196 : vector<16x128xi1>, vector<16x128xf32>
      %cst_451 = arith.constant 3.000000e+10 : f32
      %1198 = vector.broadcast %cst_451 : f32 to vector<16x128xf32>
      %1199 = arith.select %1193, %1195, %1198 : vector<16x128xi1>, vector<16x128xf32>
      %1200 = arith.minimumf %1197, %1199 : vector<16x128xf32>
      %1201 = vector.broadcast %1188 : f32 to vector<16x128xf32>
      %1202 = arith.addf %1200, %1201 : vector<16x128xf32>
      %1203 = arith.minimumf %1155, %1202 : vector<16x128xf32>
      %c1_i32_452 = arith.constant 1 : i32
      %1204 = tpu.dynamic_rotate %1156 by %c1_i32_452 dim 0 : vector<16x128xf32>, i32 -> vector<16x128xf32>
      %c15_i32_453 = arith.constant 15 : i32
      %1205 = tpu.dynamic_rotate %1157 by %c15_i32_453 dim 0 : vector<16x128xf32>, i32 -> vector<16x128xf32>
      %cst_454 = arith.constant 3.000000e+10 : f32
      %1206 = vector.broadcast %cst_454 : f32 to vector<16x128xf32>
      %1207 = arith.select %1190, %1204, %1206 : vector<16x128xi1>, vector<16x128xf32>
      %cst_455 = arith.constant 3.000000e+10 : f32
      %1208 = vector.broadcast %cst_455 : f32 to vector<16x128xf32>
      %1209 = arith.select %1193, %1205, %1208 : vector<16x128xi1>, vector<16x128xf32>
      %1210 = arith.minimumf %1207, %1209 : vector<16x128xf32>
      %1211 = vector.broadcast %1188 : f32 to vector<16x128xf32>
      %1212 = arith.addf %1210, %1211 : vector<16x128xf32>
      %1213 = arith.minimumf %1165, %1212 : vector<16x128xf32>
      %c1_i32_456 = arith.constant 1 : i32
      %1214 = tpu.dynamic_rotate %1166 by %c1_i32_456 dim 0 : vector<16x128xf32>, i32 -> vector<16x128xf32>
      %c15_i32_457 = arith.constant 15 : i32
      %1215 = tpu.dynamic_rotate %1167 by %c15_i32_457 dim 0 : vector<16x128xf32>, i32 -> vector<16x128xf32>
      %cst_458 = arith.constant 3.000000e+10 : f32
      %1216 = vector.broadcast %cst_458 : f32 to vector<16x128xf32>
      %1217 = arith.select %1190, %1214, %1216 : vector<16x128xi1>, vector<16x128xf32>
      %cst_459 = arith.constant 3.000000e+10 : f32
      %1218 = vector.broadcast %cst_459 : f32 to vector<16x128xf32>
      %1219 = arith.select %1193, %1215, %1218 : vector<16x128xi1>, vector<16x128xf32>
      %1220 = arith.minimumf %1217, %1219 : vector<16x128xf32>
      %1221 = vector.broadcast %1188 : f32 to vector<16x128xf32>
      %1222 = arith.addf %1220, %1221 : vector<16x128xf32>
      %1223 = arith.minimumf %1175, %1222 : vector<16x128xf32>
      %c1_i32_460 = arith.constant 1 : i32
      %1224 = tpu.dynamic_rotate %1176 by %c1_i32_460 dim 0 : vector<16x128xf32>, i32 -> vector<16x128xf32>
      %c15_i32_461 = arith.constant 15 : i32
      %1225 = tpu.dynamic_rotate %1177 by %c15_i32_461 dim 0 : vector<16x128xf32>, i32 -> vector<16x128xf32>
      %cst_462 = arith.constant 3.000000e+10 : f32
      %1226 = vector.broadcast %cst_462 : f32 to vector<16x128xf32>
      %1227 = arith.select %1190, %1224, %1226 : vector<16x128xi1>, vector<16x128xf32>
      %cst_463 = arith.constant 3.000000e+10 : f32
      %1228 = vector.broadcast %cst_463 : f32 to vector<16x128xf32>
      %1229 = arith.select %1193, %1225, %1228 : vector<16x128xi1>, vector<16x128xf32>
      %1230 = arith.minimumf %1227, %1229 : vector<16x128xf32>
      %1231 = vector.broadcast %1188 : f32 to vector<16x128xf32>
      %1232 = arith.addf %1230, %1231 : vector<16x128xf32>
      %1233 = arith.minimumf %1185, %1232 : vector<16x128xf32>
      %c7_i32_464 = arith.constant 7 : i32
      %1234 = arith.addi %arg4, %c7_i32_464 : i32
      %1235 = arith.sitofp %1234 : i32 to f32
      %1236 = arith.mulf %1235, %1235 : f32
      %1237 = vector.broadcast %1235 : f32 to vector<16x128xf32>
      %1238 = arith.cmpf oge, %6, %1237 : vector<16x128xf32>
      %cst_465 = arith.constant 1.600000e+01 : f32
      %1239 = arith.subf %cst_465, %1235 : f32
      %1240 = vector.broadcast %1239 : f32 to vector<16x128xf32>
      %1241 = arith.cmpf olt, %6, %1240 : vector<16x128xf32>
      %c1_i32_466 = arith.constant 1 : i32
      %1242 = tpu.dynamic_rotate %1194 by %c1_i32_466 dim 0 : vector<16x128xf32>, i32 -> vector<16x128xf32>
      %c15_i32_467 = arith.constant 15 : i32
      %1243 = tpu.dynamic_rotate %1195 by %c15_i32_467 dim 0 : vector<16x128xf32>, i32 -> vector<16x128xf32>
      %cst_468 = arith.constant 3.000000e+10 : f32
      %1244 = vector.broadcast %cst_468 : f32 to vector<16x128xf32>
      %1245 = arith.select %1238, %1242, %1244 : vector<16x128xi1>, vector<16x128xf32>
      %cst_469 = arith.constant 3.000000e+10 : f32
      %1246 = vector.broadcast %cst_469 : f32 to vector<16x128xf32>
      %1247 = arith.select %1241, %1243, %1246 : vector<16x128xi1>, vector<16x128xf32>
      %1248 = arith.minimumf %1245, %1247 : vector<16x128xf32>
      %1249 = vector.broadcast %1236 : f32 to vector<16x128xf32>
      %1250 = arith.addf %1248, %1249 : vector<16x128xf32>
      %1251 = arith.minimumf %1203, %1250 : vector<16x128xf32>
      %c1_i32_470 = arith.constant 1 : i32
      %1252 = tpu.dynamic_rotate %1204 by %c1_i32_470 dim 0 : vector<16x128xf32>, i32 -> vector<16x128xf32>
      %c15_i32_471 = arith.constant 15 : i32
      %1253 = tpu.dynamic_rotate %1205 by %c15_i32_471 dim 0 : vector<16x128xf32>, i32 -> vector<16x128xf32>
      %cst_472 = arith.constant 3.000000e+10 : f32
      %1254 = vector.broadcast %cst_472 : f32 to vector<16x128xf32>
      %1255 = arith.select %1238, %1252, %1254 : vector<16x128xi1>, vector<16x128xf32>
      %cst_473 = arith.constant 3.000000e+10 : f32
      %1256 = vector.broadcast %cst_473 : f32 to vector<16x128xf32>
      %1257 = arith.select %1241, %1253, %1256 : vector<16x128xi1>, vector<16x128xf32>
      %1258 = arith.minimumf %1255, %1257 : vector<16x128xf32>
      %1259 = vector.broadcast %1236 : f32 to vector<16x128xf32>
      %1260 = arith.addf %1258, %1259 : vector<16x128xf32>
      %1261 = arith.minimumf %1213, %1260 : vector<16x128xf32>
      %c1_i32_474 = arith.constant 1 : i32
      %1262 = tpu.dynamic_rotate %1214 by %c1_i32_474 dim 0 : vector<16x128xf32>, i32 -> vector<16x128xf32>
      %c15_i32_475 = arith.constant 15 : i32
      %1263 = tpu.dynamic_rotate %1215 by %c15_i32_475 dim 0 : vector<16x128xf32>, i32 -> vector<16x128xf32>
      %cst_476 = arith.constant 3.000000e+10 : f32
      %1264 = vector.broadcast %cst_476 : f32 to vector<16x128xf32>
      %1265 = arith.select %1238, %1262, %1264 : vector<16x128xi1>, vector<16x128xf32>
      %cst_477 = arith.constant 3.000000e+10 : f32
      %1266 = vector.broadcast %cst_477 : f32 to vector<16x128xf32>
      %1267 = arith.select %1241, %1263, %1266 : vector<16x128xi1>, vector<16x128xf32>
      %1268 = arith.minimumf %1265, %1267 : vector<16x128xf32>
      %1269 = vector.broadcast %1236 : f32 to vector<16x128xf32>
      %1270 = arith.addf %1268, %1269 : vector<16x128xf32>
      %1271 = arith.minimumf %1223, %1270 : vector<16x128xf32>
      %c1_i32_478 = arith.constant 1 : i32
      %1272 = tpu.dynamic_rotate %1224 by %c1_i32_478 dim 0 : vector<16x128xf32>, i32 -> vector<16x128xf32>
      %c15_i32_479 = arith.constant 15 : i32
      %1273 = tpu.dynamic_rotate %1225 by %c15_i32_479 dim 0 : vector<16x128xf32>, i32 -> vector<16x128xf32>
      %cst_480 = arith.constant 3.000000e+10 : f32
      %1274 = vector.broadcast %cst_480 : f32 to vector<16x128xf32>
      %1275 = arith.select %1238, %1272, %1274 : vector<16x128xi1>, vector<16x128xf32>
      %cst_481 = arith.constant 3.000000e+10 : f32
      %1276 = vector.broadcast %cst_481 : f32 to vector<16x128xf32>
      %1277 = arith.select %1241, %1273, %1276 : vector<16x128xi1>, vector<16x128xf32>
      %1278 = arith.minimumf %1275, %1277 : vector<16x128xf32>
      %1279 = vector.broadcast %1236 : f32 to vector<16x128xf32>
      %1280 = arith.addf %1278, %1279 : vector<16x128xf32>
      %1281 = arith.minimumf %1233, %1280 : vector<16x128xf32>
      %c8_i32_482 = arith.constant 8 : i32
      %1282 = arith.addi %arg4, %c8_i32_482 : i32
      %cst_483 = arith.constant 0.000000e+00 : f32
      %1283 = vector.broadcast %cst_483 : f32 to vector<16x128xf32>
      %1284 = arith.select %299, %1251, %1283 : vector<16x128xi1>, vector<16x128xf32>
      %1285 = vector.shape_cast %1284 : vector<16x128xf32> to vector<1x16x128xf32>
      %cst_484 = arith.constant dense<0xFF800000> : vector<1xf32>
      %1286 = vector.multi_reduction <maximumf>, %1285, %cst_484 [1, 2] : vector<1x16x128xf32> to vector<1xf32>
      %1287 = vector.shape_cast %1286 : vector<1xf32> to vector<1x1x1xf32>
      %1288 = vector.extract %1287[0, 0, 0] : f32 from vector<1x1x1xf32>
      %cst_485 = arith.constant 0.000000e+00 : f32
      %1289 = arith.maximumf %cst_485, %1288 : f32
      %cst_486 = arith.constant 0.000000e+00 : f32
      %1290 = vector.broadcast %cst_486 : f32 to vector<16x128xf32>
      %1291 = arith.select %301, %1261, %1290 : vector<16x128xi1>, vector<16x128xf32>
      %1292 = vector.shape_cast %1291 : vector<16x128xf32> to vector<1x16x128xf32>
      %cst_487 = arith.constant dense<0xFF800000> : vector<1xf32>
      %1293 = vector.multi_reduction <maximumf>, %1292, %cst_487 [1, 2] : vector<1x16x128xf32> to vector<1xf32>
      %1294 = vector.shape_cast %1293 : vector<1xf32> to vector<1x1x1xf32>
      %1295 = vector.extract %1294[0, 0, 0] : f32 from vector<1x1x1xf32>
      %1296 = arith.maximumf %1289, %1295 : f32
      %cst_488 = arith.constant 0.000000e+00 : f32
      %1297 = vector.broadcast %cst_488 : f32 to vector<16x128xf32>
      %1298 = arith.select %303, %1271, %1297 : vector<16x128xi1>, vector<16x128xf32>
      %1299 = vector.shape_cast %1298 : vector<16x128xf32> to vector<1x16x128xf32>
      %cst_489 = arith.constant dense<0xFF800000> : vector<1xf32>
      %1300 = vector.multi_reduction <maximumf>, %1299, %cst_489 [1, 2] : vector<1x16x128xf32> to vector<1xf32>
      %1301 = vector.shape_cast %1300 : vector<1xf32> to vector<1x1x1xf32>
      %1302 = vector.extract %1301[0, 0, 0] : f32 from vector<1x1x1xf32>
      %1303 = arith.maximumf %1296, %1302 : f32
      %cst_490 = arith.constant 0.000000e+00 : f32
      %1304 = vector.broadcast %cst_490 : f32 to vector<16x128xf32>
      %1305 = arith.select %305, %1281, %1304 : vector<16x128xi1>, vector<16x128xf32>
      %1306 = vector.shape_cast %1305 : vector<16x128xf32> to vector<1x16x128xf32>
      %cst_491 = arith.constant dense<0xFF800000> : vector<1xf32>
      %1307 = vector.multi_reduction <maximumf>, %1306, %cst_491 [1, 2] : vector<1x16x128xf32> to vector<1xf32>
      %1308 = vector.shape_cast %1307 : vector<1xf32> to vector<1x1x1xf32>
      %1309 = vector.extract %1308[0, 0, 0] : f32 from vector<1x1x1xf32>
      %1310 = arith.maximumf %1303, %1309 : f32
      scf.yield %1282, %1310, %1251, %1261, %1271, %1281, %1242, %1252, %1262, %1272, %1243, %1253, %1263, %1273 : i32, f32, vector<16x128xf32>, vector<16x128xf32>, vector<16x128xf32>, vector<16x128xf32>, vector<16x128xf32>, vector<16x128xf32>, vector<16x128xf32>, vector<16x128xf32>, vector<16x128xf32>, vector<16x128xf32>, vector<16x128xf32>, vector<16x128xf32>
    }
    %cst_217 = arith.constant 1.000000e+08 : f32
    %564 = vector.broadcast %cst_217 : f32 to vector<16x128xf32>
    %565 = arith.cmpf oge, %563#2, %564 : vector<16x128xf32>
    %cst_218 = arith.constant 0.000000e+00 : f32
    %566 = vector.broadcast %cst_218 : f32 to vector<16x128xf32>
    %567 = arith.select %565, %566, %563#2 : vector<16x128xi1>, vector<16x128xf32>
    %cst_219 = arith.constant 1.000000e+08 : f32
    %568 = vector.broadcast %cst_219 : f32 to vector<16x128xf32>
    %569 = arith.cmpf oge, %563#3, %568 : vector<16x128xf32>
    %cst_220 = arith.constant 0.000000e+00 : f32
    %570 = vector.broadcast %cst_220 : f32 to vector<16x128xf32>
    %571 = arith.select %569, %570, %563#3 : vector<16x128xi1>, vector<16x128xf32>
    %572 = arith.addf %567, %571 : vector<16x128xf32>
    %cst_221 = arith.constant 0.000000e+00 : f32
    %573 = vector.broadcast %cst_221 : f32 to vector<16x128xf32>
    %574 = arith.select %301, %572, %573 : vector<16x128xi1>, vector<16x128xf32>
    %cst_222 = arith.constant 1.000000e+08 : f32
    %575 = vector.broadcast %cst_222 : f32 to vector<16x128xf32>
    %576 = arith.cmpf oge, %563#4, %575 : vector<16x128xf32>
    %cst_223 = arith.constant 0.000000e+00 : f32
    %577 = vector.broadcast %cst_223 : f32 to vector<16x128xf32>
    %578 = arith.select %576, %577, %563#4 : vector<16x128xi1>, vector<16x128xf32>
    %cst_224 = arith.constant 1.000000e+08 : f32
    %579 = vector.broadcast %cst_224 : f32 to vector<16x128xf32>
    %580 = arith.cmpf oge, %563#5, %579 : vector<16x128xf32>
    %cst_225 = arith.constant 0.000000e+00 : f32
    %581 = vector.broadcast %cst_225 : f32 to vector<16x128xf32>
    %582 = arith.select %580, %581, %563#5 : vector<16x128xi1>, vector<16x128xf32>
    %583 = arith.addf %578, %582 : vector<16x128xf32>
    %cst_226 = arith.constant 0.000000e+00 : f32
    %584 = vector.broadcast %cst_226 : f32 to vector<16x128xf32>
    %585 = arith.select %305, %583, %584 : vector<16x128xi1>, vector<16x128xf32>
    %586 = arith.subf %36, %3 : vector<16x128xf32>
    %587 = arith.subf %36, %3 : vector<16x128xf32>
    %588 = arith.mulf %586, %587 : vector<16x128xf32>
    %589 = arith.addf %574, %585 : vector<16x128xf32>
    %590 = arith.mulf %588, %589 : vector<16x128xf32>
    %591 = vector.shape_cast %590 : vector<16x128xf32> to vector<1x16x128xf32>
    %cst_227 = arith.constant dense<0.000000e+00> : vector<1xf32>
    %592 = vector.multi_reduction <add>, %591, %cst_227 [1, 2] : vector<1x16x128xf32> to vector<1xf32>
    %593 = vector.shape_cast %592 : vector<1xf32> to vector<1x1x1xf32>
    %594 = vector.extract %593[0, 0, 0] : f32 from vector<1x1x1xf32>
    %c128_i32 = arith.constant 128 : i32
    %595 = vector.broadcast %c128_i32 : i32 to vector<16x128xi32>
    %596 = arith.muli %4, %595 : vector<16x128xi32>
    %597 = arith.addi %596, %5 : vector<16x128xi32>
    %c2058_i32 = arith.constant 2058 : i32
    %598 = vector.broadcast %c2058_i32 : i32 to vector<16x128xi32>
    %599 = arith.select %38, %597, %598 : vector<16x128xi1>, vector<16x128xi32>
    %c0_i32 = arith.constant 0 : i32
    %c1_i32_228 = arith.constant 1 : i32
    %600:3 = scf.while (%arg4 = %c0_i32, %arg5 = %599, %arg6 = %c1_i32_228) : (i32, vector<16x128xi32>, i32) -> (i32, vector<16x128xi32>, i32) {
      %c256_i32 = arith.constant 256 : i32
      %898 = arith.cmpi slt, %arg4, %c256_i32 : i32
      %c0_i32_339 = arith.constant 0 : i32
      %899 = arith.cmpi sgt, %arg6, %c0_i32_339 : i32
      %900 = arith.andi %898, %899 : i1
      scf.condition(%900) %arg4, %arg5, %arg6 : i32, vector<16x128xi32>, i32
    } do {
    ^bb0(%arg4: i32, %arg5: vector<16x128xi32>, %arg6: i32):
      %cst_339 = arith.constant 1.000000e+00 : f32
      %898 = vector.broadcast %cst_339 : f32 to vector<16x128xf32>
      %899 = arith.cmpf oge, %6, %898 : vector<16x128xf32>
      %c1_i32_340 = arith.constant 1 : i32
      %900 = tpu.dynamic_rotate %arg5 by %c1_i32_340 dim 0 : vector<16x128xi32>, i32 -> vector<16x128xi32>
      %c2058_i32_341 = arith.constant 2058 : i32
      %901 = vector.broadcast %c2058_i32_341 : i32 to vector<16x128xi32>
      %902 = arith.select %899, %900, %901 : vector<16x128xi1>, vector<16x128xi32>
      %cst_342 = arith.constant 1.500000e+01 : f32
      %903 = vector.broadcast %cst_342 : f32 to vector<16x128xf32>
      %904 = arith.cmpf olt, %6, %903 : vector<16x128xf32>
      %c15_i32 = arith.constant 15 : i32
      %905 = tpu.dynamic_rotate %arg5 by %c15_i32 dim 0 : vector<16x128xi32>, i32 -> vector<16x128xi32>
      %c2058_i32_343 = arith.constant 2058 : i32
      %906 = vector.broadcast %c2058_i32_343 : i32 to vector<16x128xi32>
      %907 = arith.select %904, %905, %906 : vector<16x128xi1>, vector<16x128xi32>
      %908 = arith.minsi %902, %907 : vector<16x128xi32>
      %909 = arith.minsi %arg5, %908 : vector<16x128xi32>
      %cst_344 = arith.constant 1.000000e+00 : f32
      %910 = vector.broadcast %cst_344 : f32 to vector<16x128xf32>
      %911 = arith.cmpf oge, %13, %910 : vector<16x128xf32>
      %c1_i32_345 = arith.constant 1 : i32
      %912 = tpu.dynamic_rotate %909 by %c1_i32_345 dim 1 : vector<16x128xi32>, i32 -> vector<16x128xi32>
      %c2058_i32_346 = arith.constant 2058 : i32
      %913 = vector.broadcast %c2058_i32_346 : i32 to vector<16x128xi32>
      %914 = arith.select %911, %912, %913 : vector<16x128xi1>, vector<16x128xi32>
      %cst_347 = arith.constant 1.500000e+01 : f32
      %915 = vector.broadcast %cst_347 : f32 to vector<16x128xf32>
      %916 = arith.cmpf olt, %13, %915 : vector<16x128xf32>
      %c127_i32_348 = arith.constant 127 : i32
      %917 = tpu.dynamic_rotate %909 by %c127_i32_348 dim 1 : vector<16x128xi32>, i32 -> vector<16x128xi32>
      %c2058_i32_349 = arith.constant 2058 : i32
      %918 = vector.broadcast %c2058_i32_349 : i32 to vector<16x128xi32>
      %919 = arith.select %916, %917, %918 : vector<16x128xi1>, vector<16x128xi32>
      %920 = arith.minsi %914, %919 : vector<16x128xi32>
      %921 = arith.minsi %909, %920 : vector<16x128xi32>
      %c2058_i32_350 = arith.constant 2058 : i32
      %922 = vector.broadcast %c2058_i32_350 : i32 to vector<16x128xi32>
      %923 = arith.select %38, %921, %922 : vector<16x128xi1>, vector<16x128xi32>
      %cst_351 = arith.constant 1.000000e+00 : f32
      %924 = vector.broadcast %cst_351 : f32 to vector<16x128xf32>
      %925 = arith.cmpf oge, %13, %924 : vector<16x128xf32>
      %cst_352 = arith.constant 1.500000e+01 : f32
      %926 = vector.broadcast %cst_352 : f32 to vector<16x128xf32>
      %927 = arith.cmpf olt, %13, %926 : vector<16x128xf32>
      %cst_353 = arith.constant 0.000000e+00 : f32
      %928 = vector.broadcast %cst_353 : f32 to vector<16x128xf32>
      %929 = arith.cmpf ogt, %36, %928 : vector<16x128xf32>
      %930 = arith.andi %929, %925 : vector<16x128xi1>
      %c1_i32_354 = arith.constant 1 : i32
      %931 = tpu.dynamic_rotate %923 by %c1_i32_354 dim 1 : vector<16x128xi32>, i32 -> vector<16x128xi32>
      %c2058_i32_355 = arith.constant 2058 : i32
      %932 = vector.broadcast %c2058_i32_355 : i32 to vector<16x128xi32>
      %933 = arith.select %930, %931, %932 : vector<16x128xi1>, vector<16x128xi32>
      %934 = arith.minsi %923, %933 : vector<16x128xi32>
      %c1_i32_356 = arith.constant 1 : i32
      %935 = tpu.dynamic_rotate %36 by %c1_i32_356 dim 1 : vector<16x128xf32>, i32 -> vector<16x128xf32>
      %cst_357 = arith.constant 0.000000e+00 : f32
      %936 = vector.broadcast %cst_357 : f32 to vector<16x128xf32>
      %937 = arith.select %925, %935, %936 : vector<16x128xi1>, vector<16x128xf32>
      %938 = arith.mulf %36, %937 : vector<16x128xf32>
      %cst_358 = arith.constant 0.000000e+00 : f32
      %939 = vector.broadcast %cst_358 : f32 to vector<16x128xf32>
      %940 = arith.cmpf ogt, %36, %939 : vector<16x128xf32>
      %941 = arith.andi %940, %927 : vector<16x128xi1>
      %c127_i32_359 = arith.constant 127 : i32
      %942 = tpu.dynamic_rotate %923 by %c127_i32_359 dim 1 : vector<16x128xi32>, i32 -> vector<16x128xi32>
      %c2058_i32_360 = arith.constant 2058 : i32
      %943 = vector.broadcast %c2058_i32_360 : i32 to vector<16x128xi32>
      %944 = arith.select %941, %942, %943 : vector<16x128xi1>, vector<16x128xi32>
      %945 = arith.minsi %923, %944 : vector<16x128xi32>
      %c127_i32_361 = arith.constant 127 : i32
      %946 = tpu.dynamic_rotate %36 by %c127_i32_361 dim 1 : vector<16x128xf32>, i32 -> vector<16x128xf32>
      %cst_362 = arith.constant 0.000000e+00 : f32
      %947 = vector.broadcast %cst_362 : f32 to vector<16x128xf32>
      %948 = arith.select %927, %946, %947 : vector<16x128xi1>, vector<16x128xf32>
      %949 = arith.mulf %36, %948 : vector<16x128xf32>
      %cst_363 = arith.constant 2.000000e+00 : f32
      %950 = vector.broadcast %cst_363 : f32 to vector<16x128xf32>
      %951 = arith.cmpf oge, %13, %950 : vector<16x128xf32>
      %cst_364 = arith.constant 1.400000e+01 : f32
      %952 = vector.broadcast %cst_364 : f32 to vector<16x128xf32>
      %953 = arith.cmpf olt, %13, %952 : vector<16x128xf32>
      %cst_365 = arith.constant 0.000000e+00 : f32
      %954 = vector.broadcast %cst_365 : f32 to vector<16x128xf32>
      %955 = arith.cmpf ogt, %938, %954 : vector<16x128xf32>
      %956 = arith.andi %955, %951 : vector<16x128xi1>
      %c2_i32_366 = arith.constant 2 : i32
      %957 = tpu.dynamic_rotate %934 by %c2_i32_366 dim 1 : vector<16x128xi32>, i32 -> vector<16x128xi32>
      %c2058_i32_367 = arith.constant 2058 : i32
      %958 = vector.broadcast %c2058_i32_367 : i32 to vector<16x128xi32>
      %959 = arith.select %956, %957, %958 : vector<16x128xi1>, vector<16x128xi32>
      %960 = arith.minsi %934, %959 : vector<16x128xi32>
      %c2_i32_368 = arith.constant 2 : i32
      %961 = tpu.dynamic_rotate %938 by %c2_i32_368 dim 1 : vector<16x128xf32>, i32 -> vector<16x128xf32>
      %cst_369 = arith.constant 0.000000e+00 : f32
      %962 = vector.broadcast %cst_369 : f32 to vector<16x128xf32>
      %963 = arith.select %951, %961, %962 : vector<16x128xi1>, vector<16x128xf32>
      %964 = arith.mulf %938, %963 : vector<16x128xf32>
      %cst_370 = arith.constant 0.000000e+00 : f32
      %965 = vector.broadcast %cst_370 : f32 to vector<16x128xf32>
      %966 = arith.cmpf ogt, %949, %965 : vector<16x128xf32>
      %967 = arith.andi %966, %953 : vector<16x128xi1>
      %c126_i32_371 = arith.constant 126 : i32
      %968 = tpu.dynamic_rotate %945 by %c126_i32_371 dim 1 : vector<16x128xi32>, i32 -> vector<16x128xi32>
      %c2058_i32_372 = arith.constant 2058 : i32
      %969 = vector.broadcast %c2058_i32_372 : i32 to vector<16x128xi32>
      %970 = arith.select %967, %968, %969 : vector<16x128xi1>, vector<16x128xi32>
      %971 = arith.minsi %945, %970 : vector<16x128xi32>
      %c126_i32_373 = arith.constant 126 : i32
      %972 = tpu.dynamic_rotate %949 by %c126_i32_373 dim 1 : vector<16x128xf32>, i32 -> vector<16x128xf32>
      %cst_374 = arith.constant 0.000000e+00 : f32
      %973 = vector.broadcast %cst_374 : f32 to vector<16x128xf32>
      %974 = arith.select %953, %972, %973 : vector<16x128xi1>, vector<16x128xf32>
      %975 = arith.mulf %949, %974 : vector<16x128xf32>
      %cst_375 = arith.constant 4.000000e+00 : f32
      %976 = vector.broadcast %cst_375 : f32 to vector<16x128xf32>
      %977 = arith.cmpf oge, %13, %976 : vector<16x128xf32>
      %cst_376 = arith.constant 1.200000e+01 : f32
      %978 = vector.broadcast %cst_376 : f32 to vector<16x128xf32>
      %979 = arith.cmpf olt, %13, %978 : vector<16x128xf32>
      %cst_377 = arith.constant 0.000000e+00 : f32
      %980 = vector.broadcast %cst_377 : f32 to vector<16x128xf32>
      %981 = arith.cmpf ogt, %964, %980 : vector<16x128xf32>
      %982 = arith.andi %981, %977 : vector<16x128xi1>
      %c4_i32_378 = arith.constant 4 : i32
      %983 = tpu.dynamic_rotate %960 by %c4_i32_378 dim 1 : vector<16x128xi32>, i32 -> vector<16x128xi32>
      %c2058_i32_379 = arith.constant 2058 : i32
      %984 = vector.broadcast %c2058_i32_379 : i32 to vector<16x128xi32>
      %985 = arith.select %982, %983, %984 : vector<16x128xi1>, vector<16x128xi32>
      %986 = arith.minsi %960, %985 : vector<16x128xi32>
      %c4_i32_380 = arith.constant 4 : i32
      %987 = tpu.dynamic_rotate %964 by %c4_i32_380 dim 1 : vector<16x128xf32>, i32 -> vector<16x128xf32>
      %cst_381 = arith.constant 0.000000e+00 : f32
      %988 = vector.broadcast %cst_381 : f32 to vector<16x128xf32>
      %989 = arith.select %977, %987, %988 : vector<16x128xi1>, vector<16x128xf32>
      %990 = arith.mulf %964, %989 : vector<16x128xf32>
      %cst_382 = arith.constant 0.000000e+00 : f32
      %991 = vector.broadcast %cst_382 : f32 to vector<16x128xf32>
      %992 = arith.cmpf ogt, %975, %991 : vector<16x128xf32>
      %993 = arith.andi %992, %979 : vector<16x128xi1>
      %c124_i32_383 = arith.constant 124 : i32
      %994 = tpu.dynamic_rotate %971 by %c124_i32_383 dim 1 : vector<16x128xi32>, i32 -> vector<16x128xi32>
      %c2058_i32_384 = arith.constant 2058 : i32
      %995 = vector.broadcast %c2058_i32_384 : i32 to vector<16x128xi32>
      %996 = arith.select %993, %994, %995 : vector<16x128xi1>, vector<16x128xi32>
      %997 = arith.minsi %971, %996 : vector<16x128xi32>
      %c124_i32_385 = arith.constant 124 : i32
      %998 = tpu.dynamic_rotate %975 by %c124_i32_385 dim 1 : vector<16x128xf32>, i32 -> vector<16x128xf32>
      %cst_386 = arith.constant 0.000000e+00 : f32
      %999 = vector.broadcast %cst_386 : f32 to vector<16x128xf32>
      %1000 = arith.select %979, %998, %999 : vector<16x128xi1>, vector<16x128xf32>
      %1001 = arith.mulf %975, %1000 : vector<16x128xf32>
      %cst_387 = arith.constant 8.000000e+00 : f32
      %1002 = vector.broadcast %cst_387 : f32 to vector<16x128xf32>
      %1003 = arith.cmpf oge, %13, %1002 : vector<16x128xf32>
      %cst_388 = arith.constant 8.000000e+00 : f32
      %1004 = vector.broadcast %cst_388 : f32 to vector<16x128xf32>
      %1005 = arith.cmpf olt, %13, %1004 : vector<16x128xf32>
      %cst_389 = arith.constant 0.000000e+00 : f32
      %1006 = vector.broadcast %cst_389 : f32 to vector<16x128xf32>
      %1007 = arith.cmpf ogt, %990, %1006 : vector<16x128xf32>
      %1008 = arith.andi %1007, %1003 : vector<16x128xi1>
      %c8_i32_390 = arith.constant 8 : i32
      %1009 = tpu.dynamic_rotate %986 by %c8_i32_390 dim 1 : vector<16x128xi32>, i32 -> vector<16x128xi32>
      %c2058_i32_391 = arith.constant 2058 : i32
      %1010 = vector.broadcast %c2058_i32_391 : i32 to vector<16x128xi32>
      %1011 = arith.select %1008, %1009, %1010 : vector<16x128xi1>, vector<16x128xi32>
      %1012 = arith.minsi %986, %1011 : vector<16x128xi32>
      %c8_i32_392 = arith.constant 8 : i32
      %1013 = tpu.dynamic_rotate %990 by %c8_i32_392 dim 1 : vector<16x128xf32>, i32 -> vector<16x128xf32>
      %cst_393 = arith.constant 0.000000e+00 : f32
      %1014 = vector.broadcast %cst_393 : f32 to vector<16x128xf32>
      %1015 = arith.select %1003, %1013, %1014 : vector<16x128xi1>, vector<16x128xf32>
      %1016 = arith.mulf %990, %1015 : vector<16x128xf32>
      %cst_394 = arith.constant 0.000000e+00 : f32
      %1017 = vector.broadcast %cst_394 : f32 to vector<16x128xf32>
      %1018 = arith.cmpf ogt, %1001, %1017 : vector<16x128xf32>
      %1019 = arith.andi %1018, %1005 : vector<16x128xi1>
      %c120_i32_395 = arith.constant 120 : i32
      %1020 = tpu.dynamic_rotate %997 by %c120_i32_395 dim 1 : vector<16x128xi32>, i32 -> vector<16x128xi32>
      %c2058_i32_396 = arith.constant 2058 : i32
      %1021 = vector.broadcast %c2058_i32_396 : i32 to vector<16x128xi32>
      %1022 = arith.select %1019, %1020, %1021 : vector<16x128xi1>, vector<16x128xi32>
      %1023 = arith.minsi %997, %1022 : vector<16x128xi32>
      %c120_i32_397 = arith.constant 120 : i32
      %1024 = tpu.dynamic_rotate %1001 by %c120_i32_397 dim 1 : vector<16x128xf32>, i32 -> vector<16x128xf32>
      %cst_398 = arith.constant 0.000000e+00 : f32
      %1025 = vector.broadcast %cst_398 : f32 to vector<16x128xf32>
      %1026 = arith.select %1005, %1024, %1025 : vector<16x128xi1>, vector<16x128xf32>
      %1027 = arith.mulf %1001, %1026 : vector<16x128xf32>
      %1028 = arith.minsi %1012, %1023 : vector<16x128xi32>
      %c2058_i32_399 = arith.constant 2058 : i32
      %1029 = vector.broadcast %c2058_i32_399 : i32 to vector<16x128xi32>
      %1030 = arith.select %38, %1028, %1029 : vector<16x128xi1>, vector<16x128xi32>
      %cst_400 = arith.constant 1.000000e+00 : f32
      %1031 = vector.broadcast %cst_400 : f32 to vector<16x128xf32>
      %1032 = arith.cmpf oge, %6, %1031 : vector<16x128xf32>
      %cst_401 = arith.constant 1.500000e+01 : f32
      %1033 = vector.broadcast %cst_401 : f32 to vector<16x128xf32>
      %1034 = arith.cmpf olt, %6, %1033 : vector<16x128xf32>
      %cst_402 = arith.constant 0.000000e+00 : f32
      %1035 = vector.broadcast %cst_402 : f32 to vector<16x128xf32>
      %1036 = arith.cmpf ogt, %36, %1035 : vector<16x128xf32>
      %1037 = arith.andi %1036, %1032 : vector<16x128xi1>
      %c1_i32_403 = arith.constant 1 : i32
      %1038 = tpu.dynamic_rotate %1030 by %c1_i32_403 dim 0 : vector<16x128xi32>, i32 -> vector<16x128xi32>
      %c2058_i32_404 = arith.constant 2058 : i32
      %1039 = vector.broadcast %c2058_i32_404 : i32 to vector<16x128xi32>
      %1040 = arith.select %1037, %1038, %1039 : vector<16x128xi1>, vector<16x128xi32>
      %1041 = arith.minsi %1030, %1040 : vector<16x128xi32>
      %c1_i32_405 = arith.constant 1 : i32
      %1042 = tpu.dynamic_rotate %36 by %c1_i32_405 dim 0 : vector<16x128xf32>, i32 -> vector<16x128xf32>
      %cst_406 = arith.constant 0.000000e+00 : f32
      %1043 = vector.broadcast %cst_406 : f32 to vector<16x128xf32>
      %1044 = arith.select %1032, %1042, %1043 : vector<16x128xi1>, vector<16x128xf32>
      %1045 = arith.mulf %36, %1044 : vector<16x128xf32>
      %cst_407 = arith.constant 0.000000e+00 : f32
      %1046 = vector.broadcast %cst_407 : f32 to vector<16x128xf32>
      %1047 = arith.cmpf ogt, %36, %1046 : vector<16x128xf32>
      %1048 = arith.andi %1047, %1034 : vector<16x128xi1>
      %c15_i32_408 = arith.constant 15 : i32
      %1049 = tpu.dynamic_rotate %1030 by %c15_i32_408 dim 0 : vector<16x128xi32>, i32 -> vector<16x128xi32>
      %c2058_i32_409 = arith.constant 2058 : i32
      %1050 = vector.broadcast %c2058_i32_409 : i32 to vector<16x128xi32>
      %1051 = arith.select %1048, %1049, %1050 : vector<16x128xi1>, vector<16x128xi32>
      %1052 = arith.minsi %1030, %1051 : vector<16x128xi32>
      %c15_i32_410 = arith.constant 15 : i32
      %1053 = tpu.dynamic_rotate %36 by %c15_i32_410 dim 0 : vector<16x128xf32>, i32 -> vector<16x128xf32>
      %cst_411 = arith.constant 0.000000e+00 : f32
      %1054 = vector.broadcast %cst_411 : f32 to vector<16x128xf32>
      %1055 = arith.select %1034, %1053, %1054 : vector<16x128xi1>, vector<16x128xf32>
      %1056 = arith.mulf %36, %1055 : vector<16x128xf32>
      %cst_412 = arith.constant 2.000000e+00 : f32
      %1057 = vector.broadcast %cst_412 : f32 to vector<16x128xf32>
      %1058 = arith.cmpf oge, %6, %1057 : vector<16x128xf32>
      %cst_413 = arith.constant 1.400000e+01 : f32
      %1059 = vector.broadcast %cst_413 : f32 to vector<16x128xf32>
      %1060 = arith.cmpf olt, %6, %1059 : vector<16x128xf32>
      %cst_414 = arith.constant 0.000000e+00 : f32
      %1061 = vector.broadcast %cst_414 : f32 to vector<16x128xf32>
      %1062 = arith.cmpf ogt, %1045, %1061 : vector<16x128xf32>
      %1063 = arith.andi %1062, %1058 : vector<16x128xi1>
      %c2_i32_415 = arith.constant 2 : i32
      %1064 = tpu.dynamic_rotate %1041 by %c2_i32_415 dim 0 : vector<16x128xi32>, i32 -> vector<16x128xi32>
      %c2058_i32_416 = arith.constant 2058 : i32
      %1065 = vector.broadcast %c2058_i32_416 : i32 to vector<16x128xi32>
      %1066 = arith.select %1063, %1064, %1065 : vector<16x128xi1>, vector<16x128xi32>
      %1067 = arith.minsi %1041, %1066 : vector<16x128xi32>
      %c2_i32_417 = arith.constant 2 : i32
      %1068 = tpu.dynamic_rotate %1045 by %c2_i32_417 dim 0 : vector<16x128xf32>, i32 -> vector<16x128xf32>
      %cst_418 = arith.constant 0.000000e+00 : f32
      %1069 = vector.broadcast %cst_418 : f32 to vector<16x128xf32>
      %1070 = arith.select %1058, %1068, %1069 : vector<16x128xi1>, vector<16x128xf32>
      %1071 = arith.mulf %1045, %1070 : vector<16x128xf32>
      %cst_419 = arith.constant 0.000000e+00 : f32
      %1072 = vector.broadcast %cst_419 : f32 to vector<16x128xf32>
      %1073 = arith.cmpf ogt, %1056, %1072 : vector<16x128xf32>
      %1074 = arith.andi %1073, %1060 : vector<16x128xi1>
      %c14_i32 = arith.constant 14 : i32
      %1075 = tpu.dynamic_rotate %1052 by %c14_i32 dim 0 : vector<16x128xi32>, i32 -> vector<16x128xi32>
      %c2058_i32_420 = arith.constant 2058 : i32
      %1076 = vector.broadcast %c2058_i32_420 : i32 to vector<16x128xi32>
      %1077 = arith.select %1074, %1075, %1076 : vector<16x128xi1>, vector<16x128xi32>
      %1078 = arith.minsi %1052, %1077 : vector<16x128xi32>
      %c14_i32_421 = arith.constant 14 : i32
      %1079 = tpu.dynamic_rotate %1056 by %c14_i32_421 dim 0 : vector<16x128xf32>, i32 -> vector<16x128xf32>
      %cst_422 = arith.constant 0.000000e+00 : f32
      %1080 = vector.broadcast %cst_422 : f32 to vector<16x128xf32>
      %1081 = arith.select %1060, %1079, %1080 : vector<16x128xi1>, vector<16x128xf32>
      %1082 = arith.mulf %1056, %1081 : vector<16x128xf32>
      %cst_423 = arith.constant 4.000000e+00 : f32
      %1083 = vector.broadcast %cst_423 : f32 to vector<16x128xf32>
      %1084 = arith.cmpf oge, %6, %1083 : vector<16x128xf32>
      %cst_424 = arith.constant 1.200000e+01 : f32
      %1085 = vector.broadcast %cst_424 : f32 to vector<16x128xf32>
      %1086 = arith.cmpf olt, %6, %1085 : vector<16x128xf32>
      %cst_425 = arith.constant 0.000000e+00 : f32
      %1087 = vector.broadcast %cst_425 : f32 to vector<16x128xf32>
      %1088 = arith.cmpf ogt, %1071, %1087 : vector<16x128xf32>
      %1089 = arith.andi %1088, %1084 : vector<16x128xi1>
      %c4_i32_426 = arith.constant 4 : i32
      %1090 = tpu.dynamic_rotate %1067 by %c4_i32_426 dim 0 : vector<16x128xi32>, i32 -> vector<16x128xi32>
      %c2058_i32_427 = arith.constant 2058 : i32
      %1091 = vector.broadcast %c2058_i32_427 : i32 to vector<16x128xi32>
      %1092 = arith.select %1089, %1090, %1091 : vector<16x128xi1>, vector<16x128xi32>
      %1093 = arith.minsi %1067, %1092 : vector<16x128xi32>
      %c4_i32_428 = arith.constant 4 : i32
      %1094 = tpu.dynamic_rotate %1071 by %c4_i32_428 dim 0 : vector<16x128xf32>, i32 -> vector<16x128xf32>
      %cst_429 = arith.constant 0.000000e+00 : f32
      %1095 = vector.broadcast %cst_429 : f32 to vector<16x128xf32>
      %1096 = arith.select %1084, %1094, %1095 : vector<16x128xi1>, vector<16x128xf32>
      %1097 = arith.mulf %1071, %1096 : vector<16x128xf32>
      %cst_430 = arith.constant 0.000000e+00 : f32
      %1098 = vector.broadcast %cst_430 : f32 to vector<16x128xf32>
      %1099 = arith.cmpf ogt, %1082, %1098 : vector<16x128xf32>
      %1100 = arith.andi %1099, %1086 : vector<16x128xi1>
      %c12_i32 = arith.constant 12 : i32
      %1101 = tpu.dynamic_rotate %1078 by %c12_i32 dim 0 : vector<16x128xi32>, i32 -> vector<16x128xi32>
      %c2058_i32_431 = arith.constant 2058 : i32
      %1102 = vector.broadcast %c2058_i32_431 : i32 to vector<16x128xi32>
      %1103 = arith.select %1100, %1101, %1102 : vector<16x128xi1>, vector<16x128xi32>
      %1104 = arith.minsi %1078, %1103 : vector<16x128xi32>
      %c12_i32_432 = arith.constant 12 : i32
      %1105 = tpu.dynamic_rotate %1082 by %c12_i32_432 dim 0 : vector<16x128xf32>, i32 -> vector<16x128xf32>
      %cst_433 = arith.constant 0.000000e+00 : f32
      %1106 = vector.broadcast %cst_433 : f32 to vector<16x128xf32>
      %1107 = arith.select %1086, %1105, %1106 : vector<16x128xi1>, vector<16x128xf32>
      %1108 = arith.mulf %1082, %1107 : vector<16x128xf32>
      %cst_434 = arith.constant 8.000000e+00 : f32
      %1109 = vector.broadcast %cst_434 : f32 to vector<16x128xf32>
      %1110 = arith.cmpf oge, %6, %1109 : vector<16x128xf32>
      %cst_435 = arith.constant 8.000000e+00 : f32
      %1111 = vector.broadcast %cst_435 : f32 to vector<16x128xf32>
      %1112 = arith.cmpf olt, %6, %1111 : vector<16x128xf32>
      %cst_436 = arith.constant 0.000000e+00 : f32
      %1113 = vector.broadcast %cst_436 : f32 to vector<16x128xf32>
      %1114 = arith.cmpf ogt, %1097, %1113 : vector<16x128xf32>
      %1115 = arith.andi %1114, %1110 : vector<16x128xi1>
      %c8_i32_437 = arith.constant 8 : i32
      %1116 = tpu.dynamic_rotate %1093 by %c8_i32_437 dim 0 : vector<16x128xi32>, i32 -> vector<16x128xi32>
      %c2058_i32_438 = arith.constant 2058 : i32
      %1117 = vector.broadcast %c2058_i32_438 : i32 to vector<16x128xi32>
      %1118 = arith.select %1115, %1116, %1117 : vector<16x128xi1>, vector<16x128xi32>
      %1119 = arith.minsi %1093, %1118 : vector<16x128xi32>
      %c8_i32_439 = arith.constant 8 : i32
      %1120 = tpu.dynamic_rotate %1097 by %c8_i32_439 dim 0 : vector<16x128xf32>, i32 -> vector<16x128xf32>
      %cst_440 = arith.constant 0.000000e+00 : f32
      %1121 = vector.broadcast %cst_440 : f32 to vector<16x128xf32>
      %1122 = arith.select %1110, %1120, %1121 : vector<16x128xi1>, vector<16x128xf32>
      %1123 = arith.mulf %1097, %1122 : vector<16x128xf32>
      %cst_441 = arith.constant 0.000000e+00 : f32
      %1124 = vector.broadcast %cst_441 : f32 to vector<16x128xf32>
      %1125 = arith.cmpf ogt, %1108, %1124 : vector<16x128xf32>
      %1126 = arith.andi %1125, %1112 : vector<16x128xi1>
      %c8_i32_442 = arith.constant 8 : i32
      %1127 = tpu.dynamic_rotate %1104 by %c8_i32_442 dim 0 : vector<16x128xi32>, i32 -> vector<16x128xi32>
      %c2058_i32_443 = arith.constant 2058 : i32
      %1128 = vector.broadcast %c2058_i32_443 : i32 to vector<16x128xi32>
      %1129 = arith.select %1126, %1127, %1128 : vector<16x128xi1>, vector<16x128xi32>
      %1130 = arith.minsi %1104, %1129 : vector<16x128xi32>
      %c8_i32_444 = arith.constant 8 : i32
      %1131 = tpu.dynamic_rotate %1108 by %c8_i32_444 dim 0 : vector<16x128xf32>, i32 -> vector<16x128xf32>
      %cst_445 = arith.constant 0.000000e+00 : f32
      %1132 = vector.broadcast %cst_445 : f32 to vector<16x128xf32>
      %1133 = arith.select %1112, %1131, %1132 : vector<16x128xi1>, vector<16x128xf32>
      %1134 = arith.mulf %1108, %1133 : vector<16x128xf32>
      %1135 = arith.minsi %1119, %1130 : vector<16x128xi32>
      %c2058_i32_446 = arith.constant 2058 : i32
      %1136 = vector.broadcast %c2058_i32_446 : i32 to vector<16x128xi32>
      %1137 = arith.select %38, %1135, %1136 : vector<16x128xi1>, vector<16x128xi32>
      %1138 = arith.subi %arg5, %1137 : vector<16x128xi32>
      %1139 = vector.shape_cast %1138 : vector<16x128xi32> to vector<1x16x128xi32>
      %cst_447 = arith.constant dense<-2147483648> : vector<1xi32>
      %1140 = vector.multi_reduction <maxsi>, %1139, %cst_447 [1, 2] : vector<1x16x128xi32> to vector<1xi32>
      %1141 = vector.shape_cast %1140 : vector<1xi32> to vector<1x1x1xi32>
      %1142 = vector.extract %1141[0, 0, 0] : i32 from vector<1x1x1xi32>
      %c1_i32_448 = arith.constant 1 : i32
      %1143 = arith.addi %arg4, %c1_i32_448 : i32
      scf.yield %1143, %1137, %1142 : i32, vector<16x128xi32>, i32
    }
    %601 = arith.cmpi eq, %600#1, %597 : vector<16x128xi32>
    %602 = arith.andi %38, %601 : vector<16x128xi1>
    %cst_229 = arith.constant 1.000000e+00 : f32
    %cst_230 = arith.constant 0.000000e+00 : f32
    %603 = vector.broadcast %cst_229 : f32 to vector<16x128xf32>
    %604 = vector.broadcast %cst_230 : f32 to vector<16x128xf32>
    %605 = arith.select %602, %603, %604 : vector<16x128xi1>, vector<16x128xf32>
    %cst_231 = arith.constant 0.000000e+00 : f32
    %606 = vector.broadcast %cst_231 : f32 to vector<16x128xf32>
    %607 = arith.cmpf oeq, %10, %606 : vector<16x128xf32>
    %cst_232 = arith.constant 0.000000e+00 : f32
    %608 = vector.broadcast %cst_232 : f32 to vector<16x128xf32>
    %609 = arith.select %607, %605, %608 : vector<16x128xi1>, vector<16x128xf32>
    %610 = vector.shape_cast %609 : vector<16x128xf32> to vector<1x16x128xf32>
    %cst_233 = arith.constant dense<0.000000e+00> : vector<1xf32>
    %611 = vector.multi_reduction <add>, %610, %cst_233 [1, 2] : vector<1x16x128xf32> to vector<1xf32>
    %612 = vector.shape_cast %611 : vector<1xf32> to vector<1x1x1xf32>
    %613 = vector.extract %612[0, 0, 0] : f32 from vector<1x1x1xf32>
    %cst_234 = arith.constant 1.000000e+00 : f32
    %614 = vector.broadcast %cst_234 : f32 to vector<16x128xf32>
    %615 = arith.cmpf oeq, %10, %614 : vector<16x128xf32>
    %cst_235 = arith.constant 0.000000e+00 : f32
    %616 = vector.broadcast %cst_235 : f32 to vector<16x128xf32>
    %617 = arith.select %615, %605, %616 : vector<16x128xi1>, vector<16x128xf32>
    %618 = vector.shape_cast %617 : vector<16x128xf32> to vector<1x16x128xf32>
    %cst_236 = arith.constant dense<0.000000e+00> : vector<1xf32>
    %619 = vector.multi_reduction <add>, %618, %cst_236 [1, 2] : vector<1x16x128xf32> to vector<1xf32>
    %620 = vector.shape_cast %619 : vector<1xf32> to vector<1x1x1xf32>
    %621 = vector.extract %620[0, 0, 0] : f32 from vector<1x1x1xf32>
    %cst_237 = arith.constant 2.000000e+00 : f32
    %622 = vector.broadcast %cst_237 : f32 to vector<16x128xf32>
    %623 = arith.cmpf oeq, %10, %622 : vector<16x128xf32>
    %cst_238 = arith.constant 0.000000e+00 : f32
    %624 = vector.broadcast %cst_238 : f32 to vector<16x128xf32>
    %625 = arith.select %623, %605, %624 : vector<16x128xi1>, vector<16x128xf32>
    %626 = vector.shape_cast %625 : vector<16x128xf32> to vector<1x16x128xf32>
    %cst_239 = arith.constant dense<0.000000e+00> : vector<1xf32>
    %627 = vector.multi_reduction <add>, %626, %cst_239 [1, 2] : vector<1x16x128xf32> to vector<1xf32>
    %628 = vector.shape_cast %627 : vector<1xf32> to vector<1x1x1xf32>
    %629 = vector.extract %628[0, 0, 0] : f32 from vector<1x1x1xf32>
    %cst_240 = arith.constant 3.000000e+00 : f32
    %630 = vector.broadcast %cst_240 : f32 to vector<16x128xf32>
    %631 = arith.cmpf oeq, %10, %630 : vector<16x128xf32>
    %cst_241 = arith.constant 0.000000e+00 : f32
    %632 = vector.broadcast %cst_241 : f32 to vector<16x128xf32>
    %633 = arith.select %631, %605, %632 : vector<16x128xi1>, vector<16x128xf32>
    %634 = vector.shape_cast %633 : vector<16x128xf32> to vector<1x16x128xf32>
    %cst_242 = arith.constant dense<0.000000e+00> : vector<1xf32>
    %635 = vector.multi_reduction <add>, %634, %cst_242 [1, 2] : vector<1x16x128xf32> to vector<1xf32>
    %636 = vector.shape_cast %635 : vector<1xf32> to vector<1x1x1xf32>
    %637 = vector.extract %636[0, 0, 0] : f32 from vector<1x1x1xf32>
    %cst_243 = arith.constant 4.000000e+00 : f32
    %638 = vector.broadcast %cst_243 : f32 to vector<16x128xf32>
    %639 = arith.cmpf oeq, %10, %638 : vector<16x128xf32>
    %cst_244 = arith.constant 0.000000e+00 : f32
    %640 = vector.broadcast %cst_244 : f32 to vector<16x128xf32>
    %641 = arith.select %639, %605, %640 : vector<16x128xi1>, vector<16x128xf32>
    %642 = vector.shape_cast %641 : vector<16x128xf32> to vector<1x16x128xf32>
    %cst_245 = arith.constant dense<0.000000e+00> : vector<1xf32>
    %643 = vector.multi_reduction <add>, %642, %cst_245 [1, 2] : vector<1x16x128xf32> to vector<1xf32>
    %644 = vector.shape_cast %643 : vector<1xf32> to vector<1x1x1xf32>
    %645 = vector.extract %644[0, 0, 0] : f32 from vector<1x1x1xf32>
    %cst_246 = arith.constant 5.000000e+00 : f32
    %646 = vector.broadcast %cst_246 : f32 to vector<16x128xf32>
    %647 = arith.cmpf oeq, %10, %646 : vector<16x128xf32>
    %cst_247 = arith.constant 0.000000e+00 : f32
    %648 = vector.broadcast %cst_247 : f32 to vector<16x128xf32>
    %649 = arith.select %647, %605, %648 : vector<16x128xi1>, vector<16x128xf32>
    %650 = vector.shape_cast %649 : vector<16x128xf32> to vector<1x16x128xf32>
    %cst_248 = arith.constant dense<0.000000e+00> : vector<1xf32>
    %651 = vector.multi_reduction <add>, %650, %cst_248 [1, 2] : vector<1x16x128xf32> to vector<1xf32>
    %652 = vector.shape_cast %651 : vector<1xf32> to vector<1x1x1xf32>
    %653 = vector.extract %652[0, 0, 0] : f32 from vector<1x1x1xf32>
    %cst_249 = arith.constant 6.000000e+00 : f32
    %654 = vector.broadcast %cst_249 : f32 to vector<16x128xf32>
    %655 = arith.cmpf oeq, %10, %654 : vector<16x128xf32>
    %cst_250 = arith.constant 0.000000e+00 : f32
    %656 = vector.broadcast %cst_250 : f32 to vector<16x128xf32>
    %657 = arith.select %655, %605, %656 : vector<16x128xi1>, vector<16x128xf32>
    %658 = vector.shape_cast %657 : vector<16x128xf32> to vector<1x16x128xf32>
    %cst_251 = arith.constant dense<0.000000e+00> : vector<1xf32>
    %659 = vector.multi_reduction <add>, %658, %cst_251 [1, 2] : vector<1x16x128xf32> to vector<1xf32>
    %660 = vector.shape_cast %659 : vector<1xf32> to vector<1x1x1xf32>
    %661 = vector.extract %660[0, 0, 0] : f32 from vector<1x1x1xf32>
    %cst_252 = arith.constant 7.000000e+00 : f32
    %662 = vector.broadcast %cst_252 : f32 to vector<16x128xf32>
    %663 = arith.cmpf oeq, %10, %662 : vector<16x128xf32>
    %cst_253 = arith.constant 0.000000e+00 : f32
    %664 = vector.broadcast %cst_253 : f32 to vector<16x128xf32>
    %665 = arith.select %663, %605, %664 : vector<16x128xi1>, vector<16x128xf32>
    %666 = vector.shape_cast %665 : vector<16x128xf32> to vector<1x16x128xf32>
    %cst_254 = arith.constant dense<0.000000e+00> : vector<1xf32>
    %667 = vector.multi_reduction <add>, %666, %cst_254 [1, 2] : vector<1x16x128xf32> to vector<1xf32>
    %668 = vector.shape_cast %667 : vector<1xf32> to vector<1x1x1xf32>
    %669 = vector.extract %668[0, 0, 0] : f32 from vector<1x1x1xf32>
    %670 = tpu.iota {dimensions = array<i32: 0>} : vector<8x128xi32>
    %671 = tpu.iota {dimensions = array<i32: 1>} : vector<8x128xi32>
    %cst_255 = arith.constant 0.000000e+00 : f32
    %672 = vector.broadcast %cst_255 : f32 to vector<8x128xf32>
    %c0_i32_256 = arith.constant 0 : i32
    %673 = vector.broadcast %c0_i32_256 : i32 to vector<8x128xi32>
    %674 = arith.cmpi eq, %670, %673 : vector<8x128xi32>
    %c0_i32_257 = arith.constant 0 : i32
    %675 = vector.broadcast %c0_i32_257 : i32 to vector<8x128xi32>
    %676 = arith.cmpi eq, %671, %675 : vector<8x128xi32>
    %677 = arith.andi %674, %676 : vector<8x128xi1>
    %678 = vector.broadcast %32 : f32 to vector<8x128xf32>
    %679 = arith.select %677, %678, %672 : vector<8x128xi1>, vector<8x128xf32>
    %c0_i32_258 = arith.constant 0 : i32
    %680 = vector.broadcast %c0_i32_258 : i32 to vector<8x128xi32>
    %681 = arith.cmpi eq, %670, %680 : vector<8x128xi32>
    %c1_i32_259 = arith.constant 1 : i32
    %682 = vector.broadcast %c1_i32_259 : i32 to vector<8x128xi32>
    %683 = arith.cmpi eq, %671, %682 : vector<8x128xi32>
    %684 = arith.andi %681, %683 : vector<8x128xi1>
    %685 = vector.broadcast %594 : f32 to vector<8x128xf32>
    %686 = arith.select %684, %685, %679 : vector<8x128xi1>, vector<8x128xf32>
    %687 = arith.addf %46, %110 : f32
    %cst_260 = arith.constant 0.000000e+00 : f32
    %688 = arith.cmpf ogt, %613, %cst_260 : f32
    %cst_261 = arith.constant 1.000000e+00 : f32
    %689 = arith.divf %cst_261, %613 : f32
    %cst_262 = arith.constant 1.000000e+00 : f32
    %690 = arith.subf %cst_262, %689 : f32
    %cst_263 = arith.constant 1.000000e+00 : f32
    %691 = arith.select %688, %690, %cst_263 : f32
    %c1_i32_264 = arith.constant 1 : i32
    %692 = vector.broadcast %c1_i32_264 : i32 to vector<8x128xi32>
    %693 = arith.cmpi eq, %670, %692 : vector<8x128xi32>
    %c0_i32_265 = arith.constant 0 : i32
    %694 = vector.broadcast %c0_i32_265 : i32 to vector<8x128xi32>
    %695 = arith.cmpi eq, %671, %694 : vector<8x128xi32>
    %696 = arith.andi %693, %695 : vector<8x128xi1>
    %697 = vector.broadcast %175 : f32 to vector<8x128xf32>
    %698 = arith.select %696, %697, %686 : vector<8x128xi1>, vector<8x128xf32>
    %c2_i32_266 = arith.constant 2 : i32
    %699 = vector.broadcast %c2_i32_266 : i32 to vector<8x128xi32>
    %700 = arith.cmpi eq, %670, %699 : vector<8x128xi32>
    %c0_i32_267 = arith.constant 0 : i32
    %701 = vector.broadcast %c0_i32_267 : i32 to vector<8x128xi32>
    %702 = arith.cmpi eq, %671, %701 : vector<8x128xi32>
    %703 = arith.andi %700, %702 : vector<8x128xi1>
    %704 = vector.broadcast %687 : f32 to vector<8x128xf32>
    %705 = arith.select %703, %704, %698 : vector<8x128xi1>, vector<8x128xf32>
    %c3_i32 = arith.constant 3 : i32
    %706 = vector.broadcast %c3_i32 : i32 to vector<8x128xi32>
    %707 = arith.cmpi eq, %670, %706 : vector<8x128xi32>
    %c0_i32_268 = arith.constant 0 : i32
    %708 = vector.broadcast %c0_i32_268 : i32 to vector<8x128xi32>
    %709 = arith.cmpi eq, %671, %708 : vector<8x128xi32>
    %710 = arith.andi %707, %709 : vector<8x128xi1>
    %711 = vector.broadcast %691 : f32 to vector<8x128xf32>
    %712 = arith.select %710, %711, %705 : vector<8x128xi1>, vector<8x128xf32>
    %713 = arith.addf %54, %118 : f32
    %cst_269 = arith.constant 0.000000e+00 : f32
    %714 = arith.cmpf ogt, %621, %cst_269 : f32
    %cst_270 = arith.constant 1.000000e+00 : f32
    %715 = arith.divf %cst_270, %621 : f32
    %cst_271 = arith.constant 1.000000e+00 : f32
    %716 = arith.subf %cst_271, %715 : f32
    %cst_272 = arith.constant 1.000000e+00 : f32
    %717 = arith.select %714, %716, %cst_272 : f32
    %c1_i32_273 = arith.constant 1 : i32
    %718 = vector.broadcast %c1_i32_273 : i32 to vector<8x128xi32>
    %719 = arith.cmpi eq, %670, %718 : vector<8x128xi32>
    %c1_i32_274 = arith.constant 1 : i32
    %720 = vector.broadcast %c1_i32_274 : i32 to vector<8x128xi32>
    %721 = arith.cmpi eq, %671, %720 : vector<8x128xi32>
    %722 = arith.andi %719, %721 : vector<8x128xi1>
    %723 = vector.broadcast %183 : f32 to vector<8x128xf32>
    %724 = arith.select %722, %723, %712 : vector<8x128xi1>, vector<8x128xf32>
    %c2_i32_275 = arith.constant 2 : i32
    %725 = vector.broadcast %c2_i32_275 : i32 to vector<8x128xi32>
    %726 = arith.cmpi eq, %670, %725 : vector<8x128xi32>
    %c1_i32_276 = arith.constant 1 : i32
    %727 = vector.broadcast %c1_i32_276 : i32 to vector<8x128xi32>
    %728 = arith.cmpi eq, %671, %727 : vector<8x128xi32>
    %729 = arith.andi %726, %728 : vector<8x128xi1>
    %730 = vector.broadcast %713 : f32 to vector<8x128xf32>
    %731 = arith.select %729, %730, %724 : vector<8x128xi1>, vector<8x128xf32>
    %c3_i32_277 = arith.constant 3 : i32
    %732 = vector.broadcast %c3_i32_277 : i32 to vector<8x128xi32>
    %733 = arith.cmpi eq, %670, %732 : vector<8x128xi32>
    %c1_i32_278 = arith.constant 1 : i32
    %734 = vector.broadcast %c1_i32_278 : i32 to vector<8x128xi32>
    %735 = arith.cmpi eq, %671, %734 : vector<8x128xi32>
    %736 = arith.andi %733, %735 : vector<8x128xi1>
    %737 = vector.broadcast %717 : f32 to vector<8x128xf32>
    %738 = arith.select %736, %737, %731 : vector<8x128xi1>, vector<8x128xf32>
    %739 = arith.addf %62, %126 : f32
    %cst_279 = arith.constant 0.000000e+00 : f32
    %740 = arith.cmpf ogt, %629, %cst_279 : f32
    %cst_280 = arith.constant 1.000000e+00 : f32
    %741 = arith.divf %cst_280, %629 : f32
    %cst_281 = arith.constant 1.000000e+00 : f32
    %742 = arith.subf %cst_281, %741 : f32
    %cst_282 = arith.constant 1.000000e+00 : f32
    %743 = arith.select %740, %742, %cst_282 : f32
    %c1_i32_283 = arith.constant 1 : i32
    %744 = vector.broadcast %c1_i32_283 : i32 to vector<8x128xi32>
    %745 = arith.cmpi eq, %670, %744 : vector<8x128xi32>
    %c2_i32_284 = arith.constant 2 : i32
    %746 = vector.broadcast %c2_i32_284 : i32 to vector<8x128xi32>
    %747 = arith.cmpi eq, %671, %746 : vector<8x128xi32>
    %748 = arith.andi %745, %747 : vector<8x128xi1>
    %749 = vector.broadcast %191 : f32 to vector<8x128xf32>
    %750 = arith.select %748, %749, %738 : vector<8x128xi1>, vector<8x128xf32>
    %c2_i32_285 = arith.constant 2 : i32
    %751 = vector.broadcast %c2_i32_285 : i32 to vector<8x128xi32>
    %752 = arith.cmpi eq, %670, %751 : vector<8x128xi32>
    %c2_i32_286 = arith.constant 2 : i32
    %753 = vector.broadcast %c2_i32_286 : i32 to vector<8x128xi32>
    %754 = arith.cmpi eq, %671, %753 : vector<8x128xi32>
    %755 = arith.andi %752, %754 : vector<8x128xi1>
    %756 = vector.broadcast %739 : f32 to vector<8x128xf32>
    %757 = arith.select %755, %756, %750 : vector<8x128xi1>, vector<8x128xf32>
    %c3_i32_287 = arith.constant 3 : i32
    %758 = vector.broadcast %c3_i32_287 : i32 to vector<8x128xi32>
    %759 = arith.cmpi eq, %670, %758 : vector<8x128xi32>
    %c2_i32_288 = arith.constant 2 : i32
    %760 = vector.broadcast %c2_i32_288 : i32 to vector<8x128xi32>
    %761 = arith.cmpi eq, %671, %760 : vector<8x128xi32>
    %762 = arith.andi %759, %761 : vector<8x128xi1>
    %763 = vector.broadcast %743 : f32 to vector<8x128xf32>
    %764 = arith.select %762, %763, %757 : vector<8x128xi1>, vector<8x128xf32>
    %765 = arith.addf %70, %134 : f32
    %cst_289 = arith.constant 0.000000e+00 : f32
    %766 = arith.cmpf ogt, %637, %cst_289 : f32
    %cst_290 = arith.constant 1.000000e+00 : f32
    %767 = arith.divf %cst_290, %637 : f32
    %cst_291 = arith.constant 1.000000e+00 : f32
    %768 = arith.subf %cst_291, %767 : f32
    %cst_292 = arith.constant 1.000000e+00 : f32
    %769 = arith.select %766, %768, %cst_292 : f32
    %c1_i32_293 = arith.constant 1 : i32
    %770 = vector.broadcast %c1_i32_293 : i32 to vector<8x128xi32>
    %771 = arith.cmpi eq, %670, %770 : vector<8x128xi32>
    %c3_i32_294 = arith.constant 3 : i32
    %772 = vector.broadcast %c3_i32_294 : i32 to vector<8x128xi32>
    %773 = arith.cmpi eq, %671, %772 : vector<8x128xi32>
    %774 = arith.andi %771, %773 : vector<8x128xi1>
    %775 = vector.broadcast %199 : f32 to vector<8x128xf32>
    %776 = arith.select %774, %775, %764 : vector<8x128xi1>, vector<8x128xf32>
    %c2_i32_295 = arith.constant 2 : i32
    %777 = vector.broadcast %c2_i32_295 : i32 to vector<8x128xi32>
    %778 = arith.cmpi eq, %670, %777 : vector<8x128xi32>
    %c3_i32_296 = arith.constant 3 : i32
    %779 = vector.broadcast %c3_i32_296 : i32 to vector<8x128xi32>
    %780 = arith.cmpi eq, %671, %779 : vector<8x128xi32>
    %781 = arith.andi %778, %780 : vector<8x128xi1>
    %782 = vector.broadcast %765 : f32 to vector<8x128xf32>
    %783 = arith.select %781, %782, %776 : vector<8x128xi1>, vector<8x128xf32>
    %c3_i32_297 = arith.constant 3 : i32
    %784 = vector.broadcast %c3_i32_297 : i32 to vector<8x128xi32>
    %785 = arith.cmpi eq, %670, %784 : vector<8x128xi32>
    %c3_i32_298 = arith.constant 3 : i32
    %786 = vector.broadcast %c3_i32_298 : i32 to vector<8x128xi32>
    %787 = arith.cmpi eq, %671, %786 : vector<8x128xi32>
    %788 = arith.andi %785, %787 : vector<8x128xi1>
    %789 = vector.broadcast %769 : f32 to vector<8x128xf32>
    %790 = arith.select %788, %789, %783 : vector<8x128xi1>, vector<8x128xf32>
    %791 = arith.addf %78, %142 : f32
    %cst_299 = arith.constant 0.000000e+00 : f32
    %792 = arith.cmpf ogt, %645, %cst_299 : f32
    %cst_300 = arith.constant 1.000000e+00 : f32
    %793 = arith.divf %cst_300, %645 : f32
    %cst_301 = arith.constant 1.000000e+00 : f32
    %794 = arith.subf %cst_301, %793 : f32
    %cst_302 = arith.constant 1.000000e+00 : f32
    %795 = arith.select %792, %794, %cst_302 : f32
    %c1_i32_303 = arith.constant 1 : i32
    %796 = vector.broadcast %c1_i32_303 : i32 to vector<8x128xi32>
    %797 = arith.cmpi eq, %670, %796 : vector<8x128xi32>
    %c4_i32_304 = arith.constant 4 : i32
    %798 = vector.broadcast %c4_i32_304 : i32 to vector<8x128xi32>
    %799 = arith.cmpi eq, %671, %798 : vector<8x128xi32>
    %800 = arith.andi %797, %799 : vector<8x128xi1>
    %801 = vector.broadcast %207 : f32 to vector<8x128xf32>
    %802 = arith.select %800, %801, %790 : vector<8x128xi1>, vector<8x128xf32>
    %c2_i32_305 = arith.constant 2 : i32
    %803 = vector.broadcast %c2_i32_305 : i32 to vector<8x128xi32>
    %804 = arith.cmpi eq, %670, %803 : vector<8x128xi32>
    %c4_i32_306 = arith.constant 4 : i32
    %805 = vector.broadcast %c4_i32_306 : i32 to vector<8x128xi32>
    %806 = arith.cmpi eq, %671, %805 : vector<8x128xi32>
    %807 = arith.andi %804, %806 : vector<8x128xi1>
    %808 = vector.broadcast %791 : f32 to vector<8x128xf32>
    %809 = arith.select %807, %808, %802 : vector<8x128xi1>, vector<8x128xf32>
    %c3_i32_307 = arith.constant 3 : i32
    %810 = vector.broadcast %c3_i32_307 : i32 to vector<8x128xi32>
    %811 = arith.cmpi eq, %670, %810 : vector<8x128xi32>
    %c4_i32_308 = arith.constant 4 : i32
    %812 = vector.broadcast %c4_i32_308 : i32 to vector<8x128xi32>
    %813 = arith.cmpi eq, %671, %812 : vector<8x128xi32>
    %814 = arith.andi %811, %813 : vector<8x128xi1>
    %815 = vector.broadcast %795 : f32 to vector<8x128xf32>
    %816 = arith.select %814, %815, %809 : vector<8x128xi1>, vector<8x128xf32>
    %817 = arith.addf %86, %150 : f32
    %cst_309 = arith.constant 0.000000e+00 : f32
    %818 = arith.cmpf ogt, %653, %cst_309 : f32
    %cst_310 = arith.constant 1.000000e+00 : f32
    %819 = arith.divf %cst_310, %653 : f32
    %cst_311 = arith.constant 1.000000e+00 : f32
    %820 = arith.subf %cst_311, %819 : f32
    %cst_312 = arith.constant 1.000000e+00 : f32
    %821 = arith.select %818, %820, %cst_312 : f32
    %c1_i32_313 = arith.constant 1 : i32
    %822 = vector.broadcast %c1_i32_313 : i32 to vector<8x128xi32>
    %823 = arith.cmpi eq, %670, %822 : vector<8x128xi32>
    %c5_i32 = arith.constant 5 : i32
    %824 = vector.broadcast %c5_i32 : i32 to vector<8x128xi32>
    %825 = arith.cmpi eq, %671, %824 : vector<8x128xi32>
    %826 = arith.andi %823, %825 : vector<8x128xi1>
    %827 = vector.broadcast %215 : f32 to vector<8x128xf32>
    %828 = arith.select %826, %827, %816 : vector<8x128xi1>, vector<8x128xf32>
    %c2_i32_314 = arith.constant 2 : i32
    %829 = vector.broadcast %c2_i32_314 : i32 to vector<8x128xi32>
    %830 = arith.cmpi eq, %670, %829 : vector<8x128xi32>
    %c5_i32_315 = arith.constant 5 : i32
    %831 = vector.broadcast %c5_i32_315 : i32 to vector<8x128xi32>
    %832 = arith.cmpi eq, %671, %831 : vector<8x128xi32>
    %833 = arith.andi %830, %832 : vector<8x128xi1>
    %834 = vector.broadcast %817 : f32 to vector<8x128xf32>
    %835 = arith.select %833, %834, %828 : vector<8x128xi1>, vector<8x128xf32>
    %c3_i32_316 = arith.constant 3 : i32
    %836 = vector.broadcast %c3_i32_316 : i32 to vector<8x128xi32>
    %837 = arith.cmpi eq, %670, %836 : vector<8x128xi32>
    %c5_i32_317 = arith.constant 5 : i32
    %838 = vector.broadcast %c5_i32_317 : i32 to vector<8x128xi32>
    %839 = arith.cmpi eq, %671, %838 : vector<8x128xi32>
    %840 = arith.andi %837, %839 : vector<8x128xi1>
    %841 = vector.broadcast %821 : f32 to vector<8x128xf32>
    %842 = arith.select %840, %841, %835 : vector<8x128xi1>, vector<8x128xf32>
    %843 = arith.addf %94, %158 : f32
    %cst_318 = arith.constant 0.000000e+00 : f32
    %844 = arith.cmpf ogt, %661, %cst_318 : f32
    %cst_319 = arith.constant 1.000000e+00 : f32
    %845 = arith.divf %cst_319, %661 : f32
    %cst_320 = arith.constant 1.000000e+00 : f32
    %846 = arith.subf %cst_320, %845 : f32
    %cst_321 = arith.constant 1.000000e+00 : f32
    %847 = arith.select %844, %846, %cst_321 : f32
    %c1_i32_322 = arith.constant 1 : i32
    %848 = vector.broadcast %c1_i32_322 : i32 to vector<8x128xi32>
    %849 = arith.cmpi eq, %670, %848 : vector<8x128xi32>
    %c6_i32 = arith.constant 6 : i32
    %850 = vector.broadcast %c6_i32 : i32 to vector<8x128xi32>
    %851 = arith.cmpi eq, %671, %850 : vector<8x128xi32>
    %852 = arith.andi %849, %851 : vector<8x128xi1>
    %853 = vector.broadcast %223 : f32 to vector<8x128xf32>
    %854 = arith.select %852, %853, %842 : vector<8x128xi1>, vector<8x128xf32>
    %c2_i32_323 = arith.constant 2 : i32
    %855 = vector.broadcast %c2_i32_323 : i32 to vector<8x128xi32>
    %856 = arith.cmpi eq, %670, %855 : vector<8x128xi32>
    %c6_i32_324 = arith.constant 6 : i32
    %857 = vector.broadcast %c6_i32_324 : i32 to vector<8x128xi32>
    %858 = arith.cmpi eq, %671, %857 : vector<8x128xi32>
    %859 = arith.andi %856, %858 : vector<8x128xi1>
    %860 = vector.broadcast %843 : f32 to vector<8x128xf32>
    %861 = arith.select %859, %860, %854 : vector<8x128xi1>, vector<8x128xf32>
    %c3_i32_325 = arith.constant 3 : i32
    %862 = vector.broadcast %c3_i32_325 : i32 to vector<8x128xi32>
    %863 = arith.cmpi eq, %670, %862 : vector<8x128xi32>
    %c6_i32_326 = arith.constant 6 : i32
    %864 = vector.broadcast %c6_i32_326 : i32 to vector<8x128xi32>
    %865 = arith.cmpi eq, %671, %864 : vector<8x128xi32>
    %866 = arith.andi %863, %865 : vector<8x128xi1>
    %867 = vector.broadcast %847 : f32 to vector<8x128xf32>
    %868 = arith.select %866, %867, %861 : vector<8x128xi1>, vector<8x128xf32>
    %869 = arith.addf %102, %166 : f32
    %cst_327 = arith.constant 0.000000e+00 : f32
    %870 = arith.cmpf ogt, %669, %cst_327 : f32
    %cst_328 = arith.constant 1.000000e+00 : f32
    %871 = arith.divf %cst_328, %669 : f32
    %cst_329 = arith.constant 1.000000e+00 : f32
    %872 = arith.subf %cst_329, %871 : f32
    %cst_330 = arith.constant 1.000000e+00 : f32
    %873 = arith.select %870, %872, %cst_330 : f32
    %c1_i32_331 = arith.constant 1 : i32
    %874 = vector.broadcast %c1_i32_331 : i32 to vector<8x128xi32>
    %875 = arith.cmpi eq, %670, %874 : vector<8x128xi32>
    %c7_i32 = arith.constant 7 : i32
    %876 = vector.broadcast %c7_i32 : i32 to vector<8x128xi32>
    %877 = arith.cmpi eq, %671, %876 : vector<8x128xi32>
    %878 = arith.andi %875, %877 : vector<8x128xi1>
    %879 = vector.broadcast %231 : f32 to vector<8x128xf32>
    %880 = arith.select %878, %879, %868 : vector<8x128xi1>, vector<8x128xf32>
    %c2_i32_332 = arith.constant 2 : i32
    %881 = vector.broadcast %c2_i32_332 : i32 to vector<8x128xi32>
    %882 = arith.cmpi eq, %670, %881 : vector<8x128xi32>
    %c7_i32_333 = arith.constant 7 : i32
    %883 = vector.broadcast %c7_i32_333 : i32 to vector<8x128xi32>
    %884 = arith.cmpi eq, %671, %883 : vector<8x128xi32>
    %885 = arith.andi %882, %884 : vector<8x128xi1>
    %886 = vector.broadcast %869 : f32 to vector<8x128xf32>
    %887 = arith.select %885, %886, %880 : vector<8x128xi1>, vector<8x128xf32>
    %c3_i32_334 = arith.constant 3 : i32
    %888 = vector.broadcast %c3_i32_334 : i32 to vector<8x128xi32>
    %889 = arith.cmpi eq, %670, %888 : vector<8x128xi32>
    %c7_i32_335 = arith.constant 7 : i32
    %890 = vector.broadcast %c7_i32_335 : i32 to vector<8x128xi32>
    %891 = arith.cmpi eq, %671, %890 : vector<8x128xi32>
    %892 = arith.andi %889, %891 : vector<8x128xi1>
    %893 = vector.broadcast %873 : f32 to vector<8x128xf32>
    %894 = arith.select %892, %893, %887 : vector<8x128xi1>, vector<8x128xf32>
    %c0_336 = arith.constant 0 : index
    %c0_337 = arith.constant 0 : index
    %c0_338 = arith.constant 0 : index
    %895 = vector.load %arg3[%c0_336, %c0_337, %c0_338] : memref<1x8x128xf32, #tpu.memory_space<vmem>>, vector<1x8x128xf32>
    %896 = vector.shape_cast %895 : vector<1x8x128xf32> to vector<8x128xf32>
    %897 = vector.shape_cast %894 : vector<8x128xf32> to vector<1x8x128xf32>
    tpu.vector_store %arg3[%c0_336, %c0_337, %c0_338], %897 {strides = array<i32>} : memref<1x8x128xf32, #tpu.memory_space<vmem>>, vector<1x8x128xf32>,
    return
  }
  func.func @transform_0(%arg0: i32) -> (i32, i32, i32) {
    %c0_i32 = arith.constant 0 : i32
    %c0_i32_0 = arith.constant 0 : i32
    %c0_i32_1 = arith.constant 0 : i32
    return %arg0, %c0_i32, %c0_i32_0 : i32, i32, i32
  }
  func.func @transform_1(%arg0: i32) -> (i32, i32, i32) {
    %c0_i32 = arith.constant 0 : i32
    %c0_i32_0 = arith.constant 0 : i32
    %c0_i32_1 = arith.constant 0 : i32
    return %arg0, %c0_i32, %c0_i32_0 : i32, i32, i32
  }
  func.func @transform_2(%arg0: i32) -> (i32, i32, i32) {
    %c0_i32 = arith.constant 0 : i32
    %c0_i32_0 = arith.constant 0 : i32
    %c0_i32_1 = arith.constant 0 : i32
    return %arg0, %c0_i32, %c0_i32_0 : i32, i32, i32
  }
}

</mosaic_0001>

<bundles_post_ra>
// kernel: tpu_custom_call.1
= control target key start
LH: loop header
LB: loop body
LE: loop exit
PB: predicated region body
PF: predicated region fallthrough
CT: control target
= control target key end

     0   :  { %s6077_s0 = inlined_call_operand.hbm [shape: f32[1,16,128], index: 0, kind: input, shape index: {}]   ;;  %s6078_s1 = inlined_call_operand.hbm [shape: f32[1,16,128], index: 1, kind: input, shape index: {}]   ;;  %s6079_s2 = inlined_call_operand.hbm [shape: f32[1,8,128], index: 2, kind: output, shape index: {}]  }
   0x1   :  { %6186 = sst [smem:[#allocation48_spill]] %s6079_s2 }
   0x2   :  { %7 = vsyncpa [#allocation3], 0 }
   0x3   :  { %8 = vsyncpa [#allocation6], 0 }
   0x4   :  { %9 = vsyncpa [#allocation4], 0  ;;  %s3192_s9 = smov [#allocation2]  }
   0x5   :  { %s15_s10 = sshll.u32 %s3192_s9, 4  ;;  %s16_s10 = int_to_ptr.vmem [resolvable:$true] %s15_s10 }
   0x6   :  { %s2846_s11 = scalar_lea.vmem %s16_s10, 256  ;;  %p2851_p1 = scmp.lt.s32.totalorder %s16_s10, %s16_s10 }
   0x7   :  { %p2847_p0 = scmp.ne.s32.totalorder %s16_s10, %s2846_s11  ;;  %p2852_p2 = scmp.lt.s32.totalorder %s2846_s11, %s2846_s11 }
   0x9   :  { %p2853_p3 = por %p2852_p2, %p2851_p1 }
   0xb   :  { %p2854_p4 = pnand %p2853_p3, %p2847_p0 }
   0xd   :  { %2857 = shalt.err (!%p2854_p4)
}
   0xe   :  { %s3193_s12 = smov 128   ;;  %s3194_s13 = smov 8  }
   0xf   :  { %21 = dma.hbm_to_vmem [thread:$0]  %s6077_s0, 256, %s16_s10, [#allocation3], %s3193_s12, %s3193_s12, %s3194_s13  }
  0x10   :  { %s3195_s16 = smov [#allocation5]  }
  0x11   :  { %s27_s17 = sshll.u32 %s3195_s16, 4  ;;  %s28_s17 = int_to_ptr.vmem [resolvable:$true] %s27_s17 }
  0x12   :  { %s2866_s18 = scalar_lea.vmem %s28_s17, 256  ;;  %p2871_p6 = scmp.lt.s32.totalorder %s28_s17, %s28_s17 }
  0x13   :  { %p2867_p5 = scmp.ne.s32.totalorder %s28_s17, %s2866_s18  ;;  %p2872_p7 = scmp.lt.s32.totalorder %s2866_s18, %s2866_s18 }
  0x15   :  { %p2873_p8 = por %p2872_p7, %p2871_p6 }
  0x17   :  { %p2874_p9 = pnand %p2873_p8, %p2867_p5 }
  0x19   :  { %2877 = shalt.err (!%p2874_p9)
}
  0x1a   :  { %33 = dma.hbm_to_vmem [thread:$0]  %s6078_s1, 256, %s28_s17, [#allocation6], %s3193_s12, %s3193_s12, %s3194_s13  }
  0x1b   :  { %3042 = dma.done.wait [#allocation3], 256  }
  0x1c   :  { %3043 = vsyncadd [#allocation3], 4294967040 }
  0x1d   :  { %3044 = dma.done.wait [#allocation6], 256  }
  0x1e   :  { %3045 = vsyncadd [#allocation6], 4294967040  ;;  %v44_v0 = vlaneseq  ;;  %v40_v8 = vld [vmem:[#allocation2] sm:$0xff]  ;;  %v41_v9 = vld [vmem:[#allocation2 + $0x8] sm:$0xff]  ;;  %v6104_v11 = vmov 0.0   ;;  %vm3197_vm4 = vmmov 1  }
  0x1f   :  { %vm92_vm0 = vcmp.gt.f32.partialorder %v41_v9, 0.5  ;;  %vm91_vm1 = vcmp.gt.f32.partialorder %v40_v8, 0.5  ;;  %s3198_s0 = smov 127   ;;  %s3199_s1 = smov 1   ;;  %v3300_v22 = vld [vmem:[#allocation5] sm:$0xff]  ;;  %v3302_v23 = vld [vmem:[#allocation5 + $0x8] sm:$0xff]  ;;  %2804 = vlog2.f32 %v40_v8 }
  0x20   :  { %v3239_v1 = vshrl.u32 %v44_v0, 7  ;;  %v3241_v2 = vand.u32 127, %v44_v0  ;;  %v3256_v12 = vsel %vm91_vm1, 1.0, %v6104_v11  ;;  %v3259_v13 = vsel %vm92_vm0, 1.0, %v6104_v11  ;;  %6193 = vst [vmem:[#allocation17_spill] sm:$0xff] %v3300_v22  ;;  %6194 = vst [vmem:[#allocation18_spill] sm:$0xff] %v3302_v23 }
  0x21   :  { %6190 = vst [vmem:[#allocation14_spill] sm:$0xff] %v3256_v12  ;;  %6191 = vst [vmem:[#allocation15_spill] sm:$0xff] %v3259_v13  ;;  %vm6098_vm2 = vcmp.gt.f32.partialorder %v3256_v12, 0.5  ;;  %vm6097_vm3 = vcmp.gt.f32.partialorder %v3259_v13, 0.5  ;;  %vm596_vm7 = vcmp.le.f32.partialorder %v3302_v23, 0.5  ;;  %vm595_vm8 = vcmp.le.f32.partialorder %v3300_v22, 0.5 }
  0x22   :  { %6187 = vst [vmem:[#allocation11_spill] sm:$0xff] %v3241_v2  ;;  %v3244_v3 = vadd.s32 8, %v3239_v1  ;;  %v3247_v4 = vcvt.s32.f32 %v3239_v1  ;;  %v51_v5 = vcvt.s32.f32 %v3241_v2  ;;  %vm433_vm5 = vmxor %vm6098_vm2, %vm3197_vm4  ;;  %v63_v28 = vsub.f32 1.0, %v40_v8  ;;  %s3200_s21 = smov 2   ;;  %s3201_s22 = smov 126  }
  0x23   :  { %vm434_vm6 = vmxor %vm6097_vm3, %vm3197_vm4  ;;  %v64_v29 = vsub.f32 1.0, %v41_v9  ;;  %2806 = vlog2.f32 %v41_v9  ;;  %vm674_vm9 = vcmp.gt.f32.partialorder %v3302_v23, 0.5  ;;  %vm673_vm10 = vcmp.gt.f32.partialorder %v3300_v22, 0.5  ;;  %s3202_s23 = smov 4   ;;  %s3203_s24 = smov 124  }
  0x24   :  { %6188 = vst [vmem:[#allocation12_spill] sm:$0xff] %v3244_v3  ;;  %v3251_v6 = vcvt.s32.f32 %v3244_v3  ;;  %v53_v7 = vmul.f32 0.0625, %v51_v5  ;;  %2808 = vlog2.f32 %v63_v28  ;;  %v73_v44 = vsub.f32 1.0, %v3300_v22  ;;  %s3204_s26 = smov 120  }
  0x25   :  { %2810 = vlog2.f32 %v64_v29  ;;  %v74_v45 = vsub.f32 1.0, %v3302_v23 }
  0x26   :  { %v3253_v10 = vfloor.f32 %v53_v7 }
  0x28   :  { %6189 = vst [vmem:[#allocation13_spill] sm:$0xff] %v3253_v10  ;;  %v55_v14 = vmul.f32 16.0, %v3253_v10  ;;  %vm6082_vm11 = vcmp.eq.f32.partialorder %v3253_v10, 1.0  ;;  %vm6089_vm12 = vcmp.eq.f32.partialorder %v3253_v10, 0.0  ;;  %vm6090_vm13 = vcmp.eq.f32.partialorder %v3253_v10, 2.0 }
  0x29   :  { %v113_v59 = vsel %vm6082_vm11, %v3256_v12, 0.0  ;;  %v114_v60 = vsel %vm6082_vm11, %v3259_v13, 0.0  ;;  %v100_v61 = vsel %vm6089_vm12, %v3256_v12, 0.0  ;;  %v101_v62 = vsel %vm6089_vm12, %v3259_v13, 0.0 }
  0x2a   :  { %v3266_v15 = vsub.f32 %v51_v5, %v55_v14  ;;  %vm6088_vm14 = vcmp.eq.f32.partialorder %v3253_v10, 3.0  ;;  %v115_v63 = vadd.f32 %v114_v60, %v113_v59  ;;  %v102_v0 = vadd.f32 %v101_v62, %v100_v61 }
  0x2b   :  { %v126_v5 = vsel %vm6090_vm13, %v3256_v12, 0.0  ;;  %v127_v7 = vsel %vm6090_vm13, %v3259_v13, 0.0  ;;  %v139_v8 = vsel %vm6088_vm14, %v3256_v12, 0.0  ;;  %v140_v9 = vsel %vm6088_vm14, %v3259_v13, 0.0 }
  0x2c   :  { %6192 = vst [vmem:[#allocation16_spill] sm:$0xff] %v3266_v15  ;;  %v3271_v16 = vsel %vm433_vm5, %v3266_v15, 100000.0  ;;  %v3274_v17 = vsel %vm433_vm5, %v3266_v15, -100000.0  ;;  %v3281_v18 = vsel %vm434_vm6, %v3266_v15, 100000.0  ;;  %v3284_v19 = vsel %vm434_vm6, %v3266_v15, -100000.0  ;;  %v2805_v36 = vpop.eup %2804 }
  0x2d   :  { %449 = vrot.lane.b32.xlu1 %v3271_v16, %s3198_s0  ;;  %440 = vrot.lane.b32.xlu0 %v3274_v17, %s3199_s1  ;;  %v3293_v20 = vsel %vm6097_vm3, %v3266_v15, -100000.0  ;;  %v3298_v21 = vsel %vm6098_vm2, %v3266_v15, -100000.0  ;;  %v3311_v24 = vsel %vm6097_vm3, %v3266_v15, 100000.0  ;;  %v3316_v25 = vsel %vm6098_vm2, %v3266_v15, 100000.0 }
  0x2e   :  { %v3325_v26 = vsel %vm596_vm7, %v3266_v15, -100000.0  ;;  %v3328_v27 = vsel %vm595_vm8, %v3266_v15, -100000.0  ;;  %v3335_v30 = vsel %vm596_vm7, %v3266_v15, 100000.0  ;;  %v3338_v31 = vsel %vm595_vm8, %v3266_v15, 100000.0 }
  0x2f   :  { %v3347_v32 = vsel %vm674_vm9, %v3266_v15, -100000.0  ;;  %v3350_v33 = vsel %vm673_vm10, %v3266_v15, -100000.0  ;;  %v3357_v34 = vsel %vm674_vm9, %v3266_v15, 100000.0  ;;  %v3360_v35 = vsel %vm673_vm10, %v3266_v15, 100000.0 }
  0x30   :  { %v2807_v37 = vpop.eup %2806  ;;  %v58_v40 = vmul.f32 0.6931472, %v2805_v36  ;;  %vm6083_vm15 = vcmp.eq.f32.partialorder %v3253_v10, 4.0  ;;  %vm6087_vm0 = vcmp.eq.f32.partialorder %v3253_v10, 5.0  ;;  %v128_v14 = vadd.f32 %v127_v7, %v126_v5 }
  0x31   :  { %451 = vrot.lane.b32.xlu1 %v3281_v18, %s3198_s0  ;;  %442 = vrot.lane.b32.xlu0 %v3284_v19, %s3199_s1  ;;  %v2809_v38 = vpop.eup %2808  ;;  %v60_v41 = vmul.f32 0.6931472, %v2807_v37  ;;  %v141_v28 = vadd.f32 %v140_v9, %v139_v8  ;;  %v152_v29 = vsel %vm6083_vm15, %v3256_v12, 0.0  ;;  %v153_v36 = vsel %vm6083_vm15, %v3259_v13, 0.0 }
  0x32   :  { %v2811_v39 = vpop.eup %2810  ;;  %v66_v42 = vmul.f32 0.6931472, %v2809_v38  ;;  %v61_v46 = vmax.f32 %v58_v40, -100.0  ;;  %v165_v37 = vsel %vm6087_vm0, %v3256_v12, 0.0  ;;  %v166_v38 = vsel %vm6087_vm0, %v3259_v13, 0.0 }
  0x33   :  { %v68_v43 = vmul.f32 0.6931472, %v2811_v39  ;;  %v62_v47 = vmax.f32 %v60_v41, -100.0  ;;  %vm6084_vm1 = vcmp.eq.f32.partialorder %v3253_v10, 6.0  ;;  %vm6085_vm4 = vcmp.eq.f32.partialorder %v3253_v10, 7.0 }
  0x34   :  { %v69_v48 = vmax.f32 %v66_v42, -100.0  ;;  %v71_v50 = vmul.f32 %v61_v46, %v3300_v22  ;;  %v154_v39 = vadd.f32 %v153_v36, %v152_v29  ;;  %v167_v40 = vadd.f32 %v166_v38, %v165_v37 }
  0x35   :  { %525 = vrot.lane.b32.xlu1 %v3293_v20, %s3199_s1  ;;  %523 = vrot.lane.b32.xlu0 %v3298_v21, %s3199_s1  ;;  %v70_v49 = vmax.f32 %v68_v43, -100.0  ;;  %v72_v51 = vmul.f32 %v62_v47, %v3302_v23  ;;  %v178_v41 = vsel %vm6084_vm1, %v3256_v12, 0.0  ;;  %v179_v42 = vsel %vm6084_vm1, %v3259_v13, 0.0 }
  0x36   :  { %v75_v52 = vmul.f32 %v73_v44, %v69_v48  ;;  %v191_v43 = vsel %vm6085_vm4, %v3256_v12, 0.0  ;;  %v192_v44 = vsel %vm6085_vm4, %v3259_v13, 0.0  ;;  %v203_v47 = vsel %vm6089_vm12, %v3300_v22, 0.0 }
  0x37   :  { %v76_v53 = vmul.f32 %v74_v45, %v70_v49  ;;  %v180_v45 = vadd.f32 %v179_v42, %v178_v41  ;;  %v193_v46 = vadd.f32 %v192_v44, %v191_v43  ;;  %v204_v48 = vsel %vm6089_vm12, %v3302_v23, 0.0 }
  0x38   :  { %v77_v54 = vadd.f32 %v75_v52, %v71_v50  ;;  %v215_v49 = vsel %vm6082_vm11, %v3300_v22, 0.0  ;;  %v216_v50 = vsel %vm6082_vm11, %v3302_v23, 0.0  ;;  %v251_v59 = vsel %vm6083_vm15, %v3300_v22, 0.0 }
  0x39   :  { %533 = vrot.lane.b32.xlu1 %v3311_v24, %s3198_s0  ;;  %531 = vrot.lane.b32.xlu0 %v3316_v25, %s3198_s0  ;;  %v78_v55 = vadd.f32 %v76_v53, %v72_v51  ;;  %v205_v51 = vadd.f32 %v204_v48, %v203_v47  ;;  %v217_v52 = vadd.f32 %v216_v50, %v215_v49  ;;  %v227_v53 = vsel %vm6090_vm13, %v3300_v22, 0.0 }
  0x3a   :  { %v79_v56 = vsub.f32 0.0, %v77_v54  ;;  %v228_v54 = vsel %vm6090_vm13, %v3302_v23, 0.0  ;;  %v252_v60 = vsel %vm6083_vm15, %v3302_v23, 0.0  ;;  %v263_v61 = vsel %vm6087_vm0, %v3300_v22, 0.0 }
  0x3b   :  { %v80_v57 = vsub.f32 0.0, %v78_v55  ;;  %v239_v55 = vsel %vm6088_vm14, %v3300_v22, 0.0  ;;  %v264_v62 = vsel %vm6087_vm0, %v3302_v23, 0.0  ;;  %vm6095_vm5 = vcmp.ge.f32.partialorder %v3266_v15, 1.0 }
  0x3c   :  { %vm6096_vm6 = vcmp.lt.f32.partialorder %v3266_v15, 15.0  ;;  %vm6094_vm7 = vcmp.ge.f32.partialorder %v3266_v15, 2.0  ;;  %vm6093_vm8 = vcmp.lt.f32.partialorder %v3266_v15, 14.0  ;;  %vm6081_vm9 = vcmp.ge.f32.partialorder %v3266_v15, 4.0 }
  0x3d   :  { %603 = vrot.lane.b32.xlu1 %v3325_v26, %s3199_s1  ;;  %601 = vrot.lane.b32.xlu0 %v3328_v27, %s3199_s1  ;;  %v81_v58 = vadd.f32 %v80_v57, %v79_v56  ;;  %v240_v56 = vsel %vm6088_vm14, %v3302_v23, 0.0  ;;  %v229_v57 = vadd.f32 %v228_v54, %v227_v53  ;;  %vm6080_vm10 = vcmp.lt.f32.partialorder %v3266_v15, 12.0 }
  0x41   :  { %611 = vrot.lane.b32.xlu1 %v3335_v30, %s3198_s0  ;;  %609 = vrot.lane.b32.xlu0 %v3338_v31, %s3198_s0 }
  0x45   :  { %681 = vrot.lane.b32.xlu1 %v3347_v32, %s3199_s1  ;;  %679 = vrot.lane.b32.xlu0 %v3350_v33, %s3199_s1 }
  0x49   :  { %689 = vrot.lane.b32.xlu1 %v3357_v34, %s3198_s0  ;;  %687 = vrot.lane.b32.xlu0 %v3360_v35, %s3198_s0 }
  0x68   :  { %82 = vadd.xlane.f32.xlu0 %v81_v58  ;;  %v241_v58 = vadd.f32 %v240_v56, %v239_v55 }
  0x6c   :  { %116 = vadd.xlane.f32.xlu0 %v115_v63  ;;  %v253_v63 = vadd.f32 %v252_v60, %v251_v59 }
  0x6d   :  { %103 = vadd.xlane.f32.xlu1 %v102_v0  ;;  %v265_v0 = vadd.f32 %v264_v62, %v263_v61 }
  0x70   :  { %129 = vadd.xlane.f32.xlu0 %v128_v14 }
  0x71   :  { %142 = vadd.xlane.f32.xlu1 %v141_v28 }
  0x74   :  { %155 = vadd.xlane.f32.xlu0 %v154_v39 }
  0x75   :  { %168 = vadd.xlane.f32.xlu1 %v167_v40 }
  0x78   :  { %181 = vadd.xlane.f32.xlu0 %v180_v45 }
  0x79   :  { %194 = vadd.xlane.f32.xlu1 %v193_v46 }
  0x7c   :  { %206 = vadd.xlane.f32.xlu0 %v205_v51 }
  0x7d   :  { %218 = vadd.xlane.f32.xlu1 %v217_v52 }
  0x80   :  { %230 = vadd.xlane.f32.xlu0 %v229_v57 }
  0x81   :  { %242 = vadd.xlane.f32.xlu1 %v241_v58 }
  0x84   :  { %254 = vadd.xlane.f32.xlu0 %v253_v63  ;;  %v275_v63 = vsel %vm6084_vm1, %v3300_v22, 0.0 }
  0x85   :  { %266 = vadd.xlane.f32.xlu1 %v265_v0 }
  0x9f   :  { %v441_v5 = vpop.permute.xlu0 %440  ;;  %v450_v7 = vpop.permute.xlu1 %449 }
  0xa0   :  { %v444_v8 = vsel %vm6095_vm5, %v441_v5, -100000.0  ;;  %v453_v9 = vsel %vm6096_vm6, %v450_v7, 100000.0  ;;  %v288_v5 = vsel %vm6085_vm4, %v3302_v23, 0.0 }
  0xa1   :  { %v3469_v14 = vmax.f32 %v3274_v17, %v444_v8  ;;  %v3472_v28 = vmin.f32 %v3271_v16, %v453_v9 }
  0xa3   :  { %v443_v29 = vpop.permute.xlu0 %442  ;;  %458 = vrot.lane.b32.xlu0 %v3469_v14, %s3200_s21  ;;  %v452_v36 = vpop.permute.xlu1 %451 }
  0xa4   :  { %v445_v37 = vsel %vm6095_vm5, %v443_v29, -100000.0  ;;  %v454_v38 = vsel %vm6096_vm6, %v452_v36, 100000.0 }
  0xa5   :  { %v3481_v39 = vmax.f32 %v3284_v19, %v445_v37  ;;  %v3484_v17 = vmin.f32 %v3281_v18, %v454_v38 }
  0xa7   :  { %460 = vrot.lane.b32.xlu1 %v3481_v39, %s3200_s21  ;;  %v524_v16 = vpop.permute.xlu0 %523  ;;  %467 = vrot.lane.b32.xlu0 %v3472_v28, %s3201_s22  ;;  %v526_v40 = vpop.permute.xlu1 %525 }
  0xa8   :  { %v527_v41 = vsel %vm6095_vm5, %v524_v16, -100000.0  ;;  %v528_v42 = vsel %vm6095_vm5, %v526_v40, -100000.0 }
  0xa9   :  { %v3495_v19 = vmax.f32 %v3298_v21, %v527_v41  ;;  %v3498_v18 = vmax.f32 %v3293_v20, %v528_v42 }
  0xab   :  { %469 = vrot.lane.b32.xlu1 %v3484_v17, %s3201_s22  ;;  %v532_v43 = vpop.permute.xlu0 %531  ;;  %539 = vrot.lane.b32.xlu0 %v3495_v19, %s3200_s21  ;;  %v534_v44 = vpop.permute.xlu1 %533 }
  0xac   :  { %v535_v45 = vsel %vm6096_vm6, %v532_v43, 100000.0  ;;  %v536_v46 = vsel %vm6096_vm6, %v534_v44, 100000.0 }
  0xad   :  { %v3509_v21 = vmin.f32 %v3316_v25, %v535_v45  ;;  %v3512_v20 = vmin.f32 %v3311_v24, %v536_v46 }
  0xaf   :  { %541 = vrot.lane.b32.xlu1 %v3498_v18, %s3200_s21  ;;  %v602_v47 = vpop.permute.xlu0 %601  ;;  %547 = vrot.lane.b32.xlu0 %v3509_v21, %s3201_s22  ;;  %v604_v48 = vpop.permute.xlu1 %603 }
  0xb0   :  { %v605_v49 = vsel %vm6095_vm5, %v602_v47, -100000.0  ;;  %v606_v50 = vsel %vm6095_vm5, %v604_v48, -100000.0 }
  0xb1   :  { %v3523_v25 = vmax.f32 %v3328_v27, %v605_v49  ;;  %v3526_v24 = vmax.f32 %v3325_v26, %v606_v50 }
  0xb3   :  { %549 = vrot.lane.b32.xlu1 %v3512_v20, %s3201_s22  ;;  %v610_v51 = vpop.permute.xlu0 %609  ;;  %617 = vrot.lane.b32.xlu0 %v3523_v25, %s3200_s21  ;;  %v612_v52 = vpop.permute.xlu1 %611 }
  0xb4   :  { %v613_v53 = vsel %vm6096_vm6, %v610_v51, 100000.0  ;;  %v614_v54 = vsel %vm6096_vm6, %v612_v52, 100000.0 }
  0xb5   :  { %v3537_v27 = vmin.f32 %v3338_v31, %v613_v53  ;;  %v3540_v26 = vmin.f32 %v3335_v30, %v614_v54 }
  0xb7   :  { %619 = vrot.lane.b32.xlu1 %v3526_v24, %s3200_s21  ;;  %v680_v55 = vpop.permute.xlu0 %679  ;;  %625 = vrot.lane.b32.xlu0 %v3537_v27, %s3201_s22  ;;  %v682_v56 = vpop.permute.xlu1 %681 }
  0xb8   :  { %v683_v57 = vsel %vm6095_vm5, %v680_v55, -100000.0  ;;  %v684_v58 = vsel %vm6095_vm5, %v682_v56, -100000.0 }
  0xb9   :  { %v3551_v31 = vmax.f32 %v3350_v33, %v683_v57  ;;  %v3554_v30 = vmax.f32 %v3347_v32, %v684_v58 }
  0xbb   :  { %627 = vrot.lane.b32.xlu1 %v3540_v26, %s3201_s22  ;;  %v688_v59 = vpop.permute.xlu0 %687  ;;  %695 = vrot.lane.b32.xlu0 %v3551_v31, %s3200_s21  ;;  %v690_v60 = vpop.permute.xlu1 %689 }
  0xbc   :  { %v691_v61 = vsel %vm6096_vm6, %v688_v59, 100000.0  ;;  %v692_v62 = vsel %vm6096_vm6, %v690_v60, 100000.0 }
  0xbd   :  { %v3565_v33 = vmin.f32 %v3360_v35, %v691_v61  ;;  %v3568_v32 = vmin.f32 %v3357_v34, %v692_v62  ;;  %v276_v35 = vsel %vm6084_vm1, %v3302_v23, 0.0  ;;  %v287_v34 = vsel %vm6085_vm4, %v3300_v22, 0.0 }
  0xbe   :  { %v277_v0 = vadd.f32 %v276_v35, %v275_v63  ;;  %v289_v7 = vadd.f32 %v288_v5, %v287_v34 }
  0xbf   :  { %697 = vrot.lane.b32.xlu1 %v3554_v30, %s3200_s21  ;;  %703 = vrot.lane.b32.xlu0 %v3565_v33, %s3201_s22 }
  0xc3   :  { %705 = vrot.lane.b32.xlu1 %v3568_v32, %s3201_s22 }
  0xde   :  { %278 = vadd.xlane.f32.xlu0 %v277_v0 }
  0xe7   :  { %290 = vadd.xlane.f32.xlu1 %v289_v7 }
  0xf1   :  { %v83_v8 = vpop.xlane.xlu0 %82 }
  0xf2   :  { %v84_v9 = vrot.slane %v83_v8, 4 }
  0xf4   :  { %v85_v29 = vadd.f32 %v84_v9, %v83_v8 }
  0xf5   :  { %v117_v36 = vpop.xlane.xlu0 %116 }
  0xf6   :  { %v86_v37 = vrot.slane %v85_v29, 2  ;;  %v118_v38 = vrot.slane %v117_v36, 4  ;;  %v104_v16 = vpop.xlane.xlu1 %103 }
  0xf7   :  { %v105_v40 = vrot.slane %v104_v16, 4 }
  0xf8   :  { %v119_v41 = vadd.f32 %v118_v38, %v117_v36  ;;  %v87_v42 = vadd.f32 %v86_v37, %v85_v29 }
  0xf9   :  { %v106_v43 = vadd.f32 %v105_v40, %v104_v16  ;;  %v130_v44 = vpop.xlane.xlu0 %129 }
  0xfa   :  { %v120_v45 = vrot.slane %v119_v41, 2  ;;  %v131_v46 = vrot.slane %v130_v44, 4  ;;  %v143_v47 = vpop.xlane.xlu1 %142  ;;  %v88_v48 = vrot.slane %v87_v42, 1 }
  0xfb   :  { %v107_v49 = vrot.slane %v106_v43, 2  ;;  %v144_v50 = vrot.slane %v143_v47, 4 }
  0xfc   :  { %v132_v51 = vadd.f32 %v131_v46, %v130_v44  ;;  %v89_v52 = vadd.f32 %v88_v48, %v87_v42  ;;  %v121_v53 = vadd.f32 %v120_v45, %v119_v41 }
  0xfd   :  { %v145_v54 = vadd.f32 %v144_v50, %v143_v47  ;;  %v156_v55 = vpop.xlane.xlu0 %155  ;;  %v108_v56 = vadd.f32 %v107_v49, %v106_v43 }
  0xfe   :  { %v133_v57 = vrot.slane %v132_v51, 2  ;;  %v157_v58 = vrot.slane %v156_v55, 4  ;;  %v169_v59 = vpop.xlane.xlu1 %168  ;;  %2390 = vpush %v89_v52  ;;  %v122_v60 = vrot.slane %v121_v53, 1 }
  0xff   :  { %v146_v61 = vrot.slane %v145_v54, 2  ;;  %v170_v62 = vrot.slane %v169_v59, 4  ;;  %v109_v63 = vrot.slane %v108_v56, 1 }
 0x100   :  { %v158_v35 = vadd.f32 %v157_v58, %v156_v55  ;;  %v123_v0 = vadd.f32 %v122_v60, %v121_v53  ;;  %v134_v34 = vadd.f32 %v133_v57, %v132_v51 }
 0x101   :  { %v171_v5 = vadd.f32 %v170_v62, %v169_v59  ;;  %v182_v7 = vpop.xlane.xlu0 %181  ;;  %v110_v8 = vadd.f32 %v109_v63, %v108_v56  ;;  %v147_v9 = vadd.f32 %v146_v61, %v145_v54 }
 0x102   :  { %v159_v29 = vrot.slane %v158_v35, 2  ;;  %v183_v36 = vrot.slane %v182_v7, 4  ;;  %v195_v37 = vpop.xlane.xlu1 %194  ;;  %v135_v38 = vrot.slane %v134_v34, 1 }
 0x103   :  { %v172_v16 = vrot.slane %v171_v5, 2  ;;  %v196_v40 = vrot.slane %v195_v37, 4  ;;  %2392 = vpush %v110_v8  ;;  %v148_v41 = vrot.slane %v147_v9, 1 }
 0x104   :  { %v184_v42 = vadd.f32 %v183_v36, %v182_v7  ;;  %2394 = vpush %v123_v0  ;;  %v136_v43 = vadd.f32 %v135_v38, %v134_v34  ;;  %v160_v44 = vadd.f32 %v159_v29, %v158_v35 }
 0x105   :  { %v197_v45 = vadd.f32 %v196_v40, %v195_v37  ;;  %v207_v46 = vpop.xlane.xlu0 %206  ;;  %v149_v47 = vadd.f32 %v148_v41, %v147_v9  ;;  %v173_v48 = vadd.f32 %v172_v16, %v171_v5 }
 0x106   :  { %v185_v49 = vrot.slane %v184_v42, 2  ;;  %v208_v50 = vrot.slane %v207_v46, 4  ;;  %v219_v51 = vpop.xlane.xlu1 %218  ;;  %2396 = vpush %v136_v43  ;;  %v161_v52 = vrot.slane %v160_v44, 1 }
 0x107   :  { %v198_v53 = vrot.slane %v197_v45, 2  ;;  %v220_v54 = vrot.slane %v219_v51, 4  ;;  %2398 = vpush %v149_v47  ;;  %v174_v55 = vrot.slane %v173_v48, 1 }
 0x108   :  { %v209_v56 = vadd.f32 %v208_v50, %v207_v46  ;;  %v162_v57 = vadd.f32 %v161_v52, %v160_v44  ;;  %v186_v58 = vadd.f32 %v185_v49, %v184_v42 }
 0x109   :  { %v221_v59 = vadd.f32 %v220_v54, %v219_v51  ;;  %v231_v60 = vpop.xlane.xlu0 %230  ;;  %v175_v61 = vadd.f32 %v174_v55, %v173_v48  ;;  %v199_v62 = vadd.f32 %v198_v53, %v197_v45 }
 0x10a   :  { %v210_v63 = vrot.slane %v209_v56, 2  ;;  %v232_v35 = vrot.slane %v231_v60, 4  ;;  %v243_v0 = vpop.xlane.xlu1 %242  ;;  %2400 = vpush %v162_v57  ;;  %v187_v34 = vrot.slane %v186_v58, 1 }
 0x10b   :  { %v222_v5 = vrot.slane %v221_v59, 2  ;;  %v244_v7 = vrot.slane %v243_v0, 4  ;;  %2402 = vpush %v175_v61  ;;  %v200_v8 = vrot.slane %v199_v62, 1 }
 0x10c   :  { %v233_v9 = vadd.f32 %v232_v35, %v231_v60  ;;  %v188_v29 = vadd.f32 %v187_v34, %v186_v58  ;;  %v211_v36 = vadd.f32 %v210_v63, %v209_v56 }
 0x10d   :  { %v245_v37 = vadd.f32 %v244_v7, %v243_v0  ;;  %v255_v38 = vpop.xlane.xlu0 %254  ;;  %v201_v16 = vadd.f32 %v200_v8, %v199_v62  ;;  %v223_v40 = vadd.f32 %v222_v5, %v221_v59 }
 0x10e   :  { %v234_v41 = vrot.slane %v233_v9, 2  ;;  %v256_v42 = vrot.slane %v255_v38, 4  ;;  %v267_v43 = vpop.xlane.xlu1 %266  ;;  %2404 = vpush %v188_v29  ;;  %v212_v44 = vrot.slane %v211_v36, 1 }
 0x10f   :  { %v246_v45 = vrot.slane %v245_v37, 2  ;;  %v268_v46 = vrot.slane %v267_v43, 4  ;;  %2406 = vpush %v201_v16  ;;  %v224_v47 = vrot.slane %v223_v40, 1 }
 0x110   :  { %v257_v48 = vadd.f32 %v256_v42, %v255_v38  ;;  %v213_v49 = vadd.f32 %v212_v44, %v211_v36  ;;  %v235_v50 = vadd.f32 %v234_v41, %v233_v9 }
 0x111   :  { %v269_v51 = vadd.f32 %v268_v46, %v267_v43  ;;  %v225_v52 = vadd.f32 %v224_v47, %v223_v40  ;;  %v247_v53 = vadd.f32 %v246_v45, %v245_v37 }
 0x112   :  { %v258_v54 = vrot.slane %v257_v48, 2  ;;  %2408 = vpush %v213_v49  ;;  %v236_v55 = vrot.slane %v235_v50, 1 }
 0x113   :  { %v270_v56 = vrot.slane %v269_v51, 2  ;;  %2410 = vpush %v225_v52  ;;  %v248_v57 = vrot.slane %v247_v53, 1 }
 0x114   :  { %v237_v58 = vadd.f32 %v236_v55, %v235_v50  ;;  %v259_v59 = vadd.f32 %v258_v54, %v257_v48 }
 0x115   :  { %v459_v60 = vpop.permute.xlu0 %458  ;;  %v249_v61 = vadd.f32 %v248_v57, %v247_v53  ;;  %v271_v62 = vadd.f32 %v270_v56, %v269_v51 }
 0x116   :  { %v462_v63 = vsel %vm6094_vm7, %v459_v60, -100000.0  ;;  %2412 = vpush %v237_v58  ;;  %v260_v35 = vrot.slane %v259_v59, 1 }
 0x117   :  { %v3592_v0 = vmax.f32 %v3469_v14, %v462_v63  ;;  %2414 = vpush %v249_v61  ;;  %v272_v34 = vrot.slane %v271_v62, 1 }
 0x118   :  { %v261_v5 = vadd.f32 %v260_v35, %v259_v59 }
 0x119   :  { %v461_v7 = vpop.permute.xlu1 %460  ;;  %476 = vrot.lane.b32.xlu0 %v3592_v0, %s3202_s23  ;;  %v468_v8 = vpop.permute.xlu0 %467  ;;  %v273_v9 = vadd.f32 %v272_v34, %v271_v62 }
 0x11a   :  { %v463_v29 = vsel %vm6094_vm7, %v461_v7, -100000.0  ;;  %2416 = vpush %v261_v5  ;;  %v471_v14 = vsel %vm6093_vm8, %v468_v8, 100000.0 }
 0x11b   :  { %v3600_v36 = vmax.f32 %v3481_v39, %v463_v29  ;;  %2418 = vpush %v273_v9  ;;  %v3609_v40 = vmin.f32 %v3472_v28, %v471_v14 }
 0x11d   :  { %478 = vrot.lane.b32.xlu1 %v3600_v36, %s3202_s23  ;;  %v470_v37 = vpop.permute.xlu1 %469  ;;  %v540_v38 = vpop.permute.xlu0 %539 }
 0x11e   :  { %v472_v16 = vsel %vm6093_vm8, %v470_v37, 100000.0  ;;  %v543_v39 = vsel %vm6094_vm7, %v540_v38, -100000.0 }
 0x11f   :  { %v3612_v41 = vmin.f32 %v3484_v17, %v472_v16  ;;  %v3623_v28 = vmax.f32 %v3495_v19, %v543_v39 }
 0x121   :  { %v542_v42 = vpop.permute.xlu1 %541  ;;  %487 = vrot.lane.b32.xlu0 %v3612_v41, %s3203_s24  ;;  %485 = vrot.lane.b32.xlu1 %v3609_v40, %s3203_s24  ;;  %v548_v43 = vpop.permute.xlu0 %547 }
 0x122   :  { %v544_v44 = vsel %vm6094_vm7, %v542_v42, -100000.0  ;;  %v551_v45 = vsel %vm6093_vm8, %v548_v43, 100000.0 }
 0x123   :  { %v3626_v17 = vmax.f32 %v3498_v18, %v544_v44  ;;  %v3637_v19 = vmin.f32 %v3509_v21, %v551_v45 }
 0x125   :  { %v550_v46 = vpop.permute.xlu1 %549  ;;  %557 = vrot.lane.b32.xlu0 %v3626_v17, %s3202_s23  ;;  %555 = vrot.lane.b32.xlu1 %v3623_v28, %s3202_s23  ;;  %v618_v47 = vpop.permute.xlu0 %617 }
 0x126   :  { %v552_v48 = vsel %vm6093_vm8, %v550_v46, 100000.0  ;;  %v621_v49 = vsel %vm6094_vm7, %v618_v47, -100000.0 }
 0x127   :  { %v3640_v18 = vmin.f32 %v3512_v20, %v552_v48  ;;  %v3651_v21 = vmax.f32 %v3523_v25, %v621_v49 }
 0x129   :  { %v620_v50 = vpop.permute.xlu1 %619  ;;  %565 = vrot.lane.b32.xlu0 %v3640_v18, %s3203_s24  ;;  %563 = vrot.lane.b32.xlu1 %v3637_v19, %s3203_s24  ;;  %v626_v51 = vpop.permute.xlu0 %625 }
 0x12a   :  { %v622_v52 = vsel %vm6094_vm7, %v620_v50, -100000.0  ;;  %v629_v53 = vsel %vm6093_vm8, %v626_v51, 100000.0 }
 0x12b   :  { %v3654_v20 = vmax.f32 %v3526_v24, %v622_v52  ;;  %v3665_v25 = vmin.f32 %v3537_v27, %v629_v53 }
 0x12d   :  { %v628_v54 = vpop.permute.xlu1 %627  ;;  %635 = vrot.lane.b32.xlu0 %v3654_v20, %s3202_s23  ;;  %633 = vrot.lane.b32.xlu1 %v3651_v21, %s3202_s23  ;;  %v696_v55 = vpop.permute.xlu0 %695 }
 0x12e   :  { %v630_v56 = vsel %vm6093_vm8, %v628_v54, 100000.0  ;;  %v699_v57 = vsel %vm6094_vm7, %v696_v55, -100000.0 }
 0x12f   :  { %v3668_v24 = vmin.f32 %v3540_v26, %v630_v56  ;;  %s3670_s25 = spop %2390  ;;  %v3681_v60 = vmax.f32 %v3551_v31, %v699_v57 }
 0x131   :  { %v698_v58 = vpop.permute.xlu1 %697  ;;  %643 = vrot.lane.b32.xlu0 %v3668_v24, %s3203_s24  ;;  %641 = vrot.lane.b32.xlu1 %v3665_v25, %s3203_s24  ;;  %v704_v59 = vpop.permute.xlu0 %703 }
 0x132   :  { %v700_v27 = vsel %vm6094_vm7, %v698_v58, -100000.0  ;;  %v707_v61 = vsel %vm6093_vm8, %v704_v59, 100000.0 }
 0x133   :  { %v3684_v26 = vmax.f32 %v3554_v30, %v700_v27  ;;  %v3695_v35 = vmin.f32 %v3565_v33, %v707_v61 }
 0x134   :  { %s3854_s27 = spop %2392 }
 0x135   :  { %v706_v62 = vpop.permute.xlu1 %705  ;;  %713 = vrot.lane.b32.xlu0 %v3684_v26, %s3202_s23  ;;  %711 = vrot.lane.b32.xlu1 %v3681_v60, %s3202_s23  ;;  %s3857_s28 = spop %2394 }
 0x136   :  { %v708_v63 = vsel %vm6093_vm8, %v706_v62, 100000.0 }
 0x137   :  { %v3698_v31 = vmin.f32 %v3568_v32, %v708_v63  ;;  %s3859_s29 = spop %2396 }
 0x138   :  { %s3864_s30 = spop %2398 }
 0x139   :  { %721 = vrot.lane.b32.xlu0 %v3698_v31, %s3203_s24  ;;  %719 = vrot.lane.b32.xlu1 %v3695_v35, %s3203_s24  ;;  %s3205_s24 = smov 0.0  }
 0x13b   :  { %s3866_s3 = spop %2400 }
 0x13c   :  { %s3871_s4 = spop %2402 }
 0x13f   :  { %s3873_s5 = spop %2404 }
 0x140   :  { %6195 = sst [smem:[#allocation19_spill]] %s3873_s5  ;;  %s3880_s6 = spop %2406 }
 0x141   :  { %6196 = sst [smem:[#allocation20_spill]] %s3880_s6 }
 0x143   :  { %s3882_s7 = spop %2408 }
 0x144   :  { %s3896_s8 = spop %2410 }
 0x147   :  { %s3914_s9 = spop %2412 }
 0x148   :  { %s3931_s10 = spop %2414 }
 0x14b   :  { %s3933_s11 = spop %2416 }
 0x14c   :  { %s3958_s12 = spop %2418 }
 0x167   :  { %v279_v30 = vpop.xlane.xlu0 %278 }
 0x168   :  { %v280_v34 = vrot.slane %v279_v30, 4 }
 0x16a   :  { %v281_v5 = vadd.f32 %v280_v34, %v279_v30 }
 0x16c   :  { %v282_v7 = vrot.slane %v281_v5, 2 }
 0x16e   :  { %v283_v8 = vadd.f32 %v282_v7, %v281_v5 }
 0x170   :  { %v291_v9 = vpop.xlane.xlu1 %290  ;;  %v284_v29 = vrot.slane %v283_v8, 1 }
 0x171   :  { %v292_v14 = vrot.slane %v291_v9, 4 }
 0x172   :  { %v285_v37 = vadd.f32 %v284_v29, %v283_v8 }
 0x173   :  { %v293_v33 = vadd.f32 %v292_v14, %v291_v9 }
 0x174   :  { %2420 = vpush %v285_v37 }
 0x175   :  { %v294_v38 = vrot.slane %v293_v33, 2 }
 0x177   :  { %v295_v32 = vadd.f32 %v294_v38, %v293_v33 }
 0x179   :  { %v296_v16 = vrot.slane %v295_v32, 1 }
 0x17b   :  { %v297_v39 = vadd.f32 %v296_v16, %v295_v32  ;;  %v299_v16 = vmul.f32 %v3256_v12, %v3300_v22 }
 0x17d   :  { %2422 = vpush %v297_v39  ;;  %v300_v39 = vmul.f32 %v3259_v13, %v3302_v23 }
 0x18b   :  { %v477_v42 = vpop.permute.xlu0 %476 }
 0x18c   :  { %v480_v43 = vsel %vm6081_vm9, %v477_v42, -100000.0  ;;  %v313_v42 = vsel %vm6082_vm11, %v299_v16, 0.0 }
 0x18d   :  { %v3708_v44 = vmax.f32 %v3592_v0, %v480_v43  ;;  %v325_v43 = vsel %vm6090_vm13, %v299_v16, 0.0 }
 0x18f   :  { %v479_v45 = vpop.permute.xlu1 %478  ;;  %494 = vrot.lane.b32.xlu1 %v3708_v44, %s3194_s13 }
 0x190   :  { %v481_v46 = vsel %vm6081_vm9, %v479_v45, -100000.0  ;;  %v326_v45 = vsel %vm6090_vm13, %v300_v39, 0.0 }
 0x191   :  { %v3715_v47 = vmax.f32 %v3600_v36, %v481_v46  ;;  %v301_v46 = vsel %vm6089_vm12, %v299_v16, 0.0 }
 0x193   :  { %496 = vrot.lane.b32.xlu0 %v3715_v47, %s3194_s13  ;;  %v486_v48 = vpop.permute.xlu1 %485  ;;  %v488_v49 = vpop.permute.xlu0 %487 }
 0x194   :  { %v489_v0 = vsel %vm6080_vm10, %v486_v48, 100000.0  ;;  %v490_v50 = vsel %vm6080_vm10, %v488_v49, 100000.0  ;;  %v302_v48 = vsel %vm6089_vm12, %v300_v39, 0.0  ;;  %v327_v49 = vadd.f32 %v326_v45, %v325_v43 }
 0x195   :  { %v3725_v51 = vmin.f32 %v3609_v40, %v489_v0  ;;  %v3728_v52 = vmin.f32 %v3612_v41, %v490_v50  ;;  %v303_v0 = vadd.f32 %v302_v48, %v301_v46  ;;  %v349_v50 = vsel %vm6083_vm15, %v299_v16, 0.0 }
 0x196   :  { %v409_v43 = vstv %s3873_s5  ;;  %v413_v45 = vstv %s3882_s7 }
 0x197   :  { %v556_v36 = vpop.permute.xlu1 %555  ;;  %503 = vrot.lane.b32.xlu1 %v3725_v51, %s3204_s26  ;;  %505 = vrot.lane.b32.xlu0 %v3728_v52, %s3204_s26  ;;  %v558_v53 = vpop.permute.xlu0 %557 }
 0x198   :  { %v559_v54 = vsel %vm6081_vm9, %v556_v36, -100000.0  ;;  %v560_v55 = vsel %vm6081_vm9, %v558_v53, -100000.0  ;;  %v350_v36 = vsel %vm6083_vm15, %v300_v39, 0.0  ;;  %v337_v53 = vsel %vm6088_vm14, %v299_v16, 0.0 }
 0x199   :  { %v3739_v40 = vmax.f32 %v3623_v28, %v559_v54  ;;  %v3742_v41 = vmax.f32 %v3626_v17, %v560_v55  ;;  %v338_v54 = vsel %vm6088_vm14, %v300_v39, 0.0  ;;  %v351_v55 = vadd.f32 %v350_v36, %v349_v50 }
 0x19b   :  { %v564_v56 = vpop.permute.xlu1 %563  ;;  %571 = vrot.lane.b32.xlu1 %v3739_v40, %s3194_s13  ;;  %573 = vrot.lane.b32.xlu0 %v3742_v41, %s3194_s13  ;;  %v566_v57 = vpop.permute.xlu0 %565 }
 0x19c   :  { %v567_v58 = vsel %vm6080_vm10, %v564_v56, 100000.0  ;;  %v568_v59 = vsel %vm6080_vm10, %v566_v57, 100000.0  ;;  %v339_v56 = vadd.f32 %v338_v54, %v337_v53  ;;  %v373_v57 = vsel %vm6084_vm1, %v299_v16, 0.0 }
 0x19d   :  { %v3753_v28 = vmin.f32 %v3637_v19, %v567_v58  ;;  %v3756_v17 = vmin.f32 %v3640_v18, %v568_v59  ;;  %v374_v58 = vsel %vm6084_vm1, %v300_v39, 0.0  ;;  %v361_v59 = vsel %vm6087_vm0, %v299_v16, 0.0 }
 0x19f   :  { %v634_v27 = vpop.permute.xlu1 %633  ;;  %579 = vrot.lane.b32.xlu1 %v3753_v28, %s3204_s26  ;;  %581 = vrot.lane.b32.xlu0 %v3756_v17, %s3204_s26  ;;  %v636_v61 = vpop.permute.xlu0 %635 }
 0x1a0   :  { %v637_v62 = vsel %vm6081_vm9, %v634_v27, -100000.0  ;;  %v638_v63 = vsel %vm6081_vm9, %v636_v61, -100000.0  ;;  %v362_v27 = vsel %vm6087_vm0, %v300_v39, 0.0  ;;  %v375_v61 = vadd.f32 %v374_v58, %v373_v57 }
 0x1a1   :  { %v3767_v19 = vmax.f32 %v3651_v21, %v637_v62  ;;  %v3770_v18 = vmax.f32 %v3654_v20, %v638_v63  ;;  %v363_v62 = vadd.f32 %v362_v27, %v361_v59  ;;  %v385_v63 = vsel %vm6085_vm4, %v299_v16, 0.0 }
 0x1a2   :  { %v415_v57 = vstv %s3896_s8 }
 0x1a3   :  { %v642_v30 = vpop.permute.xlu1 %641  ;;  %649 = vrot.lane.b32.xlu1 %v3767_v19, %s3194_s13  ;;  %651 = vrot.lane.b32.xlu0 %v3770_v18, %s3194_s13  ;;  %v644_v34 = vpop.permute.xlu0 %643 }
 0x1a4   :  { %v645_v5 = vsel %vm6080_vm10, %v642_v30, 100000.0  ;;  %v646_v7 = vsel %vm6080_vm10, %v644_v34, 100000.0  ;;  %v386_v30 = vsel %vm6085_vm4, %v300_v39, 0.0 }
 0x1a5   :  { %v3781_v21 = vmin.f32 %v3665_v25, %v645_v5  ;;  %v3784_v20 = vmin.f32 %v3668_v24, %v646_v7  ;;  %v387_v34 = vadd.f32 %v386_v30, %v385_v63  ;;  %v397_v5 = vstv %s3854_s27 }
 0x1a6   :  { %v398_v7 = vsel %vm6089_vm12, %v397_v5, 0.0 }
 0x1a7   :  { %v712_v8 = vpop.permute.xlu1 %711  ;;  %657 = vrot.lane.b32.xlu1 %v3781_v21, %s3204_s26  ;;  %659 = vrot.lane.b32.xlu0 %v3784_v20, %s3204_s26  ;;  %v714_v9 = vpop.permute.xlu0 %713 }
 0x1a8   :  { %v715_v29 = vsel %vm6081_vm9, %v712_v8, -100000.0  ;;  %v716_v14 = vsel %vm6081_vm9, %v714_v9, -100000.0  ;;  %v399_v8 = vstv %s3857_s28  ;;  %vm6091_vm9 = vcmp.lt.f32.partialorder %v3266_v15, 8.0 }
 0x1a9   :  { %v3795_v25 = vmax.f32 %v3681_v60, %v715_v29  ;;  %v3798_v24 = vmax.f32 %v3684_v26, %v716_v14  ;;  %v400_v9 = vsel %vm6082_vm11, %v399_v8, %v398_v7  ;;  %v401_v29 = vstv %s3859_s29 }
 0x1aa   :  { %v417_v8 = vstv %s3914_s9 }
 0x1ab   :  { %v720_v37 = vpop.permute.xlu1 %719  ;;  %727 = vrot.lane.b32.xlu1 %v3795_v25, %s3194_s13  ;;  %729 = vrot.lane.b32.xlu0 %v3798_v24, %s3194_s13  ;;  %v722_v33 = vpop.permute.xlu0 %721  ;;  %s3970_s13 = spop %2420 }
 0x1ac   :  { %v723_v38 = vsel %vm6080_vm10, %v720_v37, 100000.0  ;;  %v724_v32 = vsel %vm6080_vm10, %v722_v33, 100000.0  ;;  %vm6092_vm10 = vcmp.ge.f32.partialorder %v3266_v15, 8.0  ;;  %v402_v37 = vsel %vm6090_vm13, %v401_v29, %v400_v9  ;;  %6197 = sst [smem:[#allocation21_spill]] %s3970_s13 }
 0x1ad   :  { %v3809_v60 = vmin.f32 %v3695_v35, %v723_v38  ;;  %v3812_v26 = vmin.f32 %v3698_v31, %v724_v32  ;;  %v314_v35 = vsel %vm6082_vm11, %v300_v39, 0.0  ;;  %v403_v33 = vstv %s3864_s30 }
 0x1ae   :  { %v315_v31 = vadd.f32 %v314_v35, %v313_v42  ;;  %v405_v38 = vstv %s3866_s3  ;;  %v404_v42 = vsel %vm6088_vm14, %v403_v33, %v402_v37  ;;  %s3975_s14 = spop %2422 }
 0x1af   :  { %735 = vrot.lane.b32.xlu1 %v3809_v60, %s3204_s26  ;;  %737 = vrot.lane.b32.xlu0 %v3812_v26, %s3204_s26  ;;  %v406_v35 = vsel %vm6083_vm15, %v405_v38, %v404_v42  ;;  %6198 = sst [smem:[#allocation22_spill]] %s3975_s14 }
 0x1ce   :  { %316 = vadd.xlane.f32.xlu0 %v315_v31  ;;  %v407_v31 = vstv %s3871_s4 }
 0x1cf   :  { %v408_v53 = vsel %vm6087_vm0, %v407_v31, %v406_v35  ;;  %v419_v31 = vstv %s3931_s10 }
 0x1d2   :  { %328 = vadd.xlane.f32.xlu0 %v327_v49 }
 0x1d3   :  { %304 = vadd.xlane.f32.xlu1 %v303_v0 }
 0x1d6   :  { %352 = vadd.xlane.f32.xlu0 %v351_v55 }
 0x1d7   :  { %340 = vadd.xlane.f32.xlu1 %v339_v56  ;;  %v411_v56 = vstv %s3880_s6 }
 0x1da   :  { %376 = vadd.xlane.f32.xlu0 %v375_v61 }
 0x1db   :  { %364 = vadd.xlane.f32.xlu1 %v363_v62 }
 0x1df   :  { %388 = vadd.xlane.f32.xlu1 %v387_v34 }
 0x201   :  { %v495_v14 = vpop.permute.xlu1 %494 }
 0x202   :  { %v498_v16 = vsel %vm6092_vm10, %v495_v14, -100000.0 }
 0x203   :  { %v500_v46 = vmax.f32 %v3708_v44, %v498_v16  ;;  %v410_v44 = vsel %vm6084_vm1, %v409_v43, %v408_v53  ;;  %v421_v43 = vstv %s3933_s11 }
 0x204   :  { %v3926_v30 = vsel %vm6085_vm4, %v411_v56, %v410_v44  ;;  %v423_v56 = vstv %s3958_s12 }
 0x205   :  { %v497_v32 = vpop.permute.xlu0 %496  ;;  %v511_v58 = vsub.f32 %v3266_v15, %v500_v46 }
 0x206   :  { %v499_v39 = vsel %vm6092_vm10, %v497_v32, -100000.0 }
 0x207   :  { %v501_v48 = vmax.f32 %v3715_v47, %v499_v39  ;;  %v414_v47 = vsel %vm6089_vm12, %v413_v45, 0.0 }
 0x208   :  { %v416_v7 = vsel %vm6082_vm11, %v415_v57, %v414_v47  ;;  %vm6120_vm11 = vcmp.lt.f32.partialorder %v3926_v30, 256.0 }
 0x209   :  { %v504_v49 = vpop.permute.xlu1 %503  ;;  %v506_v0 = vpop.permute.xlu0 %505  ;;  %v512_v59 = vsub.f32 %v3266_v15, %v501_v48  ;;  %v418_v35 = vsel %vm6090_vm13, %v417_v8, %v416_v7  ;;  %v427_v7 = vstv %s3975_s14 }
 0x20a   :  { %v507_v50 = vsel %vm6091_vm9, %v504_v49, 100000.0  ;;  %v508_v36 = vsel %vm6091_vm9, %v506_v0, 100000.0  ;;  %v420_v53 = vsel %vm6088_vm14, %v419_v31, %v418_v35 }
 0x20b   :  { %v509_v54 = vmin.f32 %v3725_v51, %v507_v50  ;;  %v510_v55 = vmin.f32 %v3728_v52, %v508_v36  ;;  %v422_v44 = vsel %vm6083_vm15, %v421_v43, %v420_v53  ;;  %vm6100_vm15 = vcmp.gt.f32.partialorder %v3926_v30, 0.0 }
 0x20d   :  { %v513_v27 = vsub.f32 %v509_v54, %v3266_v15  ;;  %v514_v51 = vsub.f32 %v510_v55, %v3266_v15  ;;  %v572_v52 = vpop.permute.xlu1 %571  ;;  %v574_v61 = vpop.permute.xlu0 %573 }
 0x20e   :  { %v575_v62 = vsel %vm6092_vm10, %v572_v52, -100000.0  ;;  %v576_v63 = vsel %vm6092_vm10, %v574_v61, -100000.0  ;;  %v425_v52 = vstv %s3970_s13 }
 0x20f   :  { %v515_v34 = vmin.f32 %v511_v58, %v513_v27  ;;  %v516_v5 = vmin.f32 %v512_v59, %v514_v51  ;;  %v577_v9 = vmax.f32 %v3739_v40, %v575_v62  ;;  %v578_v29 = vmax.f32 %v3742_v41, %v576_v63 }
 0x211   :  { %v580_v14 = vpop.permute.xlu1 %579  ;;  %v582_v37 = vpop.permute.xlu0 %581  ;;  %v3937_v33 = vmul.f32 %v515_v34, %v515_v34   ;;  %v3939_v38 = vmul.f32 %v516_v5, %v516_v5   ;;  %v424_v5 = vsel %vm6087_vm0, %v423_v56, %v422_v44 }
 0x212   :  { %v583_v32 = vsel %vm6091_vm9, %v580_v14, 100000.0  ;;  %v584_v16 = vsel %vm6091_vm9, %v582_v37, 100000.0 }
 0x213   :  { %v585_v39 = vmin.f32 %v3753_v28, %v583_v32  ;;  %v586_v40 = vmin.f32 %v3756_v17, %v584_v16  ;;  %v751_v41 = vsel %vm6120_vm11, %v3937_v33, 0.0  ;;  %v752_v42 = vsel %vm6120_vm11, %v3939_v38, 0.0 }
 0x214   :  { %v753_v45 = vmax.f32 %v751_v41, %v752_v42  ;;  %v587_v28 = vsub.f32 %v3266_v15, %v577_v9  ;;  %v588_v17 = vsub.f32 %v3266_v15, %v578_v29  ;;  %v426_v32 = vsel %vm6084_vm1, %v425_v52, %v424_v5 }
 0x215   :  { %v589_v46 = vsub.f32 %v585_v39, %v3266_v15  ;;  %v590_v48 = vsub.f32 %v586_v40, %v3266_v15  ;;  %v650_v49 = vpop.permute.xlu1 %649  ;;  %v652_v0 = vpop.permute.xlu0 %651  ;;  %v4012_v40 = vsel %vm6085_vm4, %v427_v7, %v426_v32 }
 0x216   :  { %v653_v50 = vsel %vm6092_vm10, %v650_v49, -100000.0  ;;  %v654_v36 = vsel %vm6092_vm10, %v652_v0, -100000.0  ;;  %754 = vmax.xlane.f32.xlu0 %v753_v45  ;;  %6199 = vst [vmem:[#allocation23_spill] sm:$0xff] %v4012_v40  ;;  %vm6101_vm1 = vcmp.lt.f32.partialorder %v4012_v40, 256.0  ;;  %vm6099_vm4 = vcmp.gt.f32.partialorder %v4012_v40, 0.0 }
 0x217   :  { %v591_v54 = vmin.f32 %v587_v28, %v589_v46  ;;  %v592_v55 = vmin.f32 %v588_v17, %v590_v48  ;;  %v655_v47 = vmax.f32 %v3767_v19, %v653_v50  ;;  %v656_v57 = vmax.f32 %v3770_v18, %v654_v36 }
 0x219   :  { %v658_v58 = vpop.permute.xlu1 %657  ;;  %v660_v59 = vpop.permute.xlu0 %659  ;;  %v3979_v27 = vmul.f32 %v591_v54, %v591_v54   ;;  %v3981_v51 = vmul.f32 %v592_v55, %v592_v55   ;;  %v665_v9 = vsub.f32 %v3266_v15, %v655_v47  ;;  %v666_v29 = vsub.f32 %v3266_v15, %v656_v57 }
 0x21a   :  { %v661_v61 = vsel %vm6091_vm9, %v658_v58, 100000.0  ;;  %v662_v62 = vsel %vm6091_vm9, %v660_v59, 100000.0 }
 0x21b   :  { %v663_v63 = vmin.f32 %v3781_v21, %v661_v61  ;;  %v664_v19 = vmin.f32 %v3784_v20, %v662_v62  ;;  %v764_v18 = vsel %vm6100_vm15, %v3979_v27, 0.0  ;;  %v765_v34 = vsel %vm6100_vm15, %v3981_v51, 0.0 }
 0x21c   :  { %v766_v8 = vmax.f32 %v764_v18, %v765_v34 }
 0x21d   :  { %v667_v21 = vsub.f32 %v663_v63, %v3266_v15  ;;  %v668_v20 = vsub.f32 %v664_v19, %v3266_v15  ;;  %v728_v14 = vpop.permute.xlu1 %727  ;;  %v730_v37 = vpop.permute.xlu0 %729 }
 0x21e   :  { %v731_v16 = vsel %vm6092_vm10, %v728_v14, -100000.0  ;;  %v732_v39 = vsel %vm6092_vm10, %v730_v37, -100000.0  ;;  %767 = vmax.xlane.f32.xlu1 %v766_v8 }
 0x21f   :  { %v669_v41 = vmin.f32 %v665_v9, %v667_v21  ;;  %v670_v42 = vmin.f32 %v666_v29, %v668_v20  ;;  %v733_v35 = vmax.f32 %v3795_v25, %v731_v16  ;;  %v734_v31 = vmax.f32 %v3798_v24, %v732_v39 }
 0x221   :  { %v736_v43 = vpop.permute.xlu1 %735  ;;  %v738_v45 = vpop.permute.xlu0 %737  ;;  %v4016_v28 = vmul.f32 %v669_v41, %v669_v41   ;;  %v4018_v17 = vmul.f32 %v670_v42, %v670_v42   ;;  %v743_v36 = vsub.f32 %v3266_v15, %v733_v35  ;;  %v744_v53 = vsub.f32 %v3266_v15, %v734_v31 }
 0x222   :  { %v739_v46 = vsel %vm6091_vm9, %v736_v43, 100000.0  ;;  %v740_v48 = vsel %vm6091_vm9, %v738_v45, 100000.0 }
 0x223   :  { %v741_v49 = vmin.f32 %v3809_v60, %v739_v46  ;;  %v742_v25 = vmin.f32 %v3812_v26, %v740_v48  ;;  %v777_v24 = vsel %vm6101_vm1, %v4016_v28, 0.0  ;;  %v778_v0 = vsel %vm6101_vm1, %v4018_v17, 0.0 }
 0x224   :  { %v779_v50 = vmax.f32 %v777_v24, %v778_v0 }
 0x225   :  { %v745_v54 = vsub.f32 %v741_v49, %v3266_v15  ;;  %v746_v55 = vsub.f32 %v742_v25, %v3266_v15 }
 0x226   :  { %780 = vmax.xlane.f32.xlu0 %v779_v50 }
 0x227   :  { %v747_v60 = vmin.f32 %v743_v36, %v745_v54  ;;  %v748_v26 = vmin.f32 %v744_v53, %v746_v55 }
 0x229   :  { %v4037_v44 = vmul.f32 %v747_v60, %v747_v60   ;;  %v4039_v56 = vmul.f32 %v748_v26, %v748_v26  }
 0x22b   :  { %v790_v47 = vsel %vm6099_vm4, %v4037_v44, 0.0  ;;  %v791_v57 = vsel %vm6099_vm4, %v4039_v56, 0.0 }
 0x22c   :  { %v792_v58 = vmax.f32 %v790_v47, %v791_v57 }
 0x22e   :  { %793 = vmax.xlane.f32.xlu1 %v792_v58 }
 0x257   :  { %v317_v59 = vpop.xlane.xlu0 %316 }
 0x258   :  { %v318_v52 = vrot.slane %v317_v59, 4 }
 0x25a   :  { %v319_v61 = vadd.f32 %v318_v52, %v317_v59 }
 0x25b   :  { %v329_v62 = vpop.xlane.xlu0 %328 }
 0x25c   :  { %v320_v63 = vrot.slane %v319_v61, 2  ;;  %v305_v19 = vpop.xlane.xlu1 %304  ;;  %v330_v18 = vrot.slane %v329_v62, 4 }
 0x25d   :  { %v306_v34 = vrot.slane %v305_v19, 4 }
 0x25e   :  { %v331_v5 = vadd.f32 %v330_v18, %v329_v62  ;;  %v321_v7 = vadd.f32 %v320_v63, %v319_v61 }
 0x25f   :  { %v307_v8 = vadd.f32 %v306_v34, %v305_v19  ;;  %v353_v9 = vpop.xlane.xlu0 %352 }
 0x260   :  { %v332_v29 = vrot.slane %v331_v5, 2  ;;  %v341_v21 = vpop.xlane.xlu1 %340  ;;  %v354_v20 = vrot.slane %v353_v9, 4  ;;  %v322_v16 = vrot.slane %v321_v7, 1 }
 0x261   :  { %v308_v14 = vrot.slane %v307_v8, 2  ;;  %v342_v37 = vrot.slane %v341_v21, 4 }
 0x262   :  { %v355_v32 = vadd.f32 %v354_v20, %v353_v9  ;;  %v333_v39 = vadd.f32 %v332_v29, %v331_v5  ;;  %v323_v0 = vadd.f32 %v322_v16, %v321_v7 }
 0x263   :  { %v343_v41 = vadd.f32 %v342_v37, %v341_v21  ;;  %v377_v42 = vpop.xlane.xlu0 %376  ;;  %v309_v35 = vadd.f32 %v308_v14, %v307_v8 }
 0x264   :  { %v356_v31 = vrot.slane %v355_v32, 2  ;;  %v365_v43 = vpop.xlane.xlu1 %364  ;;  %v378_v45 = vrot.slane %v377_v42, 4  ;;  %v334_v46 = vrot.slane %v333_v39, 1 }
 0x265   :  { %v344_v48 = vrot.slane %v343_v41, 2  ;;  %v366_v49 = vrot.slane %v365_v43, 4  ;;  %v310_v25 = vrot.slane %v309_v35, 1 }
 0x266   :  { %v379_v24 = vadd.f32 %v378_v45, %v377_v42  ;;  %v357_v50 = vadd.f32 %v356_v31, %v355_v32  ;;  %v335_v54 = vadd.f32 %v334_v46, %v333_v39 }
 0x267   :  { %v367_v36 = vadd.f32 %v366_v49, %v365_v43  ;;  %v311_v53 = vadd.f32 %v310_v25, %v309_v35  ;;  %v345_v55 = vadd.f32 %v344_v48, %v343_v41 }
 0x268   :  { %v380_v60 = vrot.slane %v379_v24, 2  ;;  %v389_v26 = vpop.xlane.xlu1 %388  ;;  %v358_v47 = vrot.slane %v357_v50, 1 }
 0x269   :  { %v368_v57 = vrot.slane %v367_v36, 2  ;;  %v390_v58 = vrot.slane %v389_v26, 4  ;;  %2424 = vpush %v311_v53  ;;  %v346_v59 = vrot.slane %v345_v55, 1 }
 0x26a   :  { %2426 = vpush %v323_v0  ;;  %v359_v52 = vadd.f32 %v358_v47, %v357_v50  ;;  %v381_v61 = vadd.f32 %v380_v60, %v379_v24 }
 0x26b   :  { %v391_v62 = vadd.f32 %v390_v58, %v389_v26  ;;  %2428 = vpush %v335_v54  ;;  %v347_v63 = vadd.f32 %v346_v59, %v345_v55  ;;  %v369_v19 = vadd.f32 %v368_v57, %v367_v36  ;;  %v6203_v59 = vmov %v4039_v56 }
 0x26c   :  { %v382_v18 = vrot.slane %v381_v61, 1 }
 0x26d   :  { %v392_v34 = vrot.slane %v391_v62, 2  ;;  %2430 = vpush %v347_v63  ;;  %v370_v5 = vrot.slane %v369_v19, 1  ;;  %v6207_v63 = vmov %v3981_v51 }
 0x26e   :  { %2432 = vpush %v359_v52  ;;  %v383_v7 = vadd.f32 %v382_v18, %v381_v61  ;;  %v6204_v52 = vmov %v4037_v44  ;;  %v6205_v61 = vmov %v4018_v17  ;;  %v6209_v18 = vmov %v3939_v38 }
 0x26f   :  { %v371_v8 = vadd.f32 %v370_v5, %v369_v19  ;;  %v393_v9 = vadd.f32 %v392_v34, %v391_v62  ;;  %v6206_v62 = vmov %v4016_v28  ;;  %v6208_v19 = vmov %v3979_v27 }
 0x270   :  { %v6210_v34 = vmov %v3937_v33 }
 0x271   :  { %2434 = vpush %v371_v8  ;;  %v394_v29 = vrot.slane %v393_v9, 1 }
 0x272   :  { %2436 = vpush %v383_v7 }
 0x273   :  { %v395_v21 = vadd.f32 %v394_v29, %v393_v9 }
 0x275   :  { %2438 = vpush %v395_v21 }
 0x29a   :  { %s4048_s15 = spop %2424 }
 0x29b   :  { %s4050_s16 = spop %2426 }
 0x29c   :  { %s4052_s17 = spop %2428 }
 0x29e   :  { %s4054_s18 = spop %2430 }
 0x29f   :  { %v755_v20 = vpop.xlane.xlu0 %754  ;;  %s4056_s19 = spop %2432 }
 0x2a0   :  { %v756_v14 = vrot.slane %v755_v20, 4 }
 0x2a2   :  { %v757_v37 = vmax.f32 %v755_v20, %v756_v14  ;;  %s4058_s20 = spop %2434 }
 0x2a3   :  { %6200 = sst [smem:[#allocation24_spill]] %s4058_s20  ;;  %s4060_s0 = spop %2436 }
 0x2a4   :  { %6201 = sst [smem:[#allocation25_spill]] %s4060_s0  ;;  %v758_v32 = vrot.slane %v757_v37, 2 }
 0x2a6   :  { %v759_v16 = vmax.f32 %v757_v37, %v758_v32  ;;  %s4062_s1 = spop %2438 }
 0x2a7   :  { %6202 = sst [smem:[#allocation26_spill]] %s4062_s1  ;;  %v768_v39 = vpop.xlane.xlu1 %767 }
 0x2a8   :  { %v769_v41 = vrot.slane %v768_v39, 4  ;;  %v760_v42 = vrot.slane %v759_v16, 1 }
 0x2aa   :  { %v770_v35 = vmax.f32 %v768_v39, %v769_v41  ;;  %v761_v31 = vmax.f32 %v759_v16, %v760_v42 }
 0x2ac   :  { %v771_v43 = vrot.slane %v770_v35, 2  ;;  %2440 = vpush %v761_v31 }
 0x2ae   :  { %v772_v45 = vmax.f32 %v770_v35, %v771_v43 }
 0x2af   :  { %v781_v46 = vpop.xlane.xlu0 %780 }
 0x2b0   :  { %v782_v48 = vrot.slane %v781_v46, 4  ;;  %v773_v49 = vrot.slane %v772_v45, 1 }
 0x2b2   :  { %v783_v25 = vmax.f32 %v781_v46, %v782_v48  ;;  %v774_v24 = vmax.f32 %v772_v45, %v773_v49 }
 0x2b4   :  { %v784_v0 = vrot.slane %v783_v25, 2  ;;  %2442 = vpush %v774_v24 }
 0x2b6   :  { %v785_v50 = vmax.f32 %v783_v25, %v784_v0 }
 0x2b7   :  { %v794_v36 = vpop.xlane.xlu1 %793 }
 0x2b8   :  { %v795_v53 = vrot.slane %v794_v36, 4  ;;  %v786_v54 = vrot.slane %v785_v50, 1 }
 0x2ba   :  { %v796_v55 = vmax.f32 %v794_v36, %v795_v53  ;;  %v787_v60 = vmax.f32 %v785_v50, %v786_v54 }
 0x2bc   :  { %v797_v26 = vrot.slane %v796_v55, 2  ;;  %2444 = vpush %v787_v60 }
 0x2be   :  { %v798_v47 = vmax.f32 %v796_v55, %v797_v26 }
 0x2c0   :  { %v799_v57 = vrot.slane %v798_v47, 1 }
 0x2c2   :  { %v800_v58 = vmax.f32 %v798_v47, %v799_v57 }
 0x2c4   :  { %2446 = vpush %v800_v58 }
 0x2dd   :  { %s2441_s21 = spop %2440 }
 0x2de   :  { %s763_s26 = smax.f32 %s3205_s24, %s2441_s21 }
 0x2e5   :  { %s2443_s22 = spop %2442 }
 0x2e6   :  { %s776_s2 = smax.f32 %s2443_s22, %s763_s26 }
 0x2ed   :  { %s2445_s23 = spop %2444 }
 0x2ee   :  { %s789_s1 = smax.f32 %s2445_s23, %s776_s2 }
 0x2f5   :  { %s2447_s0 = spop %2446 }
 0x2f6   :  { %s802_s14 = smax.f32 %s2447_s0, %s789_s1 }
 0x2f7   :  { %p2388_p10 = scmp.ge.f32.partialorder %s802_s14, 1.0 }
 0x2f9   :  { %2321 = sbr.rel (!%p2388_p10) target bundleno = 1179 (0x49b), region = 44 }
 0x2fe   :  { %v6211_v5 = vmov %v4039_v56  ;;  %v6212_v7 = vmov %v4037_v44  ;;  %v6213_v8 = vmov %v4018_v17  ;;  %v6214_v9 = vmov %v4016_v28  ;;  %s4160_s2 = smov 1  }
 0x2ff   :  { %v6215_v29 = vmov %v3981_v51  ;;  %v6216_v21 = vmov %v3979_v27  ;;  %v6217_v20 = vmov %v3939_v38  ;;  %v6218_v14 = vmov %v3937_v33 }
 0x300   :  { %v6219_v37 = vmov %v4039_v56  ;;  %v6220_v32 = vmov %v4037_v44  ;;  %v6221_v16 = vmov %v4018_v17  ;;  %v6222_v39 = vmov %v4016_v28 }
 0x301   :  { %v6223_v41 = vmov %v3981_v51  ;;  %v6224_v42 = vmov %v3979_v27  ;;  %v6225_v35 = vmov %v3939_v38  ;;  %v6226_v31 = vmov %v3937_v33 }
 0x302 LB: > { %6227 = vst [vmem:[#allocation27_spill] sm:$0xff] %v3050_v5  ;;  %6228 = vst [vmem:[#allocation28_spill] sm:$0xff] %v3054_v7  ;;  %s838_s14 = scvt.s32.f32 %s3146_s2  ;;  %s922_s0 = sadd.s32 1, %s3146_s2  ;;  %v847_v43 = vrot.slane %v3110_v31, 7  ;;  %v848_v45 = vrot.slane %v3106_v35, 7  ;;  %vm6132_vm0 = vcmp.lt.s32.totalorder %v3239_v1, 1  ;;  %s3146_s2 = sphi %s4160_s2, %s6481_s2   ;;  %v3142_v33 = vphi %v3937_v33, %v6480_v33   ;;  %v3138_v38 = vphi %v3939_v38, %v6479_v38   ;;  %v3134_v27 = vphi %v3979_v27, %v6478_v27   ;;  %v3130_v51 = vphi %v3981_v51, %v6477_v51   ;;  %v3126_v28 = vphi %v4016_v28, %v6476_v28   ;;  %v3122_v17 = vphi %v4018_v17, %v6475_v17   ;;  %v3118_v44 = vphi %v4037_v44, %v6474_v44   ;;  %v3114_v56 = vphi %v4039_v56, %v6473_v56   ;;  %v3110_v31 = vphi %v6226_v31, %v6472_v31   ;;  %v3106_v35 = vphi %v6225_v35, %v6471_v35   ;;  %v3102_v42 = vphi %v6224_v42, %v6470_v42   ;;  %v3098_v41 = vphi %v6223_v41, %v4953_v41   ;;  %v3094_v39 = vphi %v6222_v39, %v6469_v39   ;;  %v3090_v16 = vphi %v6221_v16, %v6468_v16   ;;  %v3086_v32 = vphi %v6220_v32, %v5143_v32   ;;  %v3082_v37 = vphi %v6219_v37, %v6467_v37   ;;  %v3078_v14 = vphi %v6218_v14, %v6466_v14   ;;  %v3074_v20 = vphi %v6217_v20, %v6465_v20   ;;  %v3070_v21 = vphi %v6216_v21, %v6464_v21   ;;  %v3066_v29 = vphi %v6215_v29, %v4965_v29   ;;  %v3062_v9 = vphi %v6214_v9, %v4778_v9   ;;  %v3058_v8 = vphi %v6213_v8, %v4782_v8   ;;  %v3054_v7 = vphi %v6212_v7, %v6463_v7   ;;  %v3050_v5 = vphi %v6211_v5, %v1492_v5  }
 0x303   : > { %6229 = vst [vmem:[#allocation29_spill] sm:$0xff] %v3066_v29  ;;  %6230 = vst [vmem:[#allocation30_spill] sm:$0xff] %v3082_v37  ;;  %v852_v46 = vrot.slane %v3078_v14, 1  ;;  %s4232_s1 = scvt.s32.f32 %s922_s0  ;;  %s1005_s21 = sadd.s32 2, %s3146_s2  ;;  %v853_v49 = vrot.slane %v3074_v20, 1  ;;  %vm6131_vm14 = vcmp.lt.s32.totalorder %v3239_v1, 7 }
 0x304   : > { %6231 = vst [vmem:[#allocation31_spill] sm:$0xff] %v3086_v32  ;;  %6232 = vst [vmem:[#allocation32_spill] sm:$0xff] %v3114_v56  ;;  %s839_s22 = smul.f32 %s838_s14, %s838_s14  ;;  %v840_v48 = vstv %s838_s14  ;;  %s843_s23 = ssub.f32 16.0, %s838_s14  ;;  %v6236_v25 = vmov 0  ;;  %v6238_v24 = vmov 0  ;;  %v850_v0 = vsel %vm6132_vm0, %v847_v43, %v848_v45 }
 0x305   : > { %6233 = vst [vmem:[#allocation33_spill] sm:$0xff] %v3118_v44  ;;  %6234 = vst [vmem:[#allocation34_spill] sm:$0xff] %v3130_v51  ;;  %vm4237_vm12 = vcmp.ge.f32.partialorder %v3247_v4, %v840_v48  ;;  %vm4242_vm13 = vcmp.ge.f32.partialorder %v3251_v6, %v840_v48  ;;  %v851_v50 = vsel %vm6132_vm0, %v848_v45, %v847_v43  ;;  %s928_s24 = ssub.f32 16.0, %s4232_s1  ;;  %s4267_s26 = scvt.s32.f32 %s1005_s21  ;;  %v925_v58 = vstv %s4232_s1 }
 0x306   : > { %6235 = vst [vmem:[#allocation35_spill] sm:$0xff] %v3134_v27  ;;  %v6237_v25 = vsel %vm4237_vm12, 4294967295, %v6236_v25  ;;  %v6239_v24 = vsel %vm4242_vm13, 4294967295, %v6238_v24  ;;  %v4251_v36 = vstv %s843_s23  ;;  %v855_v53 = vsel %vm6131_vm14, %v852_v46, %v853_v49  ;;  %s1088_s14 = sadd.s32 3, %s3146_s2  ;;  %s924_s0 = smul.f32 %s4232_s1, %s4232_s1 }
 0x307   : > { %v856_v54 = vsel %vm6131_vm14, %v853_v49, %v852_v46  ;;  %v857_v55 = vsel %vm4237_vm12, %v851_v50, 3.0000001e+10  ;;  %vm6119_vm9 = vcmp.lt.f32.partialorder %v3247_v4, %v4251_v36  ;;  %vm6117_vm10 = vcmp.lt.f32.partialorder %v3251_v6, %v4251_v36  ;;  %s1011_s1 = ssub.f32 16.0, %s4267_s26  ;;  %s4296_s21 = scvt.s32.f32 %s1088_s14 }
 0x308   : > { %v858_v60 = vsel %vm4242_vm13, %v850_v0, 3.0000001e+10  ;;  %v4265_v26 = vstv %s839_s22  ;;  %v859_v47 = vsel %vm6119_vm9, %v855_v53, 3.0000001e+10  ;;  %v860_v57 = vsel %vm6117_vm10, %v856_v54, 3.0000001e+10  ;;  %s1007_s22 = smul.f32 %s4267_s26, %s4267_s26 }
 0x309   : > { %v4276_v59 = vstv %s928_s24  ;;  %v861_v52 = vmin.f32 %v857_v55, %v859_v47  ;;  %v862_v61 = vmin.f32 %v858_v60, %v860_v57  ;;  %vm4282_vm8 = vcmp.ge.f32.partialorder %v3247_v4, %v925_v58  ;;  %s1094_s23 = ssub.f32 16.0, %s4296_s21  ;;  %s4334_s24 = sadd.s32 8, %s3146_s2  }
 0x30a   : > { %vm4287_vm7 = vcmp.ge.f32.partialorder %v3251_v6, %v925_v58  ;;  %vm6109_vm5 = vcmp.lt.f32.partialorder %v3247_v4, %v4276_v59  ;;  %v932_v19 = vrot.slane %v851_v50, 7  ;;  %v933_v18 = vrot.slane %v850_v0, 7  ;;  %s830_s20 = scvt.s32.f32 %s4334_s24  ;;  %p831_p11 = scmp.lt.s32.totalorder %s4334_s24, 16 }
 0x30b   : > { %v864_v34 = vadd.f32 %v4265_v26, %v861_v52  ;;  %v865_v20 = vadd.f32 %v4265_v26, %v862_v61  ;;  %v936_v14 = vrot.slane %v855_v53, 1  ;;  %v937_v35 = vrot.slane %v856_v54, 1 }
 0x30c   : > { %vm6102_vm6 = vcmp.lt.f32.partialorder %v3251_v6, %v4276_v59  ;;  %v934_v31 = vsel %vm6132_vm0, %v932_v19, %v933_v18  ;;  %v935_v43 = vsel %vm6132_vm0, %v933_v18, %v932_v19  ;;  %v1008_v45 = vstv %s4267_s26  ;;  %s1171_s26 = sadd.s32 4, %s3146_s2  ;;  %s832_s13 = smul.f32 %s830_s20, %s830_s20 }
 0x30d   : > { %v866_v46 = vmin.f32 %v3142_v33, %v864_v34  ;;  %v867_v48 = vmin.f32 %v3138_v38, %v865_v20  ;;  %v938_v49 = vsel %vm6131_vm14, %v936_v14, %v937_v35  ;;  %v4309_v0 = vstv %s924_s0  ;;  %s4365_s14 = scvt.s32.f32 %s1171_s26  ;;  %s1090_s0 = smul.f32 %s4296_s21, %s4296_s21 }
 0x30e   : > { %v939_v50 = vsel %vm6131_vm14, %v937_v35, %v936_v14  ;;  %v940_v53 = vsel %vm4282_vm8, %v935_v43, 3.0000001e+10  ;;  %v941_v54 = vsel %vm4287_vm7, %v934_v31, 3.0000001e+10  ;;  %v942_v33 = vsel %vm6109_vm5, %v938_v49, 3.0000001e+10 }
 0x30f   : > { %v943_v38 = vsel %vm6102_vm6, %v939_v50, 3.0000001e+10  ;;  %v944_v55 = vmin.f32 %v940_v53, %v942_v33  ;;  %vm4326_vm3 = vcmp.ge.f32.partialorder %v3247_v4, %v1008_v45  ;;  %v4330_v47 = vstv %s1011_s1  ;;  %s1254_s1 = sadd.s32 5, %s3146_s2 }
 0x310   : > { %v945_v57 = vmin.f32 %v941_v54, %v943_v38  ;;  %vm4337_vm2 = vcmp.ge.f32.partialorder %v3251_v6, %v1008_v45  ;;  %vm6103_vm4 = vcmp.lt.f32.partialorder %v3247_v4, %v4330_v47  ;;  %v1015_v52 = vrot.slane %v935_v43, 7 }
 0x311   : > { %v947_v61 = vadd.f32 %v4309_v0, %v944_v55  ;;  %v1016_v19 = vrot.slane %v934_v31, 7  ;;  %v1019_v18 = vrot.slane %v938_v49, 1  ;;  %v1020_v34 = vrot.slane %v939_v50, 1 }
 0x312   : > { %v948_v20 = vadd.f32 %v4309_v0, %v945_v57  ;;  %vm6108_vm15 = vcmp.lt.f32.partialorder %v3251_v6, %v4330_v47  ;;  %v4348_v14 = vstv %s1007_s22  ;;  %v1091_v35 = vstv %s4296_s21  ;;  %s1177_s21 = ssub.f32 16.0, %s4365_s14  ;;  %s4394_s22 = scvt.s32.f32 %s1254_s1 }
 0x313   : > { %v949_v45 = vmin.f32 %v866_v46, %v947_v61  ;;  %v1017_v43 = vsel %vm6132_vm0, %v1015_v52, %v1016_v19  ;;  %v1018_v31 = vsel %vm6132_vm0, %v1016_v19, %v1015_v52  ;;  %v4355_v49 = vstv %s1094_s23  ;;  %s1173_s23 = smul.f32 %s4365_s14, %s4365_s14 }
 0x314   : > { %v1021_v50 = vsel %vm6131_vm14, %v1019_v18, %v1020_v34  ;;  %v1022_v53 = vsel %vm6131_vm14, %v1020_v34, %v1019_v18  ;;  %v1023_v54 = vsel %vm4326_vm3, %v1018_v31, 3.0000001e+10  ;;  %v1024_v46 = vsel %vm4337_vm2, %v1017_v43, 3.0000001e+10  ;;  %s1260_s26 = ssub.f32 16.0, %s4394_s22 }
 0x315   : > { %v950_v33 = vmin.f32 %v867_v48, %v948_v20  ;;  %v1025_v38 = vsel %vm6103_vm4, %v1021_v50, 3.0000001e+10  ;;  %v1026_v55 = vsel %vm6108_vm15, %v1022_v53, 3.0000001e+10  ;;  %vm4376_vm1 = vcmp.ge.f32.partialorder %v3247_v4, %v1091_v35 }
 0x316   : > { %v1027_v52 = vmin.f32 %v1023_v54, %v1025_v38  ;;  %v1028_v48 = vmin.f32 %v1024_v46, %v1026_v55  ;;  %vm4382_vm6 = vcmp.ge.f32.partialorder %v3251_v6, %v1091_v35  ;;  %vm6110_vm4 = vcmp.lt.f32.partialorder %v3247_v4, %v4355_v49 }
 0x317   : > { %v1098_v19 = vrot.slane %v1018_v31, 7  ;;  %v1099_v18 = vrot.slane %v1017_v43, 7  ;;  %v1102_v34 = vrot.slane %v1021_v50, 1  ;;  %v1103_v20 = vrot.slane %v1022_v53, 1 }
 0x318   : > { %v1030_v11 = vadd.f32 %v4348_v14, %v1027_v52  ;;  %v1031_v10 = vadd.f32 %v4348_v14, %v1028_v48  ;;  %vm6111_vm15 = vcmp.lt.f32.partialorder %v3251_v6, %v4355_v49  ;;  %v1174_v54 = vstv %s4365_s14  ;;  %s1337_s14 = sadd.s32 6, %s3146_s2 }
 0x319   : > { %v1100_v35 = vsel %vm6132_vm0, %v1098_v19, %v1099_v18  ;;  %v1101_v43 = vsel %vm6132_vm0, %v1099_v18, %v1098_v19  ;;  %v1104_v31 = vsel %vm6131_vm14, %v1102_v34, %v1103_v20  ;;  %v4402_v50 = vstv %s1090_s0  ;;  %s1256_s0 = smul.f32 %s4394_s22, %s4394_s22  ;;  %s4462_s1 = scvt.s32.f32 %s1337_s14 }
 0x31a   : > { %v1032_v53 = vmin.f32 %v949_v45, %v1030_v11  ;;  %v1105_v46 = vsel %vm6131_vm14, %v1103_v20, %v1102_v34  ;;  %v1106_v38 = vsel %vm4376_vm1, %v1101_v43, 3.0000001e+10  ;;  %v1107_v55 = vsel %vm4382_vm6, %v1100_v35, 3.0000001e+10 }
 0x31b   : > { %v1033_v52 = vmin.f32 %v950_v33, %v1031_v10  ;;  %v1108_v48 = vsel %vm6110_vm4, %v1104_v31, 3.0000001e+10  ;;  %v1109_v19 = vsel %vm6111_vm15, %v1105_v46, 3.0000001e+10  ;;  %vm4419_vm5 = vcmp.ge.f32.partialorder %v3247_v4, %v1174_v54 }
 0x31c   : > { %v1110_v45 = vmin.f32 %v1106_v38, %v1108_v48  ;;  %v1111_v18 = vmin.f32 %v1107_v55, %v1109_v19  ;;  %v4423_v10 = vstv %s1177_s21  ;;  %v1181_v33 = vrot.slane %v1101_v43, 7  ;;  %s1420_s21 = sadd.s32 7, %s3146_s2  ;;  %s1343_s2 = ssub.f32 16.0, %s4462_s1 }
 0x31d   : > { %vm4427_vm4 = vcmp.ge.f32.partialorder %v3251_v6, %v1174_v54  ;;  %v6254_v34 = vmov 0  ;;  %vm6121_vm15 = vcmp.lt.f32.partialorder %v3247_v4, %v4423_v10  ;;  %v1182_v20 = vrot.slane %v1100_v35, 7 }
 0x31e   : > { %v6255_v34 = vsel %vm4427_vm4, 4294967295, %v6254_v34  ;;  %v1185_v15 = vrot.slane %v1104_v31, 1  ;;  %v1113_v2 = vadd.f32 %v4402_v50, %v1110_v45  ;;  %v1114_v38 = vadd.f32 %v4402_v50, %v1111_v18 }
 0x31f   : > { %vm6125_vm10 = vcmp.lt.f32.partialorder %v3251_v6, %v4423_v10  ;;  %v1186_v43 = vrot.slane %v1105_v46, 1  ;;  %v1183_v54 = vsel %vm6132_vm0, %v1181_v33, %v1182_v20  ;;  %v1184_v55 = vsel %vm6132_vm0, %v1182_v20, %v1181_v33 }
 0x320   : > { %v4442_v48 = vstv %s1173_s23  ;;  %v1257_v35 = vstv %s4394_s22  ;;  %v1115_v31 = vmin.f32 %v1032_v53, %v1113_v2  ;;  %v4445_v19 = vmin.f32 %v1033_v52, %v1114_v38  ;;  %s4490_s22 = scvt.s32.f32 %s1420_s21  ;;  %s1339_s23 = smul.f32 %s4462_s1, %s4462_s1 }
 0x321   : > { %v1187_v45 = vsel %vm6131_vm14, %v1185_v15, %v1186_v43  ;;  %v4449_v18 = vstv %s1260_s26  ;;  %v1188_v46 = vsel %vm6131_vm14, %v1186_v43, %v1185_v15  ;;  %v1189_v3 = vsel %vm4419_vm5, %v1184_v55, 3.0000001e+10  ;;  %s3206_s21 = smov 0.0  }
 0x322   : > { %v1190_v33 = vsel %vm4427_vm4, %v1183_v54, 3.0000001e+10  ;;  %v1191_v2 = vsel %vm6121_vm15, %v1187_v45, 3.0000001e+10  ;;  %v1192_v53 = vsel %vm6125_vm10, %v1188_v46, 3.0000001e+10  ;;  %vm4468_vm9 = vcmp.ge.f32.partialorder %v3247_v4, %v1257_v35  ;;  %s1422_s14 = smul.f32 %s4490_s22, %s4490_s22 }
 0x323   : > { %v1193_v15 = vmin.f32 %v1189_v3, %v1191_v2  ;;  %v6256_v52 = vmov 0  ;;  %vm4473_vm11 = vcmp.ge.f32.partialorder %v3251_v6, %v1257_v35  ;;  %v6258_v20 = vmov 0  ;;  %s1426_s26 = ssub.f32 16.0, %s4490_s22 }
 0x324   : > { %v6257_v52 = vsel %vm4468_vm9, 4294967295, %v6256_v52  ;;  %v6259_v20 = vsel %vm4473_vm11, 4294967295, %v6258_v20  ;;  %v1194_v38 = vmin.f32 %v1190_v33, %v1192_v53  ;;  %vm6134_vm15 = vcmp.lt.f32.partialorder %v3247_v4, %v4449_v18 }
 0x325   : > { %v1264_v43 = vrot.slane %v1184_v55, 7  ;;  %v1265_v13 = vrot.slane %v1183_v54, 7  ;;  %v1196_v3 = vadd.f32 %v4442_v48, %v1193_v15  ;;  %vm6133_vm10 = vcmp.lt.f32.partialorder %v3251_v6, %v4449_v18 }
 0x326   : > { %v1268_v2 = vrot.slane %v1187_v45, 1  ;;  %v1269_v23 = vrot.slane %v1188_v46, 1  ;;  %v1197_v12 = vadd.f32 %v4442_v48, %v1194_v38  ;;  %v4486_v22 = vstv %s1256_s0 }
 0x327   : > { %v1267_v35 = vsel %vm6132_vm0, %v1265_v13, %v1264_v43  ;;  %v1340_v33 = vstv %s4462_s1  ;;  %v1266_v54 = vsel %vm6132_vm0, %v1264_v43, %v1265_v13  ;;  %v1198_v53 = vmin.f32 %v1115_v31, %v1196_v3 }
 0x328   : > { %v1270_v55 = vsel %vm6131_vm14, %v1268_v2, %v1269_v23  ;;  %v1271_v45 = vsel %vm6131_vm14, %v1269_v23, %v1268_v2  ;;  %v1272_v46 = vsel %vm4468_vm9, %v1267_v35, 3.0000001e+10  ;;  %v1273_v15 = vsel %vm4473_vm11, %v1266_v54, 3.0000001e+10 }
 0x329   : > { %v1274_v38 = vsel %vm6134_vm15, %v1270_v55, 3.0000001e+10  ;;  %v1275_v13 = vsel %vm6133_vm10, %v1271_v45, 3.0000001e+10  ;;  %vm4511_vm14 = vcmp.ge.f32.partialorder %v3247_v4, %v1340_v33  ;;  %v6260_v23 = vmov 0 }
 0x32a   : > { %v1276_v43 = vmin.f32 %v1272_v46, %v1274_v38  ;;  %v1277_v56 = vmin.f32 %v1273_v15, %v1275_v13  ;;  %v6261_v23 = vsel %vm4511_vm14, 4294967295, %v6260_v23  ;;  %vm4516_vm0 = vcmp.ge.f32.partialorder %v3251_v6, %v1340_v33 }
 0x32b   : > { %v6262_v31 = vmov 0  ;;  %v4520_v3 = vstv %s1343_s2  ;;  %v1347_v2 = vrot.slane %v1267_v35, 7  ;;  %v1348_v44 = vrot.slane %v1266_v54, 7 }
 0x32c   : > { %v6263_v31 = vsel %vm4516_vm0, 4294967295, %v6262_v31  ;;  %6264 = vst [vmem:[#allocation36_spill] sm:$0xff] %v4520_v3  ;;  %v1351_v5 = vrot.slane %v1270_v55, 1  ;;  %v1199_v46 = vmin.f32 %v4445_v19, %v1197_v12  ;;  %v1279_v15 = vadd.f32 %v4486_v22, %v1276_v43 }
 0x32d   : > { %v1280_v38 = vadd.f32 %v4486_v22, %v1277_v56  ;;  %vm6265_vm11 = vcmp.lt.s32.totalorder %v3239_v1, 1  ;;  %v1352_v54 = vrot.slane %v1271_v45, 1  ;;  %v4538_v19 = vstv %s1339_s23 }
 0x32e   : > { %v1349_v35 = vsel %vm6265_vm11, %v1347_v2, %v1348_v44  ;;  %vm6266_vm9 = vmmov %vm6265_vm11  ;;  %v1281_v55 = vmin.f32 %v1198_v53, %v1279_v15  ;;  %vm6267_vm10 = vcmp.lt.s32.totalorder %v3239_v1, 7  ;;  %v1423_v7 = vstv %s4490_s22 }
 0x32f   : > { %v1350_v33 = vsel %vm6266_vm9, %v1348_v44, %v1347_v2  ;;  %v1356_v56 = vsel %vm4516_vm0, %v1349_v35, 3.0000001e+10  ;;  %v1353_v13 = vsel %vm6267_vm10, %v1351_v5, %v1352_v54  ;;  %vm6268_vm15 = vmmov %vm6267_vm10  ;;  %v4547_v44 = vstv %s1426_s26 }
 0x330   : > { %v1355_v12 = vsel %vm4511_vm14, %v1350_v33, 3.0000001e+10  ;;  %v1354_v43 = vsel %vm6268_vm15, %v1352_v54, %v1351_v5  ;;  %v1282_v45 = vmin.f32 %v1199_v46, %v1280_v38  ;;  %vm6269_vm11 = vcmp.lt.f32.partialorder %v3247_v4, %v4520_v3  ;;  %vm6282_vm4 = vmmov %vm6267_vm10 }
 0x331   : > { %v1357_v53 = vsel %vm6269_vm11, %v1353_v13, 3.0000001e+10  ;;  %vm6270_vm9 = vcmp.lt.f32.partialorder %v3251_v6, %v4520_v3  ;;  %vm4556_vm0 = vcmp.ge.f32.partialorder %v3247_v4, %v1423_v7  ;;  %v6271_v15 = vmov 0 }
 0x332   : > { %v1358_v2 = vsel %vm6270_vm9, %v1354_v43, 3.0000001e+10  ;;  %v6272_v15 = vsel %vm4556_vm0, 4294967295, %v6271_v15  ;;  %v1359_v5 = vmin.f32 %v1355_v12, %v1357_v53  ;;  %vm4561_vm15 = vcmp.ge.f32.partialorder %v3251_v6, %v1423_v7 }
 0x333   : > { %6273 = vst [vmem:[#allocation37_spill] sm:$0xff] %v6272_v15  ;;  %v1360_v54 = vmin.f32 %v1356_v56, %v1358_v2  ;;  %v6274_v37 = vmov 0  ;;  %v1430_v46 = vrot.slane %v1350_v33, 7  ;;  %v1431_v38 = vrot.slane %v1349_v35, 7 }
 0x334   : > { %v6275_v37 = vsel %vm4561_vm15, 4294967295, %v6274_v37  ;;  %v1434_v32 = vrot.slane %v1353_v13, 1  ;;  %v1435_v51 = vrot.slane %v1354_v43, 1  ;;  %v1362_v27 = vadd.f32 %v4538_v19, %v1359_v5 }
 0x335   : > { %v1363_v40 = vadd.f32 %v4538_v19, %v1360_v54  ;;  %vm6155_vm11 = vcmp.lt.f32.partialorder %v3251_v6, %v4547_v44  ;;  %v4571_v12 = vstv %s1422_s14  ;;  %vm6276_vm9 = vcmp.lt.s32.totalorder %v3239_v1, 1 }
 0x336   : > { %v4575_v35 = vsel %vm6276_vm9, %v1430_v46, %v1431_v38   ;;  %vm6278_vm14 = vmmov %vm6276_vm9  ;;  %v4583_v56 = vsel %vm6267_vm10, %v1434_v32, %v1435_v51   ;;  %v4587_v13 = vsel %vm6282_vm4, %v1435_v51, %v1434_v32   ;;  %v1364_v43 = vmin.f32 %v1281_v55, %v1362_v27 }
 0x337   : > { %6277 = vst [vmem:[#allocation38_spill] sm:$0xff] %v4575_v35  ;;  %v4579_v7 = vsel %vm6278_vm14, %v1431_v38, %v1430_v46   ;;  %6281 = vst [vmem:[#allocation40_spill] sm:$0xff] %v4583_v56  ;;  %v1439_v2 = vsel %vm4561_vm15, %v4575_v35, 3.0000001e+10  ;;  %vm6283_vm14 = vcmp.lt.f32.partialorder %v3247_v4, %v4547_v44  ;;  %v1441_v51 = vsel %vm6155_vm11, %v4587_v13, 3.0000001e+10 }
 0x338   : > { %6279 = vst [vmem:[#allocation39_spill] sm:$0xff] %v4579_v7  ;;  %v6280_v33 = vmov %v4579_v7  ;;  %v1440_v5 = vsel %vm6283_vm14, %v4583_v56, 3.0000001e+10  ;;  %v1365_v32 = vmin.f32 %v1282_v45, %v1363_v40  ;;  %v1443_v55 = vmin.f32 %v1439_v2, %v1441_v51  ;;  %vm6288_vm4 = vmmov %vm6276_vm9 }
 0x339   : > { %v1438_v53 = vsel %vm4556_vm0, %v6280_v33, 3.0000001e+10  ;;  %v886_v38 = vrot.slane %v3094_v39, 7  ;;  %v887_v7 = vrot.slane %v3090_v16, 7  ;;  %v890_v33 = vrot.slane %v3062_v9, 1  ;;  %vm6289_vm10 = vmmov %vm6288_vm4 }
 0x33a   : > { %v1442_v27 = vmin.f32 %v1438_v53, %v1440_v5  ;;  %v1446_v46 = vadd.f32 %v4571_v12, %v1443_v55  ;;  %v891_v35 = vrot.slane %v3058_v8, 1  ;;  %vm6290_vm9 = vcmp.lt.s32.totalorder %v3239_v1, 7 }
 0x33b   : > { %v888_v40 = vsel %vm6288_vm4, %v886_v38, %v887_v7  ;;  %v889_v45 = vsel %vm6289_vm10, %v887_v7, %v886_v38  ;;  %vm6291_vm14 = vmmov %vm6290_vm9  ;;  %vm6292_vm11 = vcmp.lt.f32.partialorder %v3926_v30, 256.0  ;;  %vm6294_vm4 = vcmp.lt.f32.partialorder %v3247_v4, %v4251_v36 }
 0x33c   : > { %v1445_v54 = vadd.f32 %v4571_v12, %v1442_v27  ;;  %v4611_v29 = vmin.f32 %v1365_v32, %v1446_v46   ;;  %v892_v53 = vsel %vm6290_vm9, %v890_v33, %v891_v35  ;;  %v893_v16 = vsel %vm6291_vm14, %v891_v35, %v890_v33  ;;  %vm6293_vm15 = vmmov %vm6292_vm11 }
 0x33d   : > { %v895_v39 = vsel %vm4242_vm13, %v888_v40, 3.0000001e+10  ;;  %vm6295_vm10 = vcmp.lt.f32.partialorder %v3251_v6, %v4251_v36  ;;  %v969_v33 = vrot.slane %v889_v45, 7  ;;  %v970_v51 = vrot.slane %v888_v40, 7  ;;  %vm6298_vm14 = vmmov %vm6290_vm9 }
 0x33e   : > { %v4609_v56 = vmin.f32 %v1364_v43, %v1445_v54   ;;  %6286 = vst [vmem:[#allocation42_spill] sm:$0xff] %v4611_v29  ;;  %v6287_v3 = vmov %v4611_v29  ;;  %v894_v29 = vsel %vm4237_vm12, %v889_v45, 3.0000001e+10  ;;  %v896_v43 = vsel %vm6294_vm4, %v892_v53, 3.0000001e+10 }
 0x33f   : > { %v1505_v9 = vsel %vm6293_vm15, %v6287_v3, 0.0  ;;  %v897_v35 = vsel %vm6295_vm10, %v893_v16, 3.0000001e+10  ;;  %v898_v2 = vmin.f32 %v894_v29, %v896_v43  ;;  %v973_v32 = vrot.slane %v892_v53, 1 }
 0x340   : > { %6284 = vst [vmem:[#allocation41_spill] sm:$0xff] %v4609_v56  ;;  %v6285_v15 = vmov %v4609_v56  ;;  %v899_v5 = vmin.f32 %v895_v39, %v897_v35  ;;  %v974_v27 = vrot.slane %v893_v16, 1  ;;  %vm6296_vm15 = vcmp.lt.s32.totalorder %v3239_v1, 1 }
 0x341   : > { %v1504_v8 = vsel %vm6292_vm11, %v6285_v15, 0.0  ;;  %v900_v55 = vadd.f32 %v898_v2, %v4265_v26  ;;  %v971_v46 = vsel %vm6296_vm15, %v969_v33, %v970_v51  ;;  %vm6297_vm11 = vmmov %vm6296_vm15  ;;  %vm6299_vm4 = vcmp.lt.f32.partialorder %v3247_v4, %v4276_v59 }
 0x342   : > { %v1506_v56 = vmax.f32 %v1504_v8, %v1505_v9  ;;  %v901_v54 = vadd.f32 %v899_v5, %v4265_v26  ;;  %v972_v38 = vsel %vm6297_vm11, %v970_v51, %v969_v33  ;;  %v975_v7 = vsel %vm6290_vm9, %v973_v32, %v974_v27  ;;  %vm6301_vm15 = vmmov %vm6297_vm11 }
 0x343   : > { %v976_v45 = vsel %vm6298_vm14, %v974_v27, %v973_v32  ;;  %v977_v40 = vsel %vm4282_vm8, %v972_v38, 3.0000001e+10  ;;  %v978_v53 = vsel %vm4287_vm7, %v971_v46, 3.0000001e+10  ;;  %v902_v16 = vmin.f32 %v3126_v28, %v900_v55  ;;  %vm6302_vm14 = vmmov %vm6290_vm9 }
 0x344   : > { %1507 = vmax.xlane.f32.xlu0 %v1506_v56  ;;  %v903_v8 = vmin.f32 %v3122_v17, %v901_v54  ;;  %v979_v9 = vsel %vm6299_vm4, %v975_v7, 3.0000001e+10  ;;  %vm6300_vm10 = vcmp.lt.f32.partialorder %v3251_v6, %v4276_v59  ;;  %v1052_v43 = vrot.slane %v972_v38, 7 }
 0x345   : > { %v980_v29 = vsel %vm6300_vm10, %v976_v45, 3.0000001e+10  ;;  %v981_v39 = vmin.f32 %v977_v40, %v979_v9  ;;  %v1053_v35 = vrot.slane %v971_v46, 7  ;;  %v1056_v33 = vrot.slane %v975_v7, 1 }
 0x346   : > { %v982_v56 = vmin.f32 %v978_v53, %v980_v29  ;;  %v1057_v2 = vrot.slane %v976_v45, 1  ;;  %vm6303_vm4 = vcmp.lt.f32.partialorder %v3247_v4, %v4330_v47  ;;  %vm6304_vm10 = vcmp.lt.f32.partialorder %v3251_v6, %v4330_v47 }
 0x347   : > { %v983_v5 = vadd.f32 %v981_v39, %v4309_v0  ;;  %v1054_v17 = vsel %vm6301_vm15, %v1052_v43, %v1053_v35  ;;  %v1055_v51 = vsel %vm6297_vm11, %v1053_v35, %v1052_v43  ;;  %vm6305_vm15 = vmmov %vm6297_vm11 }
 0x348   : > { %v984_v28 = vadd.f32 %v982_v56, %v4309_v0  ;;  %v1058_v32 = vsel %vm6290_vm9, %v1056_v33, %v1057_v2  ;;  %v1059_v27 = vsel %vm6302_vm14, %v1057_v2, %v1056_v33  ;;  %v1060_v55 = vsel %vm4326_vm3, %v1055_v51, 3.0000001e+10  ;;  %vm6306_vm14 = vmmov %vm6290_vm9 }
 0x349   : > { %v1061_v54 = vsel %vm4337_vm2, %v1054_v17, 3.0000001e+10  ;;  %v985_v46 = vmin.f32 %v902_v16, %v983_v5  ;;  %v1062_v7 = vsel %vm6303_vm4, %v1058_v32, 3.0000001e+10  ;;  %v1063_v45 = vsel %vm6304_vm10, %v1059_v27, 3.0000001e+10 }
 0x34a   : > { %v986_v38 = vmin.f32 %v903_v8, %v984_v28  ;;  %v1064_v40 = vmin.f32 %v1060_v55, %v1062_v7  ;;  %v1065_v53 = vmin.f32 %v1061_v54, %v1063_v45  ;;  %v1135_v9 = vrot.slane %v1055_v51, 7 }
 0x34b   : > { %v1136_v29 = vrot.slane %v1054_v17, 7  ;;  %v1139_v39 = vrot.slane %v1058_v32, 1  ;;  %v1140_v56 = vrot.slane %v1059_v27, 1  ;;  %vm6307_vm4 = vcmp.lt.f32.partialorder %v3247_v4, %v4355_v49 }
 0x34c   : > { %v1066_v43 = vadd.f32 %v1064_v40, %v4348_v14  ;;  %v1067_v35 = vadd.f32 %v1065_v53, %v4348_v14  ;;  %vm6308_vm10 = vcmp.lt.f32.partialorder %v3251_v6, %v4355_v49 }
 0x34d   : > { %v1137_v16 = vsel %vm6305_vm15, %v1135_v9, %v1136_v29  ;;  %v1138_v8 = vsel %vm6297_vm11, %v1136_v29, %v1135_v9  ;;  %v1141_v33 = vsel %vm6290_vm9, %v1139_v39, %v1140_v56  ;;  %v1142_v2 = vsel %vm6306_vm14, %v1140_v56, %v1139_v39  ;;  %vm6309_vm15 = vmmov %vm6297_vm11 }
 0x34e   : > { %v1143_v5 = vsel %vm4376_vm1, %v1138_v8, 3.0000001e+10  ;;  %v1144_v28 = vsel %vm4382_vm6, %v1137_v16, 3.0000001e+10  ;;  %v1068_v17 = vmin.f32 %v985_v46, %v1066_v43  ;;  %v1069_v51 = vmin.f32 %v986_v38, %v1067_v35  ;;  %vm6310_vm14 = vmmov %vm6290_vm9 }
 0x34f   : > { %v1145_v32 = vsel %vm6307_vm4, %v1141_v33, 3.0000001e+10  ;;  %v1146_v27 = vsel %vm6308_vm10, %v1142_v2, 3.0000001e+10  ;;  %v1218_v7 = vrot.slane %v1138_v8, 7  ;;  %v1219_v45 = vrot.slane %v1137_v16, 7 }
 0x350   : > { %v1147_v55 = vmin.f32 %v1143_v5, %v1145_v32  ;;  %v1148_v54 = vmin.f32 %v1144_v28, %v1146_v27  ;;  %v1222_v40 = vrot.slane %v1141_v33, 1  ;;  %v1223_v53 = vrot.slane %v1142_v2, 1 }
 0x351   : > { %v1220_v46 = vsel %vm6309_vm15, %v1218_v7, %v1219_v45  ;;  %v1221_v38 = vsel %vm6297_vm11, %v1219_v45, %v1218_v7  ;;  %vm6311_vm4 = vnez %v6255_v34  ;;  %vm6312_vm10 = vcmp.lt.f32.partialorder %v3247_v4, %v4423_v10 }
 0x352   : > { %v1149_v9 = vadd.f32 %v1147_v55, %v4402_v50  ;;  %v1150_v29 = vadd.f32 %v1148_v54, %v4402_v50  ;;  %v1224_v39 = vsel %vm6290_vm9, %v1222_v40, %v1223_v53  ;;  %v1225_v56 = vsel %vm6310_vm14, %v1223_v53, %v1222_v40  ;;  %vm6314_vm9 = vmmov %vm6297_vm11 }
 0x353   : > { %v1226_v43 = vsel %vm4419_vm5, %v1221_v38, 3.0000001e+10  ;;  %v1227_v35 = vsel %vm6311_vm4, %v1220_v46, 3.0000001e+10  ;;  %v1228_v33 = vsel %vm6312_vm10, %v1224_v39, 3.0000001e+10  ;;  %vm6313_vm15 = vcmp.lt.f32.partialorder %v3251_v6, %v4423_v10  ;;  %vm6315_vm10 = vmmov %vm6310_vm14 }
 0x354   : > { %v1151_v16 = vmin.f32 %v1068_v17, %v1149_v9  ;;  %v1152_v8 = vmin.f32 %v1069_v51, %v1150_v29  ;;  %v1229_v2 = vsel %vm6313_vm15, %v1225_v56, 3.0000001e+10  ;;  %v1230_v5 = vmin.f32 %v1226_v43, %v1228_v33 }
 0x355   : > { %v1231_v28 = vmin.f32 %v1227_v35, %v1229_v2  ;;  %v1301_v32 = vrot.slane %v1221_v38, 7  ;;  %v1302_v27 = vrot.slane %v1220_v46, 7  ;;  %v1305_v55 = vrot.slane %v1224_v39, 1 }
 0x356   : > { %v1306_v54 = vrot.slane %v1225_v56, 1  ;;  %v868_v7 = vrot.slane %v3102_v42, 7  ;;  %v1232_v45 = vadd.f32 %v1230_v5, %v4442_v48  ;;  %vm6316_vm15 = vnez %v6257_v52 }
 0x357   : > { %v1233_v17 = vadd.f32 %v1231_v28, %v4442_v48  ;;  %v1303_v51 = vsel %vm6297_vm11, %v1301_v32, %v1302_v27  ;;  %v1304_v40 = vsel %vm6314_vm9, %v1302_v27, %v1301_v32  ;;  %vm6317_vm4 = vnez %v6259_v20 }
 0x358   : > { %v1307_v53 = vsel %vm6310_vm14, %v1305_v55, %v1306_v54  ;;  %v1308_v9 = vsel %vm6315_vm10, %v1306_v54, %v1305_v55  ;;  %v1309_v29 = vsel %vm6316_vm15, %v1304_v40, 3.0000001e+10  ;;  %v1310_v42 = vsel %vm6317_vm4, %v1303_v51, 3.0000001e+10 }
 0x359   : > { %v1234_v46 = vmin.f32 %v1151_v16, %v1232_v45  ;;  %v1235_v38 = vmin.f32 %v1152_v8, %v1233_v17  ;;  %vm6318_vm11 = vcmp.lt.f32.partialorder %v3247_v4, %v4449_v18  ;;  %vm6319_vm9 = vcmp.lt.f32.partialorder %v3251_v6, %v4449_v18 }
 0x35a   : > { %v1311_v39 = vsel %vm6318_vm11, %v1307_v53, 3.0000001e+10  ;;  %v1312_v56 = vsel %vm6319_vm9, %v1308_v9, 3.0000001e+10  ;;  %v1384_v33 = vrot.slane %v1304_v40, 7  ;;  %v1385_v2 = vrot.slane %v1303_v51, 7 }
 0x35b   : > { %v1313_v43 = vmin.f32 %v1309_v29, %v1311_v39  ;;  %v1314_v35 = vmin.f32 %v1310_v42, %v1312_v56  ;;  %v1388_v5 = vrot.slane %v1307_v53, 1  ;;  %v1389_v28 = vrot.slane %v1308_v9, 1  ;;  %v6326_v53 = vld [vmem:[#allocation36_spill] sm:$0xff] }
 0x35c   : > { %v869_v32 = vrot.slane %v3098_v41, 7  ;;  %v872_v27 = vrot.slane %v3070_v21, 1  ;;  %vm6320_vm14 = vcmp.lt.s32.totalorder %v3239_v1, 1  ;;  %vm6322_vm11 = vcmp.lt.s32.totalorder %v3239_v1, 7 }
 0x35d   : > { %v1315_v16 = vadd.f32 %v1313_v43, %v4486_v22  ;;  %v1316_v8 = vadd.f32 %v1314_v35, %v4486_v22  ;;  %v1386_v55 = vsel %vm6320_vm14, %v1384_v33, %v1385_v2  ;;  %vm6321_vm10 = vmmov %vm6320_vm14  ;;  %v1390_v45 = vsel %vm6322_vm11, %v1388_v5, %v1389_v28 }
 0x35e   : > { %v1387_v54 = vsel %vm6321_vm10, %v1385_v2, %v1384_v33  ;;  %vm6323_vm9 = vmmov %vm6322_vm11  ;;  %vm6324_vm4 = vnez %v6261_v23  ;;  %vm6325_vm15 = vnez %v6263_v31  ;;  %vm6327_vm14 = vcmp.lt.f32.partialorder %v3247_v4, %v6326_v53 }
 0x35f   : > { %v1391_v17 = vsel %vm6323_vm9, %v1389_v28, %v1388_v5  ;;  %v1392_v41 = vsel %vm6324_vm4, %v1387_v54, 3.0000001e+10  ;;  %v1393_v21 = vsel %vm6325_vm15, %v1386_v55, 3.0000001e+10  ;;  %v1317_v51 = vmin.f32 %v1234_v46, %v1315_v16 }
 0x360   : > { %v1318_v40 = vmin.f32 %v1235_v38, %v1316_v8  ;;  %v1394_v9 = vsel %vm6327_vm14, %v1390_v45, 3.0000001e+10  ;;  %vm6328_vm10 = vcmp.lt.f32.partialorder %v3251_v6, %v6326_v53  ;;  %v1467_v56 = vrot.slane %v1387_v54, 7 }
 0x361   : > { %v1395_v29 = vsel %vm6328_vm10, %v1391_v17, 3.0000001e+10  ;;  %v1396_v42 = vmin.f32 %v1392_v41, %v1394_v9  ;;  %v1468_v43 = vrot.slane %v1386_v55, 7  ;;  %v1471_v35 = vrot.slane %v1390_v45, 1 }
 0x362   : > { %v1397_v39 = vmin.f32 %v1393_v21, %v1395_v29  ;;  %v1472_v33 = vrot.slane %v1391_v17, 1  ;;  %vm6329_vm11 = vcmp.lt.s32.totalorder %v3239_v1, 1  ;;  %vm6335_vm15 = vcmp.lt.s32.totalorder %v3239_v1, 7  ;;  %v6341_v29 = vld [vmem:[#allocation29_spill] sm:$0xff] }
 0x363   : > { %v870_v2 = vsel %vm6329_vm11, %v868_v7, %v869_v32  ;;  %vm6330_vm9 = vmmov %vm6329_vm11  ;;  %v1398_v38 = vadd.f32 %v1396_v42, %v4538_v19  ;;  %v873_v42 = vrot.slane %v6341_v29, 1 }
 0x364   : > { %v871_v46 = vsel %vm6330_vm9, %v869_v32, %v868_v7  ;;  %v1399_v5 = vadd.f32 %v1397_v39, %v4538_v19  ;;  %vm6331_vm14 = vmmov %vm6330_vm9  ;;  %v4778_v9 = vsel %vm6335_vm15, %v1471_v35, %v1472_v33   ;;  %v6337_v7 = vld [vmem:[#allocation37_spill] sm:$0xff] }
 0x365   : > { %v4770_v16 = vsel %vm6331_vm14, %v1467_v56, %v1468_v43   ;;  %vm6333_vm10 = vmmov %vm6330_vm9  ;;  %vm6338_vm9 = vnez %v6275_v37  ;;  %v1400_v55 = vmin.f32 %v1317_v51, %v1398_v38  ;;  %vm6339_vm14 = vcmp.lt.f32.partialorder %v3247_v4, %v4547_v44 }
 0x366   : > { %6332 = vst [vmem:[#allocation43_spill] sm:$0xff] %v4770_v16  ;;  %v4774_v39 = vsel %vm6333_vm10, %v1468_v43, %v1467_v56   ;;  %vm6336_vm11 = vmmov %vm6335_vm15  ;;  %v1476_v32 = vsel %vm6338_vm9, %v4770_v16, 3.0000001e+10  ;;  %v1477_v54 = vsel %vm6339_vm14, %v4778_v9, 3.0000001e+10  ;;  %vm6340_vm15 = vcmp.lt.f32.partialorder %v3251_v6, %v4547_v44 }
 0x367   : > { %6334 = vst [vmem:[#allocation44_spill] sm:$0xff] %v4774_v39  ;;  %v4782_v8 = vsel %vm6336_vm11, %v1472_v33, %v1471_v35   ;;  %v1475_v28 = vsel %vm4556_vm0, %v4774_v39, 3.0000001e+10  ;;  %v1401_v17 = vmin.f32 %v1318_v40, %v1399_v5  ;;  %v876_v56 = vsel %vm4237_vm12, %v871_v46, 3.0000001e+10  ;;  %vm6342_vm10 = vmmov %vm6336_vm11  ;;  %v6352_v39 = vld [vmem:[#allocation23_spill] sm:$0xff] }
 0x368   : > { %v1478_v45 = vsel %vm6340_vm15, %v4782_v8, 3.0000001e+10  ;;  %v1479_v41 = vmin.f32 %v1475_v28, %v1477_v54  ;;  %v877_v51 = vsel %vm4242_vm13, %v870_v2, 3.0000001e+10  ;;  %v951_v43 = vrot.slane %v871_v46, 7  ;;  %vm6343_vm11 = vmmov %vm6342_vm10 }
 0x369   : > { %v1480_v21 = vmin.f32 %v1476_v32, %v1478_v45  ;;  %v952_v35 = vrot.slane %v870_v2, 7  ;;  %v874_v15 = vsel %vm6342_vm10, %v872_v27, %v873_v42  ;;  %v875_v40 = vsel %vm6343_vm11, %v873_v42, %v872_v27  ;;  %vm6355_vm11 = vmmov %vm6342_vm10 }
 0x36a   : > { %v1481_v33 = vadd.f32 %v1479_v41, %v4571_v12  ;;  %vm6344_vm14 = vcmp.lt.f32.partialorder %v3247_v4, %v4251_v36  ;;  %vm6345_vm15 = vcmp.lt.f32.partialorder %v3251_v6, %v4251_v36  ;;  %vm6346_vm13 = vcmp.lt.s32.totalorder %v3239_v1, 1 }
 0x36b   : > { %v1482_v38 = vadd.f32 %v1480_v21, %v4571_v12  ;;  %v878_v5 = vsel %vm6344_vm14, %v874_v15, 3.0000001e+10  ;;  %v879_v28 = vsel %vm6345_vm15, %v875_v40, 3.0000001e+10  ;;  %v953_v2 = vsel %vm6346_vm13, %v951_v43, %v952_v35  ;;  %vm6347_vm12 = vmmov %vm6346_vm13 }
 0x36c   : > { %v954_v46 = vsel %vm6347_vm12, %v952_v35, %v951_v43  ;;  %v4819_v32 = vmin.f32 %v1400_v55, %v1481_v33   ;;  %v880_v41 = vmin.f32 %v876_v56, %v878_v5  ;;  %v881_v27 = vmin.f32 %v877_v51, %v879_v28  ;;  %v6356_v33 = vld [vmem:[#allocation35_spill] sm:$0xff] }
 0x36d   : > { %v4821_v17 = vmin.f32 %v1401_v17, %v1482_v38   ;;  %v955_v21 = vrot.slane %v874_v15, 1  ;;  %v956_v29 = vrot.slane %v875_v40, 1  ;;  %v959_v42 = vsel %vm4282_vm8, %v954_v46, 3.0000001e+10  ;;  %v6357_v40 = vld [vmem:[#allocation34_spill] sm:$0xff] }
 0x36e   : > { %6348 = vst [vmem:[#allocation45_spill] sm:$0xff] %v4819_v32  ;;  %v6349_v54 = vmov %v4819_v32  ;;  %v960_v3 = vsel %vm4287_vm7, %v953_v2, 3.0000001e+10  ;;  %vm6353_vm13 = vcmp.lt.f32.partialorder %v6352_v39, 256.0  ;;  %v883_v56 = vadd.f32 %v881_v27, %v4265_v26 }
 0x36f   : > { %6350 = vst [vmem:[#allocation46_spill] sm:$0xff] %v4821_v17  ;;  %v6351_v45 = vmov %v4821_v17  ;;  %v1530_v16 = vsel %vm6353_vm13, %v6349_v54, 0.0  ;;  %vm6354_vm12 = vmmov %vm6353_vm13  ;;  %v882_v17 = vadd.f32 %v880_v41, %v4265_v26  ;;  %v957_v51 = vsel %vm6342_vm10, %v955_v21, %v956_v29 }
 0x370   : > { %v1531_v55 = vsel %vm6354_vm12, %v6351_v45, 0.0  ;;  %v958_v43 = vsel %vm6355_vm11, %v956_v29, %v955_v21  ;;  %v1034_v35 = vrot.slane %v954_v46, 7  ;;  %v885_v5 = vmin.f32 %v6357_v40, %v883_v56  ;;  %vm6362_vm11 = vmmov %vm6342_vm10 }
 0x371   : > { %v1532_v15 = vmax.f32 %v1530_v16, %v1531_v55  ;;  %v884_v38 = vmin.f32 %v6356_v33, %v882_v17  ;;  %vm6358_vm14 = vcmp.lt.f32.partialorder %v3247_v4, %v4276_v59  ;;  %vm6359_vm15 = vcmp.lt.f32.partialorder %v3251_v6, %v4276_v59 }
 0x372   : > { %v961_v28 = vsel %vm6358_vm14, %v957_v51, 3.0000001e+10  ;;  %v962_v32 = vsel %vm6359_vm15, %v958_v43, 3.0000001e+10  ;;  %v1035_v27 = vrot.slane %v953_v2, 7  ;;  %v1038_v55 = vrot.slane %v957_v51, 1 }
 0x373   : > { %1533 = vmax.xlane.f32.xlu1 %v1532_v15  ;;  %v963_v16 = vmin.f32 %v959_v42, %v961_v28  ;;  %v964_v41 = vmin.f32 %v960_v3, %v962_v32  ;;  %v1039_v54 = vrot.slane %v958_v43, 1  ;;  %vm6360_vm13 = vcmp.lt.s32.totalorder %v3239_v1, 1 }
 0x374   : > { %v1036_v29 = vsel %vm6360_vm13, %v1034_v35, %v1035_v27  ;;  %vm6361_vm12 = vmmov %vm6360_vm13  ;;  %vm6363_vm14 = vcmp.lt.f32.partialorder %v3247_v4, %v4330_v47  ;;  %vm6364_vm15 = vcmp.lt.f32.partialorder %v3251_v6, %v4330_v47 }
 0x375   : > { %v965_v46 = vadd.f32 %v963_v16, %v4309_v0  ;;  %v966_v21 = vadd.f32 %v964_v41, %v4309_v0  ;;  %v1037_v17 = vsel %vm6361_vm12, %v1035_v27, %v1034_v35  ;;  %v1040_v56 = vsel %vm6342_vm10, %v1038_v55, %v1039_v54  ;;  %vm6365_vm13 = vmmov %vm6361_vm12 }
 0x376   : > { %v1041_v42 = vsel %vm6362_vm11, %v1039_v54, %v1038_v55  ;;  %v1042_v3 = vsel %vm4326_vm3, %v1037_v17, 3.0000001e+10  ;;  %v1043_v2 = vsel %vm4337_vm2, %v1036_v29, 3.0000001e+10  ;;  %v1044_v43 = vsel %vm6363_vm14, %v1040_v56, 3.0000001e+10  ;;  %vm6366_vm11 = vmmov %vm6342_vm10 }
 0x377   : > { %v967_v15 = vmin.f32 %v884_v38, %v965_v46  ;;  %v968_v51 = vmin.f32 %v885_v5, %v966_v21  ;;  %v1045_v35 = vsel %vm6364_vm15, %v1041_v42, 3.0000001e+10  ;;  %v1046_v33 = vmin.f32 %v1042_v3, %v1044_v43 }
 0x378   : > { %v1047_v40 = vmin.f32 %v1043_v2, %v1045_v35  ;;  %v1117_v28 = vrot.slane %v1037_v17, 7  ;;  %v1118_v54 = vrot.slane %v1036_v29, 7  ;;  %v1121_v32 = vrot.slane %v1040_v56, 1 }
 0x379   : > { %v1122_v16 = vrot.slane %v1041_v42, 1  ;;  %v1048_v41 = vadd.f32 %v1046_v33, %v4348_v14  ;;  %vm6367_vm14 = vcmp.lt.f32.partialorder %v3247_v4, %v4355_v49  ;;  %vm6368_vm15 = vcmp.lt.f32.partialorder %v3251_v6, %v4355_v49 }
 0x37a   : > { %v1049_v27 = vadd.f32 %v1047_v40, %v4348_v14  ;;  %v1119_v38 = vsel %vm6365_vm13, %v1117_v28, %v1118_v54  ;;  %v1120_v5 = vsel %vm6361_vm12, %v1118_v54, %v1117_v28  ;;  %vm6369_vm13 = vmmov %vm6361_vm12 }
 0x37b   : > { %v1123_v55 = vsel %vm6342_vm10, %v1121_v32, %v1122_v16  ;;  %v1124_v46 = vsel %vm6366_vm11, %v1122_v16, %v1121_v32  ;;  %v1125_v21 = vsel %vm4376_vm1, %v1120_v5, 3.0000001e+10  ;;  %v1126_v29 = vsel %vm4382_vm6, %v1119_v38, 3.0000001e+10  ;;  %vm6370_vm11 = vmmov %vm6342_vm10 }
 0x37c   : > { %v1050_v17 = vmin.f32 %v967_v15, %v1048_v41  ;;  %v1051_v56 = vmin.f32 %v968_v51, %v1049_v27  ;;  %v1127_v42 = vsel %vm6367_vm14, %v1123_v55, 3.0000001e+10  ;;  %v1128_v3 = vsel %vm6368_vm15, %v1124_v46, 3.0000001e+10 }
 0x37d   : > { %v1129_v2 = vmin.f32 %v1125_v21, %v1127_v42  ;;  %v1130_v43 = vmin.f32 %v1126_v29, %v1128_v3  ;;  %v1200_v35 = vrot.slane %v1120_v5, 7  ;;  %v1201_v33 = vrot.slane %v1119_v38, 7 }
 0x37e   : > { %v1204_v40 = vrot.slane %v1123_v55, 1  ;;  %v1205_v28 = vrot.slane %v1124_v46, 1  ;;  %vm6371_vm14 = vnez %v6255_v34  ;;  %vm6372_vm15 = vcmp.lt.f32.partialorder %v3247_v4, %v4423_v10 }
 0x37f   : > { %v1131_v54 = vadd.f32 %v1129_v2, %v4402_v50  ;;  %v1132_v32 = vadd.f32 %v1130_v43, %v4402_v50  ;;  %v1202_v15 = vsel %vm6369_vm13, %v1200_v35, %v1201_v33  ;;  %v1203_v51 = vsel %vm6361_vm12, %v1201_v33, %v1200_v35 }
 0x380   : > { %v1206_v16 = vsel %vm6342_vm10, %v1204_v40, %v1205_v28  ;;  %v1207_v41 = vsel %vm6370_vm11, %v1205_v28, %v1204_v40  ;;  %v1208_v27 = vsel %vm4419_vm5, %v1203_v51, 3.0000001e+10  ;;  %v1209_v38 = vsel %vm6371_vm14, %v1202_v15, 3.0000001e+10  ;;  %vm6374_vm10 = vmmov %vm6361_vm12 }
 0x381   : > { %v1133_v5 = vmin.f32 %v1050_v17, %v1131_v54  ;;  %v1134_v55 = vmin.f32 %v1051_v56, %v1132_v32  ;;  %v1210_v46 = vsel %vm6372_vm15, %v1206_v16, 3.0000001e+10  ;;  %vm6373_vm13 = vcmp.lt.f32.partialorder %v3251_v6, %v4423_v10  ;;  %vm6375_vm15 = vmmov %vm6370_vm11 }
 0x382   : > { %v1211_v21 = vsel %vm6373_vm13, %v1207_v41, 3.0000001e+10  ;;  %v1212_v29 = vmin.f32 %v1208_v27, %v1210_v46  ;;  %v1283_v3 = vrot.slane %v1203_v51, 7  ;;  %v1284_v2 = vrot.slane %v1202_v15, 7 }
 0x383   : > { %v1213_v42 = vmin.f32 %v1209_v38, %v1211_v21  ;;  %v1287_v43 = vrot.slane %v1206_v16, 1  ;;  %v1288_v35 = vrot.slane %v1207_v41, 1  ;;  %vm6376_vm13 = vnez %v6257_v52 }
 0x384   : > { %v1214_v33 = vadd.f32 %v1212_v29, %v4442_v48  ;;  %v1285_v17 = vsel %vm6361_vm12, %v1283_v3, %v1284_v2  ;;  %v1286_v56 = vsel %vm6374_vm10, %v1284_v2, %v1283_v3  ;;  %vm6377_vm14 = vnez %v6259_v20 }
 0x385   : > { %v1215_v40 = vadd.f32 %v1213_v42, %v4442_v48  ;;  %v1289_v28 = vsel %vm6370_vm11, %v1287_v43, %v1288_v35  ;;  %v1290_v54 = vsel %vm6375_vm15, %v1288_v35, %v1287_v43  ;;  %v1291_v32 = vsel %vm6376_vm13, %v1286_v56, 3.0000001e+10 }
 0x386   : > { %v1292_v15 = vsel %vm6377_vm14, %v1285_v17, 3.0000001e+10  ;;  %v1216_v51 = vmin.f32 %v1133_v5, %v1214_v33  ;;  %vm6378_vm12 = vcmp.lt.f32.partialorder %v3247_v4, %v4449_v18  ;;  %vm6379_vm10 = vcmp.lt.f32.partialorder %v3251_v6, %v4449_v18 }
 0x387   : > { %v1217_v16 = vmin.f32 %v1134_v55, %v1215_v40  ;;  %v1293_v41 = vsel %vm6378_vm12, %v1289_v28, 3.0000001e+10  ;;  %v1294_v27 = vsel %vm6379_vm10, %v1290_v54, 3.0000001e+10  ;;  %v1366_v21 = vrot.slane %v1286_v56, 7 }
 0x388   : > { %v1295_v38 = vmin.f32 %v1291_v32, %v1293_v41  ;;  %v1296_v46 = vmin.f32 %v1292_v15, %v1294_v27  ;;  %v1367_v29 = vrot.slane %v1285_v17, 7  ;;  %v1370_v42 = vrot.slane %v1289_v28, 1 }
 0x389   : > { %v1371_v3 = vrot.slane %v1290_v54, 1  ;;  %vm6380_vm11 = vcmp.lt.s32.totalorder %v3239_v1, 1  ;;  %vm6382_vm12 = vcmp.lt.s32.totalorder %v3239_v1, 7  ;;  %vm6384_vm14 = vnez %v6263_v31 }
 0x38a   : > { %v1297_v2 = vadd.f32 %v1295_v38, %v4486_v22  ;;  %v1298_v43 = vadd.f32 %v1296_v46, %v4486_v22  ;;  %v1368_v5 = vsel %vm6380_vm11, %v1366_v21, %v1367_v29  ;;  %vm6381_vm15 = vmmov %vm6380_vm11  ;;  %vm6385_vm11 = vcmp.lt.f32.partialorder %v3247_v4, %v6326_v53 }
 0x38b   : > { %v1369_v55 = vsel %vm6381_vm15, %v1367_v29, %v1366_v21  ;;  %v1372_v35 = vsel %vm6382_vm12, %v1370_v42, %v1371_v3  ;;  %vm6383_vm10 = vmmov %vm6382_vm12  ;;  %v1375_v17 = vsel %vm6384_vm14, %v1368_v5, 3.0000001e+10  ;;  %vm6386_vm15 = vcmp.lt.f32.partialorder %v3251_v6, %v6326_v53  ;;  %v6387_v29 = vld [vmem:[#allocation31_spill] sm:$0xff] }
 0x38c   : > { %v1373_v33 = vsel %vm6383_vm10, %v1371_v3, %v1370_v42  ;;  %v1374_v40 = vsel %vm6324_vm4, %v1369_v55, 3.0000001e+10  ;;  %v1299_v56 = vmin.f32 %v1216_v51, %v1297_v2  ;;  %v1300_v28 = vmin.f32 %v1217_v16, %v1298_v43  ;;  %v6388_v3 = vld [vmem:[#allocation30_spill] sm:$0xff] }
 0x38d   : > { %v1376_v54 = vsel %vm6385_vm11, %v1372_v35, 3.0000001e+10  ;;  %v1377_v32 = vsel %vm6386_vm15, %v1373_v33, 3.0000001e+10  ;;  %v1449_v27 = vrot.slane %v1369_v55, 7  ;;  %v1450_v38 = vrot.slane %v1368_v5, 7 }
 0x38e   : > { %v1378_v15 = vmin.f32 %v1374_v40, %v1376_v54  ;;  %v1379_v41 = vmin.f32 %v1375_v17, %v1377_v32  ;;  %v1453_v46 = vrot.slane %v1372_v35, 1  ;;  %v1454_v21 = vrot.slane %v1373_v33, 1 }
 0x38f   : > { %v904_v42 = vrot.slane %v6387_v29, 7  ;;  %v905_v45 = vrot.slane %v6388_v3, 7  ;;  %vm6389_vm12 = vcmp.lt.s32.totalorder %v3239_v1, 1  ;;  %vm6392_vm11 = vcmp.lt.s32.totalorder %v3239_v1, 7 }
 0x390   : > { %v1380_v51 = vadd.f32 %v1378_v15, %v4538_v19  ;;  %v1381_v16 = vadd.f32 %v1379_v41, %v4538_v19  ;;  %v4953_v41 = vsel %vm6389_vm12, %v1449_v27, %v1450_v38   ;;  %vm6390_vm10 = vmmov %vm6389_vm12  ;;  %v4961_v43 = vsel %vm6392_vm11, %v1453_v46, %v1454_v21  }
 0x391   : > { %v4957_v2 = vsel %vm6390_vm10, %v1450_v38, %v1449_v27   ;;  %vm6393_vm15 = vmmov %vm6392_vm11  ;;  %v1458_v55 = vsel %vm6338_vm9, %v4953_v41, 3.0000001e+10  ;;  %vm6394_vm12 = vcmp.lt.f32.partialorder %v3247_v4, %v4547_v44  ;;  %vm6395_vm10 = vcmp.lt.f32.partialorder %v3251_v6, %v4547_v44  ;;  %v6399_v38 = vld [vmem:[#allocation27_spill] sm:$0xff] }
 0x392   : > { %6391 = vst [vmem:[#allocation47_spill] sm:$0xff] %v4957_v2  ;;  %v4965_v29 = vsel %vm6393_vm15, %v1454_v21, %v1453_v46   ;;  %v1457_v5 = vsel %vm4556_vm0, %v4957_v2, 3.0000001e+10  ;;  %v1382_v35 = vmin.f32 %v1299_v56, %v1380_v51  ;;  %v1383_v33 = vmin.f32 %v1300_v28, %v1381_v16  ;;  %v6398_v56 = vld [vmem:[#allocation28_spill] sm:$0xff] }
 0x393   : > { %v1459_v40 = vsel %vm6394_vm12, %v4961_v43, 3.0000001e+10  ;;  %v1460_v17 = vsel %vm6395_vm10, %v4965_v29, 3.0000001e+10  ;;  %vm6396_vm11 = vcmp.lt.s32.totalorder %v3239_v1, 1  ;;  %v908_v28 = vrot.slane %v6398_v56, 1 }
 0x394   : > { %v1461_v54 = vmin.f32 %v1457_v5, %v1459_v40  ;;  %v1462_v32 = vmin.f32 %v1458_v55, %v1460_v17  ;;  %v906_v15 = vsel %vm6396_vm11, %v904_v42, %v905_v45  ;;  %vm6397_vm15 = vmmov %vm6396_vm11  ;;  %v909_v46 = vrot.slane %v6399_v38, 1 }
 0x395   : > { %v907_v27 = vsel %vm6397_vm15, %v905_v45, %v904_v42  ;;  %vm6400_vm9 = vnez %v6237_v25  ;;  %vm6401_vm12 = vnez %v6239_v24  ;;  %v988_v55 = vrot.slane %v906_v15, 7 }
 0x396   : > { %v912_v21 = vsel %vm6400_vm9, %v907_v27, 3.0000001e+10  ;;  %v913_v3 = vsel %vm6401_vm12, %v906_v15, 3.0000001e+10  ;;  %v1463_v51 = vadd.f32 %v1461_v54, %v4571_v12  ;;  %v1464_v16 = vadd.f32 %v1462_v32, %v4571_v12 }
 0x397   : > { %v987_v5 = vrot.slane %v907_v27, 7  ;;  %vm6402_vm10 = vcmp.lt.s32.totalorder %v3239_v1, 7  ;;  %vm6406_vm9 = vcmp.lt.f32.partialorder %v3247_v4, %v4251_v36  ;;  %vm6407_vm15 = vcmp.lt.f32.partialorder %v3251_v6, %v4251_v36 }
 0x398   : > { %v910_v40 = vsel %vm6402_vm10, %v908_v28, %v909_v46  ;;  %vm6403_vm11 = vmmov %vm6402_vm10  ;;  %v4997_v27 = vmin.f32 %v1382_v35, %v1463_v51   ;;  %v4999_v51 = vmin.f32 %v1383_v33, %v1464_v16   ;;  %vm6408_vm12 = vcmp.lt.s32.totalorder %v3239_v1, 1 }
 0x399   : > { %v911_v45 = vsel %vm6403_vm11, %v909_v46, %v908_v28  ;;  %v914_v24 = vsel %vm6406_vm9, %v910_v40, 3.0000001e+10  ;;  %v989_v32 = vsel %vm6408_vm12, %v987_v5, %v988_v55  ;;  %vm6409_vm10 = vmmov %vm6408_vm12  ;;  %vm6410_vm11 = vcmp.gt.f32.partialorder %v3926_v30, 0.0 }
 0x39a   : > { %v6404_v2 = vmov %v4997_v27  ;;  %v6405_v25 = vmov %v4999_v51  ;;  %v915_v42 = vsel %vm6407_vm15, %v911_v45, 3.0000001e+10  ;;  %v916_v17 = vmin.f32 %v912_v21, %v914_v24  ;;  %vm6411_vm0 = vmmov %vm6410_vm11  ;;  %v6416_v24 = vld [vmem:[#allocation33_spill] sm:$0xff] }
 0x39b   : > { %v917_v54 = vmin.f32 %v913_v3, %v915_v42  ;;  %v990_v15 = vsel %vm6409_vm10, %v988_v55, %v987_v5  ;;  %v1517_v35 = vsel %vm6410_vm11, %v6404_v2, 0.0  ;;  %v1518_v33 = vsel %vm6411_vm0, %v6405_v25, 0.0 }
 0x39c   : > { %v991_v27 = vrot.slane %v910_v40, 1  ;;  %v992_v56 = vrot.slane %v911_v45, 1  ;;  %v1519_v36 = vmax.f32 %v1517_v35, %v1518_v33  ;;  %v918_v28 = vadd.f32 %v916_v17, %v4265_v26  ;;  %v6417_v17 = vld [vmem:[#allocation32_spill] sm:$0xff] }
 0x39d   : > { %v919_v38 = vadd.f32 %v917_v54, %v4265_v26  ;;  %v995_v46 = vsel %vm4282_vm8, %v990_v15, 3.0000001e+10  ;;  %vm6412_vm9 = vcmp.lt.s32.totalorder %v3239_v1, 7  ;;  %v996_v51 = vsel %vm4287_vm7, %v989_v32, 3.0000001e+10  ;;  %vm6418_vm7 = vmmov %vm6409_vm10 }
 0x39e   : > { %v993_v21 = vsel %vm6412_vm9, %v991_v27, %v992_v56  ;;  %vm6413_vm15 = vmmov %vm6412_vm9  ;;  %v1070_v16 = vrot.slane %v990_v15, 7  ;;  %1520 = vmax.xlane.f32.xlu0 %v1519_v36  ;;  %vm6414_vm0 = vcmp.lt.f32.partialorder %v3247_v4, %v4276_v59  ;;  %vm6415_vm12 = vcmp.lt.f32.partialorder %v3251_v6, %v4276_v59 }
 0x39f   : > { %v994_v3 = vsel %vm6413_vm15, %v992_v56, %v991_v27  ;;  %v997_v5 = vsel %vm6414_vm0, %v993_v21, 3.0000001e+10  ;;  %v1071_v40 = vrot.slane %v989_v32, 7  ;;  %v1074_v45 = vrot.slane %v993_v21, 1  ;;  %vm6419_vm8 = vmmov %vm6418_vm7 }
 0x3a0   : > { %v998_v26 = vsel %vm6415_vm12, %v994_v3, 3.0000001e+10  ;;  %v999_v62 = vmin.f32 %v995_v46, %v997_v5  ;;  %v920_v42 = vmin.f32 %v6416_v24, %v918_v28  ;;  %v921_v54 = vmin.f32 %v6417_v17, %v919_v38  ;;  %vm6420_vm10 = vmmov %vm6412_vm9 }
 0x3a1   : > { %v1000_v55 = vmin.f32 %v996_v51, %v998_v26  ;;  %v1075_v63 = vrot.slane %v994_v3, 1  ;;  %v1072_v33 = vsel %vm6418_vm7, %v1070_v16, %v1071_v40  ;;  %v1073_v59 = vsel %vm6419_vm8, %v1071_v40, %v1070_v16  ;;  %vm6421_vm11 = vmmov %vm6412_vm9 }
 0x3a2   : > { %v1001_v15 = vadd.f32 %v999_v62, %v4309_v0  ;;  %v1078_v56 = vsel %vm4326_vm3, %v1073_v59, 3.0000001e+10  ;;  %v1079_v36 = vsel %vm4337_vm2, %v1072_v33, 3.0000001e+10  ;;  %vm6422_vm9 = vcmp.lt.f32.partialorder %v3247_v4, %v4330_v47  ;;  %vm6424_vm2 = vmmov %vm6418_vm7 }
 0x3a3   : > { %v1002_v35 = vadd.f32 %v1000_v55, %v4309_v0  ;;  %v1076_v27 = vsel %vm6420_vm10, %v1074_v45, %v1075_v63  ;;  %v1077_v32 = vsel %vm6421_vm11, %v1075_v63, %v1074_v45  ;;  %vm6423_vm15 = vcmp.lt.f32.partialorder %v3251_v6, %v4330_v47  ;;  %vm6425_vm3 = vmmov %vm6424_vm2 }
 0x3a4   : > { %v1080_v0 = vsel %vm6422_vm9, %v1076_v27, 3.0000001e+10  ;;  %v1081_v28 = vsel %vm6423_vm15, %v1077_v32, 3.0000001e+10  ;;  %v1153_v21 = vrot.slane %v1073_v59, 7  ;;  %v1154_v3 = vrot.slane %v1072_v33, 7  ;;  %vm6426_vm0 = vmmov %vm6420_vm10 }
 0x3a5   : > { %v1082_v38 = vmin.f32 %v1078_v56, %v1080_v0  ;;  %v1083_v46 = vmin.f32 %v1079_v36, %v1081_v28  ;;  %v1003_v51 = vmin.f32 %v920_v42, %v1001_v15  ;;  %v1004_v16 = vmin.f32 %v921_v54, %v1002_v35  ;;  %vm6427_vm12 = vmmov %vm6426_vm0 }
 0x3a6   : > { %v1157_v5 = vrot.slane %v1076_v27, 1  ;;  %v1158_v60 = vrot.slane %v1077_v32, 1  ;;  %v1155_v62 = vsel %vm6424_vm2, %v1153_v21, %v1154_v3  ;;  %v1156_v55 = vsel %vm6425_vm3, %v1154_v3, %v1153_v21  ;;  %vm6432_vm10 = vmmov %vm6426_vm0 }
 0x3a7   : > { %v1084_v26 = vadd.f32 %v1082_v38, %v4348_v14  ;;  %v1085_v58 = vadd.f32 %v1083_v46, %v4348_v14  ;;  %v1161_v45 = vsel %vm4376_vm1, %v1156_v55, 3.0000001e+10  ;;  %v1162_v24 = vsel %vm4382_vm6, %v1155_v62, 3.0000001e+10  ;;  %vm6430_vm1 = vmmov %vm6424_vm2 }
 0x3a8   : > { %v1159_v47 = vsel %vm6426_vm0, %v1157_v5, %v1158_v60  ;;  %v1160_v40 = vsel %vm6427_vm12, %v1158_v60, %v1157_v5  ;;  %vm6428_vm7 = vcmp.lt.f32.partialorder %v3247_v4, %v4355_v49  ;;  %vm6429_vm8 = vcmp.lt.f32.partialorder %v3251_v6, %v4355_v49  ;;  %vm6431_vm6 = vmmov %vm6430_vm1 }
 0x3a9   : > { %v1163_v14 = vsel %vm6428_vm7, %v1159_v47, 3.0000001e+10  ;;  %v1164_v42 = vsel %vm6429_vm8, %v1160_v40, 3.0000001e+10  ;;  %v1236_v63 = vrot.slane %v1156_v55, 7  ;;  %v1237_v15 = vrot.slane %v1155_v62, 7  ;;  %vm6433_vm11 = vmmov %vm6426_vm0 }
 0x3aa   : > { %v1165_v17 = vmin.f32 %v1161_v45, %v1163_v14  ;;  %v1166_v54 = vmin.f32 %v1162_v24, %v1164_v42  ;;  %v1086_v35 = vmin.f32 %v1003_v51, %v1084_v26  ;;  %v1087_v33 = vmin.f32 %v1004_v16, %v1085_v58  ;;  %vm6438_vm3 = vmmov %vm6430_vm1 }
 0x3ab   : > { %v1240_v59 = vrot.slane %v1159_v47, 1  ;;  %v1241_v57 = vrot.slane %v1160_v40, 1  ;;  %v1238_v32 = vsel %vm6430_vm1, %v1236_v63, %v1237_v15  ;;  %v1239_v56 = vsel %vm6431_vm6, %v1237_v15, %v1236_v63  ;;  %vm6439_vm12 = vmmov %vm6426_vm0 }
 0x3ac   : > { %v1167_v27 = vadd.f32 %v1165_v17, %v4402_v50  ;;  %v1168_v61 = vadd.f32 %v1166_v54, %v4402_v50  ;;  %v1244_v0 = vsel %vm4419_vm5, %v1239_v56, 3.0000001e+10  ;;  %vm6434_vm9 = vnez %v6255_v34  ;;  %vm6437_vm5 = vmmov %vm6430_vm1 }
 0x3ad   : > { %v1242_v49 = vsel %vm6432_vm10, %v1240_v59, %v1241_v57  ;;  %v1243_v36 = vsel %vm6433_vm11, %v1241_v57, %v1240_v59  ;;  %v1245_v28 = vsel %vm6434_vm9, %v1238_v32, 3.0000001e+10  ;;  %vm6435_vm15 = vcmp.lt.f32.partialorder %v3247_v4, %v4423_v10  ;;  %vm6444_vm6 = vmmov %vm6438_vm3 }
 0x3ae   : > { %v1246_v50 = vsel %vm6435_vm15, %v1242_v49, 3.0000001e+10  ;;  %vm6436_vm2 = vcmp.lt.f32.partialorder %v3251_v6, %v4423_v10  ;;  %v1319_v3 = vrot.slane %v1239_v56, 7  ;;  %v1320_v51 = vrot.slane %v1238_v32, 7  ;;  %vm6445_vm10 = vmmov %vm6426_vm0 }
 0x3af   : > { %v1247_v38 = vsel %vm6436_vm2, %v1243_v36, 3.0000001e+10  ;;  %v1248_v46 = vmin.f32 %v1244_v0, %v1246_v50  ;;  %v1169_v16 = vmin.f32 %v1086_v35, %v1167_v27  ;;  %v1170_v5 = vmin.f32 %v1087_v33, %v1168_v61  ;;  %vm6446_vm11 = vmmov %vm6426_vm0 }
 0x3b0   : > { %v1249_v21 = vmin.f32 %v1245_v28, %v1247_v38  ;;  %v1323_v60 = vrot.slane %v1242_v49, 1  ;;  %v1324_v11 = vrot.slane %v1243_v36, 1  ;;  %v1321_v58 = vsel %vm6437_vm5, %v1319_v3, %v1320_v51  ;;  %vm6452_vm2 = vmmov %vm6426_vm0 }
 0x3b1   : > { %v1250_v26 = vadd.f32 %v1248_v46, %v4442_v48  ;;  %v1322_v62 = vsel %vm6438_vm3, %v1320_v51, %v1319_v3  ;;  %vm6440_vm7 = vnez %v6259_v20  ;;  %vm6441_vm8 = vcmp.lt.f32.partialorder %v3247_v4, %v4449_v18  ;;  %vm6453_vm5 = vmmov %vm6426_vm0 }
 0x3b2   : > { %v1251_v34 = vadd.f32 %v1249_v21, %v4442_v48  ;;  %v1325_v10 = vsel %vm6426_vm0, %v1323_v60, %v1324_v11  ;;  %v1326_v55 = vsel %vm6439_vm12, %v1324_v11, %v1323_v60  ;;  %v1327_v47 = vsel %vm6376_vm13, %v1322_v62, 3.0000001e+10  ;;  %vm6443_vm13 = vmmov %vm6438_vm3 }
 0x3b3   : > { %v1328_v40 = vsel %vm6440_vm7, %v1321_v58, 3.0000001e+10  ;;  %v1329_v48 = vsel %vm6441_vm8, %v1325_v10, 3.0000001e+10  ;;  %vm6442_vm1 = vcmp.lt.f32.partialorder %v3251_v6, %v4449_v18  ;;  %v1402_v42 = vrot.slane %v1322_v62, 7 }
 0x3b4   : > { %v1330_v45 = vsel %vm6442_vm1, %v1326_v55, 3.0000001e+10  ;;  %v1331_v24 = vmin.f32 %v1327_v47, %v1329_v48  ;;  %v1403_v17 = vrot.slane %v1321_v58, 7  ;;  %v1252_v54 = vmin.f32 %v1169_v16, %v1250_v26 }
 0x3b5   : > { %v1332_v14 = vmin.f32 %v1328_v40, %v1330_v45  ;;  %v1253_v63 = vmin.f32 %v1170_v5, %v1251_v34  ;;  %v1406_v15 = vrot.slane %v1325_v10, 1  ;;  %v1407_v52 = vrot.slane %v1326_v55, 1 }
 0x3b6   : > { %v1333_v35 = vadd.f32 %v1331_v24, %v4486_v22  ;;  %v1404_v33 = vsel %vm6443_vm13, %v1402_v42, %v1403_v17  ;;  %v1405_v59 = vsel %vm6444_vm6, %v1403_v17, %v1402_v42  ;;  %vm6447_vm9 = vcmp.lt.f32.partialorder %v3247_v4, %v6326_v53 }
 0x3b7   : > { %v1334_v20 = vadd.f32 %v1332_v14, %v4486_v22  ;;  %v1408_v18 = vsel %vm6445_vm10, %v1406_v15, %v1407_v52  ;;  %v1409_v57 = vsel %vm6446_vm11, %v1407_v52, %v1406_v15  ;;  %v1410_v27 = vsel %vm6324_vm4, %v1405_v59, 3.0000001e+10  ;;  %vm6449_vm4 = vmmov %vm6438_vm3 }
 0x3b8   : > { %v1411_v61 = vsel %vm6384_vm14, %v1404_v33, 3.0000001e+10  ;;  %v1412_v22 = vsel %vm6447_vm9, %v1408_v18, 3.0000001e+10  ;;  %vm6448_vm15 = vcmp.lt.f32.partialorder %v3251_v6, %v6326_v53  ;;  %v1485_v36 = vrot.slane %v1405_v59, 7  ;;  %vm6451_vm14 = vmmov %vm6438_vm3 }
 0x3b9   : > { %v1413_v32 = vsel %vm6448_vm15, %v1409_v57, 3.0000001e+10  ;;  %v1414_v56 = vmin.f32 %v1410_v27, %v1412_v22  ;;  %v1486_v0 = vrot.slane %v1404_v33, 7  ;;  %v1335_v28 = vmin.f32 %v1252_v54, %v1333_v35 }
 0x3ba   : > { %v1415_v49 = vmin.f32 %v1411_v61, %v1413_v32  ;;  %v1336_v50 = vmin.f32 %v1253_v63, %v1334_v20  ;;  %v1489_v38 = vrot.slane %v1408_v18, 1  ;;  %v1490_v23 = vrot.slane %v1409_v57, 1 }
 0x3bb   : > { %v1416_v46 = vadd.f32 %v1414_v56, %v4538_v19  ;;  %v5139_v21 = vsel %vm6449_vm4, %v1485_v36, %v1486_v0   ;;  %v5143_v32 = vsel %vm6451_vm14, %v1486_v0, %v1485_v36   ;;  %vm6454_vm3 = vnez %v6337_v7 }
 0x3bc   : > { %v1417_v31 = vadd.f32 %v1415_v49, %v4538_v19  ;;  %v6450_v3 = vmov %v5139_v21  ;;  %v5147_v53 = vsel %vm6452_vm2, %v1489_v38, %v1490_v23   ;;  %v1492_v5 = vsel %vm6453_vm5, %v1490_v23, %v1489_v38   ;;  %v6479_v38 = vld [vmem:[#allocation42_spill] sm:$0xff] }
 0x3bd   : > { %v1493_v51 = vsel %vm6454_vm3, %v5143_v32, 3.0000001e+10  ;;  %vm6455_vm0 = vnez %v6275_v37  ;;  %vm6456_vm12 = vcmp.lt.f32.partialorder %v3247_v4, %v4547_v44  ;;  %vm6457_vm7 = vcmp.lt.f32.partialorder %v3251_v6, %v4547_v44 }
 0x3be   : > { %v1494_v19 = vsel %vm6455_vm0, %v6450_v3, 3.0000001e+10  ;;  %v1495_v16 = vsel %vm6456_vm12, %v5147_v53, 3.0000001e+10  ;;  %v1496_v60 = vsel %vm6457_vm7, %v1492_v5, 3.0000001e+10  ;;  %v1418_v11 = vmin.f32 %v1335_v28, %v1416_v46 }
 0x3bf   : > { %v1419_v26 = vmin.f32 %v1336_v50, %v1417_v31  ;;  %v1497_v34 = vmin.f32 %v1493_v51, %v1495_v16  ;;  %v1498_v58 = vmin.f32 %v1494_v19, %v1496_v60  ;;  %vm6460_vm8 = vcmp.gt.f32.partialorder %v6352_v39, 0.0  ;;  %v6468_v16 = vld [vmem:[#allocation43_spill] sm:$0xff] }
 0x3c0   : > { %vm6461_vm1 = vmmov %vm6460_vm8  ;;  %v6464_v21 = vmov %v4961_v43  ;;  %v6472_v31 = vld [vmem:[#allocation39_spill] sm:$0xff]  ;;  %v6477_v51 = vmov %v6405_v25 }
 0x3c1   : > { %v1499_v7 = vadd.f32 %v1497_v34, %v4571_v12  ;;  %v1500_v62 = vadd.f32 %v1498_v58, %v4571_v12 }
 0x3c3   : > { %v5166_v44 = vmin.f32 %v1418_v11, %v1499_v7   ;;  %v5168_v56 = vmin.f32 %v1419_v26, %v1500_v62   ;;  %v6463_v7 = vmov %v5147_v53 }
 0x3c5   : > { %v6458_v10 = vmov %v5166_v44  ;;  %v6459_v55 = vmov %v5168_v56 }
 0x3c6   : > { %v1543_v37 = vsel %vm6460_vm8, %v6458_v10, 0.0  ;;  %v1544_v47 = vsel %vm6461_vm1, %v6459_v55, 0.0 }
 0x3c7   : > { %v1545_v40 = vmax.f32 %v1543_v37, %v1544_v47  ;;  %v6467_v37 = vmov %v6450_v3 }
 0x3c9   : > { %1546 = vmax.xlane.f32.xlu1 %v1545_v40 }
 0x3cd   : > { %v1508_v48 = vpop.xlane.xlu0 %1507 }
 0x3ce   : > { %v1509_v45 = vrot.slane %v1508_v48, 4 }
 0x3d0   : > { %v1510_v24 = vmax.f32 %v1508_v48, %v1509_v45 }
 0x3d2   : > { %v1511_v14 = vrot.slane %v1510_v24, 2 }
 0x3d4   : > { %v1512_v42 = vmax.f32 %v1510_v24, %v1511_v14  ;;  %v6466_v14 = vld [vmem:[#allocation40_spill] sm:$0xff] }
 0x3d6   : > { %v1513_v12 = vrot.slane %v1512_v42, 1 }
 0x3d8   : > { %v1514_v17 = vmax.f32 %v1512_v42, %v1513_v12  ;;  %v6470_v42 = vld [vmem:[#allocation47_spill] sm:$0xff] }
 0x3da   : > { %2448 = vpush %v1514_v17  ;;  %v6475_v17 = vld [vmem:[#allocation46_spill] sm:$0xff] }
 0x3fc   : > { %v1534_v44 = vpop.xlane.xlu1 %1533 }
 0x3fd   : > { %v1535_v54 = vrot.slane %v1534_v44, 4 }
 0x3ff   : > { %v1536_v63 = vmax.f32 %v1534_v44, %v1535_v54  ;;  %v6474_v44 = vmov %v6458_v10 }
 0x401   : > { %v1537_v15 = vrot.slane %v1536_v63, 2 }
 0x403   : > { %v1538_v33 = vmax.f32 %v1536_v63, %v1537_v15 }
 0x405   : > { %v1539_v18 = vrot.slane %v1538_v33, 1 }
 0x407   : > { %v1540_v61 = vmax.f32 %v1538_v33, %v1539_v18  ;;  %v6480_v33 = vld [vmem:[#allocation41_spill] sm:$0xff] }
 0x40b   : > { %s2449_s0 = spop %2448 }
 0x40c   : > { %s1516_s2 = smax.f32 %s3206_s21, %s2449_s0 }
 0x427   : > { %v1521_v52 = vpop.xlane.xlu0 %1520 }
 0x428   : > { %v1522_v35 = vrot.slane %v1521_v52, 4 }
 0x42a   : > { %v1523_v20 = vmax.f32 %v1521_v52, %v1522_v35  ;;  %v6471_v35 = vld [vmem:[#allocation38_spill] sm:$0xff] }
 0x42c   : > { %v1524_v39 = vrot.slane %v1523_v20, 2 }
 0x42e   : > { %v1525_v59 = vmax.f32 %v1523_v20, %v1524_v39  ;;  %v6465_v20 = vmov %v4587_v13  ;;  %v6469_v39 = vld [vmem:[#allocation44_spill] sm:$0xff] }
 0x430   : > { %v1526_v57 = vrot.slane %v1525_v59, 1 }
 0x432   : > { %v1527_v27 = vmax.f32 %v1525_v59, %v1526_v57 }
 0x434   : > { %2450 = vpush %v1527_v27  ;;  %v6478_v27 = vmov %v6404_v2 }
 0x435   : > { %2452 = vpush %v1540_v61 }
 0x452   : > { %v1547_v22 = vpop.xlane.xlu1 %1546 }
 0x453   : > { %v1548_v56 = vrot.slane %v1547_v22, 4 }
 0x455   : > { %v1549_v49 = vmax.f32 %v1547_v22, %v1548_v56  ;;  %v6473_v56 = vmov %v6459_v55 }
 0x457   : > { %v1550_v36 = vrot.slane %v1549_v49, 2 }
 0x459   : > { %v1551_v0 = vmax.f32 %v1549_v49, %v1550_v36 }
 0x45b   : > { %v1552_v28 = vrot.slane %v1551_v0, 1 }
 0x45d   : > { %v1553_v50 = vmax.f32 %v1551_v0, %v1552_v28  ;;  %v6476_v28 = vld [vmem:[#allocation45_spill] sm:$0xff] }
 0x45f   : > { %2454 = vpush %v1553_v50 }
 0x465   : > { %s2451_s1 = spop %2450 }
 0x466   : > { %s1529_s22 = smax.f32 %s2451_s1, %s1516_s2  ;;  %s2453_s23 = spop %2452 }
 0x467   : > { %s1542_s26 = smax.f32 %s2453_s23, %s1529_s22  ;;  %s6481_s2 = smov %s4334_s24 }
 0x490   : > { %s2455_s14 = spop %2454 }
 0x491   : > { %s1555_s6 = smax.f32 %s2455_s14, %s1542_s26 }
 0x492   : > { %p833_p12 = scmp.le.f32.partialorder %s832_s13, %s1555_s6 }
 0x494   : > { %p5178_p13 = pnand %p833_p12, %p831_p11 }
 0x495   :  { %v6482_v59 = vmov (%p5178_p13), %v6459_v55  ;;  %v6483_v52 = vmov (%p5178_p13), %v6458_v10  ;;  %v6484_v61 = vld [vmem:[#allocation46_spill] sm:$0xff] (%p5178_p13)  ;;  %v6485_v62 = vld [vmem:[#allocation45_spill] sm:$0xff] (%p5178_p13)  ;;  %v6486_v63 = vmov (%p5178_p13), %v6405_v25  ;;  %v6487_v19 = vmov (%p5178_p13), %v6404_v2 }
 0x496   :  { %837 = sbr.rel (!%p5178_p13) target bundleno = 770 (0x302), region = 50  ;;  %v6488_v18 = vld [vmem:[#allocation42_spill] sm:$0xff] (%p5178_p13)  ;;  %v6489_v34 = vld [vmem:[#allocation41_spill] sm:$0xff] (%p5178_p13) }
 0x49b PF:  { %vm1556_vm13 = vcmp.ge.f32.partialorder %v3178_v34, 1e+08  ;;  %vm1557_vm6 = vcmp.ge.f32.partialorder %v3174_v18, 1e+08  ;;  %vm1560_vm10 = vcmp.ge.f32.partialorder %v3170_v19, 1e+08  ;;  %v3178_v34 = vphi %v6210_v34, %v6489_v34   ;;  %v3174_v18 = vphi %v6209_v18, %v6488_v18   ;;  %v3170_v19 = vphi %v6208_v19, %v6487_v19   ;;  %v3166_v63 = vphi %v6207_v63, %v6486_v63   ;;  %v3162_v62 = vphi %v6206_v62, %v6485_v62   ;;  %v3158_v61 = vphi %v6205_v61, %v6484_v61   ;;  %v3154_v52 = vphi %v6204_v52, %v6483_v52   ;;  %v3150_v59 = vphi %v6203_v59, %v6482_v59  }
 0x49c   :  { %v6490_v13 = vld [vmem:[#allocation17_spill] sm:$0xff]  ;;  %v6491_v8 = vld [vmem:[#allocation14_spill] sm:$0xff]  ;;  %v1558_v41 = vsel %vm1556_vm13, 0.0, %v3178_v34  ;;  %v1559_v29 = vsel %vm1557_vm6, 0.0, %v3174_v18  ;;  %vm1561_vm11 = vcmp.ge.f32.partialorder %v3166_v63, 1e+08 }
 0x49d   :  { %v1580_v9 = vsub.f32 %v6491_v8, %v6490_v13  ;;  %v1562_v2 = vsel %vm1560_vm10, 0.0, %v3170_v19  ;;  %v1563_v43 = vsel %vm1561_vm11, 0.0, %v3166_v63  ;;  %vm1568_vm9 = vcmp.ge.f32.partialorder %v3162_v62, 1e+08  ;;  %v6492_v46 = vld [vmem:[#allocation18_spill] sm:$0xff]  ;;  %v6493_v31 = vld [vmem:[#allocation15_spill] sm:$0xff] }
 0x49e   :  { %v1564_v25 = vadd.f32 %v1562_v2, %v1558_v41  ;;  %vm1569_vm15 = vcmp.ge.f32.partialorder %v3158_v61, 1e+08  ;;  %v1565_v5 = vadd.f32 %v1563_v43, %v1559_v29  ;;  %v1570_v32 = vsel %vm1568_vm9, 0.0, %v3162_v62  ;;  %v6496_v11 = vld [vmem:[#allocation23_spill] sm:$0xff]  ;;  %v6499_v40 = vld [vmem:[#allocation12_spill] sm:$0xff]  ;;  %s5322_s6 = smov 0  }
 0x49f   :  { %v1571_v38 = vsel %vm1569_vm15, 0.0, %v3158_v61  ;;  %vm1572_vm4 = vcmp.ge.f32.partialorder %v3154_v52, 1e+08  ;;  %vm1573_vm14 = vcmp.ge.f32.partialorder %v3150_v59, 1e+08  ;;  %v1581_v21 = vsub.f32 %v6493_v31, %v6492_v46  ;;  %v6500_v48 = vld [vmem:[#allocation11_spill] sm:$0xff] }
 0x4a0   :  { %v1574_v23 = vsel %vm1572_vm4, 0.0, %v3154_v52  ;;  %vm6494_vm2 = vcmp.gt.f32.partialorder %v3926_v30, 0.0  ;;  %v1575_v53 = vsel %vm1573_vm14, 0.0, %v3150_v59  ;;  %v1582_v60 = vmul.f32 %v1580_v9, %v1580_v9 }
 0x4a1   :  { %v1566_v3 = vsel %vm6494_vm2, %v1564_v25, 0.0  ;;  %v1576_v51 = vadd.f32 %v1574_v23, %v1570_v32  ;;  %vm6495_vm5 = vmmov %vm6494_vm2  ;;  %v1577_v16 = vadd.f32 %v1575_v53, %v1571_v38  ;;  %vm6497_vm3 = vcmp.gt.f32.partialorder %v6496_v11, 0.0 }
 0x4a2   :  { %v1567_v19 = vsel %vm6495_vm5, %v1565_v5, 0.0  ;;  %v1583_v34 = vmul.f32 %v1581_v21, %v1581_v21  ;;  %vm6498_vm0 = vmmov %vm6497_vm3  ;;  %v1598_v47 = vmul.u32 128, %v3239_v1  ;;  %v1599_v30 = vmul.u32 128, %v6499_v40 }
 0x4a3   :  { %v1578_v26 = vsel %vm6497_vm3, %v1576_v51, 0.0  ;;  %v1579_v58 = vsel %vm6498_vm0, %v1577_v16, 0.0  ;;  %vm6501_vm12 = vcmp.gt.f32.partialorder %v6491_v8, 0.5  ;;  %vm6502_vm7 = vcmp.gt.f32.partialorder %v6493_v31, 0.5 }
 0x4a4   :  { %v1584_v7 = vadd.f32 %v1578_v26, %v1566_v3  ;;  %v1585_v62 = vadd.f32 %v1579_v58, %v1567_v19  ;;  %v5305_v45 = vadd.s32 %v1598_v47, %v6500_v48  ;;  %v5308_v24 = vadd.s32 %v1599_v30, %v6500_v48 }
 0x4a6   :  { %v1586_v10 = vmul.f32 %v1584_v7, %v1582_v60  ;;  %v1587_v55 = vmul.f32 %v1585_v62, %v1583_v34  ;;  %v1602_v14 = vsel %vm6501_vm12, %v5305_v45, 2058   ;;  %v1603_v42 = vsel %vm6502_vm7, %v5308_v24, 2058  }
 0x4a8   :  { %v1588_v37 = vadd.f32 %v1587_v55, %v1586_v10 }
 0x4aa   :  { %1589 = vadd.xlane.f32.xlu0 %v1588_v37 }
 0x533   :  { %v1590_v12 = vpop.xlane.xlu0 %1589 }
 0x534   :  { %v1591_v17 = vrot.slane %v1590_v12, 4 }
 0x536   :  { %v1592_v44 = vadd.f32 %v1591_v17, %v1590_v12 }
 0x538   :  { %v1593_v54 = vrot.slane %v1592_v44, 2 }
 0x53a   :  { %v1594_v63 = vadd.f32 %v1593_v54, %v1592_v44 }
 0x53c   :  { %v1595_v15 = vrot.slane %v1594_v63, 1 }
 0x53e   :  { %v1596_v52 = vadd.f32 %v1595_v15, %v1594_v63 }
 0x540   :  { %2456 = vpush %v1596_v52 }
 0x571   :  { %s5316_s5 = spop %2456 }
 0x572 LB: > { %vm1615_vm8 = vcmp.ge.f32.partialorder %v3247_v4, 1.0  ;;  %vm1619_vm1 = vcmp.lt.s32.totalorder %v3239_v1, 1  ;;  %vm1624_vm13 = vcmp.lt.f32.partialorder %v3247_v4, 15.0  ;;  %vm6181_vm6 = vcmp.lt.s32.totalorder %v3239_v1, 7  ;;  %s3207_s13 = smov 127   ;;  %s3208_s20 = smov 1   ;;  %s3190_s6 = sphi %s5322_s6, %s2024_s6   ;;  %v3186_v14 = vphi %v1602_v14, %v6599_v14   ;;  %v3182_v42 = vphi %v1603_v42, %v6598_v42  }
 0x573   : > { %v1617_v35 = vrot.slane %v3186_v14, 7  ;;  %v1618_v20 = vrot.slane %v3182_v42, 7  ;;  %v1626_v33 = vrot.slane %v3186_v14, 1  ;;  %v1627_v39 = vrot.slane %v3182_v42, 1  ;;  %v6503_v9 = vld [vmem:[#allocation16_spill] sm:$0xff]  ;;  %v6506_v32 = vld [vmem:[#allocation14_spill] sm:$0xff] }
 0x574   : > { %vm1616_vm11 = vcmp.ge.f32.partialorder %v3251_v6, 1.0  ;;  %vm6174_vm15 = vcmp.lt.f32.partialorder %v3251_v6, 15.0  ;;  %vm6504_vm2 = vcmp.lt.f32.partialorder %v6503_v9, 15.0  ;;  %vm6505_vm5 = vcmp.ge.f32.partialorder %v6503_v9, 1.0  ;;  %v6510_v3 = vld [vmem:[#allocation15_spill] sm:$0xff]  ;;  %s3209_s24 = smov 2  }
 0x575   : > { %v1621_v59 = vsel %vm1619_vm1, %v1618_v20, %v1617_v35  ;;  %v1629_v18 = vsel %vm6181_vm6, %v1626_v33, %v1627_v39  ;;  %v1620_v22 = vsel %vm1619_vm1, %v1617_v35, %v1618_v20  ;;  %v1630_v49 = vsel %vm6181_vm6, %v1627_v39, %v1626_v33  ;;  %vm6508_vm7 = vmmov %vm6504_vm2  ;;  %s3210_s0 = smov 126   ;;  %s3211_s1 = smov 4  }
 0x576   : > { %v1622_v57 = vsel %vm1615_vm8, %v1621_v59, 2058  ;;  %v1631_v27 = vsel %vm1624_vm13, %v1629_v18, 2058  ;;  %v1623_v56 = vsel %vm1616_vm11, %v1620_v22, 2058  ;;  %v1632_v0 = vsel %vm6174_vm15, %v1630_v49, 2058  ;;  %s3212_s21 = smov 124   ;;  %s3213_s2 = smov 8  }
 0x577   : > { %vm1633_vm10 = vcmp.lt.s32.totalorder %v1622_v57, %v1631_v27  ;;  %vm1635_vm4 = vcmp.lt.s32.totalorder %v1623_v56, %v1632_v0  ;;  %vm6507_vm12 = vcmp.gt.f32.partialorder %v6506_v32, 0.5  ;;  %v2812_v51 = vpack.i.bf16 %v6510_v3, %v6506_v32  ;;  %s3214_s22 = smov 120   ;;  %s2024_s6 = sadd.s32 1, %s3190_s6  }
 0x578   : > { %v1634_v61 = vsel %vm1633_vm10, %v1622_v57, %v1631_v27  ;;  %v1636_v28 = vsel %vm1635_vm4, %v1623_v56, %v1632_v0  ;;  %vm6509_vm10 = vmmov %vm6505_vm5  ;;  %p1609_p0 = scmp.lt.s32.totalorder %s2024_s6, 256 }
 0x579   : > { %vm1637_vm9 = vcmp.lt.s32.totalorder %v3186_v14, %v1634_v61  ;;  %vm1639_vm14 = vcmp.lt.s32.totalorder %v3182_v42, %v1636_v28 }
 0x57a   : > { %v1638_v36 = vsel %vm1637_vm9, %v3186_v14, %v1634_v61  ;;  %v1640_v50 = vsel %vm1639_vm14, %v3182_v42, %v1636_v28  ;;  %vm6511_vm14 = vcmp.gt.f32.partialorder %v6510_v3, 0.5 }
 0x57b   : > { %1647 = vrot.lane.b32.xlu1 %v1638_v36, %s3207_s13  ;;  %1641 = vrot.lane.b32.xlu0 %v1638_v36, %s3208_s20 }
 0x57f   : > { %1649 = vrot.lane.b32.xlu1 %v1640_v50, %s3207_s13  ;;  %1643 = vrot.lane.b32.xlu0 %v1640_v50, %s3208_s20 }
 0x5ed   : > { %v1648_v13 = vpop.permute.xlu1 %1647  ;;  %v1642_v8 = vpop.permute.xlu0 %1641 }
 0x5ee   : > { %v1651_v41 = vsel %vm6504_vm2, %v1648_v13, 2058  ;;  %v1645_v29 = vsel %vm6505_vm5, %v1642_v8, 2058  ;;  %vm6173_vm2 = vcmp.gt.f32.partialorder %v6506_v32, 0.0 }
 0x5ef   : > { %vm1653_vm3 = vcmp.lt.s32.totalorder %v1645_v29, %v1651_v41 }
 0x5f0   : > { %v1654_v2 = vsel %vm1653_vm3, %v1645_v29, %v1651_v41  ;;  %vm1665_vm3 = vmand %vm6173_vm2, %vm6505_vm5 }
 0x5f1   : > { %vm1657_vm0 = vcmp.lt.s32.totalorder %v1638_v36, %v1654_v2  ;;  %v1650_v25 = vpop.permute.xlu1 %1649  ;;  %v1644_v5 = vpop.permute.xlu0 %1643 }
 0x5f2   : > { %v1658_v43 = vsel %vm1657_vm0, %v1638_v36, %v1654_v2  ;;  %v1652_v23 = vsel %vm6508_vm7, %v1650_v25, 2058  ;;  %v1646_v46 = vsel %vm6509_vm10, %v1644_v5, 2058  ;;  %vm6172_vm0 = vcmp.gt.f32.partialorder %v6510_v3, 0.0  ;;  %vm1685_vm10 = vmand %vm6173_vm2, %vm6508_vm7 }
 0x5f3   : > { %v1661_v38 = vsel %vm6507_vm12, %v1658_v43, 2058  ;;  %vm1655_vm9 = vcmp.lt.s32.totalorder %v1646_v46, %v1652_v23 }
 0x5f4   : > { %1667 = vrot.lane.b32.xlu0 %v1661_v38, %s3208_s20  ;;  %v1656_v31 = vsel %vm1655_vm9, %v1646_v46, %v1652_v23  ;;  %vm6512_vm9 = vmmov %vm6505_vm5 }
 0x5f5   : > { %vm1659_vm4 = vcmp.lt.s32.totalorder %v1640_v50, %v1656_v31 }
 0x5f6   : > { %v1660_v21 = vsel %vm1659_vm4, %v1640_v50, %v1656_v31  ;;  %vm1666_vm4 = vmand %vm6172_vm0, %vm6512_vm9 }
 0x5f7   : > { %v1662_v53 = vsel %vm6511_vm14, %v1660_v21, 2058 }
 0x5f8   : > { %1687 = vrot.lane.b32.xlu0 %v1661_v38, %s3207_s13  ;;  %1669 = vrot.lane.b32.xlu1 %v1662_v53, %s3208_s20 }
 0x5fc   : > { %2813 = vrot.lane.b32.xlu0 %v2812_v51, %s3208_s20  ;;  %1689 = vrot.lane.b32.xlu1 %v1662_v53, %s3207_s13 }
 0x600   : > { %2818 = vrot.lane.b32.xlu1 %v2812_v51, %s3207_s13 }
 0x666   : > { %v1668_v19 = vpop.permute.xlu0 %1667 }
 0x667   : > { %v1671_v16 = vsel %vm1665_vm3, %v1668_v19, 2058  ;;  %vm6513_vm3 = vmmov %vm6508_vm7 }
 0x668   : > { %vm1673_vm12 = vcmp.lt.s32.totalorder %v1661_v38, %v1671_v16  ;;  %vm1686_vm7 = vmand %vm6172_vm0, %vm6513_vm3 }
 0x669   : > { %v1674_v60 = vsel %vm1673_vm12, %v1661_v38, %v1671_v16 }
 0x66a   : > { %1709 = vrot.lane.b32.xlu0 %v1674_v60, %s3209_s24  ;;  %v1688_v11 = vpop.permute.xlu0 %1687  ;;  %v1670_v26 = vpop.permute.xlu1 %1669 }
 0x66b   : > { %v1691_v34 = vsel %vm1685_vm10, %v1688_v11, 2058  ;;  %v1672_v58 = vsel %vm1666_vm4, %v1670_v26, 2058  ;;  %vm6514_vm10 = vmmov %vm6512_vm9 }
 0x66c   : > { %vm1693_vm14 = vcmp.lt.s32.totalorder %v1661_v38, %v1691_v34  ;;  %vm1675_vm5 = vcmp.lt.s32.totalorder %v1662_v53, %v1672_v58  ;;  %vm6515_vm4 = vmmov %vm6513_vm3 }
 0x66d   : > { %v1694_v7 = vsel %vm1693_vm14, %v1661_v38, %v1691_v34  ;;  %v1676_v62 = vsel %vm1675_vm5, %v1662_v53, %v1672_v58  ;;  %vm6516_vm14 = vmmov %vm6513_vm3  ;;  %vm6517_vm3 = vcmp.ge.f32.partialorder %v6503_v9, 2.0 }
 0x66e   : > { %1731 = vrot.lane.b32.xlu0 %v1694_v7, %s3210_s0  ;;  %v2814_v10 = vpop.permute.xlu0 %2813  ;;  %1711 = vrot.lane.b32.xlu1 %v1676_v62, %s3209_s24  ;;  %v1690_v55 = vpop.permute.xlu1 %1689  ;;  %vm6519_vm0 = vmmov %vm6517_vm3 }
 0x66f   : > { %v2816_v37 = vunpack.i.h.bf16 %v2814_v10  ;;  %v2815_v47 = vunpack.i.l.bf16 %v2814_v10  ;;  %v1692_v40 = vsel %vm1686_vm7, %v1690_v55, 2058  ;;  %v1840_v10 = vrot.slane %v6510_v3, 7 }
 0x670   : > { %vm1695_vm12 = vcmp.lt.s32.totalorder %v1662_v53, %v1692_v40  ;;  %v1859_v55 = vrot.slane %v6506_v32, 1 }
 0x671   : > { %v1682_v30 = vsel %vm6514_vm10, %v2816_v37, 0.0  ;;  %v1681_v48 = vsel %vm6512_vm9, %v2815_v47, 0.0  ;;  %v1696_v17 = vsel %vm1695_vm12, %v1662_v53, %v1692_v40  ;;  %v1860_v37 = vrot.slane %v6510_v3, 1 }
 0x672   : > { %v1683_v12 = vmul.f32 %v6506_v32, %v1681_v48  ;;  %v1684_v44 = vmul.f32 %v6510_v3, %v1682_v30  ;;  %1733 = vrot.lane.b32.xlu1 %v1696_v17, %s3210_s0  ;;  %v2819_v54 = vpop.permute.xlu1 %2818 }
 0x673   : > { %v2821_v63 = vunpack.i.h.bf16 %v2819_v54  ;;  %v2820_v15 = vunpack.i.l.bf16 %v2819_v54  ;;  %v1861_v30 = vsel %vm6181_vm6, %v1859_v55, %v1860_v37  ;;  %v1862_v48 = vsel %vm6181_vm6, %v1860_v37, %v1859_v55 }
 0x674   : > { %1719 = vrot.lane.b32.xlu0 %v1683_v12, %s3209_s24  ;;  %vm1705_vm5 = vcmp.gt.f32.partialorder %v1683_v12, 0.0  ;;  %vm1706_vm9 = vcmp.gt.f32.partialorder %v1684_v44, 0.0  ;;  %v1863_v54 = vsel %vm1624_vm13, %v1861_v30, 0.0  ;;  %vm1918_vm6 = vcmp.ge.f32.partialorder %v3251_v6, 4.0 }
 0x675   : > { %v1702_v52 = vsel %vm6515_vm4, %v2821_v63, 0.0  ;;  %v1701_v35 = vsel %vm6516_vm14, %v2820_v15, 0.0  ;;  %vm1707_vm7 = vmand %vm1705_vm5, %vm6517_vm3  ;;  %vm6518_vm4 = vcmp.lt.f32.partialorder %v6503_v9, 14.0 }
 0x676   : > { %v1704_v20 = vmul.f32 %v6510_v3, %v1702_v52  ;;  %v1703_v33 = vmul.f32 %v6506_v32, %v1701_v35  ;;  %1721 = vrot.lane.b32.xlu1 %v1684_v44, %s3209_s24  ;;  %vm1708_vm2 = vmand %vm1706_vm9, %vm6519_vm0  ;;  %v5504_v35 = vmul.f32 %v6506_v32, %v1863_v54 }
 0x678   : > { %1741 = vrot.lane.b32.xlu0 %v1703_v33, %s3210_s0  ;;  %vm1727_vm12 = vcmp.gt.f32.partialorder %v1703_v33, 0.0  ;;  %vm1728_vm3 = vcmp.gt.f32.partialorder %v1704_v20, 0.0 }
 0x679   : > { %vm1729_vm14 = vmand %vm1727_vm12, %vm6518_vm4 }
 0x67a   : > { %1743 = vrot.lane.b32.xlu1 %v1704_v20, %s3210_s0 }
 0x6dc   : > { %v1710_v39 = vpop.permute.xlu0 %1709 }
 0x6dd   : > { %v1713_v59 = vsel %vm1707_vm7, %v1710_v39, 2058  ;;  %vm6520_vm7 = vmmov %vm6518_vm4 }
 0x6de   : > { %vm1715_vm10 = vcmp.lt.s32.totalorder %v1674_v60, %v1713_v59  ;;  %vm1730_vm12 = vmand %vm1728_vm3, %vm6520_vm7 }
 0x6df   : > { %v1716_v18 = vsel %vm1715_vm10, %v1674_v60, %v1713_v59 }
 0x6e0   : > { %v1732_v57 = vpop.permute.xlu0 %1731  ;;  %1753 = vrot.lane.b32.xlu0 %v1716_v18, %s3211_s1  ;;  %v1712_v27 = vpop.permute.xlu1 %1711 }
 0x6e1   : > { %v1735_v61 = vsel %vm1729_vm14, %v1732_v57, 2058  ;;  %v1714_v22 = vsel %vm1708_vm2, %v1712_v27, 2058  ;;  %vm6522_vm2 = vmmov %vm6518_vm4  ;;  %vm6524_vm14 = vcmp.ge.f32.partialorder %v6503_v9, 4.0  ;;  %v1909_v27 = vrot.slane %v5504_v35, 2 }
 0x6e2   : > { %vm1737_vm5 = vcmp.lt.s32.totalorder %v1694_v7, %v1735_v61  ;;  %vm1717_vm15 = vcmp.lt.s32.totalorder %v1676_v62, %v1714_v22  ;;  %vm6523_vm9 = vmmov %vm6522_vm2 }
 0x6e3   : > { %v1738_v56 = vsel %vm1737_vm5, %v1694_v7, %v1735_v61  ;;  %v1718_v49 = vsel %vm1717_vm15, %v1676_v62, %v1714_v22  ;;  %vm6521_vm15 = vmmov %vm6519_vm0  ;;  %v1839_v62 = vrot.slane %v6506_v32, 7 }
 0x6e4   : > { %1775 = vrot.lane.b32.xlu0 %v1738_v56, %s3212_s21  ;;  %v1734_v36 = vpop.permute.xlu1 %1733  ;;  %1755 = vrot.lane.b32.xlu1 %v1718_v49, %s3211_s1 }
 0x6e5   : > { %v1736_v0 = vsel %vm1730_vm12, %v1734_v36, 2058  ;;  %v1842_v47 = vsel %vm1619_vm1, %v1840_v10, %v1839_v62  ;;  %v1841_v40 = vsel %vm1619_vm1, %v1839_v62, %v1840_v10 }
 0x6e6   : > { %v1720_v28 = vpop.permute.xlu0 %1719  ;;  %vm1739_vm10 = vcmp.lt.s32.totalorder %v1696_v17, %v1736_v0 }
 0x6e7   : > { %v1723_v50 = vsel %vm6519_vm0, %v1720_v28, 0.0  ;;  %v1740_v8 = vsel %vm1739_vm10, %v1696_v17, %v1736_v0  ;;  %vm6525_vm10 = vcmp.lt.f32.partialorder %v6503_v9, 12.0  ;;  %v1844_v17 = vsel %vm1616_vm11, %v1841_v40, 0.0 }
 0x6e8   : > { %v5433_v13 = vmul.f32 %v1723_v50, %v1683_v12  ;;  %v1722_v41 = vpop.permute.xlu1 %1721  ;;  %1777 = vrot.lane.b32.xlu1 %v1740_v8, %s3212_s21  ;;  %v1843_v12 = vsel %vm1615_vm8, %v1842_v47, 0.0  ;;  %v5501_v52 = vmul.f32 %v6510_v3, %v1844_v17 }
 0x6e9   : > { %v1724_v29 = vsel %vm6521_vm15, %v1722_v41, 0.0  ;;  %vm6526_vm15 = vmmov %vm6524_vm14  ;;  %v5498_v15 = vmul.f32 %v6506_v32, %v1843_v12 }
 0x6ea   : > { %1763 = vrot.lane.b32.xlu0 %v5433_v13, %s3211_s1  ;;  %v5439_v2 = vmul.f32 %v1724_v29, %v1684_v44  ;;  %v1742_v43 = vpop.permute.xlu0 %1741  ;;  %vm1749_vm4 = vcmp.gt.f32.partialorder %v5433_v13, 0.0 }
 0x6eb   : > { %v1745_v25 = vsel %vm6522_vm2, %v1742_v43, 0.0  ;;  %vm1751_vm5 = vmand %vm1749_vm4, %vm6524_vm14  ;;  %v1886_v59 = vrot.slane %v5498_v15, 6 }
 0x6ec   : > { %v5443_v5 = vmul.f32 %v1745_v25, %v1703_v33  ;;  %v1744_v38 = vpop.permute.xlu1 %1743  ;;  %1765 = vrot.lane.b32.xlu1 %v5439_v2, %s3211_s1  ;;  %vm1750_vm12 = vcmp.gt.f32.partialorder %v5439_v2, 0.0 }
 0x6ed   : > { %v1746_v23 = vsel %vm6523_vm9, %v1744_v38, 0.0  ;;  %vm1752_vm2 = vmand %vm1750_vm12, %vm6526_vm15  ;;  %vm6528_vm12 = vcmp.lt.f32.partialorder %v3251_v6, 15.0 }
 0x6ee   : > { %v5449_v46 = vmul.f32 %v1746_v23, %v1704_v20  ;;  %1785 = vrot.lane.b32.xlu0 %v5443_v5, %s3212_s21  ;;  %vm1771_vm3 = vcmp.gt.f32.partialorder %v5443_v5, 0.0  ;;  %v1864_v63 = vsel %vm6528_vm12, %v1862_v48, 0.0 }
 0x6ef   : > { %vm1773_vm0 = vmand %vm1771_vm3, %vm6525_vm10  ;;  %v5507_v20 = vmul.f32 %v6510_v3, %v1864_v63 }
 0x6f0   : > { %1787 = vrot.lane.b32.xlu1 %v5449_v46, %s3212_s21  ;;  %vm1772_vm4 = vcmp.gt.f32.partialorder %v5449_v46, 0.0 }
 0x6f1   : > { %v1910_v61 = vrot.slane %v5507_v20, 2 }
 0x752   : > { %v1754_v31 = vpop.permute.xlu0 %1753 }
 0x753   : > { %v1757_v21 = vsel %vm1751_vm5, %v1754_v31, 2058  ;;  %vm6527_vm5 = vmmov %vm6525_vm10 }
 0x754   : > { %vm1759_vm7 = vcmp.lt.s32.totalorder %v1716_v18, %v1757_v21  ;;  %vm1774_vm3 = vmand %vm1772_vm4, %vm6527_vm5  ;;  %vm6178_vm4 = vcmp.ge.f32.partialorder %v3251_v6, 2.0 }
 0x755   : > { %v5458_v53 = vsel %vm1759_vm7, %v1716_v18, %v1757_v21  ;;  %vm6529_vm10 = vmmov %vm6526_vm15  ;;  %v1887_v18 = vrot.slane %v5501_v52, 6  ;;  %vm6180_vm15 = vcmp.ge.f32.partialorder %v3247_v4, 2.0 }
 0x756   : > { %1797 = vrot.lane.b32.xlu0 %v5458_v53, %s3213_s2  ;;  %v1776_v51 = vpop.permute.xlu0 %1775  ;;  %v1756_v19 = vpop.permute.xlu1 %1755 }
 0x757   : > { %v1779_v16 = vsel %vm1773_vm0, %v1776_v51, 2058  ;;  %v1758_v60 = vsel %vm1752_vm2, %v1756_v19, 2058  ;;  %vm6176_vm0 = vcmp.lt.s32.totalorder %v3239_v1, 2  ;;  %vm6175_vm2 = vcmp.lt.s32.totalorder %v3239_v1, 6 }
 0x758   : > { %vm1781_vm9 = vcmp.lt.s32.totalorder %v1738_v56, %v1779_v16  ;;  %vm1761_vm14 = vcmp.lt.s32.totalorder %v1718_v49, %v1758_v60  ;;  %v1889_v36 = vsel %vm6176_vm0, %v1887_v18, %v1886_v59  ;;  %v1911_v50 = vsel %vm6175_vm2, %v1909_v27, %v1910_v61 }
 0x759   : > { %v5466_v11 = vsel %vm1781_vm9, %v1738_v56, %v1779_v16  ;;  %v5468_v26 = vsel %vm1761_vm14, %v1718_v49, %v1758_v60  ;;  %vm6530_vm9 = vmmov %vm6527_vm5  ;;  %v1888_v49 = vsel %vm6176_vm0, %v1886_v59, %v1887_v18  ;;  %vm6179_vm5 = vcmp.lt.f32.partialorder %v3247_v4, 14.0 }
 0x75a   : > { %1811 = vrot.lane.b32.xlu0 %v5466_v11, %s3214_s22  ;;  %1799 = vrot.lane.b32.xlu1 %v5468_v26, %s3213_s2  ;;  %v1778_v34 = vpop.permute.xlu1 %1777  ;;  %vm6531_vm14 = vmmov %vm6529_vm10  ;;  %v1891_v41 = vsel %vm6178_vm4, %v1888_v49, 0.0  ;;  %v1890_v43 = vsel %vm6180_vm15, %v1889_v36, 0.0  ;;  %vm6183_vm15 = vcmp.ge.f32.partialorder %v3247_v4, 4.0 }
 0x75b   : > { %v1780_v58 = vsel %vm1774_vm3, %v1778_v34, 2058  ;;  %vm6177_vm3 = vcmp.lt.f32.partialorder %v3251_v6, 14.0  ;;  %vm6532_vm12 = vmmov %vm6530_vm9  ;;  %v5549_v31 = vmul.f32 %v1891_v41, %v5501_v52  ;;  %v5552_v21 = vmul.f32 %v1890_v43, %v5498_v15 }
 0x75c   : > { %vm1783_vm7 = vcmp.lt.s32.totalorder %v1740_v8, %v1780_v58  ;;  %v1764_v44 = vpop.permute.xlu0 %1763 }
 0x75d   : > { %v5474_v7 = vsel %vm1783_vm7, %v1740_v8, %v1780_v58  ;;  %v1767_v33 = vsel %vm6529_vm10, %v1764_v44, 0.0  ;;  %vm6533_vm10 = vcmp.ge.f32.partialorder %v6503_v9, 8.0  ;;  %v1937_v34 = vrot.slane %v5549_v31, 4 }
 0x75e   : > { %1813 = vrot.lane.b32.xlu1 %v5474_v7, %s3214_s22  ;;  %v1766_v39 = vpop.permute.xlu1 %1765  ;;  %v1769_v22 = vmul.f32 %v1767_v33, %v5433_v13  ;;  %v1912_v13 = vsel %vm6175_vm2, %v1910_v61, %v1909_v27  ;;  %v1936_v62 = vrot.slane %v5552_v21, 4 }
 0x75f   : > { %v1768_v0 = vsel %vm6531_vm14, %v1766_v39, 0.0  ;;  %v1914_v38 = vsel %vm6177_vm3, %v1912_v13, 0.0 }
 0x760   : > { %v1786_v57 = vpop.permute.xlu0 %1785  ;;  %vm1793_vm7 = vcmp.gt.f32.partialorder %v1769_v22, 0.0  ;;  %v1770_v29 = vmul.f32 %v1768_v0, %v5439_v2  ;;  %v5556_v19 = vmul.f32 %v1914_v38, %v5507_v20 }
 0x761   : > { %v1789_v56 = vsel %vm6530_vm9, %v1786_v57, 0.0  ;;  %vm1795_vm9 = vmand %vm1793_vm7, %vm6533_vm10  ;;  %vm6534_vm10 = vcmp.lt.f32.partialorder %v6503_v9, 8.0 }
 0x762   : > { %v1788_v28 = vpop.permute.xlu1 %1787  ;;  %v1791_v8 = vmul.f32 %v1789_v56, %v5443_v5  ;;  %v1913_v5 = vsel %vm6179_vm5, %v1911_v50, 0.0  ;;  %vm6182_vm5 = vcmp.lt.s32.totalorder %v3239_v1, 4  ;;  %v1959_v55 = vrot.slane %v5556_v19, 4 }
 0x763   : > { %v1790_v25 = vsel %vm6532_vm12, %v1788_v28, 0.0  ;;  %vm1794_vm12 = vcmp.gt.f32.partialorder %v1770_v29, 0.0  ;;  %v5559_v16 = vmul.f32 %v1913_v5, %v5504_v35  ;;  %v1938_v12 = vsel %vm6182_vm5, %v1936_v62, %v1937_v34 }
 0x764   : > { %vm1807_vm14 = vcmp.gt.f32.partialorder %v1791_v8, 0.0  ;;  %v1792_v51 = vmul.f32 %v1790_v25, %v5449_v46  ;;  %v1941_v18 = vsel %vm1918_vm6, %v1938_v12, 0.0 }
 0x765   : > { %vm1809_vm2 = vmand %vm1807_vm14, %vm6534_vm10  ;;  %v1958_v40 = vrot.slane %v5559_v16, 4  ;;  %vm1871_vm14 = vcmp.gt.f32.partialorder %v5498_v15, 0.0  ;;  %v1943_v13 = vmul.f32 %v1941_v18, %v5549_v31 }
 0x766   : > { %vm1808_vm4 = vcmp.gt.f32.partialorder %v1792_v51, 0.0 }
 0x767   : > { %v1960_v17 = vsel %vm6182_vm5, %v1958_v40, %v1959_v55  ;;  %v1961_v44 = vsel %vm6182_vm5, %v1959_v55, %v1958_v40 }
 0x7c8   : > { %v1798_v23 = vpop.permute.xlu0 %1797 }
 0x7c9   : > { %v1801_v2 = vsel %vm1795_vm9, %v1798_v23, 2058  ;;  %vm6535_vm9 = vcmp.ge.f32.partialorder %v6503_v9, 8.0 }
 0x7ca   : > { %vm1803_vm7 = vcmp.lt.s32.totalorder %v5458_v53, %v1801_v2  ;;  %vm1796_vm0 = vmand %vm1794_vm12, %vm6535_vm9 }
 0x7cb   : > { %v1804_v37 = vsel %vm1803_vm7, %v5458_v53, %v1801_v2  ;;  %vm1810_vm9 = vmand %vm1808_vm4, %vm6534_vm10  ;;  %v1939_v53 = vsel %vm6182_vm5, %v1937_v34, %v1936_v62  ;;  %vm6184_vm7 = vcmp.lt.f32.partialorder %v3251_v6, 12.0  ;;  %vm6536_vm10 = vcmp.gt.f32.partialorder %v6506_v32, 0.0 }
 0x7cc   : > { %v1812_v60 = vpop.permute.xlu0 %1811  ;;  %v1800_v58 = vpop.permute.xlu1 %1799  ;;  %v1940_v33 = vsel %vm6183_vm15, %v1939_v53, 0.0  ;;  %vm6539_vm5 = vcmp.gt.f32.partialorder %v6506_v32, 0.5  ;;  %v1963_v27 = vsel %vm6184_vm7, %v1961_v44, 0.0 }
 0x7cd   : > { %v1815_v46 = vsel %vm1809_vm2, %v1812_v60, 2058  ;;  %v1802_v10 = vsel %vm1796_vm0, %v1800_v58, 2058  ;;  %v5635_v56 = vmul.f32 %v1940_v33, %v5552_v21  ;;  %v5652_v41 = vmul.f32 %v1963_v27, %v5556_v19 }
 0x7ce   : > { %vm1817_vm3 = vcmp.lt.s32.totalorder %v5466_v11, %v1815_v46  ;;  %vm1805_vm0 = vcmp.lt.s32.totalorder %v5468_v26, %v1802_v10 }
 0x7cf   : > { %v1818_v47 = vsel %vm1817_vm3, %v5466_v11, %v1815_v46  ;;  %vm6185_vm3 = vcmp.lt.f32.partialorder %v3247_v4, 12.0  ;;  %v1806_v54 = vsel %vm1805_vm0, %v5468_v26, %v1802_v10  ;;  %vm1921_vm0 = vcmp.gt.f32.partialorder %v5552_v21, 0.0 }
 0x7d0   : > { %vm1821_vm12 = vcmp.lt.s32.totalorder %v1804_v37, %v1818_v47  ;;  %v1814_v30 = vpop.permute.xlu1 %1813  ;;  %v1962_v57 = vsel %vm6185_vm3, %v1960_v17, 0.0 }
 0x7d1   : > { %v1822_v11 = vsel %vm1821_vm12, %v1804_v37, %v1818_v47  ;;  %v1816_v48 = vsel %vm1810_vm9, %v1814_v30, 2058  ;;  %vm1895_vm12 = vcmp.gt.f32.partialorder %v5507_v20, 0.0  ;;  %vm5602_vm9 = vmand %vm6536_vm10, %vm1615_vm8  ;;  %vm6543_vm8 = vcmp.gt.f32.partialorder %v6510_v3, 0.0 }
 0x7d2   : > { %vm1819_vm2 = vcmp.lt.s32.totalorder %v5474_v7, %v1816_v48  ;;  %v1825_v59 = vsel %vm6539_vm5, %v1822_v11, 2058  ;;  %vm5627_vm5 = vmand %vm6543_vm8, %vm1616_vm11  ;;  %v5649_v8 = vmul.f32 %v1962_v57, %v5559_v16  ;;  %vm6553_vm11 = vcmp.ge.f32.partialorder %v3247_v4, 2.0 }
 0x7d3   : > { %v1820_v63 = vsel %vm1819_vm2, %v5474_v7, %v1816_v48  ;;  %vm6540_vm2 = vmmov %vm6536_vm10  ;;  %v1829_v36 = vrot.slane %v1825_v59, 7  ;;  %v1849_v0 = vrot.slane %v1825_v59, 1 }
 0x7d4   : > { %vm1823_vm4 = vcmp.lt.s32.totalorder %v1806_v54, %v1820_v63  ;;  %vm5613_vm15 = vmand %vm6540_vm2, %vm1624_vm13  ;;  %vm6546_vm13 = vcmp.gt.f32.partialorder %v6510_v3, 0.5  ;;  %vm6547_vm2 = vcmp.lt.f32.partialorder %v3251_v6, 15.0 }
 0x7d5   : > { %v1824_v7 = vsel %vm1823_vm4, %v1806_v54, %v1820_v63  ;;  %vm6548_vm7 = vmmov %vm6543_vm8  ;;  %vm1970_vm8 = vcmp.gt.f32.partialorder %v5635_v56, 0.0 }
 0x7d6   : > { %v1826_v22 = vsel %vm6546_vm13, %v1824_v7, 2058  ;;  %vm5642_vm3 = vmand %vm6548_vm7, %vm6547_vm2  ;;  %vm6551_vm7 = vcmp.lt.s32.totalorder %v3239_v1, 7 }
 0x7d7   : > { %v1830_v28 = vrot.slane %v1826_v22, 7  ;;  %v1850_v50 = vrot.slane %v1826_v22, 1  ;;  %vm6552_vm13 = vmmov %vm6551_vm7 }
 0x7d8   : > { %vm5668_vm10 = vmand %vm1871_vm14, %vm6553_vm11  ;;  %vm6557_vm14 = vcmp.gt.f32.partialorder %v5504_v35, 0.0 }
 0x7d9   : > { %v1831_v29 = vsel %vm1619_vm1, %v1829_v36, %v1830_v28  ;;  %v1832_v43 = vsel %vm1619_vm1, %v1830_v28, %v1829_v36  ;;  %v1851_v25 = vsel %vm6551_vm7, %v1849_v0, %v1850_v50  ;;  %v1852_v38 = vsel %vm6552_vm13, %v1850_v50, %v1849_v0 }
 0x7da   : > { %v1833_v5 = vsel %vm5602_vm9, %v1832_v43, 2058  ;;  %v1834_v2 = vsel %vm5627_vm5, %v1831_v29, 2058  ;;  %v1853_v51 = vsel %vm5613_vm15, %v1851_v25, 2058  ;;  %v1854_v60 = vsel %vm5642_vm3, %v1852_v38, 2058 }
 0x7db   : > { %vm6556_vm7 = vcmp.lt.f32.partialorder %v3247_v4, 14.0  ;;  %vm1835_vm9 = vcmp.lt.s32.totalorder %v1825_v59, %v1833_v5  ;;  %vm1837_vm13 = vcmp.lt.s32.totalorder %v1826_v22, %v1834_v2  ;;  %vm1855_vm2 = vcmp.lt.s32.totalorder %v1825_v59, %v1853_v51 }
 0x7dc   : > { %vm5685_vm11 = vmand %vm6557_vm14, %vm6556_vm7  ;;  %vm1857_vm5 = vcmp.lt.s32.totalorder %v1826_v22, %v1854_v60  ;;  %vm6560_vm15 = vcmp.ge.f32.partialorder %v3251_v6, 2.0  ;;  %vm6561_vm3 = vcmp.gt.f32.partialorder %v5501_v52, 0.0  ;;  %v1836_v58 = vsel %vm1835_vm9, %v1825_v59, %v1833_v5 }
 0x7dd   : > { %vm5694_vm4 = vmand %vm6561_vm3, %vm6560_vm15  ;;  %v1838_v35 = vsel %vm1837_vm13, %v1826_v22, %v1834_v2  ;;  %v1856_v46 = vsel %vm1855_vm2, %v1825_v59, %v1853_v51  ;;  %v1858_v62 = vsel %vm1857_vm5, %v1826_v22, %v1854_v60  ;;  %vm6564_vm7 = vcmp.lt.f32.partialorder %v3251_v6, 14.0 }
 0x7de   : > { %vm1897_vm14 = vmand %vm1895_vm12, %vm6564_vm7  ;;  %v1875_v10 = vrot.slane %v1836_v58, 6  ;;  %v1876_v55 = vrot.slane %v1838_v35, 6  ;;  %v1898_v37 = vrot.slane %v1856_v46, 2  ;;  %v1899_v47 = vrot.slane %v1858_v62, 2 }
 0x7df   : > { %vm1971_vm1 = vcmp.gt.f32.partialorder %v1943_v13, 0.0  ;;  %vm1980_vm15 = vcmp.gt.f32.partialorder %v5649_v8, 0.0  ;;  %vm6565_vm9 = vcmp.lt.s32.totalorder %v3239_v1, 2  ;;  %vm6566_vm2 = vcmp.lt.s32.totalorder %v3239_v1, 6 }
 0x7e0   : > { %v1878_v52 = vsel %vm6565_vm9, %v1875_v10, %v1876_v55  ;;  %v1902_v40 = vsel %vm6566_vm2, %v1899_v47, %v1898_v37  ;;  %vm6567_vm13 = vmmov %vm6565_vm9  ;;  %vm6569_vm5 = vcmp.ge.f32.partialorder %v3247_v4, 4.0  ;;  %vm6572_vm9 = vcmp.gt.f32.partialorder %v5549_v31, 0.0 }
 0x7e1   : > { %v1879_v20 = vsel %vm6567_vm13, %v1876_v55, %v1875_v10  ;;  %vm6568_vm12 = vmmov %vm6566_vm2  ;;  %v1881_v11 = vsel %vm5694_vm4, %v1878_v52, 2058  ;;  %v1904_v48 = vsel %vm1897_vm14, %v1902_v40, 2058  ;;  %vm6575_vm4 = vcmp.lt.f32.partialorder %v3247_v4, 12.0 }
 0x7e2   : > { %v1901_v30 = vsel %vm6568_vm12, %v1898_v37, %v1899_v47  ;;  %vm5717_vm7 = vmand %vm1921_vm0, %vm6569_vm5  ;;  %v1880_v12 = vsel %vm5668_vm10, %v1879_v20, 2058  ;;  %vm1884_vm0 = vcmp.lt.s32.totalorder %v1838_v35, %v1881_v11  ;;  %vm1907_vm13 = vcmp.lt.s32.totalorder %v1858_v62, %v1904_v48 }
 0x7e3   : > { %v1903_v17 = vsel %vm5685_vm11, %v1901_v30, 2058  ;;  %vm5731_vm2 = vmand %vm6572_vm9, %vm1918_vm6  ;;  %vm1882_vm12 = vcmp.lt.s32.totalorder %v1836_v58, %v1880_v12  ;;  %vm6576_vm14 = vcmp.gt.f32.partialorder %v5559_v16, 0.0  ;;  %v1885_v63 = vsel %vm1884_vm0, %v1838_v35, %v1881_v11 }
 0x7e4   : > { %vm1905_vm5 = vcmp.lt.s32.totalorder %v1856_v46, %v1903_v17  ;;  %vm5739_vm10 = vmand %vm6576_vm14, %vm6575_vm4  ;;  %v1883_v54 = vsel %vm1882_vm12, %v1836_v58, %v1880_v12  ;;  %v1908_v31 = vsel %vm1907_vm13, %v1858_v62, %v1904_v48  ;;  %vm6579_vm6 = vcmp.lt.f32.partialorder %v3251_v6, 12.0 }
 0x7e5   : > { %v1906_v33 = vsel %vm1905_vm5, %v1856_v46, %v1903_v17  ;;  %vm6580_vm11 = vcmp.gt.f32.partialorder %v5556_v19, 0.0  ;;  %v1925_v39 = vrot.slane %v1883_v54, 4  ;;  %v1926_v59 = vrot.slane %v1885_v63, 4 }
 0x7e6   : > { %vm1947_vm9 = vmand %vm6580_vm11, %vm6579_vm6  ;;  %v1948_v26 = vrot.slane %v1906_v33, 4  ;;  %v1949_v7 = vrot.slane %v1908_v31, 4  ;;  %vm6581_vm3 = vcmp.ge.f32.partialorder %v3247_v4, 8.0  ;;  %vm6584_vm0 = vcmp.ge.f32.partialorder %v3251_v6, 8.0 }
 0x7e7   : > { %vm5751_vm4 = vmand %vm1970_vm8, %vm6581_vm3  ;;  %vm6587_vm12 = vcmp.lt.s32.totalorder %v3239_v1, 4  ;;  %vm6591_vm3 = vcmp.lt.f32.partialorder %v3247_v4, 8.0  ;;  %vm6594_vm6 = vcmp.lt.f32.partialorder %v3251_v6, 8.0  ;;  %vm6595_vm11 = vcmp.gt.f32.partialorder %v5652_v41, 0.0 }
 0x7e8   : > { %vm5758_vm13 = vmand %vm1971_vm1, %vm6584_vm0  ;;  %v1928_v19 = vsel %vm6587_vm12, %v1925_v39, %v1926_v59 }
 0x7e9   : > { %vm6588_vm5 = vmmov %vm6587_vm12  ;;  %v1931_v49 = vsel %vm5731_vm2, %v1928_v19, 2058 }
 0x7ea   : > { %v1929_v57 = vsel %vm6588_vm5, %v1926_v59, %v1925_v39  ;;  %vm6589_vm14 = vmmov %vm6588_vm5 }
 0x7eb   : > { %v1950_v27 = vsel %vm6589_vm14, %v1948_v26, %v1949_v7  ;;  %vm6590_vm8 = vmmov %vm6588_vm5  ;;  %v1930_v56 = vsel %vm5717_vm7, %v1929_v57, 2058 }
 0x7ec   : > { %v1951_v61 = vsel %vm6590_vm8, %v1949_v7, %v1948_v26  ;;  %vm5774_vm1 = vmand %vm1980_vm15, %vm6591_vm3  ;;  %v1952_v36 = vsel %vm5739_vm10, %v1950_v27, 2058  ;;  %vm1932_vm12 = vcmp.lt.s32.totalorder %v1883_v54, %v1930_v56  ;;  %vm1934_vm15 = vcmp.lt.s32.totalorder %v1885_v63, %v1931_v49 }
 0x7ed   : > { %v1953_v0 = vsel %vm1947_vm9, %v1951_v61, 2058  ;;  %vm1983_vm0 = vmand %vm6595_vm11, %vm6594_vm6  ;;  %vm1954_vm5 = vcmp.lt.s32.totalorder %v1906_v33, %v1952_v36  ;;  %v1933_v28 = vsel %vm1932_vm12, %v1883_v54, %v1930_v56  ;;  %v1935_v50 = vsel %vm1934_vm15, %v1885_v63, %v1931_v49 }
 0x7ee   : > { %vm1956_vm14 = vcmp.lt.s32.totalorder %v1908_v31, %v1953_v0  ;;  %v1955_v13 = vsel %vm1954_vm5, %v1906_v33, %v1952_v36  ;;  %v1974_v29 = vsel %vm5751_vm4, %v1935_v50, 2058  ;;  %v1975_v43 = vsel %vm5758_vm13, %v1933_v28, 2058 }
 0x7ef   : > { %v1957_v8 = vsel %vm1956_vm14, %v1908_v31, %v1953_v0  ;;  %v1985_v38 = vsel %vm1983_vm0, %v1955_v13, 2058  ;;  %vm1976_vm7 = vcmp.lt.s32.totalorder %v1933_v28, %v1974_v29  ;;  %vm1978_vm2 = vcmp.lt.s32.totalorder %v1935_v50, %v1975_v43 }
 0x7f0   : > { %v1984_v25 = vsel %vm5774_vm1, %v1957_v8, 2058  ;;  %vm1988_vm9 = vcmp.lt.s32.totalorder %v1957_v8, %v1985_v38  ;;  %v1977_v41 = vsel %vm1976_vm7, %v1933_v28, %v1974_v29  ;;  %v1979_v23 = vsel %vm1978_vm2, %v1935_v50, %v1975_v43 }
 0x7f1   : > { %vm1986_vm10 = vcmp.lt.s32.totalorder %v1955_v13, %v1984_v25  ;;  %v1989_v2 = vsel %vm1988_vm9, %v1957_v8, %v1985_v38  ;;  %vm6596_vm4 = vcmp.gt.f32.partialorder %v6506_v32, 0.5  ;;  %vm6597_vm13 = vcmp.gt.f32.partialorder %v6510_v3, 0.5 }
 0x7f2   : > { %v1987_v5 = vsel %vm1986_vm10, %v1955_v13, %v1984_v25  ;;  %vm1992_vm3 = vcmp.lt.s32.totalorder %v1979_v23, %v1989_v2 }
 0x7f3   : > { %vm1990_vm8 = vcmp.lt.s32.totalorder %v1977_v41, %v1987_v5  ;;  %v1993_v60 = vsel %vm1992_vm3, %v1979_v23, %v1989_v2 }
 0x7f4   : > { %v1991_v51 = vsel %vm1990_vm8, %v1977_v41, %v1987_v5  ;;  %v1995_v34 = vsel %vm6597_vm13, %v1993_v60, 2058  }
 0x7f5   : > { %v1994_v15 = vsel %vm6596_vm4, %v1991_v51, 2058   ;;  %v1997_v35 = vsub.s32 %v3182_v42, %v1995_v34 }
 0x7f6   : > { %v1996_v58 = vsub.s32 %v3186_v14, %v1994_v15 }
 0x7f8   : > { %vm1998_vm1 = vcmp.gt.s32.totalorder %v1996_v58, %v1997_v35 }
 0x7f9   : > { %v1999_v46 = vsel %vm1998_vm1, %v1996_v58, %v1997_v35 }
 0x7fa   : > { %v2001_v62 = vshra.s32 %v1999_v46, 16  ;;  %v2000_v55 = vand.u32 65535, %v1999_v46 }
 0x7fc   : > { %v2003_v10 = vcvt.s32.f32 %v2001_v62  ;;  %v2002_v47 = vcvt.s32.f32 %v2000_v55 }
 0x7fe   : > { %2004 = vmax.xlane.f32.xlu0 %v2003_v10 }
 0x887   : > { %v2005_v37 = vpop.xlane.xlu0 %2004 }
 0x888   : > { %vm2006_vm6 = vcmp.eq.f32.partialorder %v2003_v10, %v2005_v37  ;;  %v2011_v32 = vcvt.f32.s32 %v2005_v37 }
 0x889   : > { %v2007_v52 = vsel %vm2006_vm6, %v2002_v47, -inf }
 0x88a   : > { %2008 = vmax.xlane.f32.xlu1 %v2007_v52  ;;  %v2012_v3 = vshll.u32 %v2011_v32, 16 }
 0x913   : > { %v2009_v40 = vpop.xlane.xlu1 %2008 }
 0x914   : > { %v2010_v20 = vcvt.f32.s32 %v2009_v40 }
 0x916   : > { %v2013_v30 = vadd.s32 %v2012_v3, %v2010_v20 }
 0x918   : > { %v2014_v14 = vrot.slane %v2013_v30, 4 }
 0x91a   : > { %vm2015_vm11 = vcmp.gt.s32.totalorder %v2013_v30, %v2014_v14 }
 0x91b   : > { %v2016_v42 = vsel %vm2015_vm11, %v2013_v30, %v2014_v14  ;;  %v6599_v14 = vmov %v1994_v15 }
 0x91c   : > { %v2017_v53 = vrot.slane %v2016_v42, 2 }
 0x91e   : > { %vm2018_vm0 = vcmp.gt.s32.totalorder %v2016_v42, %v2017_v53 }
 0x91f   : > { %v2019_v11 = vsel %vm2018_vm0, %v2016_v42, %v2017_v53  ;;  %v6598_v42 = vmov %v1995_v34 }
 0x920   : > { %v2020_v48 = vrot.slane %v2019_v11, 1 }
 0x922   : > { %vm2021_vm12 = vcmp.gt.s32.totalorder %v2019_v11, %v2020_v48 }
 0x923   : > { %v2022_v12 = vsel %vm2021_vm12, %v2019_v11, %v2020_v48 }
 0x924   : > { %2458 = vpush %v2022_v12 }
 0x955   : > { %s2459_s23 = spop %2458 }
 0x956   : > { %p1610_p1 = scmp.gt.s32.totalorder %s2459_s23, 0 }
 0x958   : > { %p1611_p2 = pnand %p1610_p1, %p1609_p0 }
 0x959   :  { %vm2025_vm15 = vcmp.eq.s32.totalorder (%p1611_p2), %v1994_v15, %v5305_v45  ;;  %vm2026_vm5 = vcmp.eq.s32.totalorder (%p1611_p2), %v1995_v34, %v5308_v24  ;;  %v6600_v17 = vld [vmem:[#allocation14_spill] sm:$0xff] (%p1611_p2)  ;;  %v6602_v21 = vld [vmem:[#allocation15_spill] sm:$0xff] (%p1611_p2)  ;;  %v6604_v44 = vmov (%p1611_p2), 0.0   ;;  %v6605_v33 = vld [vmem:[#allocation13_spill] sm:$0xff] (%p1611_p2)  ;;  %s2136_s21 = sadd.f32 (%p1611_p2), %s3882_s7, %s3854_s27 }
 0x95a   :  { %1614 = sbr.rel (!%p1611_p2) target bundleno = 1394 (0x572), region = 61  ;;  %vm6601_vm14 = vcmp.gt.f32.partialorder (%p1611_p2), %v6600_v17, 0.5  ;;  %vm6603_vm2 = vcmp.gt.f32.partialorder (%p1611_p2), %v6602_v21, 0.5  ;;  %vm6606_vm9 = vcmp.eq.f32.partialorder (%p1611_p2), %v6605_v33, 2.0  ;;  %vm6607_vm8 = vcmp.eq.f32.partialorder (%p1611_p2), %v6605_v33, 0.0  ;;  %s2171_s2 = sadd.f32 (%p1611_p2), %s3914_s9, %s3859_s29 }
 0x95b   :  { %vm2027_vm7 = vmand (%p1611_p2), %vm6601_vm14, %vm2025_vm15  ;;  %vm6608_vm3 = vcmp.eq.f32.partialorder (%p1611_p2), %v6605_v33, 3.0  ;;  %vm6612_vm6 = vcmp.eq.f32.partialorder (%p1611_p2), %v6605_v33, 1.0  ;;  %vm6614_vm0 = vcmp.eq.f32.partialorder (%p1611_p2), %v6605_v33, 5.0  ;;  %vm6616_vm15 = vcmp.eq.f32.partialorder (%p1611_p2), %v6605_v33, 4.0  ;;  %s2188_s22 = sadd.f32 (%p1611_p2), %s3931_s10, %s3864_s30 }
 0x95c   :  { %vm2028_vm10 = vmand (%p1611_p2), %vm6603_vm2, %vm2026_vm5  ;;  %v2029_v54 = vsel (%p1611_p2), %vm2027_vm7, 1.0, %v6604_v44  ;;  %vm6618_vm14 = vcmp.eq.f32.partialorder (%p1611_p2), %v6605_v33, 7.0  ;;  %vm6620_vm2 = vcmp.eq.f32.partialorder (%p1611_p2), %v6605_v33, 6.0  ;;  %s2205_s27 = sadd.f32 (%p1611_p2), %s3933_s11, %s3866_s3 }
 0x95d   :  { %v2030_v63 = vsel (%p1611_p2), %vm2028_vm10, 1.0, %v6604_v44  ;;  %v2055_v31 = vsel (%p1611_p2), %vm6606_vm9, %v2029_v54, 0.0  ;;  %v2031_v39 = vsel (%p1611_p2), %vm6607_vm8, %v2029_v54, 0.0  ;;  %v2067_v4 = vsel (%p1611_p2), %vm6608_vm3, %v2029_v54, 0.0  ;;  %vm6609_vm4 = vmmov (%p1611_p2), %vm6606_vm9  ;;  %s6631_s29 = sld [smem:[#allocation19_spill]] (%p1611_p2) }
 0x95e   :  { %v2056_v6 = vsel (%p1611_p2), %vm6609_vm4, %v2030_v63, 0.0  ;;  %vm6610_vm13 = vmmov (%p1611_p2), %vm6607_vm8  ;;  %v2043_v9 = vsel (%p1611_p2), %vm6612_vm6, %v2029_v54, 0.0  ;;  %v2091_v19 = vsel (%p1611_p2), %vm6614_vm0, %v2029_v54, 0.0  ;;  %v2079_v27 = vsel (%p1611_p2), %vm6616_vm15, %v2029_v54, 0.0  ;;  %s6632_s9 = sld [smem:[#allocation21_spill]] (%p1611_p2) }
 0x95f   :  { %v2032_v45 = vsel %vm6610_vm13, %v2030_v63, 0.0  ;;  %vm6611_vm1 = vmmov %vm6608_vm3  ;;  %v2057_v59 = vadd.f32 %v2056_v6, %v2055_v31  ;;  %v2115_v49 = vsel %vm6618_vm14, %v2029_v54, 0.0  ;;  %v2103_v0 = vsel %vm6620_vm2, %v2029_v54, 0.0  ;;  %s6633_s30 = sld [smem:[#allocation24_spill]] }
 0x960   :  { %v2068_v24 = vsel %vm6611_vm1, %v2030_v63, 0.0  ;;  %v2033_v26 = vadd.f32 %v2032_v45, %v2031_v39  ;;  %vm6613_vm11 = vmmov %vm6612_vm6  ;;  %vm2127_vm9 = vcmp.eq.s32.totalorder %v3239_v1, 0  ;;  %vm2143_vm1 = vcmp.eq.s32.totalorder %v3239_v1, 1  ;;  %s6637_s10 = sld [smem:[#allocation22_spill]] }
 0x961   :  { %v2044_v7 = vsel %vm6613_vm11, %v2030_v63, 0.0  ;;  %2058 = vadd.xlane.f32.xlu1 %v2057_v59  ;;  %v2069_v16 = vadd.f32 %v2068_v24, %v2067_v4  ;;  %vm6615_vm12 = vmmov %vm6614_vm0  ;;  %vm2147_vm11 = vcmp.eq.s32.totalorder %v3239_v1, 2 }
 0x962   :  { %2034 = vadd.xlane.f32.xlu0 %v2033_v26  ;;  %v2045_v18 = vadd.f32 %v2044_v7, %v2043_v9  ;;  %v2092_v57 = vsel %vm6615_vm12, %v2030_v63, 0.0  ;;  %vm6617_vm5 = vmmov %vm6616_vm15  ;;  %vm2151_vm12 = vcmp.eq.s32.totalorder %v3239_v1, 3 }
 0x963   :  { %v2080_v61 = vsel %vm6617_vm5, %v2030_v63, 0.0  ;;  %v2093_v22 = vadd.f32 %v2092_v57, %v2091_v19  ;;  %vm6619_vm7 = vmmov %vm6618_vm14 }
 0x964   :  { %v2081_v56 = vadd.f32 %v2080_v61, %v2079_v27  ;;  %v2116_v36 = vsel %vm6619_vm7, %v2030_v63, 0.0  ;;  %vm6621_vm10 = vmmov %vm6620_vm2 }
 0x965   :  { %2070 = vadd.xlane.f32.xlu1 %v2069_v16  ;;  %v2104_v28 = vsel %vm6621_vm10, %v2030_v63, 0.0  ;;  %v2117_v50 = vadd.f32 %v2116_v36, %v2115_v49 }
 0x966   :  { %2046 = vadd.xlane.f32.xlu0 %v2045_v18  ;;  %v2105_v13 = vadd.f32 %v2104_v28, %v2103_v0 }
 0x969   :  { %2094 = vadd.xlane.f32.xlu1 %v2093_v22 }
 0x96a   :  { %2082 = vadd.xlane.f32.xlu0 %v2081_v56 }
 0x96d   :  { %2118 = vadd.xlane.f32.xlu1 %v2117_v50 }
 0x96e   :  { %2106 = vadd.xlane.f32.xlu0 %v2105_v13 }
 0x9ea   :  { %v2059_v8 = vpop.xlane.xlu1 %2058 }
 0x9eb   :  { %v2035_v29 = vpop.xlane.xlu0 %2034  ;;  %v2060_v43 = vrot.slane %v2059_v8, 4 }
 0x9ec   :  { %v2036_v25 = vrot.slane %v2035_v29, 4 }
 0x9ed   :  { %v2061_v38 = vadd.f32 %v2060_v43, %v2059_v8 }
 0x9ee   :  { %v2037_v41 = vadd.f32 %v2036_v25, %v2035_v29  ;;  %v2071_v23 = vpop.xlane.xlu1 %2070 }
 0x9ef   :  { %v2047_v5 = vpop.xlane.xlu0 %2046  ;;  %v2062_v2 = vrot.slane %v2061_v38, 2  ;;  %v2072_v60 = vrot.slane %v2071_v23, 4 }
 0x9f0   :  { %v2038_v51 = vrot.slane %v2037_v41, 2  ;;  %v2048_v15 = vrot.slane %v2047_v5, 4 }
 0x9f1   :  { %v2073_v34 = vadd.f32 %v2072_v60, %v2071_v23  ;;  %v2063_v10 = vadd.f32 %v2062_v2, %v2061_v38  ;;  %v2130_v60 = vstv %s3670_s25  ;;  %s2155_s25 = sadd.f32 %s3896_s8, %s3857_s28 }
 0x9f2   :  { %v2049_v58 = vadd.f32 %v2048_v15, %v2047_v5  ;;  %v2039_v35 = vadd.f32 %v2038_v51, %v2037_v41  ;;  %v2095_v46 = vpop.xlane.xlu1 %2094  ;;  %v6622_v51 = vld [vmem:[#allocation11_spill] sm:$0xff] }
 0x9f3   :  { %v2083_v62 = vpop.xlane.xlu0 %2082  ;;  %v2074_v55 = vrot.slane %v2073_v34, 2  ;;  %v2096_v47 = vrot.slane %v2095_v46, 4  ;;  %v2064_v11 = vrot.slane %v2063_v10, 1  ;;  %vm2128_vm8 = vcmp.eq.s32.totalorder %v6622_v51, 0 }
 0x9f4   :  { %v2050_v37 = vrot.slane %v2049_v58, 2  ;;  %v2084_v52 = vrot.slane %v2083_v62, 4  ;;  %v2040_v32 = vrot.slane %v2039_v35, 1  ;;  %vm2129_vm3 = vmand %vm2127_vm9, %vm2128_vm8  ;;  %vm2132_vm4 = vcmp.eq.s32.totalorder %v6622_v51, 1 }
 0x9f5   :  { %v2097_v40 = vadd.f32 %v2096_v47, %v2095_v46  ;;  %v2075_v30 = vadd.f32 %v2074_v55, %v2073_v34  ;;  %v2065_v6 = vadd.f32 %v2064_v11, %v2063_v10  ;;  %v2131_v15 = vsel %vm2129_vm3, %v2130_v60, 0.0  ;;  %vm2133_vm13 = vmand %vm2127_vm9, %vm2132_vm4 }
 0x9f6   :  { %v2085_v3 = vadd.f32 %v2084_v52, %v2083_v62  ;;  %v2051_v20 = vadd.f32 %v2050_v37, %v2049_v58  ;;  %v2119_v14 = vpop.xlane.xlu1 %2118  ;;  %v2041_v53 = vadd.f32 %v2040_v32, %v2039_v35  ;;  %v2134_v34 = vstv %s5316_s5  ;;  %vm2144_vm6 = vmand %vm2143_vm1, %vm2128_vm8 }
 0x9f7   :  { %v2107_v42 = vpop.xlane.xlu0 %2106  ;;  %v2098_v48 = vrot.slane %v2097_v40, 2  ;;  %v2120_v17 = vrot.slane %v2119_v14, 4  ;;  %v2076_v54 = vrot.slane %v2075_v30, 1  ;;  %v2135_v58 = vsel %vm2133_vm13, %v2134_v34, %v2131_v15  ;;  %vm5899_vm0 = vmand %vm2147_vm11, %vm2128_vm8 }
 0x9f8   :  { %v2086_v12 = vrot.slane %v2085_v3, 2  ;;  %v2108_v21 = vrot.slane %v2107_v42, 4  ;;  %2460 = vpush %v2041_v53  ;;  %v2052_v44 = vrot.slane %v2051_v20, 1  ;;  %v2145_v35 = vstv %s4048_s15  ;;  %vm2152_vm15 = vmand %vm2151_vm12, %vm2128_vm8 }
 0x9f9   :  { %v2121_v63 = vadd.f32 %v2120_v17, %v2119_v14  ;;  %v2099_v39 = vadd.f32 %v2098_v48, %v2097_v40  ;;  %v2077_v45 = vadd.f32 %v2076_v54, %v2075_v30  ;;  %v2146_v46 = vsel %vm2144_vm6, %v2145_v35, %v2135_v58  ;;  %vm2162_vm5 = vmand %vm2143_vm1, %vm2132_vm4 }
 0x9fa   :  { %v2109_v33 = vadd.f32 %v2108_v21, %v2107_v42  ;;  %v2087_v31 = vadd.f32 %v2086_v12, %v2085_v3  ;;  %v2053_v4 = vadd.f32 %v2052_v44, %v2051_v20  ;;  %v2149_v10 = vstv %s2136_s21  ;;  %vm5925_vm14 = vmand %vm2147_vm11, %vm2132_vm4  ;;  %s6638_s21 = sld [smem:[#allocation25_spill]] }
 0x9fb   :  { %v2122_v24 = vrot.slane %v2121_v63, 2  ;;  %v2100_v26 = vrot.slane %v2099_v39, 1  ;;  %v2150_v55 = vsel %vm5899_vm0, %v2149_v10, %v2146_v46  ;;  %v2163_v37 = vstv %s4050_s16  ;;  %vm2168_vm2 = vmand %vm2151_vm12, %vm2132_vm4 }
 0x9fc   :  { %v2110_v9 = vrot.slane %v2109_v33, 2  ;;  %v2088_v59 = vrot.slane %v2087_v31, 1  ;;  %2462 = vpush %v2053_v4  ;;  %v2166_v32 = vstv %s2155_s25  ;;  %vm2178_vm7 = vcmp.eq.s32.totalorder %v6622_v51, 2 }
 0x9fd   :  { %v2123_v7 = vadd.f32 %v2122_v24, %v2121_v63  ;;  %2464 = vpush %v2065_v6  ;;  %v2101_v19 = vadd.f32 %v2100_v26, %v2099_v39  ;;  %vm2179_vm10 = vmand %vm2143_vm1, %vm2178_vm7  ;;  %v2180_v30 = vstv %s4052_s17  ;;  %vm2195_vm9 = vcmp.eq.s32.totalorder %v6622_v51, 3 }
 0x9fe   :  { %v2111_v16 = vadd.f32 %v2110_v9, %v2109_v33  ;;  %v2089_v18 = vadd.f32 %v2088_v59, %v2087_v31  ;;  %2466 = vpush %v2077_v45  ;;  %vm5950_vm8 = vmand %vm2147_vm11, %vm2178_vm7  ;;  %v2183_v53 = vstv %s2171_s2  ;;  %v2197_v12 = vstv %s4054_s18  ;;  %s2222_s18 = sadd.f32 %s3958_s12, %s3871_s4 }
 0x9ff   :  { %v2124_v27 = vrot.slane %v2123_v7, 1  ;;  %vm2185_vm3 = vmand %vm2151_vm12, %vm2178_vm7  ;;  %vm2212_vm13 = vcmp.eq.s32.totalorder %v6622_v51, 4  ;;  %v2200_v54 = vstv %s2188_s22  ;;  %v2214_v31 = vstv %s4056_s19  ;;  %s6636_s4 = sld [smem:[#allocation20_spill]] }
 0xa00   :  { %2468 = vpush %v2089_v18  ;;  %v2112_v57 = vrot.slane %v2111_v16, 1  ;;  %vm2196_vm4 = vmand %vm2143_vm1, %vm2195_vm9  ;;  %v2217_v45 = vstv %s2205_s27  ;;  %s2239_s12 = sadd.f32 %s6632_s9, %s6631_s29  ;;  %v2231_v59 = vstv %s6633_s30  ;;  %v2234_v18 = vstv %s2222_s18 }
 0xa01   :  { %2470 = vpush %v2101_v19  ;;  %v2125_v22 = vadd.f32 %v2124_v27, %v2123_v7  ;;  %vm5978_vm6 = vmand %vm2147_vm11, %vm2195_vm9  ;;  %v2248_v27 = vstv %s6638_s21 }
 0xa02   :  { %v2113_v61 = vadd.f32 %v2112_v57, %v2111_v16  ;;  %vm2202_vm0 = vmand %vm2151_vm12, %vm2195_vm9 }
 0xa03   :  { %vm2219_vm7 = vmand %vm2151_vm12, %vm2212_vm13 }
 0xa04   :  { %2472 = vpush %v2113_v61 }
 0xa05   :  { %2474 = vpush %v2125_v22  ;;  %s2256_s3 = sadd.f32 %s6637_s10, %s6636_s4 }
 0xa29   :  { %s5847_s26 = spop %2460 }
 0xa2a   :  { %v2138_v56 = vstv %s5847_s26  ;;  %p2137_p3 = scmp.gt.f32.partialorder %s5847_s26, 0.0 }
 0xa2b   :  { %2822 = vrcp.f32 %v2138_v56  ;;  %v2251_v56 = vstv %s2239_s12 }
 0xa2d   :  { %s5850_s14 = spop %2462 }
 0xa2e   :  { %v2157_v49 = vstv %s5850_s14  ;;  %s5853_s6 = spop %2464  ;;  %p2156_p4 = scmp.gt.f32.partialorder %s5850_s14, 0.0 }
 0xa2f   :  { %2824 = vrcp.f32 %v2157_v49  ;;  %v2173_v36 = vstv %s5853_s6  ;;  %s5856_s13 = spop %2466  ;;  %p2172_p5 = scmp.gt.f32.partialorder %s5853_s6, 0.0 }
 0xa30   :  { %2826 = vrcp.f32 %v2173_v36  ;;  %v2190_v0 = vstv %s5856_s13  ;;  %p2189_p6 = scmp.gt.f32.partialorder %s5856_s13, 0.0 }
 0xa31   :  { %s5859_s20 = spop %2468  ;;  %2828 = vrcp.f32 %v2190_v0 }
 0xa32   :  { %v2207_v28 = vstv %s5859_s20  ;;  %s5862_s24 = spop %2470  ;;  %p2206_p7 = scmp.gt.f32.partialorder %s5859_s20, 0.0 }
 0xa33   :  { %2830 = vrcp.f32 %v2207_v28  ;;  %v2224_v50 = vstv %s5862_s24  ;;  %p2223_p8 = scmp.gt.f32.partialorder %s5862_s24, 0.0 }
 0xa34   :  { %2832 = vrcp.f32 %v2224_v50 }
 0xa35   :  { %s5865_s0 = spop %2472 }
 0xa36   :  { %v2241_v13 = vstv %s5865_s0  ;;  %s5868_s1 = spop %2474  ;;  %p2240_p9 = scmp.gt.f32.partialorder %s5865_s0, 0.0 }
 0xa37   :  { %2834 = vrcp.f32 %v2241_v13  ;;  %v2258_v8 = vstv %s5868_s1  ;;  %s6641_s0 = sld [smem:[#allocation26_spill]]  ;;  %p2257_p10 = scmp.gt.f32.partialorder %s5868_s1, 0.0  ;;  %v2268_v13 = vstv %s2256_s3 }
 0xa38   :  { %2836 = vrcp.f32 %v2258_v8  ;;  %v2823_v29 = vpop.eup %2822  ;;  %s3215_s1 = smov [#allocation7]  }
 0xa39   :  { %2476 = vpush %v2823_v29  ;;  %s2280_s25 = sshll.u32 %s3215_s1, 4  ;;  %s2281_s25 = int_to_ptr.vmem [resolvable:$true] %s2280_s25 }
 0xa3a   :  { %s2878_s2 = scalar_lea.vmem %s2281_s25, 128  ;;  %p2883_p12 = scmp.lt.s32.totalorder %s2281_s25, %s2281_s25 }
 0xa3b   :  { %p2879_p11 = scmp.ne.s32.totalorder %s2281_s25, %s2878_s2  ;;  %p2884_p13 = scmp.lt.s32.totalorder %s2878_s2, %s2878_s2 }
 0xa3c   :  { %v2825_v43 = vpop.eup %2824 }
 0xa3d   :  { %v2827_v25 = vpop.eup %2826  ;;  %2478 = vpush %v2825_v43  ;;  %v2265_v0 = vstv %s6641_s0  ;;  %p2885_p0 = por %p2884_p13, %p2883_p12 }
 0xa3e   :  { %v2829_v38 = vpop.eup %2828  ;;  %2480 = vpush %v2827_v25 }
 0xa3f   :  { %2482 = vpush %v2829_v38  ;;  %p2886_p1 = pnand %p2885_p0, %p2879_p11 }
 0xa40   :  { %v2831_v41 = vpop.eup %2830 }
 0xa41   :  { %v2833_v23 = vpop.eup %2832  ;;  %2484 = vpush %v2831_v41 }
 0xa42   :  { %2486 = vpush %v2833_v23 }
 0xa44   :  { %v2835_v5 = vpop.eup %2834 }
 0xa45   :  { %v2837_v2 = vpop.eup %2836  ;;  %2488 = vpush %v2835_v5 }
 0xa46   :  { %2490 = vpush %v2837_v2 }
 0xa6a   :  { %s2477_s5 = spop %2476 }
 0xa6b   :  { %s2141_s28 = ssub.f32 1.0, %s2477_s5 }
 0xa6d   :  { %s6644_s28 = smov (!%p2137_p3, %s2141_s28), 1.0 }
 0xa6e   :  { %s2479_s7 = spop %2478  ;;  %v2153_v47 = vstv %s6644_s28 }
 0xa6f   :  { %s2160_s8 = ssub.f32 1.0, %s2479_s7  ;;  %s2481_s15 = spop %2480  ;;  %v2154_v40 = vsel %vm2152_vm15, %v2153_v47, %v2150_v55  ;;  %vm2213_vm15 = vmand %vm2143_vm1, %vm2212_vm13 }
 0xa70   :  { %s2176_s16 = ssub.f32 1.0, %s2481_s15  ;;  %s2483_s23 = spop %2482  ;;  %v2164_v3 = vsel %vm2162_vm5, %v2163_v37, %v2154_v40  ;;  %vm2229_vm5 = vcmp.eq.s32.totalorder %v6622_v51, 5 }
 0xa71   :  { %s6646_s8 = smov (!%p2156_p4, %s2160_s8), 1.0  ;;  %v2167_v20 = vsel %vm5925_vm14, %v2166_v32, %v2164_v3  ;;  %s2193_s26 = ssub.f32 1.0, %s2483_s23  ;;  %vm6007_vm14 = vmand %vm2147_vm11, %vm2212_vm13 }
 0xa72   :  { %s6648_s16 = smov (!%p2172_p5, %s2176_s16), 1.0  ;;  %v2169_v14 = vstv %s6646_s8  ;;  %s2485_s17 = spop %2484  ;;  %vm6034_vm9 = vmand %vm2147_vm11, %vm2229_vm5 }
 0xa73   :  { %v2170_v11 = vsel %vm2168_vm2, %v2169_v14, %v2167_v20  ;;  %s2210_s14 = ssub.f32 1.0, %s2485_s17  ;;  %s5961_s6 = spop %2486  ;;  %v2186_v21 = vstv %s6648_s16  ;;  %vm2230_vm2 = vmand %vm2143_vm1, %vm2229_vm5 }
 0xa74   :  { %v2181_v48 = vsel %vm2179_vm10, %v2180_v30, %v2170_v11  ;;  %s6650_s26 = smov (!%p2189_p6, %s2193_s26), 1.0  ;;  %s2227_s13 = ssub.f32 1.0, %s5961_s6  ;;  %vm2246_vm10 = vcmp.eq.s32.totalorder %v6622_v51, 6 }
 0xa75   :  { %v2184_v17 = vsel %vm5950_vm8, %v2183_v53, %v2181_v48  ;;  %s6652_s14 = smov (!%p2206_p7, %s2210_s14), 1.0  ;;  %v2203_v4 = vstv %s6650_s26  ;;  %vm2236_vm8 = vmand %vm2151_vm12, %vm2229_vm5 }
 0xa76   :  { %v2187_v63 = vsel %vm2185_vm3, %v2186_v21, %v2184_v17  ;;  %s5992_s20 = spop %2488  ;;  %s6654_s13 = smov (!%p2223_p8, %s2227_s13), 1.0  ;;  %v2220_v7 = vstv %s6652_s14  ;;  %vm2247_vm3 = vmand %vm2143_vm1, %vm2246_vm10 }
 0xa77   :  { %v2198_v33 = vsel %vm2196_vm4, %v2197_v12, %v2187_v63  ;;  %s2244_s19 = ssub.f32 1.0, %s5992_s20  ;;  %s2491_s24 = spop %2490  ;;  %vm2263_vm4 = vcmp.eq.s32.totalorder %v6622_v51, 7  ;;  %v2237_v22 = vstv %s6654_s13  ;;  %vm2250_vm13 = vmand %vm2147_vm11, %vm2246_vm10 }
 0xa78   :  { %v2201_v39 = vsel %vm5978_vm6, %v2200_v54, %v2198_v33  ;;  %s2261_s11 = ssub.f32 1.0, %s2491_s24  ;;  %vm2253_vm6 = vmand %vm2151_vm12, %vm2246_vm10 }
 0xa79   :  { %v2204_v24 = vsel %vm2202_vm0, %v2203_v4, %v2201_v39  ;;  %s6656_s19 = smov (!%p2240_p9, %s2244_s19), 1.0  ;;  %vm2264_vm0 = vmand %vm2143_vm1, %vm2263_vm4 }
 0xa7a   :  { %v2215_v9 = vsel %vm2213_vm15, %v2214_v31, %v2204_v24  ;;  %s6658_s11 = smov (!%p2257_p10, %s2261_s11), 1.0  ;;  %v2254_v50 = vstv %s6656_s19  ;;  %vm2267_vm15 = vmand %vm2147_vm11, %vm2263_vm4 }
 0xa7b   :  { %v2218_v26 = vsel %vm6007_vm14, %v2217_v45, %v2215_v9  ;;  %vm2270_vm5 = vmand %vm2151_vm12, %vm2263_vm4  ;;  %v2271_v43 = vstv %s6658_s11 }
 0xa7c   :  { %v2221_v19 = vsel %vm2219_vm7, %v2220_v7, %v2218_v26 }
 0xa7d   :  { %v2232_v57 = vsel %vm2230_vm2, %v2231_v59, %v2221_v19 }
 0xa7e   :  { %v2235_v61 = vsel %vm6034_vm9, %v2234_v18, %v2232_v57 }
 0xa7f   :  { %v2238_v49 = vsel %vm2236_vm8, %v2237_v22, %v2235_v61 }
 0xa80   :  { %v2249_v36 = vsel %vm2247_vm3, %v2248_v27, %v2238_v49 }
 0xa81   :  { %v2252_v28 = vsel %vm2250_vm13, %v2251_v56, %v2249_v36 }
 0xa82   :  { %v2255_v8 = vsel %vm2253_vm6, %v2254_v50, %v2252_v28 }
 0xa83   :  { %v2266_v29 = vsel %vm2264_vm0, %v2265_v0, %v2255_v8 }
 0xa84   :  { %v2269_v25 = vsel %vm2267_vm15, %v2268_v13, %v2266_v29 }
 0xa85   :  { %v2272_v38 = vsel %vm2270_vm5, %v2271_v43, %v2269_v25 }
 0xa86   :  { %2273 = vst [vmem:[#allocation7] sm:$0xff] %v2272_v38 }
 0xa87   :  { %2889 = shalt.err (!%p2886_p1)
}
 0xa88   :  { %s6642_s27 = sld [smem:[#allocation48_spill]] }
 0xa8e   :  { %2283 = dma.vmem_to_hbm [thread:$0]  %s2281_s25, 128, %s6642_s27, [#allocation4]  }
 0xa8f   :  { %3046 = dma.done.wait [#allocation4], 128  }
 0xa90   :  { %3047 = vsyncadd [#allocation4], 4294967168 }
 0xa91   :  { %2287 = vsyncpa [#allocation3], 1 }
 0xa92   :  { %2288 = vsyncpa [#allocation6], 1 }
 0xa93   :  { %2289 = vsyncpa [#allocation4], 1 }

</bundles_post_ra>
